<compile_context>
chip_gen: v7x
topology: tpu7x:2x2x1
jax: 0.10.0
libtpu: 0.0.40
codegen_flags: <defaults>
</compile_context>

<pallas_src>
import functools
import math

import jax
import jax.numpy as jnp
from jax.experimental import pallas as pl
from jax.experimental.pallas import tpu as pltpu

LANE = 128       # channel dims padded to a multiple of the TPU lane width
_SUBLANE = 8


def _round_up(x, m):
    return (x + m - 1) // m * m


def _pick_row_tile(Ho, Wo):
    """Largest divisor of Ho that is <= max(8, ceil(256 / Wo)) rows."""
    want = min(Ho, max(8, -(-256 // Wo)))
    for t in range(want, 0, -1):
        if Ho % t == 0:
            return t
    return Ho


# ----------------------------- Pallas kernels ------------------------------

def _conv1_kernel(*refs, TM, Wo, K, Cout, eh, ew, Cs, has_shortcut):
    """relu(bn1(x)) -> 3x3 conv (stride folded into layout) [+ 1x1 shortcut].

    Row-tiled: grid = (N, Ho//TM).  The full input plane is resident in VMEM
    (DMA'd once per image); only the output tile, the bf16 padded tile and the
    bf16 im2col tile are per-step.  One deep matmul: K_contract = ntaps*K.
    """
    if has_shortcut:
        x_ref, s_ref, b_ref, w_ref, ws_ref, h_ref, sc_ref, pad_ref, col_ref = refs
    else:
        x_ref, s_ref, b_ref, w_ref, h_ref, pad_ref, col_ref = refs
        ws_ref = sc_ref = None

    r = pl.program_id(1)
    nr = pl.num_programs(1)
    row0 = pl.multiple_of(r * TM, TM)

    scale = s_ref[...].reshape(1, 1, K).astype(jnp.float32)
    bias = b_ref[...].reshape(1, 1, K).astype(jnp.float32)

    def act(rows):
        return jnp.maximum(rows.astype(jnp.float32) * scale + bias,
                           0.0).astype(jnp.bfloat16)

    # ---- padded (halo) activation tile in VMEM, bf16 -----------------------
    # interior rows of this tile
    pad_ref[1:TM + 1, 1:Wo + 1, :] = act(x_ref[0, pl.ds(row0, TM), :, :])

    # top halo row: previous activation row, or zeros for the first tile
    @pl.when(r == 0)
    def _():
        pad_ref[0:1, :, :] = jnp.zeros((1, pad_ref.shape[1], K), jnp.bfloat16)

    @pl.when(r > 0)
    def _():
        pad_ref[0:1, 1:Wo + 1, :] = act(x_ref[0, pl.ds(row0 - 1, 1), :, :])

    if eh == 2:   # 3x3 stride-1 conv also needs a bottom halo row
        @pl.when(r == nr - 1)
        def _():
            pad_ref[TM + 1:TM + 2, :, :] = jnp.zeros(
                (1, pad_ref.shape[1], K), jnp.bfloat16)

        @pl.when(r < nr - 1)
        def _():
            pad_ref[TM + 1:TM + 2, 1:Wo + 1, :] = act(
                x_ref[0, pl.ds(row0 + TM, 1), :, :])

    # halo columns only (interior is fully overwritten every step)
    pad_ref[:, 0:1, :] = jnp.zeros((pad_ref.shape[0], 1, K), jnp.bfloat16)
    if ew == 2:
        pad_ref[:, Wo + 1:Wo + 2, :] = jnp.zeros(
            (pad_ref.shape[0], 1, K), jnp.bfloat16)

    # ---- im2col (bf16) + ONE deep matmul (K_contract = ntaps*K) ------------
    nw = ew + 1
    for dh in range(eh + 1):
        for dw in range(nw):
            t = dh * nw + dw
            col_ref[:, t * K:(t + 1) * K] = (
                pad_ref[dh:dh + TM, dw:dw + Wo, :].reshape(TM * Wo, K))
    h = jnp.dot(col_ref[...], w_ref[...], preferred_element_type=jnp.float32)
    h_ref[...] = h.reshape(1, TM, Wo, Cout).astype(h_ref.dtype)

    if has_shortcut:
        # 1x1 (strided) shortcut conv on the pre-activation.  In the
        # space-to-depth layout the strided samples are the first Cs channels.
        a_sc = pad_ref[1:TM + 1, 1:Wo + 1, :Cs].reshape(TM * Wo, Cs)
        sc = jnp.dot(a_sc, ws_ref[...], preferred_element_type=jnp.float32)
        sc_ref[...] = sc.reshape(1, TM, Wo, Cout).astype(sc_ref.dtype)


def _conv2_ge_res_kernel(h_ref, s_ref, b_ref, w_ref, sc_ref, y_ref,
                         pad_ref, col_ref, acc_ref, *, Ho, Wo, C):
    """relu(bn2(h)) -> 3x3 conv -> GE-theta-minus gate -> residual add.

    dw taps are folded (K_contract = 3*C); accumulation lives in a VMEM f32
    scratch.  Kept un-tiled spatially because of the global average pool.
    """
    scale = s_ref[...].reshape(1, 1, C).astype(jnp.float32)
    bias = b_ref[...].reshape(1, 1, C).astype(jnp.float32)
    a = jnp.maximum(h_ref[0].astype(jnp.float32) * scale + bias,
                    0.0).astype(jnp.bfloat16)

    # padded activation (bf16): interior written, only the halo is zeroed
    pad_ref[1:Ho + 1, 1:Wo + 1, :] = a
    pad_ref[0:1, :, :] = jnp.zeros((1, pad_ref.shape[1], C), jnp.bfloat16)
    pad_ref[Ho + 1:Ho + 2, :, :] = jnp.zeros((1, pad_ref.shape[1], C),
                                             jnp.bfloat16)
    pad_ref[:, 0:1, :] = jnp.zeros((pad_ref.shape[0], 1, C), jnp.bfloat16)
    pad_ref[:, Wo + 1:Wo + 2, :] = jnp.zeros((pad_ref.shape[0], 1, C),
                                             jnp.bfloat16)

    # dw-folded im2col: 3 matmuls of contraction depth 3*C
    for dh in range(3):
        for dw in range(3):
            col_ref[:, dw * C:(dw + 1) * C] = (
                pad_ref[dh:dh + Ho, dw:dw + Wo, :].reshape(Ho * Wo, C))
        part = jnp.dot(col_ref[...], w_ref[dh],
                       preferred_element_type=jnp.float32)
        if dh == 0:
            acc_ref[...] = part
        else:
            acc_ref[...] += part

    # GE theta-minus: sigmoid of the global average pool, broadcast per
    # channel, fused with the residual add.  dropRate=0.0 -> dropout skipped.
    o = acc_ref[...]
    gate = jax.nn.sigmoid(jnp.mean(o, axis=0, keepdims=True))     # (1, C)
    sc = sc_ref[0].astype(jnp.float32).reshape(Ho * Wo, C)
    y_ref[...] = (sc + o * gate).reshape(1, Ho, Wo, C).astype(y_ref.dtype)


# ----------------------------- pallas_call wrappers -------------------------

def fused_conv1(x, scale, bias, w_flat, ws, cs, eh, ew):
    """bn1+relu fused with conv1 (+ optional 1x1 shortcut conv), row-tiled.

    x: (N, Ho, Wo, K) bf16 (stride-2 layers pass space-to-depth, K=4*Cin).
    w_flat: (ntaps*K, Cout) bf16.  ws: (cs, Cout) bf16 or None.
    Returns (h_bf16, shortcut_bf16_or_None).
    """
    N, Ho, Wo, K = x.shape
    KK, Cout = w_flat.shape
    ntaps = (eh + 1) * (ew + 1)
    assert KK == ntaps * K
    TM = _pick_row_tile(Ho, Wo)
    R = Ho // TM
    Wpad = _round_up(Wo + ew, _SUBLANE)
    has_sc = ws is not None

    kern = functools.partial(_conv1_kernel, TM=TM, Wo=Wo, K=K, Cout=Cout,
                             eh=eh, ew=ew, Cs=cs, has_shortcut=has_sc)

    in_specs = [
        pl.BlockSpec((1, Ho, Wo, K), lambda n, r: (n, 0, 0, 0)),
        pl.BlockSpec((1, K), lambda n, r: (0, 0)),
        pl.BlockSpec((1, K), lambda n, r: (0, 0)),
        # grid-constant weight block (DMA'd once).
        pl.BlockSpec((KK, Cout), lambda n, r: (0, 0)),
    ]
    args = [x, scale.reshape(1, K), bias.reshape(1, K), w_flat]
    out_shape = [jax.ShapeDtypeStruct((N, Ho, Wo, Cout), jnp.bfloat16)]
    out_specs = [pl.BlockSpec((1, TM, Wo, Cout), lambda n, r: (n, r, 0, 0))]
    if has_sc:
        in_specs.append(pl.BlockSpec((cs, Cout), lambda n, r: (0, 0)))
        args.append(ws)
        out_shape.append(jax.ShapeDtypeStruct((N, Ho, Wo, Cout), jnp.bfloat16))
        out_specs.append(
            pl.BlockSpec((1, TM, Wo, Cout), lambda n, r: (n, r, 0, 0)))

    # explicit VMEM budget from the actual block + scratch footprint
    blk = Ho * Wo * K * 2 + 2 * K * 4 + KK * Cout * 2 + TM * Wo * Cout * 2
    if has_sc:
        blk += cs * Cout * 2 + TM * Wo * Cout * 2
    scratch = ((TM + eh) * Wpad * K * 2 + TM * Wo * KK * 2
               + TM * Wo * Cout * 4)
    vmem = min(64 << 20, max(32 << 20, 2 * (2 * blk + scratch)))

    res = pl.pallas_call(
        kern,
        out_shape=tuple(out_shape),
        grid=(N, R),
        in_specs=in_specs,
        out_specs=tuple(out_specs),
        scratch_shapes=[
            pltpu.VMEM((TM + eh, Wpad, K), jnp.bfloat16),   # padded act tile
            pltpu.VMEM((TM * Wo, KK), jnp.bfloat16),        # im2col tile
        ],
        compiler_params=pltpu.CompilerParams(
            dimension_semantics=("parallel", "parallel"),
            vmem_limit_bytes=vmem),
    )(*args)
    if has_sc:
        return res[0], res[1]
    return res[0], None


def fused_conv2_ge_residual(h, scale, bias, w2k, shortcut):
    """bn2+relu fused with conv2, GE theta-minus gate and residual add."""
    N, Ho, Wo, C = h.shape
    Wpad = _round_up(Wo + 2, _SUBLANE)
    kern = functools.partial(_conv2_ge_res_kernel, Ho=Ho, Wo=Wo, C=C)

    blk = 3 * Ho * Wo * C * 2 + 2 * C * 4 + 9 * C * C * 2
    scratch = ((Ho + 2) * Wpad * C * 2 + Ho * Wo * 3 * C * 2
               + 2 * Ho * Wo * C * 4)
    vmem = min(64 << 20, max(32 << 20, 2 * (2 * blk + scratch)))

    return pl.pallas_call(
        kern,
        out_shape=jax.ShapeDtypeStruct((N, Ho, Wo, C), jnp.bfloat16),
        grid=(N,),
        in_specs=[
            pl.BlockSpec((1, Ho, Wo, C), lambda n: (n, 0, 0, 0)),
            pl.BlockSpec((1, C), lambda n: (0, 0)),
            pl.BlockSpec((1, C), lambda n: (0, 0)),
            pl.BlockSpec((3, 3 * C, C), lambda n: (0, 0, 0)),
            pl.BlockSpec((1, Ho, Wo, C), lambda n: (n, 0, 0, 0)),
        ],
        out_specs=pl.BlockSpec((1, Ho, Wo, C), lambda n: (n, 0, 0, 0)),
        scratch_shapes=[
            pltpu.VMEM((Ho + 2, Wpad, C), jnp.bfloat16),     # padded act
            pltpu.VMEM((Ho * Wo, 3 * C), jnp.bfloat16),      # im2col (dw-folded)
            pltpu.VMEM((Ho * Wo, C), jnp.float32),           # f32 accumulator
        ],
        compiler_params=pltpu.CompilerParams(
            dimension_semantics=("parallel",), vmem_limit_bytes=vmem),
    )(h, scale.reshape(1, C), bias.reshape(1, C), w2k, shortcut)


# ----------------------------- model glue -----------------------------------

def _space_to_depth2(x):
    """(N, H, W, C) -> (N, H//2, W//2, 4C); channel index = (p*2+q)*C + c."""
    N, H, W, C = x.shape
    assert H % 2 == 0 and W % 2 == 0
    x = x.reshape(N, H // 2, 2, W // 2, 2, C)
    x = jnp.transpose(x, (0, 1, 3, 2, 4, 5))
    return x.reshape(N, H // 2, W // 2, 4 * C)


def _build_s2d_weight(w):
    """Fold a 3x3 stride-2 pad-1 conv weight into a 2x2 stride-1 conv over the
    space-to-depth input.  w: (3, 3, Cin, Cout) -> (4, 4*Cin, Cout)."""
    Cin, Cout = w.shape[2], w.shape[3]
    w4 = jnp.zeros((2, 2, 2, 2, Cin, Cout), w.dtype)   # [dh, dw, p, q, ci, co]
    for kh in range(3):
        dh, p = ((0, 1) if kh == 0 else (1, kh - 1))
        for kw in range(3):
            dw, q = ((0, 1) if kw == 0 else (1, kw - 1))
            w4 = w4.at[dh, dw, p, q].set(w[kh, kw])
    return w4.reshape(4, 4 * Cin, Cout)


def ge_block_forward(x, p):
    """One GE-theta-minus basic block.  x: (N, H, W, Cin_pad) NHWC bf16."""
    stride = p["stride"]
    xin = x if stride == 1 else _space_to_depth2(x)
    h, sc = fused_conv1(xin, p["s1k"], p["b1k"], p["w1k"], p["ws"],
                        p["cs"], p["eh"], p["ew"])
    if p["equal_in_out"]:
        sc = x                                   # identity shortcut (stride 1)
    return fused_conv2_ge_residual(h, p["s2"], p["b2"], p["w2k"], sc)


def network_block_forward(params, x_nchw):
    layers = params["layers"]
    cin, cin_p = params["in_planes"], params["in_planes_pad"]
    x = jnp.transpose(x_nchw, (0, 2, 3, 1))                  # NCHW -> NHWC
    x = jnp.pad(x, ((0, 0), (0, 0), (0, 0), (0, cin_p - cin)))
    x = x.astype(jnp.bfloat16)                # bf16 residual stream (HBM)
    for p in layers:
        x = ge_block_forward(x, p)
    x = x[..., :params["out_planes"]].astype(jnp.float32)
    return jnp.transpose(x, (0, 3, 1, 2))                    # NHWC -> NCHW


# ----------------------------- init ------------------------------------------

def _init_conv3x3(key, cin, cout):
    std = math.sqrt(2.0 / (9 * cout))
    return std * jax.random.normal(key, (3, 3, cin, cout), jnp.float32)


def _init_bn(key, c):
    k1, k2 = jax.random.split(key)
    gamma = 1.0 + 0.1 * jax.random.normal(k1, (c,), jnp.float32)
    beta = 0.1 * jax.random.normal(k2, (c,), jnp.float32)
    # eval-mode BN (running_mean=0, running_var=1, eps=1e-5) folded in
    return gamma / jnp.sqrt(1.0 + 1e-5), beta


def _pad_vec(v, n):
    return jnp.pad(v, (0, n - v.shape[0]))


def _pad_w(w, cin_p, cout_p):
    return jnp.pad(w, ((0, 0), (0, 0), (0, cin_p - w.shape[2]),
                       (0, cout_p - w.shape[3])))


def init_network_block(key, nb_layers, in_planes, out_planes, stride):
    # Mirrors NetworkBlock._make_layer: layer 0 -> (in_planes, out_planes,
    # stride); subsequent layers -> (out_planes, out_planes, 1).
    layers = []
    cout_p = _round_up(out_planes, LANE)
    for i in range(nb_layers):
        cin = in_planes if i == 0 else out_planes
        s = stride if i == 0 else 1
        cin_p = _round_up(cin, LANE)
        assert s in (1, 2)
        assert (cin != out_planes) or (s == 1), "identity shortcut needs stride 1"
        key, kb1, kb2, kw1, kw2, kws = jax.random.split(key, 6)
        bn1_s, bn1_b = _init_bn(kb1, cin)
        bn2_s, bn2_b = _init_bn(kb2, out_planes)
        w1 = _pad_w(_init_conv3x3(kw1, cin, out_planes), cin_p, cout_p)
        w2 = _pad_w(_init_conv3x3(kw2, out_planes, out_planes), cout_p, cout_p)
        bn1_s, bn1_b = _pad_vec(bn1_s, cin_p), _pad_vec(bn1_b, cin_p)
        bn2_s, bn2_b = _pad_vec(bn2_s, cout_p), _pad_vec(bn2_b, cout_p)

        p = {"stride": s, "equal_in_out": cin == out_planes, "cs": cin_p,
             "s2": bn2_s, "b2": bn2_b,
             "w2k": w2.reshape(3, 3 * cout_p, cout_p).astype(jnp.bfloat16)}
        if s == 1:
            p["w1k"] = w1.reshape(9 * cin_p, cout_p).astype(jnp.bfloat16)
            p["s1k"], p["b1k"] = bn1_s, bn1_b
            p["eh"] = p["ew"] = 2
        else:
            p["w1k"] = _build_s2d_weight(w1).reshape(
                16 * cin_p, cout_p).astype(jnp.bfloat16)
            p["s1k"], p["b1k"] = jnp.tile(bn1_s, 4), jnp.tile(bn1_b, 4)
            p["eh"] = p["ew"] = 1
        if not p["equal_in_out"]:
            std = math.sqrt(2.0 / out_planes)
            ws = std * jax.random.normal(kws, (cin, out_planes), jnp.float32)
            p["ws"] = jnp.pad(
                ws, ((0, cin_p - cin), (0, cout_p - out_planes))
            ).astype(jnp.bfloat16)
        else:
            p["ws"] = None
        layers.append(p)
    return {"layers": layers, "in_planes": in_planes,
            "in_planes_pad": _round_up(in_planes, LANE),
            "out_planes": out_planes}


# TODO(synk): mlp=True / extra_params=True / extent>0 GE variants and
# training-mode BatchNorm (batch statistics) + dropout>0 are not implemented.

if __name__ == "__main__":
    key = jax.random.PRNGKey(0)
    k_x, k_p = jax.random.split(key)

    N, in_planes, out_planes, S = 2, 4, 8, 16
    nb_layers, stride = 2, 2

    x = jax.random.normal(k_x, (N, in_planes, S, S), jnp.float32)   # NCHW
    params = init_network_block(k_p, nb_layers, in_planes, out_planes, stride)

    fwd = jax.jit(lambda xx: network_block_forward(params, xx))
    y = jax.block_until_ready(fwd(x))

    assert y.shape == (N, out_planes, S // stride, S // stride), y.shape
    assert bool(jnp.all(jnp.isfinite(y)))
    print("KERNEL_OK")
</pallas_src>

<mosaic_0001>
module attributes {stable_mosaic.version = 11 : i64} {
  func.func @_conv1_kernel(%arg0: i32, %arg1: i32, %arg2: memref<1x8x8x512xbf16, #tpu.memory_space<vmem>>, %arg3: memref<1x512xf32, #tpu.memory_space<vmem>>, %arg4: memref<1x512xf32, #tpu.memory_space<vmem>>, %arg5: memref<2048x128xbf16, #tpu.memory_space<vmem>>, %arg6: memref<128x128xbf16, #tpu.memory_space<vmem>>, %arg7: memref<1x8x8x128xbf16, #tpu.memory_space<vmem>>, %arg8: memref<1x8x8x128xbf16, #tpu.memory_space<vmem>>, %arg9: memref<9x16x512xbf16, #tpu.memory_space<vmem>>, %arg10: memref<64x2048xbf16, #tpu.memory_space<vmem>>) attributes {dimension_semantics = [#tpu.dimension_semantics<parallel>, #tpu.dimension_semantics<parallel>], iteration_bounds = array<i64: 2, 1>, scalar_prefetch = 0 : i64, scratch_operands = 2 : i64, tpu.core_type = #tpu.core_type<tc>, window_params = [{transform_indices = @transform_0, window_bounds = array<i64: 1, 8, 8, 512>}, {pipeline_mode = #tpu.pipeline_mode<synchronous>, transform_indices = @transform_1, window_bounds = array<i64: 1, 512>}, {pipeline_mode = #tpu.pipeline_mode<synchronous>, transform_indices = @transform_2, window_bounds = array<i64: 1, 512>}, {pipeline_mode = #tpu.pipeline_mode<synchronous>, transform_indices = @transform_3, window_bounds = array<i64: 2048, 128>}, {pipeline_mode = #tpu.pipeline_mode<synchronous>, transform_indices = @transform_4, window_bounds = array<i64: 128, 128>}, {transform_indices = @transform_5, window_bounds = array<i64: 1, 8, 8, 128>}, {transform_indices = @transform_6, window_bounds = array<i64: 1, 8, 8, 128>}]} {
    %c8_i32 = arith.constant 8 : i32
    %0 = arith.muli %arg1, %c8_i32 : i32
    %1 = tpu.assume_multiple %0, 8 : i32
    %c0 = arith.constant 0 : index
    %c0_0 = arith.constant 0 : index
    %2 = vector.load %arg3[%c0, %c0_0] : memref<1x512xf32, #tpu.memory_space<vmem>>, vector<1x512xf32>
    %3 = vector.shape_cast %2 : vector<1x512xf32> to vector<1x1x512xf32>
    %c0_1 = arith.constant 0 : index
    %c0_2 = arith.constant 0 : index
    %4 = vector.load %arg4[%c0_1, %c0_2] : memref<1x512xf32, #tpu.memory_space<vmem>>, vector<1x512xf32>
    %5 = vector.shape_cast %4 : vector<1x512xf32> to vector<1x1x512xf32>
    %c0_3 = arith.constant 0 : index
    %6 = arith.index_cast %1 : i32 to index
    %c0_4 = arith.constant 0 : index
    %c0_5 = arith.constant 0 : index
    %7 = vector.load %arg2[%c0_3, %6, %c0_4, %c0_5] : memref<1x8x8x512xbf16, #tpu.memory_space<vmem>>, vector<1x8x8x512xbf16>
    %8 = vector.shape_cast %7 : vector<1x8x8x512xbf16> to vector<8x8x512xbf16>
    %9 = arith.extf %8 : vector<8x8x512xbf16> to vector<8x8x512xf32>
    %10 = vector.broadcast %3 : vector<1x1x512xf32> to vector<8x8x512xf32>
    %11 = arith.mulf %9, %10 : vector<8x8x512xf32>
    %12 = vector.broadcast %5 : vector<1x1x512xf32> to vector<8x8x512xf32>
    %13 = arith.addf %11, %12 : vector<8x8x512xf32>
    %cst = arith.constant 0.000000e+00 : f32
    %14 = vector.broadcast %cst : f32 to vector<8x8x512xf32>
    %15 = arith.maximumf %13, %14 : vector<8x8x512xf32>
    %16 = arith.truncf %15 : vector<8x8x512xf32> to vector<8x8x512xbf16>
    %c1 = arith.constant 1 : index
    %c1_6 = arith.constant 1 : index
    %c0_7 = arith.constant 0 : index
    %17 = vector.load %arg9[%c1, %c1_6, %c0_7] : memref<9x16x512xbf16, #tpu.memory_space<vmem>>, vector<8x8x512xbf16>
    tpu.vector_store %arg9[%c1, %c1_6, %c0_7], %16 {strides = array<i32>} : memref<9x16x512xbf16, #tpu.memory_space<vmem>>, vector<8x8x512xbf16>,
    %c0_i32 = arith.constant 0 : i32
    %18 = arith.cmpi eq, %arg1, %c0_i32 : i32
    %19 = arith.extui %18 : i1 to i32
    %c0_i32_8 = arith.constant 0 : i32
    %20 = arith.cmpi ne, %19, %c0_i32_8 : i32
    scf.if %20 {
      %cst_51 = arith.constant 0.000000e+00 : bf16
      %51 = vector.broadcast %cst_51 : bf16 to vector<1x16x512xbf16>
      %c0_52 = arith.constant 0 : index
      %c0_53 = arith.constant 0 : index
      %c0_54 = arith.constant 0 : index
      %52 = vector.load %arg9[%c0_52, %c0_53, %c0_54] : memref<9x16x512xbf16, #tpu.memory_space<vmem>>, vector<1x16x512xbf16>
      tpu.vector_store %arg9[%c0_52, %c0_53, %c0_54], %51 {strides = array<i32>} : memref<9x16x512xbf16, #tpu.memory_space<vmem>>, vector<1x16x512xbf16>,
    } else {
    }
    %c0_i32_9 = arith.constant 0 : i32
    %21 = arith.cmpi sgt, %arg1, %c0_i32_9 : i32
    %22 = arith.extui %21 : i1 to i32
    %c0_i32_10 = arith.constant 0 : i32
    %23 = arith.cmpi ne, %22, %c0_i32_10 : i32
    scf.if %23 {
      %c1_i32 = arith.constant 1 : i32
      %51 = arith.subi %1, %c1_i32 : i32
      %c0_51 = arith.constant 0 : index
      %52 = arith.index_cast %51 : i32 to index
      %c0_52 = arith.constant 0 : index
      %c0_53 = arith.constant 0 : index
      %53 = vector.load %arg2[%c0_51, %52, %c0_52, %c0_53] : memref<1x8x8x512xbf16, #tpu.memory_space<vmem>>, vector<1x1x8x512xbf16>
      %54 = vector.shape_cast %53 : vector<1x1x8x512xbf16> to vector<1x8x512xbf16>
      %55 = arith.extf %54 : vector<1x8x512xbf16> to vector<1x8x512xf32>
      %56 = vector.broadcast %3 : vector<1x1x512xf32> to vector<1x8x512xf32>
      %57 = arith.mulf %55, %56 : vector<1x8x512xf32>
      %58 = vector.broadcast %5 : vector<1x1x512xf32> to vector<1x8x512xf32>
      %59 = arith.addf %57, %58 : vector<1x8x512xf32>
      %cst_54 = arith.constant 0.000000e+00 : f32
      %60 = vector.broadcast %cst_54 : f32 to vector<1x8x512xf32>
      %61 = arith.maximumf %59, %60 : vector<1x8x512xf32>
      %62 = arith.truncf %61 : vector<1x8x512xf32> to vector<1x8x512xbf16>
      %c0_55 = arith.constant 0 : index
      %c1_56 = arith.constant 1 : index
      %c0_57 = arith.constant 0 : index
      %63 = vector.load %arg9[%c0_55, %c1_56, %c0_57] : memref<9x16x512xbf16, #tpu.memory_space<vmem>>, vector<1x8x512xbf16>
      tpu.vector_store %arg9[%c0_55, %c1_56, %c0_57], %62 {strides = array<i32>} : memref<9x16x512xbf16, #tpu.memory_space<vmem>>, vector<1x8x512xbf16>,
    } else {
    }
    %cst_11 = arith.constant 0.000000e+00 : bf16
    %24 = vector.broadcast %cst_11 : bf16 to vector<9x1x512xbf16>
    %c0_12 = arith.constant 0 : index
    %c0_13 = arith.constant 0 : index
    %c0_14 = arith.constant 0 : index
    %25 = vector.load %arg9[%c0_12, %c0_13, %c0_14] : memref<9x16x512xbf16, #tpu.memory_space<vmem>>, vector<9x1x512xbf16>
    tpu.vector_store %arg9[%c0_12, %c0_13, %c0_14], %24 {strides = array<i32>} : memref<9x16x512xbf16, #tpu.memory_space<vmem>>, vector<9x1x512xbf16>,
    %c0_15 = arith.constant 0 : index
    %c0_16 = arith.constant 0 : index
    %c0_17 = arith.constant 0 : index
    %26 = vector.load %arg9[%c0_15, %c0_16, %c0_17] : memref<9x16x512xbf16, #tpu.memory_space<vmem>>, vector<8x8x512xbf16>
    %27 = vector.shape_cast %26 : vector<8x8x512xbf16> to vector<64x512xbf16>
    %c0_18 = arith.constant 0 : index
    %c0_19 = arith.constant 0 : index
    %28 = vector.load %arg10[%c0_18, %c0_19] : memref<64x2048xbf16, #tpu.memory_space<vmem>>, vector<64x512xbf16>
    tpu.vector_store %arg10[%c0_18, %c0_19], %27 {strides = array<i32>} : memref<64x2048xbf16, #tpu.memory_space<vmem>>, vector<64x512xbf16>,
    %c0_20 = arith.constant 0 : index
    %c1_21 = arith.constant 1 : index
    %c0_22 = arith.constant 0 : index
    %29 = vector.load %arg9[%c0_20, %c1_21, %c0_22] : memref<9x16x512xbf16, #tpu.memory_space<vmem>>, vector<8x8x512xbf16>
    %30 = vector.shape_cast %29 : vector<8x8x512xbf16> to vector<64x512xbf16>
    %c0_23 = arith.constant 0 : index
    %c512 = arith.constant 512 : index
    %31 = vector.load %arg10[%c0_23, %c512] : memref<64x2048xbf16, #tpu.memory_space<vmem>>, vector<64x512xbf16>
    tpu.vector_store %arg10[%c0_23, %c512], %30 {strides = array<i32>} : memref<64x2048xbf16, #tpu.memory_space<vmem>>, vector<64x512xbf16>,
    %c1_24 = arith.constant 1 : index
    %c0_25 = arith.constant 0 : index
    %c0_26 = arith.constant 0 : index
    %32 = vector.load %arg9[%c1_24, %c0_25, %c0_26] : memref<9x16x512xbf16, #tpu.memory_space<vmem>>, vector<8x8x512xbf16>
    %33 = vector.shape_cast %32 : vector<8x8x512xbf16> to vector<64x512xbf16>
    %c0_27 = arith.constant 0 : index
    %c1024 = arith.constant 1024 : index
    %34 = vector.load %arg10[%c0_27, %c1024] : memref<64x2048xbf16, #tpu.memory_space<vmem>>, vector<64x512xbf16>
    tpu.vector_store %arg10[%c0_27, %c1024], %33 {strides = array<i32>} : memref<64x2048xbf16, #tpu.memory_space<vmem>>, vector<64x512xbf16>,
    %c1_28 = arith.constant 1 : index
    %c1_29 = arith.constant 1 : index
    %c0_30 = arith.constant 0 : index
    %35 = vector.load %arg9[%c1_28, %c1_29, %c0_30] : memref<9x16x512xbf16, #tpu.memory_space<vmem>>, vector<8x8x512xbf16>
    %36 = vector.shape_cast %35 : vector<8x8x512xbf16> to vector<64x512xbf16>
    %c0_31 = arith.constant 0 : index
    %c1536 = arith.constant 1536 : index
    %37 = vector.load %arg10[%c0_31, %c1536] : memref<64x2048xbf16, #tpu.memory_space<vmem>>, vector<64x512xbf16>
    tpu.vector_store %arg10[%c0_31, %c1536], %36 {strides = array<i32>} : memref<64x2048xbf16, #tpu.memory_space<vmem>>, vector<64x512xbf16>,
    %c0_32 = arith.constant 0 : index
    %c0_33 = arith.constant 0 : index
    %38 = vector.load %arg10[%c0_32, %c0_33] : memref<64x2048xbf16, #tpu.memory_space<vmem>>, vector<64x2048xbf16>
    %c0_34 = arith.constant 0 : index
    %c0_35 = arith.constant 0 : index
    %39 = vector.load %arg5[%c0_34, %c0_35] : memref<2048x128xbf16, #tpu.memory_space<vmem>>, vector<2048x128xbf16>
    %cst_36 = arith.constant dense<0.000000e+00> : vector<64x128xf32>
    %40 = tpu.matmul %38, %39, %cst_36 {dimension_numbers = #tpu.dot_dimension_numbers<[1], [0], [0], [1], [0, 0, 1, 1], [], []>} : vector<64x2048xbf16>, vector<2048x128xbf16>, vector<64x128xf32> -> vector<64x128xf32>
    %41 = vector.shape_cast %40 : vector<64x128xf32> to vector<1x8x8x128xf32>
    %42 = arith.truncf %41 : vector<1x8x8x128xf32> to vector<1x8x8x128xbf16>
    %c0_37 = arith.constant 0 : index
    %c0_38 = arith.constant 0 : index
    %c0_39 = arith.constant 0 : index
    %c0_40 = arith.constant 0 : index
    %43 = vector.load %arg7[%c0_37, %c0_38, %c0_39, %c0_40] : memref<1x8x8x128xbf16, #tpu.memory_space<vmem>>, vector<1x8x8x128xbf16>
    tpu.vector_store %arg7[%c0_37, %c0_38, %c0_39, %c0_40], %42 {strides = array<i32>} : memref<1x8x8x128xbf16, #tpu.memory_space<vmem>>, vector<1x8x8x128xbf16>,
    %c1_41 = arith.constant 1 : index
    %c1_42 = arith.constant 1 : index
    %c0_43 = arith.constant 0 : index
    %44 = vector.load %arg9[%c1_41, %c1_42, %c0_43] : memref<9x16x512xbf16, #tpu.memory_space<vmem>>, vector<8x8x128xbf16>
    %45 = vector.shape_cast %44 : vector<8x8x128xbf16> to vector<64x128xbf16>
    %c0_44 = arith.constant 0 : index
    %c0_45 = arith.constant 0 : index
    %46 = vector.load %arg6[%c0_44, %c0_45] : memref<128x128xbf16, #tpu.memory_space<vmem>>, vector<128x128xbf16>
    %cst_46 = arith.constant dense<0.000000e+00> : vector<64x128xf32>
    %47 = tpu.matmul %45, %46, %cst_46 {dimension_numbers = #tpu.dot_dimension_numbers<[1], [0], [0], [1], [0, 0, 1, 1], [], []>} : vector<64x128xbf16>, vector<128x128xbf16>, vector<64x128xf32> -> vector<64x128xf32>
    %48 = vector.shape_cast %47 : vector<64x128xf32> to vector<1x8x8x128xf32>
    %49 = arith.truncf %48 : vector<1x8x8x128xf32> to vector<1x8x8x128xbf16>
    %c0_47 = arith.constant 0 : index
    %c0_48 = arith.constant 0 : index
    %c0_49 = arith.constant 0 : index
    %c0_50 = arith.constant 0 : index
    %50 = vector.load %arg8[%c0_47, %c0_48, %c0_49, %c0_50] : memref<1x8x8x128xbf16, #tpu.memory_space<vmem>>, vector<1x8x8x128xbf16>
    tpu.vector_store %arg8[%c0_47, %c0_48, %c0_49, %c0_50], %49 {strides = array<i32>} : memref<1x8x8x128xbf16, #tpu.memory_space<vmem>>, vector<1x8x8x128xbf16>,
    return
  }
  func.func @transform_0(%arg0: i32, %arg1: i32) -> (i32, i32, i32, i32) {
    %c0_i32 = arith.constant 0 : i32
    %c0_i32_0 = arith.constant 0 : i32
    %c0_i32_1 = arith.constant 0 : i32
    %c0_i32_2 = arith.constant 0 : i32
    return %arg0, %c0_i32, %c0_i32_0, %c0_i32_1 : i32, i32, i32, i32
  }
  func.func @transform_1(%arg0: i32, %arg1: i32) -> (i32, i32) {
    %c0_i32 = arith.constant 0 : i32
    %c0_i32_0 = arith.constant 0 : i32
    %c0_i32_1 = arith.constant 0 : i32
    return %c0_i32, %c0_i32_0 : i32, i32
  }
  func.func @transform_2(%arg0: i32, %arg1: i32) -> (i32, i32) {
    %c0_i32 = arith.constant 0 : i32
    %c0_i32_0 = arith.constant 0 : i32
    %c0_i32_1 = arith.constant 0 : i32
    return %c0_i32, %c0_i32_0 : i32, i32
  }
  func.func @transform_3(%arg0: i32, %arg1: i32) -> (i32, i32) {
    %c0_i32 = arith.constant 0 : i32
    %c0_i32_0 = arith.constant 0 : i32
    %c0_i32_1 = arith.constant 0 : i32
    return %c0_i32, %c0_i32_0 : i32, i32
  }
  func.func @transform_4(%arg0: i32, %arg1: i32) -> (i32, i32) {
    %c0_i32 = arith.constant 0 : i32
    %c0_i32_0 = arith.constant 0 : i32
    %c0_i32_1 = arith.constant 0 : i32
    return %c0_i32, %c0_i32_0 : i32, i32
  }
  func.func @transform_5(%arg0: i32, %arg1: i32) -> (i32, i32, i32, i32) {
    %c0_i32 = arith.constant 0 : i32
    %c0_i32_0 = arith.constant 0 : i32
    %c0_i32_1 = arith.constant 0 : i32
    return %arg0, %arg1, %c0_i32, %c0_i32_0 : i32, i32, i32, i32
  }
  func.func @transform_6(%arg0: i32, %arg1: i32) -> (i32, i32, i32, i32) {
    %c0_i32 = arith.constant 0 : i32
    %c0_i32_0 = arith.constant 0 : i32
    %c0_i32_1 = arith.constant 0 : i32
    return %arg0, %arg1, %c0_i32, %c0_i32_0 : i32, i32, i32, i32
  }
}

module attributes {stable_mosaic.version = 11 : i64} {
  func.func @_conv2_ge_res_kernel(%arg0: i32, %arg1: memref<1x8x8x128xbf16, #tpu.memory_space<vmem>>, %arg2: memref<1x128xf32, #tpu.memory_space<vmem>>, %arg3: memref<1x128xf32, #tpu.memory_space<vmem>>, %arg4: memref<3x384x128xbf16, #tpu.memory_space<vmem>>, %arg5: memref<1x8x8x128xbf16, #tpu.memory_space<vmem>>, %arg6: memref<1x8x8x128xbf16, #tpu.memory_space<vmem>>, %arg7: memref<10x16x128xbf16, #tpu.memory_space<vmem>>, %arg8: memref<64x384xbf16, #tpu.memory_space<vmem>>, %arg9: memref<64x128xf32, #tpu.memory_space<vmem>>) attributes {dimension_semantics = [#tpu.dimension_semantics<parallel>], iteration_bounds = array<i64: 2>, scalar_prefetch = 0 : i64, scratch_operands = 3 : i64, tpu.core_type = #tpu.core_type<tc>, window_params = [{transform_indices = @transform_0, window_bounds = array<i64: 1, 8, 8, 128>}, {pipeline_mode = #tpu.pipeline_mode<synchronous>, transform_indices = @transform_1, window_bounds = array<i64: 1, 128>}, {pipeline_mode = #tpu.pipeline_mode<synchronous>, transform_indices = @transform_2, window_bounds = array<i64: 1, 128>}, {pipeline_mode = #tpu.pipeline_mode<synchronous>, transform_indices = @transform_3, window_bounds = array<i64: 3, 384, 128>}, {transform_indices = @transform_4, window_bounds = array<i64: 1, 8, 8, 128>}, {transform_indices = @transform_5, window_bounds = array<i64: 1, 8, 8, 128>}]} {
    %c0 = arith.constant 0 : index
    %c0_0 = arith.constant 0 : index
    %0 = vector.load %arg2[%c0, %c0_0] : memref<1x128xf32, #tpu.memory_space<vmem>>, vector<1x128xf32>
    %1 = vector.shape_cast %0 : vector<1x128xf32> to vector<1x1x128xf32>
    %c0_1 = arith.constant 0 : index
    %c0_2 = arith.constant 0 : index
    %2 = vector.load %arg3[%c0_1, %c0_2] : memref<1x128xf32, #tpu.memory_space<vmem>>, vector<1x128xf32>
    %3 = vector.shape_cast %2 : vector<1x128xf32> to vector<1x1x128xf32>
    %c0_3 = arith.constant 0 : index
    %c0_4 = arith.constant 0 : index
    %c0_5 = arith.constant 0 : index
    %c0_6 = arith.constant 0 : index
    %4 = vector.load %arg1[%c0_3, %c0_4, %c0_5, %c0_6] : memref<1x8x8x128xbf16, #tpu.memory_space<vmem>>, vector<1x8x8x128xbf16>
    %5 = vector.shape_cast %4 : vector<1x8x8x128xbf16> to vector<8x8x128xbf16>
    %6 = arith.extf %5 : vector<8x8x128xbf16> to vector<8x8x128xf32>
    %7 = vector.broadcast %1 : vector<1x1x128xf32> to vector<8x8x128xf32>
    %8 = arith.mulf %6, %7 : vector<8x8x128xf32>
    %9 = vector.broadcast %3 : vector<1x1x128xf32> to vector<8x8x128xf32>
    %10 = arith.addf %8, %9 : vector<8x8x128xf32>
    %cst = arith.constant 0.000000e+00 : f32
    %11 = vector.broadcast %cst : f32 to vector<8x8x128xf32>
    %12 = arith.maximumf %10, %11 : vector<8x8x128xf32>
    %13 = arith.truncf %12 : vector<8x8x128xf32> to vector<8x8x128xbf16>
    %c1 = arith.constant 1 : index
    %c1_7 = arith.constant 1 : index
    %c0_8 = arith.constant 0 : index
    %14 = vector.load %arg7[%c1, %c1_7, %c0_8] : memref<10x16x128xbf16, #tpu.memory_space<vmem>>, vector<8x8x128xbf16>
    tpu.vector_store %arg7[%c1, %c1_7, %c0_8], %13 {strides = array<i32>} : memref<10x16x128xbf16, #tpu.memory_space<vmem>>, vector<8x8x128xbf16>,
    %cst_9 = arith.constant 0.000000e+00 : bf16
    %15 = vector.broadcast %cst_9 : bf16 to vector<1x16x128xbf16>
    %c0_10 = arith.constant 0 : index
    %c0_11 = arith.constant 0 : index
    %c0_12 = arith.constant 0 : index
    %16 = vector.load %arg7[%c0_10, %c0_11, %c0_12] : memref<10x16x128xbf16, #tpu.memory_space<vmem>>, vector<1x16x128xbf16>
    tpu.vector_store %arg7[%c0_10, %c0_11, %c0_12], %15 {strides = array<i32>} : memref<10x16x128xbf16, #tpu.memory_space<vmem>>, vector<1x16x128xbf16>,
    %cst_13 = arith.constant 0.000000e+00 : bf16
    %17 = vector.broadcast %cst_13 : bf16 to vector<1x16x128xbf16>
    %c9 = arith.constant 9 : index
    %c0_14 = arith.constant 0 : index
    %c0_15 = arith.constant 0 : index
    %18 = vector.load %arg7[%c9, %c0_14, %c0_15] : memref<10x16x128xbf16, #tpu.memory_space<vmem>>, vector<1x16x128xbf16>
    tpu.vector_store %arg7[%c9, %c0_14, %c0_15], %17 {strides = array<i32>} : memref<10x16x128xbf16, #tpu.memory_space<vmem>>, vector<1x16x128xbf16>,
    %cst_16 = arith.constant 0.000000e+00 : bf16
    %19 = vector.broadcast %cst_16 : bf16 to vector<10x1x128xbf16>
    %c0_17 = arith.constant 0 : index
    %c0_18 = arith.constant 0 : index
    %c0_19 = arith.constant 0 : index
    %20 = vector.load %arg7[%c0_17, %c0_18, %c0_19] : memref<10x16x128xbf16, #tpu.memory_space<vmem>>, vector<10x1x128xbf16>
    tpu.vector_store %arg7[%c0_17, %c0_18, %c0_19], %19 {strides = array<i32>} : memref<10x16x128xbf16, #tpu.memory_space<vmem>>, vector<10x1x128xbf16>,
    %cst_20 = arith.constant 0.000000e+00 : bf16
    %21 = vector.broadcast %cst_20 : bf16 to vector<10x1x128xbf16>
    %c0_21 = arith.constant 0 : index
    %c9_22 = arith.constant 9 : index
    %c0_23 = arith.constant 0 : index
    %22 = vector.load %arg7[%c0_21, %c9_22, %c0_23] : memref<10x16x128xbf16, #tpu.memory_space<vmem>>, vector<10x1x128xbf16>
    tpu.vector_store %arg7[%c0_21, %c9_22, %c0_23], %21 {strides = array<i32>} : memref<10x16x128xbf16, #tpu.memory_space<vmem>>, vector<10x1x128xbf16>,
    %c0_24 = arith.constant 0 : index
    %c0_25 = arith.constant 0 : index
    %c0_26 = arith.constant 0 : index
    %23 = vector.load %arg7[%c0_24, %c0_25, %c0_26] : memref<10x16x128xbf16, #tpu.memory_space<vmem>>, vector<8x8x128xbf16>
    %24 = vector.shape_cast %23 : vector<8x8x128xbf16> to vector<64x128xbf16>
    %c0_27 = arith.constant 0 : index
    %c0_28 = arith.constant 0 : index
    %25 = vector.load %arg8[%c0_27, %c0_28] : memref<64x384xbf16, #tpu.memory_space<vmem>>, vector<64x128xbf16>
    tpu.vector_store %arg8[%c0_27, %c0_28], %24 {strides = array<i32>} : memref<64x384xbf16, #tpu.memory_space<vmem>>, vector<64x128xbf16>,
    %c0_29 = arith.constant 0 : index
    %c1_30 = arith.constant 1 : index
    %c0_31 = arith.constant 0 : index
    %26 = vector.load %arg7[%c0_29, %c1_30, %c0_31] : memref<10x16x128xbf16, #tpu.memory_space<vmem>>, vector<8x8x128xbf16>
    %27 = vector.shape_cast %26 : vector<8x8x128xbf16> to vector<64x128xbf16>
    %c0_32 = arith.constant 0 : index
    %c128 = arith.constant 128 : index
    %28 = vector.load %arg8[%c0_32, %c128] : memref<64x384xbf16, #tpu.memory_space<vmem>>, vector<64x128xbf16>
    tpu.vector_store %arg8[%c0_32, %c128], %27 {strides = array<i32>} : memref<64x384xbf16, #tpu.memory_space<vmem>>, vector<64x128xbf16>,
    %c0_33 = arith.constant 0 : index
    %c2 = arith.constant 2 : index
    %c0_34 = arith.constant 0 : index
    %29 = vector.load %arg7[%c0_33, %c2, %c0_34] : memref<10x16x128xbf16, #tpu.memory_space<vmem>>, vector<8x8x128xbf16>
    %30 = vector.shape_cast %29 : vector<8x8x128xbf16> to vector<64x128xbf16>
    %c0_35 = arith.constant 0 : index
    %c256 = arith.constant 256 : index
    %31 = vector.load %arg8[%c0_35, %c256] : memref<64x384xbf16, #tpu.memory_space<vmem>>, vector<64x128xbf16>
    tpu.vector_store %arg8[%c0_35, %c256], %30 {strides = array<i32>} : memref<64x384xbf16, #tpu.memory_space<vmem>>, vector<64x128xbf16>,
    %c0_36 = arith.constant 0 : index
    %c0_37 = arith.constant 0 : index
    %32 = vector.load %arg8[%c0_36, %c0_37] : memref<64x384xbf16, #tpu.memory_space<vmem>>, vector<64x384xbf16>
    %c0_38 = arith.constant 0 : index
    %c0_39 = arith.constant 0 : index
    %c0_40 = arith.constant 0 : index
    %33 = vector.load %arg4[%c0_38, %c0_39, %c0_40] : memref<3x384x128xbf16, #tpu.memory_space<vmem>>, vector<1x384x128xbf16>
    %34 = vector.shape_cast %33 : vector<1x384x128xbf16> to vector<384x128xbf16>
    %cst_41 = arith.constant dense<0.000000e+00> : vector<64x128xf32>
    %35 = tpu.matmul %32, %34, %cst_41 {dimension_numbers = #tpu.dot_dimension_numbers<[1], [0], [0], [1], [0, 0, 1, 1], [], []>} : vector<64x384xbf16>, vector<384x128xbf16>, vector<64x128xf32> -> vector<64x128xf32>
    %c0_42 = arith.constant 0 : index
    %c0_43 = arith.constant 0 : index
    %36 = vector.load %arg9[%c0_42, %c0_43] : memref<64x128xf32, #tpu.memory_space<vmem>>, vector<64x128xf32>
    tpu.vector_store %arg9[%c0_42, %c0_43], %35 {strides = array<i32>} : memref<64x128xf32, #tpu.memory_space<vmem>>, vector<64x128xf32>,
    %c1_44 = arith.constant 1 : index
    %c0_45 = arith.constant 0 : index
    %c0_46 = arith.constant 0 : index
    %37 = vector.load %arg7[%c1_44, %c0_45, %c0_46] : memref<10x16x128xbf16, #tpu.memory_space<vmem>>, vector<8x8x128xbf16>
    %38 = vector.shape_cast %37 : vector<8x8x128xbf16> to vector<64x128xbf16>
    %c0_47 = arith.constant 0 : index
    %c0_48 = arith.constant 0 : index
    %39 = vector.load %arg8[%c0_47, %c0_48] : memref<64x384xbf16, #tpu.memory_space<vmem>>, vector<64x128xbf16>
    tpu.vector_store %arg8[%c0_47, %c0_48], %38 {strides = array<i32>} : memref<64x384xbf16, #tpu.memory_space<vmem>>, vector<64x128xbf16>,
    %c1_49 = arith.constant 1 : index
    %c1_50 = arith.constant 1 : index
    %c0_51 = arith.constant 0 : index
    %40 = vector.load %arg7[%c1_49, %c1_50, %c0_51] : memref<10x16x128xbf16, #tpu.memory_space<vmem>>, vector<8x8x128xbf16>
    %41 = vector.shape_cast %40 : vector<8x8x128xbf16> to vector<64x128xbf16>
    %c0_52 = arith.constant 0 : index
    %c128_53 = arith.constant 128 : index
    %42 = vector.load %arg8[%c0_52, %c128_53] : memref<64x384xbf16, #tpu.memory_space<vmem>>, vector<64x128xbf16>
    tpu.vector_store %arg8[%c0_52, %c128_53], %41 {strides = array<i32>} : memref<64x384xbf16, #tpu.memory_space<vmem>>, vector<64x128xbf16>,
    %c1_54 = arith.constant 1 : index
    %c2_55 = arith.constant 2 : index
    %c0_56 = arith.constant 0 : index
    %43 = vector.load %arg7[%c1_54, %c2_55, %c0_56] : memref<10x16x128xbf16, #tpu.memory_space<vmem>>, vector<8x8x128xbf16>
    %44 = vector.shape_cast %43 : vector<8x8x128xbf16> to vector<64x128xbf16>
    %c0_57 = arith.constant 0 : index
    %c256_58 = arith.constant 256 : index
    %45 = vector.load %arg8[%c0_57, %c256_58] : memref<64x384xbf16, #tpu.memory_space<vmem>>, vector<64x128xbf16>
    tpu.vector_store %arg8[%c0_57, %c256_58], %44 {strides = array<i32>} : memref<64x384xbf16, #tpu.memory_space<vmem>>, vector<64x128xbf16>,
    %c0_59 = arith.constant 0 : index
    %c0_60 = arith.constant 0 : index
    %46 = vector.load %arg8[%c0_59, %c0_60] : memref<64x384xbf16, #tpu.memory_space<vmem>>, vector<64x384xbf16>
    %c1_61 = arith.constant 1 : index
    %c0_62 = arith.constant 0 : index
    %c0_63 = arith.constant 0 : index
    %47 = vector.load %arg4[%c1_61, %c0_62, %c0_63] : memref<3x384x128xbf16, #tpu.memory_space<vmem>>, vector<1x384x128xbf16>
    %48 = vector.shape_cast %47 : vector<1x384x128xbf16> to vector<384x128xbf16>
    %cst_64 = arith.constant dense<0.000000e+00> : vector<64x128xf32>
    %49 = tpu.matmul %46, %48, %cst_64 {dimension_numbers = #tpu.dot_dimension_numbers<[1], [0], [0], [1], [0, 0, 1, 1], [], []>} : vector<64x384xbf16>, vector<384x128xbf16>, vector<64x128xf32> -> vector<64x128xf32>
    %c0_65 = arith.constant 0 : index
    %c0_66 = arith.constant 0 : index
    %50 = vector.load %arg9[%c0_65, %c0_66] : memref<64x128xf32, #tpu.memory_space<vmem>>, vector<64x128xf32>
    %51 = arith.addf %50, %49 : vector<64x128xf32>
    %c0_67 = arith.constant 0 : index
    %c0_68 = arith.constant 0 : index
    %52 = vector.load %arg9[%c0_67, %c0_68] : memref<64x128xf32, #tpu.memory_space<vmem>>, vector<64x128xf32>
    tpu.vector_store %arg9[%c0_67, %c0_68], %51 {strides = array<i32>} : memref<64x128xf32, #tpu.memory_space<vmem>>, vector<64x128xf32>,
    %c2_69 = arith.constant 2 : index
    %c0_70 = arith.constant 0 : index
    %c0_71 = arith.constant 0 : index
    %53 = vector.load %arg7[%c2_69, %c0_70, %c0_71] : memref<10x16x128xbf16, #tpu.memory_space<vmem>>, vector<8x8x128xbf16>
    %54 = vector.shape_cast %53 : vector<8x8x128xbf16> to vector<64x128xbf16>
    %c0_72 = arith.constant 0 : index
    %c0_73 = arith.constant 0 : index
    %55 = vector.load %arg8[%c0_72, %c0_73] : memref<64x384xbf16, #tpu.memory_space<vmem>>, vector<64x128xbf16>
    tpu.vector_store %arg8[%c0_72, %c0_73], %54 {strides = array<i32>} : memref<64x384xbf16, #tpu.memory_space<vmem>>, vector<64x128xbf16>,
    %c2_74 = arith.constant 2 : index
    %c1_75 = arith.constant 1 : index
    %c0_76 = arith.constant 0 : index
    %56 = vector.load %arg7[%c2_74, %c1_75, %c0_76] : memref<10x16x128xbf16, #tpu.memory_space<vmem>>, vector<8x8x128xbf16>
    %57 = vector.shape_cast %56 : vector<8x8x128xbf16> to vector<64x128xbf16>
    %c0_77 = arith.constant 0 : index
    %c128_78 = arith.constant 128 : index
    %58 = vector.load %arg8[%c0_77, %c128_78] : memref<64x384xbf16, #tpu.memory_space<vmem>>, vector<64x128xbf16>
    tpu.vector_store %arg8[%c0_77, %c128_78], %57 {strides = array<i32>} : memref<64x384xbf16, #tpu.memory_space<vmem>>, vector<64x128xbf16>,
    %c2_79 = arith.constant 2 : index
    %c2_80 = arith.constant 2 : index
    %c0_81 = arith.constant 0 : index
    %59 = vector.load %arg7[%c2_79, %c2_80, %c0_81] : memref<10x16x128xbf16, #tpu.memory_space<vmem>>, vector<8x8x128xbf16>
    %60 = vector.shape_cast %59 : vector<8x8x128xbf16> to vector<64x128xbf16>
    %c0_82 = arith.constant 0 : index
    %c256_83 = arith.constant 256 : index
    %61 = vector.load %arg8[%c0_82, %c256_83] : memref<64x384xbf16, #tpu.memory_space<vmem>>, vector<64x128xbf16>
    tpu.vector_store %arg8[%c0_82, %c256_83], %60 {strides = array<i32>} : memref<64x384xbf16, #tpu.memory_space<vmem>>, vector<64x128xbf16>,
    %c0_84 = arith.constant 0 : index
    %c0_85 = arith.constant 0 : index
    %62 = vector.load %arg8[%c0_84, %c0_85] : memref<64x384xbf16, #tpu.memory_space<vmem>>, vector<64x384xbf16>
    %c2_86 = arith.constant 2 : index
    %c0_87 = arith.constant 0 : index
    %c0_88 = arith.constant 0 : index
    %63 = vector.load %arg4[%c2_86, %c0_87, %c0_88] : memref<3x384x128xbf16, #tpu.memory_space<vmem>>, vector<1x384x128xbf16>
    %64 = vector.shape_cast %63 : vector<1x384x128xbf16> to vector<384x128xbf16>
    %cst_89 = arith.constant dense<0.000000e+00> : vector<64x128xf32>
    %65 = tpu.matmul %62, %64, %cst_89 {dimension_numbers = #tpu.dot_dimension_numbers<[1], [0], [0], [1], [0, 0, 1, 1], [], []>} : vector<64x384xbf16>, vector<384x128xbf16>, vector<64x128xf32> -> vector<64x128xf32>
    %c0_90 = arith.constant 0 : index
    %c0_91 = arith.constant 0 : index
    %66 = vector.load %arg9[%c0_90, %c0_91] : memref<64x128xf32, #tpu.memory_space<vmem>>, vector<64x128xf32>
    %67 = arith.addf %66, %65 : vector<64x128xf32>
    %c0_92 = arith.constant 0 : index
    %c0_93 = arith.constant 0 : index
    %68 = vector.load %arg9[%c0_92, %c0_93] : memref<64x128xf32, #tpu.memory_space<vmem>>, vector<64x128xf32>
    tpu.vector_store %arg9[%c0_92, %c0_93], %67 {strides = array<i32>} : memref<64x128xf32, #tpu.memory_space<vmem>>, vector<64x128xf32>,
    %c0_94 = arith.constant 0 : index
    %c0_95 = arith.constant 0 : index
    %69 = vector.load %arg9[%c0_94, %c0_95] : memref<64x128xf32, #tpu.memory_space<vmem>>, vector<64x128xf32>
    %cst_96 = arith.constant dense<0.000000e+00> : vector<128xf32>
    %70 = vector.multi_reduction <add>, %69, %cst_96 [0] : vector<64x128xf32> to vector<128xf32>
    %71 = vector.shape_cast %70 : vector<128xf32> to vector<1x128xf32>
    %cst_97 = arith.constant 6.400000e+01 : f32
    %72 = vector.broadcast %cst_97 : f32 to vector<1x128xf32>
    %73 = arith.divf %71, %72 : vector<1x128xf32>
    %74 = arith.negf %73 : vector<1x128xf32>
    %75 = math.exp %74 : vector<1x128xf32>
    %cst_98 = arith.constant 1.000000e+00 : f32
    %76 = vector.broadcast %cst_98 : f32 to vector<1x128xf32>
    %77 = arith.addf %76, %75 : vector<1x128xf32>
    %78 = arith.divf %76, %77 : vector<1x128xf32>
    %c0_99 = arith.constant 0 : index
    %c0_100 = arith.constant 0 : index
    %c0_101 = arith.constant 0 : index
    %c0_102 = arith.constant 0 : index
    %79 = vector.load %arg5[%c0_99, %c0_100, %c0_101, %c0_102] : memref<1x8x8x128xbf16, #tpu.memory_space<vmem>>, vector<1x8x8x128xbf16>
    %80 = vector.shape_cast %79 : vector<1x8x8x128xbf16> to vector<8x8x128xbf16>
    %81 = arith.extf %80 : vector<8x8x128xbf16> to vector<8x8x128xf32>
    %82 = vector.shape_cast %81 : vector<8x8x128xf32> to vector<64x128xf32>
    %83 = vector.broadcast %78 : vector<1x128xf32> to vector<64x128xf32>
    %84 = arith.mulf %69, %83 : vector<64x128xf32>
    %85 = arith.addf %82, %84 : vector<64x128xf32>
    %86 = vector.shape_cast %85 : vector<64x128xf32> to vector<1x8x8x128xf32>
    %87 = arith.truncf %86 : vector<1x8x8x128xf32> to vector<1x8x8x128xbf16>
    %c0_103 = arith.constant 0 : index
    %c0_104 = arith.constant 0 : index
    %c0_105 = arith.constant 0 : index
    %c0_106 = arith.constant 0 : index
    %88 = vector.load %arg6[%c0_103, %c0_104, %c0_105, %c0_106] : memref<1x8x8x128xbf16, #tpu.memory_space<vmem>>, vector<1x8x8x128xbf16>
    tpu.vector_store %arg6[%c0_103, %c0_104, %c0_105, %c0_106], %87 {strides = array<i32>} : memref<1x8x8x128xbf16, #tpu.memory_space<vmem>>, vector<1x8x8x128xbf16>,
    return
  }
  func.func @transform_0(%arg0: i32) -> (i32, i32, i32, i32) {
    %c0_i32 = arith.constant 0 : i32
    %c0_i32_0 = arith.constant 0 : i32
    %c0_i32_1 = arith.constant 0 : i32
    %c0_i32_2 = arith.constant 0 : i32
    return %arg0, %c0_i32, %c0_i32_0, %c0_i32_1 : i32, i32, i32, i32
  }
  func.func @transform_1(%arg0: i32) -> (i32, i32) {
    %c0_i32 = arith.constant 0 : i32
    %c0_i32_0 = arith.constant 0 : i32
    %c0_i32_1 = arith.constant 0 : i32
    return %c0_i32, %c0_i32_0 : i32, i32
  }
  func.func @transform_2(%arg0: i32) -> (i32, i32) {
    %c0_i32 = arith.constant 0 : i32
    %c0_i32_0 = arith.constant 0 : i32
    %c0_i32_1 = arith.constant 0 : i32
    return %c0_i32, %c0_i32_0 : i32, i32
  }
  func.func @transform_3(%arg0: i32) -> (i32, i32, i32) {
    %c0_i32 = arith.constant 0 : i32
    %c0_i32_0 = arith.constant 0 : i32
    %c0_i32_1 = arith.constant 0 : i32
    %c0_i32_2 = arith.constant 0 : i32
    return %c0_i32, %c0_i32_0, %c0_i32_1 : i32, i32, i32
  }
  func.func @transform_4(%arg0: i32) -> (i32, i32, i32, i32) {
    %c0_i32 = arith.constant 0 : i32
    %c0_i32_0 = arith.constant 0 : i32
    %c0_i32_1 = arith.constant 0 : i32
    %c0_i32_2 = arith.constant 0 : i32
    return %arg0, %c0_i32, %c0_i32_0, %c0_i32_1 : i32, i32, i32, i32
  }
  func.func @transform_5(%arg0: i32) -> (i32, i32, i32, i32) {
    %c0_i32 = arith.constant 0 : i32
    %c0_i32_0 = arith.constant 0 : i32
    %c0_i32_1 = arith.constant 0 : i32
    %c0_i32_2 = arith.constant 0 : i32
    return %arg0, %c0_i32, %c0_i32_0, %c0_i32_1 : i32, i32, i32, i32
  }
}

module attributes {stable_mosaic.version = 11 : i64} {
  func.func @_conv1_kernel(%arg0: i32, %arg1: i32, %arg2: memref<1x8x8x128xbf16, #tpu.memory_space<vmem>>, %arg3: memref<1x128xf32, #tpu.memory_space<vmem>>, %arg4: memref<1x128xf32, #tpu.memory_space<vmem>>, %arg5: memref<1152x128xbf16, #tpu.memory_space<vmem>>, %arg6: memref<1x8x8x128xbf16, #tpu.memory_space<vmem>>, %arg7: memref<10x16x128xbf16, #tpu.memory_space<vmem>>, %arg8: memref<64x1152xbf16, #tpu.memory_space<vmem>>) attributes {dimension_semantics = [#tpu.dimension_semantics<parallel>, #tpu.dimension_semantics<parallel>], iteration_bounds = array<i64: 2, 1>, scalar_prefetch = 0 : i64, scratch_operands = 2 : i64, tpu.core_type = #tpu.core_type<tc>, window_params = [{transform_indices = @transform_0, window_bounds = array<i64: 1, 8, 8, 128>}, {pipeline_mode = #tpu.pipeline_mode<synchronous>, transform_indices = @transform_1, window_bounds = array<i64: 1, 128>}, {pipeline_mode = #tpu.pipeline_mode<synchronous>, transform_indices = @transform_2, window_bounds = array<i64: 1, 128>}, {pipeline_mode = #tpu.pipeline_mode<synchronous>, transform_indices = @transform_3, window_bounds = array<i64: 1152, 128>}, {transform_indices = @transform_4, window_bounds = array<i64: 1, 8, 8, 128>}]} {
    %c8_i32 = arith.constant 8 : i32
    %0 = arith.muli %arg1, %c8_i32 : i32
    %1 = tpu.assume_multiple %0, 8 : i32
    %c0 = arith.constant 0 : index
    %c0_0 = arith.constant 0 : index
    %2 = vector.load %arg3[%c0, %c0_0] : memref<1x128xf32, #tpu.memory_space<vmem>>, vector<1x128xf32>
    %3 = vector.shape_cast %2 : vector<1x128xf32> to vector<1x1x128xf32>
    %c0_1 = arith.constant 0 : index
    %c0_2 = arith.constant 0 : index
    %4 = vector.load %arg4[%c0_1, %c0_2] : memref<1x128xf32, #tpu.memory_space<vmem>>, vector<1x128xf32>
    %5 = vector.shape_cast %4 : vector<1x128xf32> to vector<1x1x128xf32>
    %c0_3 = arith.constant 0 : index
    %6 = arith.index_cast %1 : i32 to index
    %c0_4 = arith.constant 0 : index
    %c0_5 = arith.constant 0 : index
    %7 = vector.load %arg2[%c0_3, %6, %c0_4, %c0_5] : memref<1x8x8x128xbf16, #tpu.memory_space<vmem>>, vector<1x8x8x128xbf16>
    %8 = vector.shape_cast %7 : vector<1x8x8x128xbf16> to vector<8x8x128xbf16>
    %9 = arith.extf %8 : vector<8x8x128xbf16> to vector<8x8x128xf32>
    %10 = vector.broadcast %3 : vector<1x1x128xf32> to vector<8x8x128xf32>
    %11 = arith.mulf %9, %10 : vector<8x8x128xf32>
    %12 = vector.broadcast %5 : vector<1x1x128xf32> to vector<8x8x128xf32>
    %13 = arith.addf %11, %12 : vector<8x8x128xf32>
    %cst = arith.constant 0.000000e+00 : f32
    %14 = vector.broadcast %cst : f32 to vector<8x8x128xf32>
    %15 = arith.maximumf %13, %14 : vector<8x8x128xf32>
    %16 = arith.truncf %15 : vector<8x8x128xf32> to vector<8x8x128xbf16>
    %c1 = arith.constant 1 : index
    %c1_6 = arith.constant 1 : index
    %c0_7 = arith.constant 0 : index
    %17 = vector.load %arg7[%c1, %c1_6, %c0_7] : memref<10x16x128xbf16, #tpu.memory_space<vmem>>, vector<8x8x128xbf16>
    tpu.vector_store %arg7[%c1, %c1_6, %c0_7], %16 {strides = array<i32>} : memref<10x16x128xbf16, #tpu.memory_space<vmem>>, vector<8x8x128xbf16>,
    %c0_i32 = arith.constant 0 : i32
    %18 = arith.cmpi eq, %arg1, %c0_i32 : i32
    %19 = arith.extui %18 : i1 to i32
    %c0_i32_8 = arith.constant 0 : i32
    %20 = arith.cmpi ne, %19, %c0_i32_8 : i32
    scf.if %20 {
      %cst_67 = arith.constant 0.000000e+00 : bf16
      %67 = vector.broadcast %cst_67 : bf16 to vector<1x16x128xbf16>
      %c0_68 = arith.constant 0 : index
      %c0_69 = arith.constant 0 : index
      %c0_70 = arith.constant 0 : index
      %68 = vector.load %arg7[%c0_68, %c0_69, %c0_70] : memref<10x16x128xbf16, #tpu.memory_space<vmem>>, vector<1x16x128xbf16>
      tpu.vector_store %arg7[%c0_68, %c0_69, %c0_70], %67 {strides = array<i32>} : memref<10x16x128xbf16, #tpu.memory_space<vmem>>, vector<1x16x128xbf16>,
    } else {
    }
    %c0_i32_9 = arith.constant 0 : i32
    %21 = arith.cmpi sgt, %arg1, %c0_i32_9 : i32
    %22 = arith.extui %21 : i1 to i32
    %c0_i32_10 = arith.constant 0 : i32
    %23 = arith.cmpi ne, %22, %c0_i32_10 : i32
    scf.if %23 {
      %c1_i32 = arith.constant 1 : i32
      %67 = arith.subi %1, %c1_i32 : i32
      %c0_67 = arith.constant 0 : index
      %68 = arith.index_cast %67 : i32 to index
      %c0_68 = arith.constant 0 : index
      %c0_69 = arith.constant 0 : index
      %69 = vector.load %arg2[%c0_67, %68, %c0_68, %c0_69] : memref<1x8x8x128xbf16, #tpu.memory_space<vmem>>, vector<1x1x8x128xbf16>
      %70 = vector.shape_cast %69 : vector<1x1x8x128xbf16> to vector<1x8x128xbf16>
      %71 = arith.extf %70 : vector<1x8x128xbf16> to vector<1x8x128xf32>
      %72 = vector.broadcast %3 : vector<1x1x128xf32> to vector<1x8x128xf32>
      %73 = arith.mulf %71, %72 : vector<1x8x128xf32>
      %74 = vector.broadcast %5 : vector<1x1x128xf32> to vector<1x8x128xf32>
      %75 = arith.addf %73, %74 : vector<1x8x128xf32>
      %cst_70 = arith.constant 0.000000e+00 : f32
      %76 = vector.broadcast %cst_70 : f32 to vector<1x8x128xf32>
      %77 = arith.maximumf %75, %76 : vector<1x8x128xf32>
      %78 = arith.truncf %77 : vector<1x8x128xf32> to vector<1x8x128xbf16>
      %c0_71 = arith.constant 0 : index
      %c1_72 = arith.constant 1 : index
      %c0_73 = arith.constant 0 : index
      %79 = vector.load %arg7[%c0_71, %c1_72, %c0_73] : memref<10x16x128xbf16, #tpu.memory_space<vmem>>, vector<1x8x128xbf16>
      tpu.vector_store %arg7[%c0_71, %c1_72, %c0_73], %78 {strides = array<i32>} : memref<10x16x128xbf16, #tpu.memory_space<vmem>>, vector<1x8x128xbf16>,
    } else {
    }
    %c0_i32_11 = arith.constant 0 : i32
    %24 = arith.cmpi eq, %arg1, %c0_i32_11 : i32
    %25 = arith.extui %24 : i1 to i32
    %c0_i32_12 = arith.constant 0 : i32
    %26 = arith.cmpi ne, %25, %c0_i32_12 : i32
    scf.if %26 {
      %cst_67 = arith.constant 0.000000e+00 : bf16
      %67 = vector.broadcast %cst_67 : bf16 to vector<1x16x128xbf16>
      %c9_68 = arith.constant 9 : index
      %c0_69 = arith.constant 0 : index
      %c0_70 = arith.constant 0 : index
      %68 = vector.load %arg7[%c9_68, %c0_69, %c0_70] : memref<10x16x128xbf16, #tpu.memory_space<vmem>>, vector<1x16x128xbf16>
      tpu.vector_store %arg7[%c9_68, %c0_69, %c0_70], %67 {strides = array<i32>} : memref<10x16x128xbf16, #tpu.memory_space<vmem>>, vector<1x16x128xbf16>,
    } else {
    }
    %c0_i32_13 = arith.constant 0 : i32
    %27 = arith.cmpi slt, %arg1, %c0_i32_13 : i32
    %28 = arith.extui %27 : i1 to i32
    %c0_i32_14 = arith.constant 0 : i32
    %29 = arith.cmpi ne, %28, %c0_i32_14 : i32
    scf.if %29 {
      %c8_i32_67 = arith.constant 8 : i32
      %67 = arith.addi %1, %c8_i32_67 : i32
      %c0_68 = arith.constant 0 : index
      %68 = arith.index_cast %67 : i32 to index
      %c0_69 = arith.constant 0 : index
      %c0_70 = arith.constant 0 : index
      %69 = vector.load %arg2[%c0_68, %68, %c0_69, %c0_70] : memref<1x8x8x128xbf16, #tpu.memory_space<vmem>>, vector<1x1x8x128xbf16>
      %70 = vector.shape_cast %69 : vector<1x1x8x128xbf16> to vector<1x8x128xbf16>
      %71 = arith.extf %70 : vector<1x8x128xbf16> to vector<1x8x128xf32>
      %72 = vector.broadcast %3 : vector<1x1x128xf32> to vector<1x8x128xf32>
      %73 = arith.mulf %71, %72 : vector<1x8x128xf32>
      %74 = vector.broadcast %5 : vector<1x1x128xf32> to vector<1x8x128xf32>
      %75 = arith.addf %73, %74 : vector<1x8x128xf32>
      %cst_71 = arith.constant 0.000000e+00 : f32
      %76 = vector.broadcast %cst_71 : f32 to vector<1x8x128xf32>
      %77 = arith.maximumf %75, %76 : vector<1x8x128xf32>
      %78 = arith.truncf %77 : vector<1x8x128xf32> to vector<1x8x128xbf16>
      %c9_72 = arith.constant 9 : index
      %c1_73 = arith.constant 1 : index
      %c0_74 = arith.constant 0 : index
      %79 = vector.load %arg7[%c9_72, %c1_73, %c0_74] : memref<10x16x128xbf16, #tpu.memory_space<vmem>>, vector<1x8x128xbf16>
      tpu.vector_store %arg7[%c9_72, %c1_73, %c0_74], %78 {strides = array<i32>} : memref<10x16x128xbf16, #tpu.memory_space<vmem>>, vector<1x8x128xbf16>,
    } else {
    }
    %cst_15 = arith.constant 0.000000e+00 : bf16
    %30 = vector.broadcast %cst_15 : bf16 to vector<10x1x128xbf16>
    %c0_16 = arith.constant 0 : index
    %c0_17 = arith.constant 0 : index
    %c0_18 = arith.constant 0 : index
    %31 = vector.load %arg7[%c0_16, %c0_17, %c0_18] : memref<10x16x128xbf16, #tpu.memory_space<vmem>>, vector<10x1x128xbf16>
    tpu.vector_store %arg7[%c0_16, %c0_17, %c0_18], %30 {strides = array<i32>} : memref<10x16x128xbf16, #tpu.memory_space<vmem>>, vector<10x1x128xbf16>,
    %cst_19 = arith.constant 0.000000e+00 : bf16
    %32 = vector.broadcast %cst_19 : bf16 to vector<10x1x128xbf16>
    %c0_20 = arith.constant 0 : index
    %c9 = arith.constant 9 : index
    %c0_21 = arith.constant 0 : index
    %33 = vector.load %arg7[%c0_20, %c9, %c0_21] : memref<10x16x128xbf16, #tpu.memory_space<vmem>>, vector<10x1x128xbf16>
    tpu.vector_store %arg7[%c0_20, %c9, %c0_21], %32 {strides = array<i32>} : memref<10x16x128xbf16, #tpu.memory_space<vmem>>, vector<10x1x128xbf16>,
    %c0_22 = arith.constant 0 : index
    %c0_23 = arith.constant 0 : index
    %c0_24 = arith.constant 0 : index
    %34 = vector.load %arg7[%c0_22, %c0_23, %c0_24] : memref<10x16x128xbf16, #tpu.memory_space<vmem>>, vector<8x8x128xbf16>
    %35 = vector.shape_cast %34 : vector<8x8x128xbf16> to vector<64x128xbf16>
    %c0_25 = arith.constant 0 : index
    %c0_26 = arith.constant 0 : index
    %36 = vector.load %arg8[%c0_25, %c0_26] : memref<64x1152xbf16, #tpu.memory_space<vmem>>, vector<64x128xbf16>
    tpu.vector_store %arg8[%c0_25, %c0_26], %35 {strides = array<i32>} : memref<64x1152xbf16, #tpu.memory_space<vmem>>, vector<64x128xbf16>,
    %c0_27 = arith.constant 0 : index
    %c1_28 = arith.constant 1 : index
    %c0_29 = arith.constant 0 : index
    %37 = vector.load %arg7[%c0_27, %c1_28, %c0_29] : memref<10x16x128xbf16, #tpu.memory_space<vmem>>, vector<8x8x128xbf16>
    %38 = vector.shape_cast %37 : vector<8x8x128xbf16> to vector<64x128xbf16>
    %c0_30 = arith.constant 0 : index
    %c128 = arith.constant 128 : index
    %39 = vector.load %arg8[%c0_30, %c128] : memref<64x1152xbf16, #tpu.memory_space<vmem>>, vector<64x128xbf16>
    tpu.vector_store %arg8[%c0_30, %c128], %38 {strides = array<i32>} : memref<64x1152xbf16, #tpu.memory_space<vmem>>, vector<64x128xbf16>,
    %c0_31 = arith.constant 0 : index
    %c2 = arith.constant 2 : index
    %c0_32 = arith.constant 0 : index
    %40 = vector.load %arg7[%c0_31, %c2, %c0_32] : memref<10x16x128xbf16, #tpu.memory_space<vmem>>, vector<8x8x128xbf16>
    %41 = vector.shape_cast %40 : vector<8x8x128xbf16> to vector<64x128xbf16>
    %c0_33 = arith.constant 0 : index
    %c256 = arith.constant 256 : index
    %42 = vector.load %arg8[%c0_33, %c256] : memref<64x1152xbf16, #tpu.memory_space<vmem>>, vector<64x128xbf16>
    tpu.vector_store %arg8[%c0_33, %c256], %41 {strides = array<i32>} : memref<64x1152xbf16, #tpu.memory_space<vmem>>, vector<64x128xbf16>,
    %c1_34 = arith.constant 1 : index
    %c0_35 = arith.constant 0 : index
    %c0_36 = arith.constant 0 : index
    %43 = vector.load %arg7[%c1_34, %c0_35, %c0_36] : memref<10x16x128xbf16, #tpu.memory_space<vmem>>, vector<8x8x128xbf16>
    %44 = vector.shape_cast %43 : vector<8x8x128xbf16> to vector<64x128xbf16>
    %c0_37 = arith.constant 0 : index
    %c384 = arith.constant 384 : index
    %45 = vector.load %arg8[%c0_37, %c384] : memref<64x1152xbf16, #tpu.memory_space<vmem>>, vector<64x128xbf16>
    tpu.vector_store %arg8[%c0_37, %c384], %44 {strides = array<i32>} : memref<64x1152xbf16, #tpu.memory_space<vmem>>, vector<64x128xbf16>,
    %c1_38 = arith.constant 1 : index
    %c1_39 = arith.constant 1 : index
    %c0_40 = arith.constant 0 : index
    %46 = vector.load %arg7[%c1_38, %c1_39, %c0_40] : memref<10x16x128xbf16, #tpu.memory_space<vmem>>, vector<8x8x128xbf16>
    %47 = vector.shape_cast %46 : vector<8x8x128xbf16> to vector<64x128xbf16>
    %c0_41 = arith.constant 0 : index
    %c512 = arith.constant 512 : index
    %48 = vector.load %arg8[%c0_41, %c512] : memref<64x1152xbf16, #tpu.memory_space<vmem>>, vector<64x128xbf16>
    tpu.vector_store %arg8[%c0_41, %c512], %47 {strides = array<i32>} : memref<64x1152xbf16, #tpu.memory_space<vmem>>, vector<64x128xbf16>,
    %c1_42 = arith.constant 1 : index
    %c2_43 = arith.constant 2 : index
    %c0_44 = arith.constant 0 : index
    %49 = vector.load %arg7[%c1_42, %c2_43, %c0_44] : memref<10x16x128xbf16, #tpu.memory_space<vmem>>, vector<8x8x128xbf16>
    %50 = vector.shape_cast %49 : vector<8x8x128xbf16> to vector<64x128xbf16>
    %c0_45 = arith.constant 0 : index
    %c640 = arith.constant 640 : index
    %51 = vector.load %arg8[%c0_45, %c640] : memref<64x1152xbf16, #tpu.memory_space<vmem>>, vector<64x128xbf16>
    tpu.vector_store %arg8[%c0_45, %c640], %50 {strides = array<i32>} : memref<64x1152xbf16, #tpu.memory_space<vmem>>, vector<64x128xbf16>,
    %c2_46 = arith.constant 2 : index
    %c0_47 = arith.constant 0 : index
    %c0_48 = arith.constant 0 : index
    %52 = vector.load %arg7[%c2_46, %c0_47, %c0_48] : memref<10x16x128xbf16, #tpu.memory_space<vmem>>, vector<8x8x128xbf16>
    %53 = vector.shape_cast %52 : vector<8x8x128xbf16> to vector<64x128xbf16>
    %c0_49 = arith.constant 0 : index
    %c768 = arith.constant 768 : index
    %54 = vector.load %arg8[%c0_49, %c768] : memref<64x1152xbf16, #tpu.memory_space<vmem>>, vector<64x128xbf16>
    tpu.vector_store %arg8[%c0_49, %c768], %53 {strides = array<i32>} : memref<64x1152xbf16, #tpu.memory_space<vmem>>, vector<64x128xbf16>,
    %c2_50 = arith.constant 2 : index
    %c1_51 = arith.constant 1 : index
    %c0_52 = arith.constant 0 : index
    %55 = vector.load %arg7[%c2_50, %c1_51, %c0_52] : memref<10x16x128xbf16, #tpu.memory_space<vmem>>, vector<8x8x128xbf16>
    %56 = vector.shape_cast %55 : vector<8x8x128xbf16> to vector<64x128xbf16>
    %c0_53 = arith.constant 0 : index
    %c896 = arith.constant 896 : index
    %57 = vector.load %arg8[%c0_53, %c896] : memref<64x1152xbf16, #tpu.memory_space<vmem>>, vector<64x128xbf16>
    tpu.vector_store %arg8[%c0_53, %c896], %56 {strides = array<i32>} : memref<64x1152xbf16, #tpu.memory_space<vmem>>, vector<64x128xbf16>,
    %c2_54 = arith.constant 2 : index
    %c2_55 = arith.constant 2 : index
    %c0_56 = arith.constant 0 : index
    %58 = vector.load %arg7[%c2_54, %c2_55, %c0_56] : memref<10x16x128xbf16, #tpu.memory_space<vmem>>, vector<8x8x128xbf16>
    %59 = vector.shape_cast %58 : vector<8x8x128xbf16> to vector<64x128xbf16>
    %c0_57 = arith.constant 0 : index
    %c1024 = arith.constant 1024 : index
    %60 = vector.load %arg8[%c0_57, %c1024] : memref<64x1152xbf16, #tpu.memory_space<vmem>>, vector<64x128xbf16>
    tpu.vector_store %arg8[%c0_57, %c1024], %59 {strides = array<i32>} : memref<64x1152xbf16, #tpu.memory_space<vmem>>, vector<64x128xbf16>,
    %c0_58 = arith.constant 0 : index
    %c0_59 = arith.constant 0 : index
    %61 = vector.load %arg8[%c0_58, %c0_59] : memref<64x1152xbf16, #tpu.memory_space<vmem>>, vector<64x1152xbf16>
    %c0_60 = arith.constant 0 : index
    %c0_61 = arith.constant 0 : index
    %62 = vector.load %arg5[%c0_60, %c0_61] : memref<1152x128xbf16, #tpu.memory_space<vmem>>, vector<1152x128xbf16>
    %cst_62 = arith.constant dense<0.000000e+00> : vector<64x128xf32>
    %63 = tpu.matmul %61, %62, %cst_62 {dimension_numbers = #tpu.dot_dimension_numbers<[1], [0], [0], [1], [0, 0, 1, 1], [], []>} : vector<64x1152xbf16>, vector<1152x128xbf16>, vector<64x128xf32> -> vector<64x128xf32>
    %64 = vector.shape_cast %63 : vector<64x128xf32> to vector<1x8x8x128xf32>
    %65 = arith.truncf %64 : vector<1x8x8x128xf32> to vector<1x8x8x128xbf16>
    %c0_63 = arith.constant 0 : index
    %c0_64 = arith.constant 0 : index
    %c0_65 = arith.constant 0 : index
    %c0_66 = arith.constant 0 : index
    %66 = vector.load %arg6[%c0_63, %c0_64, %c0_65, %c0_66] : memref<1x8x8x128xbf16, #tpu.memory_space<vmem>>, vector<1x8x8x128xbf16>
    tpu.vector_store %arg6[%c0_63, %c0_64, %c0_65, %c0_66], %65 {strides = array<i32>} : memref<1x8x8x128xbf16, #tpu.memory_space<vmem>>, vector<1x8x8x128xbf16>,
    return
  }
  func.func @transform_0(%arg0: i32, %arg1: i32) -> (i32, i32, i32, i32) {
    %c0_i32 = arith.constant 0 : i32
    %c0_i32_0 = arith.constant 0 : i32
    %c0_i32_1 = arith.constant 0 : i32
    %c0_i32_2 = arith.constant 0 : i32
    return %arg0, %c0_i32, %c0_i32_0, %c0_i32_1 : i32, i32, i32, i32
  }
  func.func @transform_1(%arg0: i32, %arg1: i32) -> (i32, i32) {
    %c0_i32 = arith.constant 0 : i32
    %c0_i32_0 = arith.constant 0 : i32
    %c0_i32_1 = arith.constant 0 : i32
    return %c0_i32, %c0_i32_0 : i32, i32
  }
  func.func @transform_2(%arg0: i32, %arg1: i32) -> (i32, i32) {
    %c0_i32 = arith.constant 0 : i32
    %c0_i32_0 = arith.constant 0 : i32
    %c0_i32_1 = arith.constant 0 : i32
    return %c0_i32, %c0_i32_0 : i32, i32
  }
  func.func @transform_3(%arg0: i32, %arg1: i32) -> (i32, i32) {
    %c0_i32 = arith.constant 0 : i32
    %c0_i32_0 = arith.constant 0 : i32
    %c0_i32_1 = arith.constant 0 : i32
    return %c0_i32, %c0_i32_0 : i32, i32
  }
  func.func @transform_4(%arg0: i32, %arg1: i32) -> (i32, i32, i32, i32) {
    %c0_i32 = arith.constant 0 : i32
    %c0_i32_0 = arith.constant 0 : i32
    %c0_i32_1 = arith.constant 0 : i32
    return %arg0, %arg1, %c0_i32, %c0_i32_0 : i32, i32, i32, i32
  }
}

</mosaic_0001>

<bundles_post_ra>
// kernel: _lambda_.5
= control target key start
LH: loop header
LB: loop body
LE: loop exit
PB: predicated region body
PF: predicated region fallthrough
CT: control target
= control target key end

     0   :  { %s3532_s18 = smov 0   ;;  %s4233_s0 = inlined_call_operand.vmem [shape: bf16[2,8,8,128], index: 0, kind: input, shape index: {}]   ;;  %s4234_s1 = inlined_call_operand.vmem [shape: f32[1,128], index: 1, kind: input, shape index: {}]   ;;  %s4235_s2 = inlined_call_operand.vmem [shape: f32[1,128], index: 2, kind: input, shape index: {}]   ;;  %s4236_s3 = inlined_call_operand.vmem [shape: bf16[3,384,128], index: 3, kind: input, shape index: {}]   ;;  %s4237_s4 = inlined_call_operand.vmem [shape: bf16[2,8,8,128], index: 4, kind: input, shape index: {}]   ;;  %s4238_s5 = inlined_call_operand.vmem [shape: bf16[2,8,8,128], index: 5, kind: output, shape index: {}]  }
   0x1 LB: > { %s2628_s19 = sadd.s32 4294967295, %s3499_s18   ;;  %p2632_p0 = scmp.ge.s32.totalorder %s3499_s18, 1  ;;  %s3499_s18 = sphi %s3532_s18, %s15_s18  }
   0x2   : > { %p197_p1 = scmp.lt.s32.totalorder %s3499_s18, 3 }
   0x4   : > { %p198_p2 = pnand %p2632_p0, %p197_p1 }
   0x5   : > { %v3309_v0 = vld [vmem:[%s4236_s3 + $0x80] sm:$0xff] (!%p198_p2)   ;;  %v3310_v1 = vld [vmem:[%s4236_s3 + $0x88] sm:$0xff] (!%p198_p2)   ;;  %v3313_v4 = vld [vmem:[%s4236_s3 + $0x90] sm:$0xff] (!%p198_p2)   ;;  %v3501_v5 = vmov (!%p198_p2), 0   ;;  %p230_p3 = scmp.lt.s32.totalorder (!%p198_p2), %s2628_s19, 1  ;;  %vm436_vm0 = vcmask (!%p198_p2), 1044484  }
   0x6   : > { %201 = sbr.rel (%p198_p2) target bundleno = 457 (0x1c9), region = 40  ;;  %3188 = vmatprep.subr.bf16.mxu1 (!%p198_p2), %v3309_v0  ;;  %v3311_v2 = vld [vmem:[%s4236_s3 + $0x40] sm:$0xff] (!%p198_p2)   ;;  %400 = vst [vmem:[#allocation2] sm:$0xff] (!%p198_p2), %v3501_v5  ;;  %402 = vst [vmem:[#allocation2 + $0x48] sm:$0xff] (!%p198_p2), %v3501_v5  ;;  %v3314_v6 = vld [vmem:[%s4236_s3 + $0x48] sm:$0xff] (!%p198_p2)   ;;  %vm403_vm3 = vcmask (!%p198_p2), 1040384  }
   0x7   : > { %3189 = vmatpush3.bf16.msra.mxu1 (!%p198_p2), %v3309_v0  ;;  %v3312_v3 = vld [vmem:[%s4236_s3] sm:$0xff] (!%p198_p2)   ;;  %3032 = vmatprep.subr.bf16.mxu0 (!%p198_p2), %v3311_v2  ;;  %v3315_v7 = vld [vmem:[%s4236_s3 + $0x8] sm:$0xff] (!%p198_p2)   ;;  %v3316_v8 = vld [vmem:[%s4236_s3 + $0x98] sm:$0xff] (!%p198_p2)   ;;  %vm437_vm1 = vsmask.f32 (!%p198_p2), 7954  ;;  %vm373_vm6 = vcmask (!%p198_p2), 1044480  }
   0x8   : > { %3190 = vmatprep.subr.bf16.mxu1 (!%p198_p2), %v3310_v1  ;;  %3033 = vmatpush3.bf16.msra.mxu0 (!%p198_p2), %v3312_v3  ;;  %v3317_v9 = vld [vmem:[%s4236_s3 + $0x50] sm:$0xff] (!%p198_p2)   ;;  %v3320_v11 = vld [vmem:[%s4236_s3 + $0x58] sm:$0xff] (!%p198_p2)   ;;  %v3319_v12 = vld [vmem:[%s4236_s3 + $0xa0] sm:$0xff] (!%p198_p2)   ;;  %vm404_vm4 = vsmask.f32 (!%p198_p2), 256  ;;  %vm736_vm9 = vcmask (!%p198_p2), 1042432  }
   0x9   : > { %3034 = vmatprep.subr.bf16.mxu0 (!%p198_p2), %v3314_v6  ;;  %v3318_v10 = vld [vmem:[%s4236_s3 + $0x10] sm:$0xff] (!%p198_p2)   ;;  %v3321_v13 = vld [vmem:[%s4236_s3 + $0x18] sm:$0xff] (!%p198_p2)   ;;  %v3323_v14 = vld [vmem:[%s4236_s3 + $0x60] sm:$0xff] (!%p198_p2)   ;;  %vm374_vm7 = vsmask.f32 (!%p198_p2), 4354  ;;  %vm737_vm10 = vcmask (!%p198_p2), 1046532  }
   0xa   : > { %v3322_v15 = vld [vmem:[%s4236_s3 + $0xa8] sm:$0xff] (!%p198_p2)   ;;  %v3324_v16 = vld [vmem:[%s4236_s3 + $0x20] sm:$0xff] (!%p198_p2)   ;;  %v3325_v18 = vld [vmem:[%s4236_s3 + $0xb0] sm:$0xff] (!%p198_p2)   ;;  %vm553_vm11 = vsmask.f32 (!%p198_p2), 3328 }
   0xb   : > { %3191 = vmatpush3.bf16.msra.mxu1 (!%p198_p2), %v3310_v1  ;;  %v3326_v17 = vld [vmem:[%s4236_s3 + $0x68] sm:$0xff] (!%p198_p2)   ;;  %v3329_v20 = vld [vmem:[%s4236_s3 + $0x70] sm:$0xff] (!%p198_p2)   ;;  %v3615_v21 = vld [vmem:[%s4234_s1] ss:$0 sm:$0xff] (!%p198_p2)  ;;  %vm554_vm12 = vsmask.f32 (!%p198_p2), 7440 }
   0xc   : > { %3192 = vmatprep.subr.bf16.mxu1 (!%p198_p2), %v3313_v4  ;;  %3035 = vmatpush3.bf16.msra.mxu0 (!%p198_p2), %v3315_v7  ;;  %v3327_v19 = vld [vmem:[%s4236_s3 + $0x28] sm:$0xff] (!%p198_p2)   ;;  %v3328_v23 = vld [vmem:[%s4236_s3 + $0xb8] sm:$0xff] (!%p198_p2)   ;;  %v3624_v26 = vld [vmem:[%s4235_s2] ss:$0 sm:$0xff] (!%p198_p2) }
   0xd   : > { %3036 = vmatprep.subr.bf16.mxu0 %v3317_v9  ;;  %s4250_s19 = smov (!%p230_p3, %s2628_s19), 1  ;;  %v439_v27 = vld [vmem:[#allocation2] sm:$0x10]  ;;  %v3330_v28 = vld [vmem:[%s4236_s3 + $0x30] sm:$0xff]   ;;  %vm3630_vm2 = vmand %vm436_vm0, %vm437_vm1 }
   0xe   : > { %s3589_s27 = sshll.u32 %s4250_s19, 5  ;;  %v440_v32 = vsel %vm3630_vm2, 0, %v439_v27  ;;  %v3640_v33 = vld [vmem:[%s4236_s3 + $0x140] sm:$0xff]   ;;  %v3340_v38 = vld [vmem:[%s4236_s3 + $0x78] sm:$0xff]   ;;  %vm3653_vm5 = vmand %vm403_vm3, %vm404_vm4 }
   0xf   : > { %3193 = vmatpush3.bf16.msra.mxu1 %v3313_v4  ;;  %s3601_s9 = scalar_lea.vmem %s4233_s0, %s3589_s27  ;;  %441 = vst [vmem:[#allocation2] sm:$0x10] %v440_v32  ;;  %v3341_v39 = vld [vmem:[%s4236_s3 + $0x38] sm:$0xff]   ;;  %v406_v45 = vld [vmem:[#allocation2] sm:$0x1]  ;;  %vm3667_vm8 = vmand %vm373_vm6, %vm374_vm7  ;;  %s239_s10 = scalar_lea.vmem %s4237_s4, %s3589_s27 }
  0x10   : > { %3194 = vmatprep.subr.bf16.mxu1 %v3316_v8  ;;  %3037 = vmatpush3.bf16.msra.mxu0 %v3318_v10  ;;  %v2972_v22 = vld [vmem:[%s3601_s9] sm:$0xff]   ;;  %v3023_v34 = vld [vmem:[%s3601_s9 + $0x8] sm:$0xff]   ;;  %v407_v50 = vsel %vm3653_vm5, 0, %v406_v45  ;;  %v379_v60 = vld [vmem:[#allocation2 + $0x10] sm:$0x1f]  ;;  %s244_s13 = scalar_lea.vmem %s4238_s5, %s3589_s27 }
  0x11   : > { %3038 = vmatprep.subr.bf16.mxu0 %v3320_v11  ;;  %v2973_v24 = vunpack.c.l.bf16 %v2972_v22  ;;  %v2974_v25 = vunpack.c.h.bf16 %v2972_v22  ;;  %v2977_v36 = vunpack.c.l.bf16 %v3023_v34  ;;  %v2978_v40 = vunpack.c.h.bf16 %v3023_v34  ;;  %v3347_v46 = vld [vmem:[%s4236_s3 + $0x100] sm:$0xff]   ;;  %408 = vst [vmem:[#allocation2] sm:$0x1] %v407_v50  ;;  %v376_v56 = vld [vmem:[#allocation2 + $0x8] sm:$0x1f]  ;;  %vm3700_vm13 = vmor %vm736_vm9, %vm737_vm10 }
  0x12   : > { %v382_v5 = vld [vmem:[#allocation2 + $0x18] sm:$0x1f]  ;;  %vm3710_vm14 = vmor %vm553_vm11, %vm554_vm12  ;;  %v3424_v61 = vld [vmem:[%s4236_s3 + $0x228] sm:$0xff]  }
  0x13   : > { %3195 = vmatpush3.bf16.msra.mxu1 %v3316_v8  ;;  %v270_v29 = vmul.f32 %v2973_v24, %v3615_v21  ;;  %v271_v31 = vmul.f32 %v2974_v25, %v3615_v21  ;;  %v272_v42 = vmul.f32 %v2977_v36, %v3615_v21  ;;  %v273_v51 = vmul.f32 %v2978_v40, %v3615_v21  ;;  %v3024_v24 = vld [vmem:[%s3601_s9 + $0x10] sm:$0xff]  }
  0x14   : > { %3196 = vmatprep.subr.bf16.mxu1 %v3319_v12  ;;  %3039 = vmatpush3.bf16.msra.mxu0 %v3321_v13  ;;  %v3448_v30 = vld [vmem:[%s4236_s3 + $0x1f0] sm:$0xff]  }
  0x15   : > { %3040 = vmatprep.subr.bf16.mxu0 %v3323_v14  ;;  %v284_v35 = vadd.f32 %v3624_v26, %v270_v29  ;;  %v285_v37 = vadd.f32 %v3624_v26, %v271_v31  ;;  %v286_v48 = vadd.f32 %v3624_v26, %v272_v42  ;;  %v287_v2 = vadd.f32 %v3624_v26, %v273_v51  ;;  %v385_v42 = vld [vmem:[#allocation2 + $0x20] sm:$0x1f]  ;;  %v3025_v51 = vld [vmem:[%s3601_s9 + $0x18] sm:$0xff]  }
  0x16   : > { %v688_v0 = vld [vmem:[#allocation2] sm:$0x1e]  ;;  %v2981_v29 = vunpack.c.l.bf16 %v3024_v24  ;;  %v2982_v31 = vunpack.c.h.bf16 %v3024_v24 }
  0x17   : > { %3197 = vmatpush3.bf16.msra.mxu1 %v3319_v12  ;;  %v292_v41 = vmax.f32 %v284_v35, 0.0  ;;  %v293_v43 = vmax.f32 %v285_v37, 0.0  ;;  %v294_v54 = vmax.f32 %v286_v48, 0.0  ;;  %v295_v13 = vmax.f32 %v287_v2, 0.0 }
  0x18   : > { %3198 = vmatprep.subr.bf16.mxu1 %v3322_v15  ;;  %3041 = vmatpush3.bf16.msra.mxu0 %v3324_v16  ;;  %v505_v8 = vld [vmem:[#allocation2] sm:$0x1f]  ;;  %v2665_v14 = vcombine.low %v688_v0, %v688_v0  ;;  %v275_v48 = vmul.f32 %v2982_v31, %v3615_v21 }
  0x19   : > { %3042 = vmatprep.subr.bf16.mxu0 %v3326_v17  ;;  %v300_v47 = vpack.c.bf16 %v292_v41, %v292_v41  ;;  %v301_v49 = vpack.c.bf16 %v293_v43, %v293_v43  ;;  %v302_v59 = vpack.c.bf16 %v294_v54, %v294_v54  ;;  %v2645_v10 = vcombine.low %v505_v8, %v505_v8 }
  0x1a   : > { %v2646_v12 = vcombine.high %v505_v8, %v505_v8  ;;  %v2666_v17 = vcombine.high %v688_v0, %v688_v0  ;;  %v274_v41 = vmul.f32 %v2981_v29, %v3615_v21 }
  0x1b   : > { %3199 = vmatpush3.bf16.msra.mxu1 %v3322_v15  ;;  %v309_v52 = vshrl.u32 %v300_v47, 16  ;;  %v312_v53 = vshll.u32 %v300_v47, 16  ;;  %v316_v55 = vshrl.u32 %v301_v49, 16  ;;  %v319_v57 = vshll.u32 %v301_v49, 16 }
  0x1c   : > { %3200 = vmatprep.subr.bf16.mxu1 %v3325_v18  ;;  %3043 = vmatpush3.bf16.msra.mxu0 %v3327_v19  ;;  %v323_v1 = vshrl.u32 %v302_v59, 16  ;;  %v326_v4 = vshll.u32 %v302_v59, 16  ;;  %v557_v15 = vshrl.u32 %v2645_v10, 16  ;;  %v560_v16 = vshll.u32 %v2645_v10, 16 }
  0x1d   : > { %3044 = vmatprep.subr.bf16.mxu0 %v3329_v20  ;;  %v311_v58 = vrot.slane %v309_v52, 7  ;;  %v318_v62 = vrot.slane %v316_v55, 7  ;;  %v303_v19 = vpack.c.bf16 %v295_v13, %v295_v13  ;;  %v3681_v34 = vrot.slane %v2666_v17, 5 }
  0x1e   : > { %v325_v7 = vrot.slane %v323_v1, 7  ;;  %v559_v20 = vrot.slane %v557_v15, 4  ;;  %v562_v22 = vrot.slane %v560_v16, 5  ;;  %v288_v50 = vadd.f32 %v3624_v26, %v274_v41 }
  0x1f   : > { %3201 = vmatpush3.bf16.msra.mxu1 %v3325_v18  ;;  %v314_v63 = vor.u32 %v312_v53, %v311_v58  ;;  %v321_v3 = vor.u32 %v319_v57, %v318_v62  ;;  %v330_v25 = vshrl.u32 %v303_v19, 16  ;;  %v333_v27 = vshll.u32 %v303_v19, 16 }
  0x20   : > { %3202 = vmatprep.subr.bf16.mxu1 %v3328_v23  ;;  %3045 = vmatpush3.bf16.msra.mxu0 %v3330_v28  ;;  %v328_v11 = vor.u32 %v326_v4, %v325_v7  ;;  %v3679_v28 = vrot.slane %v2665_v14, 9  ;;  %v563_v40 = vor.u32 %v562_v22, %v559_v20  ;;  %v2985_v55 = vunpack.c.l.bf16 %v3025_v51 }
  0x21   : > { %3046 = vmatprep.subr.bf16.mxu0 %v3340_v38  ;;  %v377_v6 = vsel %vm3667_vm8, %v314_v63, %v376_v56  ;;  %v380_v9 = vsel %vm3667_vm8, %v321_v3, %v379_v60  ;;  %v332_v36 = vrot.slane %v330_v25, 7  ;;  %v289_v56 = vadd.f32 %v3624_v26, %v275_v48 }
  0x22   : > { %378 = vst [vmem:[#allocation2 + $0x8] sm:$0x1f] %v377_v6  ;;  %381 = vst [vmem:[#allocation2 + $0x10] sm:$0x1f] %v380_v9  ;;  %v383_v18 = vsel %vm3667_vm8, %v328_v11, %v382_v5  ;;  %v2986_v57 = vunpack.c.h.bf16 %v3025_v51  ;;  %v564_v60 = vrot.slane %v563_v40, 4  ;;  %v296_v63 = vmax.f32 %v288_v50, 0.0 }
  0x23   : > { %3203 = vmatpush3.bf16.msra.mxu1 %v3328_v23  ;;  %384 = vst [vmem:[#allocation2 + $0x18] sm:$0x1f] %v383_v18  ;;  %v566_v23 = vshll.u32 %v2646_v12, 16  ;;  %v335_v47 = vor.u32 %v333_v27, %v332_v36  ;;  %v276_v1 = vmul.f32 %v2985_v55, %v3615_v21  ;;  %v297_v2 = vmax.f32 %v289_v56, 0.0 }
  0x24   : > { %3212 = vmatprep.subr.bf16.mxu1 %v3640_v33  ;;  %3047 = vmatpush3.bf16.msra.mxu0 %v3341_v39  ;;  %v277_v3 = vmul.f32 %v2986_v57, %v3615_v21  ;;  %v3716_v4 = vpack.c.bf16 %v296_v63, %v296_v63  ;;  %v742_v7 = vsel %vm3700_vm13, %v3679_v28, %v3681_v34 }
  0x25   : > { %3084 = vmatprep.subr.bf16.mxu0 %v3347_v46  ;;  %v568_v45 = vrot.slane %v566_v23, 5  ;;  %v386_v54 = vsel %vm3667_vm8, %v335_v47, %v385_v42  ;;  %v3730_v10 = vadd.f32 %v3624_v26, %v276_v1  ;;  %v3732_v21 = vpack.c.bf16 %v297_v2, %v297_v2 }
  0x26   : > { %387 = vst [vmem:[#allocation2 + $0x20] sm:$0x1f] %v386_v54  ;;  %v3719_v5 = vadd.f32 %v3624_v26, %v277_v3  ;;  %v337_v19 = vshrl.u32 %v3716_v4, 16  ;;  %v340_v20 = vshll.u32 %v3716_v4, 16  ;;  %v3349_v3 = vld [vmem:[%s4236_s3 + $0xc0] sm:$0xff]   ;;  %v3353_v4 = vld [vmem:[%s4236_s3 + $0x158] sm:$0xff]  }
  0x27   : > { %v3727_v9 = vsel %vm3710_vm14, %v564_v60, %v568_v45 }
  0x29   : > { %v442_v32 = vld [vmem:[#allocation2 + $0x8] sm:$0x10]  ;;  %v409_v35 = vld [vmem:[#allocation2 + $0x8] sm:$0x1]  ;;  %v445_v38 = vld [vmem:[#allocation2 + $0x10] sm:$0x10] }
  0x2a   : > { %v443_v37 = vsel %vm3630_vm2, 0, %v442_v32  ;;  %v410_v39 = vsel %vm3653_vm5, 0, %v409_v35  ;;  %v446_v43 = vsel %vm3630_vm2, 0, %v445_v38  ;;  %v412_v46 = vld [vmem:[#allocation2 + $0x10] sm:$0x1] }
  0x2b   : > { %444 = vst [vmem:[#allocation2 + $0x8] sm:$0x10] %v443_v37  ;;  %411 = vst [vmem:[#allocation2 + $0x8] sm:$0x1] %v410_v39  ;;  %v413_v49 = vsel %vm3653_vm5, 0, %v412_v46 }
  0x2c   : > { %447 = vst [vmem:[#allocation2 + $0x10] sm:$0x10] %v446_v43  ;;  %v448_v52 = vld [vmem:[#allocation2 + $0x18] sm:$0x10]  ;;  %414 = vst [vmem:[#allocation2 + $0x10] sm:$0x1] %v413_v49 }
  0x2d   : > { %v415_v53 = vld [vmem:[#allocation2 + $0x18] sm:$0x1]  ;;  %v449_v59 = vsel %vm3630_vm2, 0, %v448_v52  ;;  %v418_v47 = vld [vmem:[#allocation2 + $0x20] sm:$0x1] }
  0x2e   : > { %v416_v62 = vsel %vm3653_vm5, 0, %v415_v53  ;;  %450 = vst [vmem:[#allocation2 + $0x18] sm:$0x10] %v449_v59  ;;  %v451_v56 = vld [vmem:[#allocation2 + $0x20] sm:$0x10]  ;;  %v3342_v59 = vld [vmem:[%s4236_s3 + $0x148] sm:$0xff]  }
  0x2f   : > { %417 = vst [vmem:[#allocation2 + $0x18] sm:$0x1] %v416_v62 }
  0x32   : > { %v689_v6 = vld [vmem:[#allocation2 + $0x8] sm:$0x1e] }
  0x33   : > { %v506_v8 = vld [vmem:[#allocation2 + $0x8] sm:$0x1f]  ;;  %v2667_v11 = vcombine.low %v689_v6, %v689_v6  ;;  %v2668_v12 = vcombine.high %v689_v6, %v689_v6  ;;  %v690_v13 = vld [vmem:[#allocation2 + $0x10] sm:$0x1e] }
  0x34   : > { %v2647_v14 = vcombine.low %v506_v8, %v506_v8  ;;  %v2648_v15 = vcombine.high %v506_v8, %v506_v8  ;;  %v2669_v16 = vcombine.low %v690_v13, %v690_v13  ;;  %v2670_v17 = vcombine.high %v690_v13, %v690_v13  ;;  %v507_v18 = vld [vmem:[#allocation2 + $0x10] sm:$0x1f]  ;;  %v3348_v62 = vld [vmem:[#allocation2] ss:$8 sps:$4 sm:$0xff]  }
  0x35   : > { %v2682_v22 = vrot.slane %v2667_v11, 9  ;;  %v745_v23 = vrot.slane %v2668_v12, 5  ;;  %v691_v26 = vld [vmem:[#allocation2 + $0x18] sm:$0x1e]  ;;  %v2649_v31 = vcombine.low %v507_v18, %v507_v18  ;;  %v2650_v45 = vcombine.high %v507_v18, %v507_v18  ;;  %v1349_v2 = vld [vmem:[#allocation2 + $0x8] sm:$0x1e] }
  0x36   : > { %v571_v24 = vshrl.u32 %v2647_v14, 16  ;;  %v574_v25 = vshll.u32 %v2647_v14, 16  ;;  %v2683_v27 = vrot.slane %v2669_v16, 9  ;;  %v749_v28 = vrot.slane %v2670_v17, 5  ;;  %v508_v37 = vld [vmem:[#allocation2 + $0x18] sm:$0x1f] }
  0x37   : > { %v580_v29 = vshll.u32 %v2648_v15, 16  ;;  %v746_v32 = vsel %vm3700_vm13, %v2682_v22, %v745_v23  ;;  %v2671_v34 = vcombine.low %v691_v26, %v691_v26  ;;  %v2672_v35 = vcombine.high %v691_v26, %v691_v26  ;;  %v388_v12 = vld [vmem:[#allocation2 + $0x28] sm:$0x1f]  ;;  %v3350_v14 = vld [vmem:[%s4236_s3 + $0x150] sm:$0xff]  }
  0x38   : > { %v573_v36 = vrot.slane %v571_v24, 4  ;;  %v2689_v38 = vcombine.low %v742_v7, %v746_v32  ;;  %v750_v39 = vsel %vm3700_vm13, %v2683_v27, %v749_v28  ;;  %v576_v40 = vrot.slane %v574_v25, 5  ;;  %v1350_v18 = vld [vmem:[#allocation2 + $0x10] sm:$0x1e]  ;;  %v3351_v26 = vld [vmem:[%s4236_s3 + $0x108] sm:$0xff]  }
  0x39   : > { %v582_v41 = vrot.slane %v580_v29, 5  ;;  %v2684_v42 = vrot.slane %v2671_v34, 9  ;;  %v753_v43 = vrot.slane %v2672_v35, 5  ;;  %v2651_v46 = vcombine.low %v508_v37, %v508_v37  ;;  %v3352_v28 = vld [vmem:[%s4236_s3 + $0xc8] sm:$0xff]  }
  0x3a   : > { %3204 = vmatprep.mubr.bf16.mxu1 %v2689_v38  ;;  %v577_v48 = vor.u32 %v576_v40, %v573_v36  ;;  %v2652_v49 = vcombine.high %v508_v37, %v508_v37  ;;  %v585_v50 = vshrl.u32 %v2649_v31, 16  ;;  %v588_v51 = vshll.u32 %v2649_v31, 16  ;;  %v3777_v37 = vld [vmem:[#allocation2 + $0x18] sm:$0x1e]  ;;  %v391_v38 = vld [vmem:[#allocation2 + $0x30] sm:$0x1f] }
  0x3b   : > { %v754_v52 = vsel %vm3700_vm13, %v2684_v42, %v753_v43  ;;  %v594_v53 = vshll.u32 %v2650_v45, 16  ;;  %v599_v54 = vshrl.u32 %v2651_v46, 16  ;;  %v602_v55 = vshll.u32 %v2651_v46, 16  ;;  %v3358_v43 = vld [vmem:[%s4236_s3 + $0x110] sm:$0xff]  }
  0x3c   : > { %v2690_v57 = vcombine.low %v750_v39, %v754_v52  ;;  %v578_v60 = vrot.slane %v577_v48, 4  ;;  %v587_v63 = vrot.slane %v585_v50, 4  ;;  %v590_v1 = vrot.slane %v588_v51, 5  ;;  %v3359_v45 = vld [vmem:[#allocation2 + $0x10] ss:$8 sps:$4 sm:$0xff]  }
  0x3d   : > { %v596_v6 = vrot.slane %v594_v53, 5  ;;  %v601_v7 = vrot.slane %v599_v54, 4  ;;  %v604_v8 = vrot.slane %v602_v55, 5  ;;  %v608_v11 = vshll.u32 %v2652_v49, 16  ;;  %v3360_v48 = vld [vmem:[%s4236_s3 + $0xd0] sm:$0xff]   ;;  %v3361_v53 = vld [vmem:[%s4236_s3 + $0x160] sm:$0xff]  }
  0x3e   : > { %3205 = vmatmul.mubr.bf16.vlgmr.msra.gmra.mrb[0].mxu1 %v2690_v57  ;;  %v583_v13 = vsel %vm3710_vm14, %v578_v60, %v582_v41  ;;  %v591_v15 = vor.u32 %v590_v1, %v587_v63  ;;  %v339_v16 = vrot.slane %v337_v19, 7  ;;  %v419_v17 = vsel %vm3653_vm5, 0, %v418_v47  ;;  %v3781_v41 = vld [vmem:[#allocation2 + $0x8] sm:$0x1f]  ;;  %v394_v63 = vld [vmem:[#allocation2 + $0x38] sm:$0x1f] }
  0x3f   : > { %3213 = vmatpush3.bf16.msra.mxu1 %v3640_v33  ;;  %v2661_v22 = vcombine.low %v3727_v9, %v583_v13  ;;  %v605_v23 = vor.u32 %v604_v8, %v601_v7  ;;  %v610_v24 = vrot.slane %v608_v11, 5  ;;  %420 = vst [vmem:[#allocation2 + $0x20] sm:$0x1] %v419_v17  ;;  %v452_v25 = vsel %vm3630_vm2, 0, %v451_v56  ;;  %v3363_v13 = vld [vmem:[%s4236_s3 + $0xd8] sm:$0xff]  }
  0x40   : > { %3214 = vmatprep.subr.bf16.mxu1 %v3342_v59  ;;  %v592_v19 = vrot.slane %v591_v15, 4  ;;  %v342_v27 = vor.u32 %v340_v20, %v339_v16  ;;  %453 = vst [vmem:[#allocation2 + $0x20] sm:$0x10] %v452_v25  ;;  %v298_v33 = vmax.f32 %v3730_v10, 0.0  ;;  %v344_v9 = vshrl.u32 %v3732_v21, 16 }
  0x41   : > { %1027 = vmatprep.mubr.bf16.mxu0 %v2661_v22  ;;  %v606_v29 = vrot.slane %v605_v23, 4  ;;  %v347_v31 = vshll.u32 %v3732_v21, 16  ;;  %v2741_v32 = vcombine.low %v1349_v2, %v1349_v2  ;;  %v2742_v34 = vcombine.high %v1349_v2, %v1349_v2 }
  0x42   : > { %1028 = vmatmul.mubr.bf16.vlgmr.msra.gmra.mrb[0].mxu0 %v3348_v62  ;;  %v597_v10 = vsel %vm3710_vm14, %v592_v19, %v596_v6  ;;  %v389_v20 = vsel %vm3667_vm8, %v342_v27, %v388_v12  ;;  %v306_v35 = vpack.c.bf16 %v298_v33, %v298_v33  ;;  %v346_v36 = vrot.slane %v344_v9, 7  ;;  %v3362_v6 = vld [vmem:[%s4236_s3 + $0x118] sm:$0xff]   ;;  %v3364_v19 = vld [vmem:[%s4236_s3 + $0x168] sm:$0xff]  }
  0x43   : > { %3215 = vmatpush3.bf16.msra.mxu1 %v3342_v59  ;;  %3085 = vmatpush3.bf16.msra.mxu0 %v3349_v3  ;;  %v611_v21 = vsel %vm3710_vm14, %v606_v29, %v610_v24  ;;  %390 = vst [vmem:[#allocation2 + $0x28] sm:$0x1f] %v389_v20  ;;  %v2743_v39 = vcombine.low %v1350_v18, %v1350_v18  ;;  %v3789_v50 = vrot.slane %v2741_v32, 9  ;;  %v3791_v51 = vrot.slane %v2742_v34, 5  ;;  %v3804_v59 = vld [vmem:[#allocation2 + $0x10] sm:$0x1f] }
  0x44   : > { %v2744_v40 = vcombine.high %v1350_v18, %v1350_v18  ;;  %3216 = vmatprep.subr.bf16.mxu1 %v3350_v14  ;;  %3086 = vmatprep.subr.bf16.mxu0 %v3351_v26  ;;  %v2662_v42 = vcombine.low %v597_v10, %v611_v21  ;;  %v349_v46 = vor.u32 %v347_v31, %v346_v36  ;;  %v351_v47 = vshrl.u32 %v306_v35, 16  ;;  %v3369_v32 = vld [vmem:[%s4236_s3 + $0x120] sm:$0xff]  }
  0x45   : > { %v354_v49 = vshll.u32 %v306_v35, 16  ;;  %v2745_v52 = vcombine.low %v3777_v37, %v3777_v37  ;;  %v3800_v56 = vrot.slane %v2743_v39, 9  ;;  %v2746_v2 = vcombine.high %v3777_v37, %v3777_v37  ;;  %v3371_v10 = vld [vmem:[%s4236_s3 + $0xe0] sm:$0xff]   ;;  %v3376_v39 = vld [vmem:[%s4236_s3 + $0x170] sm:$0xff]  }
  0x46   : > { %1035 = vmatprep.mubr.bf16.mxu0 %v2662_v42  ;;  %v353_v54 = vrot.slane %v351_v47, 7  ;;  %v392_v55 = vsel %vm3667_vm8, %v349_v46, %v391_v38  ;;  %v3802_v57 = vrot.slane %v2744_v40, 5  ;;  %v3810_v3 = vcombine.low %v3781_v41, %v3781_v41 }
  0x47   : > { %3217 = vmatpush3.bf16.msra.mxu1 %v3350_v14  ;;  %3087 = vmatpush3.bf16.msra.mxu0 %v3352_v28  ;;  %v509_v60 = vld [vmem:[#allocation2 + $0x20] sm:$0x1f]  ;;  %393 = vst [vmem:[#allocation2 + $0x30] sm:$0x1f] %v392_v55  ;;  %v3815_v12 = vrot.slane %v2745_v52, 9  ;;  %v1400_v16 = vsel %vm3700_vm13, %v3789_v50, %v3791_v51  ;;  %v2722_v26 = vcombine.high %v3781_v41, %v3781_v41  ;;  %v1407_v35 = vrot.slane %v2746_v2, 5 }
  0x48   : > { %v692_v62 = vld [vmem:[#allocation2 + $0x20] sm:$0x1e]  ;;  %3218 = vmatprep.subr.bf16.mxu1 %v3353_v4  ;;  %3088 = vmatprep.subr.bf16.mxu0 %v3358_v43  ;;  %v2653_v7 = vcombine.low %v509_v60, %v509_v60  ;;  %v2654_v8 = vcombine.high %v509_v60, %v509_v60  ;;  %v356_v15 = vor.u32 %v354_v49, %v353_v54  ;;  %v1218_v43 = vshrl.u32 %v3810_v3, 16  ;;  %v3381_v50 = vld [vmem:[%s4236_s3 + $0x128] sm:$0xff]   ;;  %v3872_v54 = vld [vmem:[#allocation2 + $0x18] sm:$0x1f] }
  0x49   : > { %v1352_v1 = vld [vmem:[#allocation2 + $0x20] sm:$0x1e]  ;;  %v2673_v11 = vcombine.low %v692_v62, %v692_v62  ;;  %v2674_v14 = vcombine.high %v692_v62, %v692_v62  ;;  %v3835_v28 = vcombine.low %v3804_v59, %v3804_v59  ;;  %v2724_v42 = vcombine.high %v3804_v59, %v3804_v59  ;;  %v3382_v55 = vld [vmem:[%s4236_s3 + $0xe8] sm:$0xff]   ;;  %v3383_v62 = vld [vmem:[%s4236_s3 + $0x178] sm:$0xff]  }
  0x4a   : > { %v2747_v17 = vcombine.low %v1352_v1, %v1352_v1  ;;  %1036 = vmatmul.mubr.bf16.gmra.mrb[4].mxu0 %v3359_v45  ;;  %v421_v18 = vld [vmem:[#allocation2 + $0x28] sm:$0x1]  ;;  %v454_v22 = vld [vmem:[#allocation2 + $0x28] sm:$0x10]  ;;  %v613_v23 = vshrl.u32 %v2653_v7, 16  ;;  %v616_v24 = vshll.u32 %v2653_v7, 16  ;;  %v2748_v25 = vcombine.high %v1352_v1, %v1352_v1 }
  0x4b   : > { %3219 = vmatpush3.bf16.msra.mxu1 %v3353_v4  ;;  %3089 = vmatpush3.bf16.msra.mxu0 %v3360_v48  ;;  %v422_v27 = vsel %vm3653_vm5, 0, %v421_v18  ;;  %v455_v33 = vsel %vm3630_vm2, 0, %v454_v22  ;;  %v622_v9 = vshll.u32 %v2654_v8, 16  ;;  %v3840_v34 = vrot.slane %v2673_v11, 9  ;;  %v3901_v11 = vld [vmem:[#allocation2 + $0x20] sm:$0x1f] }
  0x4c   : > { %3220 = vmatprep.subr.bf16.mxu1 %v3361_v53  ;;  %3090 = vmatprep.subr.bf16.mxu0 %v3362_v6  ;;  %423 = vst [vmem:[#allocation2 + $0x28] sm:$0x1] %v422_v27  ;;  %456 = vst [vmem:[#allocation2 + $0x28] sm:$0x10] %v455_v33  ;;  %v615_v29 = vrot.slane %v613_v23, 4  ;;  %v618_v31 = vrot.slane %v616_v24, 5  ;;  %v395_v4 = vsel %vm3667_vm8, %v356_v15, %v394_v63 }
  0x4d   : > { %v3847_v20 = vrot.slane %v2674_v14, 5  ;;  %396 = vst [vmem:[#allocation2 + $0x38] sm:$0x1f] %v395_v4  ;;  %v2760_v36 = vrot.slane %v2747_v17, 9  ;;  %v1411_v37 = vrot.slane %v2748_v25, 5  ;;  %v624_v38 = vrot.slane %v622_v9, 5 }
  0x4e   : > { %v619_v21 = vor.u32 %v618_v31, %v615_v29  ;;  %v457_v40 = vld [vmem:[#allocation2 + $0x30] sm:$0x10]  ;;  %v424_v41 = vld [vmem:[#allocation2 + $0x30] sm:$0x1]  ;;  %v1404_v47 = vsel %vm3700_vm13, %v3800_v56, %v3802_v57  ;;  %v1408_v48 = vsel %vm3700_vm13, %v3815_v12, %v1407_v35  ;;  %v1220_v52 = vrot.slane %v1218_v43, 4  ;;  %v3917_v9 = vld [vmem:[%s4236_s3 + $0x200] sm:$0xff]  }
  0x4f   : > { %3221 = vmatpush3.bf16.msra.mxu1 %v3361_v53  ;;  %3091 = vmatpush3.bf16.msra.mxu0 %v3363_v13  ;;  %v458_v45 = vsel %vm3630_vm2, 0, %v457_v40  ;;  %v425_v46 = vsel %vm3653_vm5, 0, %v424_v41  ;;  %v1412_v51 = vsel %vm3700_vm13, %v2760_v36, %v1411_v37  ;;  %v1221_v53 = vshll.u32 %v3810_v3, 16  ;;  %v3388_v63 = vld [vmem:[%s4236_s3 + $0x130] sm:$0xff]   ;;  %v3401_v43 = vld [vmem:[%s4236_s3 + $0xf8] sm:$0xff]  }
  0x50   : > { %3222 = vmatprep.subr.bf16.mxu1 %v3364_v19  ;;  %v620_v49 = vrot.slane %v619_v21, 4  ;;  %3092 = vmatprep.subr.bf16.mxu0 %v3369_v32  ;;  %459 = vst [vmem:[#allocation2 + $0x30] sm:$0x10] %v458_v45  ;;  %426 = vst [vmem:[#allocation2 + $0x30] sm:$0x1] %v425_v46  ;;  %v3877_v56 = vshll.u32 %v2722_v26, 16  ;;  %v758_v60 = vsel %vm3700_vm13, %v3840_v34, %v3847_v20 }
  0x51   : > { %v1232_v57 = vshrl.u32 %v3835_v28, 16  ;;  %v1235_v59 = vshll.u32 %v3835_v28, 16  ;;  %v3891_v1 = vcombine.low %v1400_v16, %v1404_v47  ;;  %v1223_v2 = vrot.slane %v1221_v53, 5  ;;  %v3390_v33 = vld [vmem:[%s4236_s3 + $0xf0] sm:$0xff]  }
  0x52   : > { %v3893_v3 = vshll.u32 %v2724_v42, 16  ;;  %v3897_v7 = vsel %vm3710_vm14, %v620_v49, %v624_v38  ;;  %v3899_v8 = vcombine.low %v1408_v48, %v1412_v51  ;;  %v3905_v12 = vcombine.low %v3872_v54, %v3872_v54  ;;  %v3400_v38 = vld [vmem:[%s4236_s3 + $0x138] sm:$0xff]  }
  0x53   : > { %3223 = vmatpush3.bf16.msra.mxu1 %v3364_v19  ;;  %v510_v6 = vld [vmem:[#allocation2 + $0x28] sm:$0x1f]  ;;  %3093 = vmatpush3.bf16.msra.mxu0 %v3371_v10  ;;  %v1224_v18 = vor.u32 %v1223_v2, %v1220_v52  ;;  %v2726_v10 = vcombine.high %v3872_v54, %v3872_v54  ;;  %v3923_v20 = vcombine.low %v3901_v11, %v3901_v11  ;;  %v1229_v48 = vrot.slane %v3877_v56, 5  ;;  %v3407_v56 = vld [vmem:[%s4236_s3 + $0x1c0] sm:$0xff]  }
  0x54   : > { %v2655_v13 = vcombine.low %v510_v6, %v510_v6  ;;  %v2656_v14 = vcombine.high %v510_v6, %v510_v6  ;;  %v693_v15 = vld [vmem:[#allocation2 + $0x28] sm:$0x1e]  ;;  %3224 = vmatprep.subr.bf16.mxu1 %v3376_v39  ;;  %v460_v16 = vld [vmem:[#allocation2 + $0x38] sm:$0x10]  ;;  %3094 = vmatprep.subr.bf16.mxu0 %v3381_v50  ;;  %v427_v17 = vld [vmem:[#allocation2 + $0x38] sm:$0x1] }
  0x55   : > { %v2675_v22 = vcombine.low %v693_v15, %v693_v15  ;;  %v2676_v23 = vcombine.high %v693_v15, %v693_v15  ;;  %v461_v24 = vsel %vm3630_vm2, 0, %v460_v16  ;;  %v428_v25 = vsel %vm3653_vm5, 0, %v427_v17 }
  0x56   : > { %v627_v26 = vshrl.u32 %v2655_v13, 16  ;;  %v630_v19 = vshll.u32 %v2655_v13, 16  ;;  %v636_v27 = vshll.u32 %v2656_v14, 16  ;;  %462 = vst [vmem:[#allocation2 + $0x38] sm:$0x10] %v461_v24  ;;  %v1225_v29 = vrot.slane %v1224_v18, 4 }
  0x57   : > { %429 = vst [vmem:[#allocation2 + $0x38] sm:$0x1] %v428_v25  ;;  %v2686_v31 = vrot.slane %v2675_v22, 9  ;;  %v761_v32 = vrot.slane %v2676_v23, 5  ;;  %v694_v34 = vld [vmem:[#allocation2 + $0x30] sm:$0x1e]  ;;  %3225 = vmatpush3.bf16.msra.mxu1 %v3376_v39  ;;  %3095 = vmatpush3.bf16.msra.mxu0 %v3382_v55 }
  0x58   : > { %v511_v4 = vld [vmem:[#allocation2 + $0x30] sm:$0x1f]  ;;  %v629_v35 = vrot.slane %v627_v26, 4  ;;  %v632_v36 = vrot.slane %v630_v19, 5  ;;  %v638_v37 = vrot.slane %v636_v27, 5  ;;  %v2677_v21 = vcombine.low %v694_v34, %v694_v34  ;;  %3226 = vmatprep.subr.bf16.mxu1 %v3383_v62  ;;  %3096 = vmatprep.subr.bf16.mxu0 %v3388_v63 }
  0x59   : > { %v762_v39 = vsel %vm3700_vm13, %v2686_v31, %v761_v32  ;;  %v2678_v40 = vcombine.high %v694_v34, %v694_v34  ;;  %v2657_v41 = vcombine.low %v511_v4, %v511_v4  ;;  %v2658_v42 = vcombine.high %v511_v4, %v511_v4 }
  0x5a   : > { %v633_v45 = vor.u32 %v632_v36, %v629_v35  ;;  %v2691_v46 = vcombine.low %v758_v60, %v762_v39  ;;  %v2687_v47 = vrot.slane %v2677_v21, 9  ;;  %v1234_v55 = vrot.slane %v1232_v57, 4  ;;  %v1173_v35 = vld [vmem:[#allocation2 + $0x28] sm:$0x1f]  ;;  %v1174_v39 = vld [vmem:[#allocation2 + $0x30] sm:$0x1f] }
  0x5b   : > { %v765_v49 = vrot.slane %v2678_v40, 5  ;;  %3227 = vmatpush3.bf16.msra.mxu1 %v3383_v62  ;;  %v641_v50 = vshrl.u32 %v2657_v41, 16  ;;  %v644_v51 = vshll.u32 %v2657_v41, 16  ;;  %v650_v52 = vshll.u32 %v2658_v42, 16  ;;  %3097 = vmatpush3.bf16.msra.mxu0 %v3390_v33 }
  0x5c   : > { %v634_v53 = vrot.slane %v633_v45, 4  ;;  %3208 = vmatprep.mubr.bf16.mxu1 %v2691_v46  ;;  %3236 = vmatprep.subr.bf16.mxu1 %v3917_v9  ;;  %v1237_v63 = vrot.slane %v1235_v59, 5  ;;  %v2728_v60 = vcombine.high %v3901_v11, %v3901_v11  ;;  %v3948_v57 = vsel %vm3710_vm14, %v1225_v29, %v1229_v48  ;;  %v3370_v59 = vld [vmem:[#allocation2 + $0x20] ss:$8 sps:$4 sm:$0xff]  }
  0x5d   : > { %v695_v62 = vld [vmem:[#allocation2 + $0x38] sm:$0x1e]  ;;  %v766_v2 = vsel %vm3700_vm13, %v2687_v47, %v765_v49  ;;  %v643_v13 = vrot.slane %v641_v50, 4  ;;  %v646_v14 = vrot.slane %v644_v51, 5  ;;  %3098 = vmatprep.subr.bf16.mxu0 %v3400_v38  ;;  %v652_v23 = vrot.slane %v650_v52, 5 }
  0x5e   : > { %v512_v6 = vld [vmem:[#allocation2 + $0x38] sm:$0x1f]  ;;  %v639_v28 = vsel %vm3710_vm14, %v634_v53, %v638_v37  ;;  %v2679_v15 = vcombine.low %v695_v62, %v695_v62  ;;  %v2680_v16 = vcombine.high %v695_v62, %v695_v62  ;;  %v1238_v29 = vor.u32 %v1237_v63, %v1234_v55 }
  0x5f   : > { %v2659_v17 = vcombine.low %v512_v6, %v512_v6  ;;  %v2663_v11 = vcombine.low %v3897_v7, %v639_v28  ;;  %v2660_v18 = vcombine.high %v512_v6, %v512_v6  ;;  %v647_v22 = vor.u32 %v646_v14, %v643_v13  ;;  %3099 = vmatpush3.bf16.msra.mxu0 %v3401_v43  ;;  %v3389_v55 = vld [vmem:[#allocation2 + $0x30] ss:$8 sps:$4 sm:$0xff]   ;;  %v1353_v13 = vld [vmem:[#allocation2 + $0x28] sm:$0x1e] }
  0x60   : > { %v2688_v24 = vrot.slane %v2679_v15, 9  ;;  %v769_v25 = vrot.slane %v2680_v16, 5  ;;  %3136 = vmatprep.subr.bf16.mxu0 %v3407_v56  ;;  %v1243_v31 = vrot.slane %v3893_v3, 5  ;;  %v1246_v4 = vshrl.u32 %v3905_v12, 16  ;;  %v1354_v14 = vld [vmem:[#allocation2 + $0x30] sm:$0x1e] }
  0x61   : > { %v655_v26 = vshrl.u32 %v2659_v17, 16  ;;  %v658_v19 = vshll.u32 %v2659_v17, 16  ;;  %1043 = vmatprep.mubr.bf16.mxu0 %v2663_v11  ;;  %v648_v27 = vrot.slane %v647_v22, 4  ;;  %v664_v33 = vshll.u32 %v2660_v18, 16  ;;  %v3974_v22 = vld [vmem:[#allocation2 + $0x38] sm:$0x1e] }
  0x62   : > { %1044 = vmatmul.mubr.bf16.gmra.mrb[8].mxu0 %v3370_v59  ;;  %v770_v32 = vsel %vm3700_vm13, %v2688_v24, %v769_v25  ;;  %v1239_v38 = vrot.slane %v1238_v29, 4  ;;  %v1248_v41 = vrot.slane %v1246_v4, 4  ;;  %v1249_v3 = vshll.u32 %v3905_v12, 16 }
  0x63   : > { %v657_v7 = vrot.slane %v655_v26, 4  ;;  %v660_v34 = vrot.slane %v658_v19, 5  ;;  %v2692_v36 = vcombine.low %v766_v2, %v770_v32  ;;  %v653_v37 = vsel %vm3710_vm14, %v648_v27, %v652_v23  ;;  %v3410_v26 = vld [vmem:[%s4236_s3 + $0x210] sm:$0xff]  }
  0x64   : > { %v666_v21 = vrot.slane %v664_v33, 5  ;;  %v1255_v42 = vshll.u32 %v2726_v10, 16  ;;  %v1244_v43 = vsel %vm3710_vm14, %v1239_v38, %v1243_v31  ;;  %v1260_v45 = vshrl.u32 %v3923_v20, 16  ;;  %v3408_v31 = vld [vmem:[#allocation2 + $0x8] ss:$8 sps:$4 sm:$0xff]   ;;  %v3409_v38 = vld [vmem:[%s4236_s3 + $0x180] sm:$0xff]  }
  0x65   : > { %v661_v40 = vor.u32 %v660_v34, %v657_v7  ;;  %3209 = vmatmul.mubr.bf16.gmra.mrb[4].mxu1 %v2692_v36  ;;  %v1263_v46 = vshll.u32 %v3923_v20, 16  ;;  %v1269_v47 = vshll.u32 %v2728_v60, 16  ;;  %v2737_v49 = vcombine.low %v3948_v57, %v1244_v43 }
  0x66   : > { %3228 = vmatprep.mubr.bf16.mxu1 %v3891_v1  ;;  %v1251_v50 = vrot.slane %v1249_v3, 5  ;;  %v1257_v12 = vrot.slane %v1255_v42, 5  ;;  %v1262_v51 = vrot.slane %v1260_v45, 4  ;;  %v2729_v10 = vcombine.low %v1173_v35, %v1173_v35  ;;  %v3402_v1 = vld [vmem:[%s4236_s3 + $0x208] sm:$0xff]  }
  0x67   : > { %v662_v48 = vrot.slane %v661_v40, 4  ;;  %v1265_v52 = vrot.slane %v1263_v46, 5  ;;  %v1271_v54 = vrot.slane %v1269_v47, 5  ;;  %v2730_v56 = vcombine.high %v1173_v35, %v1173_v35 }
  0x68   : > { %v1252_v63 = vor.u32 %v1251_v50, %v1248_v41  ;;  %v2731_v62 = vcombine.low %v1174_v39, %v1174_v39  ;;  %v2732_v2 = vcombine.high %v1174_v39, %v1174_v39  ;;  %v1274_v6 = vshrl.u32 %v2729_v10, 16  ;;  %v2025_v50 = vld [vmem:[#allocation2 + $0x10] sm:$0x1e] }
  0x69   : > { %v667_v53 = vsel %vm3710_vm14, %v662_v48, %v666_v21  ;;  %v1266_v60 = vor.u32 %v1265_v52, %v1262_v51  ;;  %v1277_v28 = vshll.u32 %v2729_v10, 16  ;;  %v1283_v59 = vshll.u32 %v2730_v56, 16  ;;  %v3986_v21 = vld [vmem:[#allocation2 + $0x38] sm:$0x1f]  ;;  %v397_v56 = vld [vmem:[#allocation2 + $0x40] sm:$0x1f] }
  0x6a   : > { %v2664_v20 = vcombine.low %v653_v37, %v667_v53  ;;  %v1253_v57 = vrot.slane %v1252_v63, 4  ;;  %v1288_v15 = vshrl.u32 %v2731_v62, 16  ;;  %v1276_v17 = vrot.slane %v1274_v6, 4  ;;  %v2026_v53 = vld [vmem:[#allocation2 + $0x18] sm:$0x1e] }
  0x6b   : > { %v1267_v16 = vrot.slane %v1266_v60, 4  ;;  %v1291_v11 = vshll.u32 %v2731_v62, 16  ;;  %v1297_v18 = vshll.u32 %v2732_v2, 16  ;;  %v1279_v23 = vrot.slane %v1277_v28, 5  ;;  %v2027_v28 = vld [vmem:[#allocation2 + $0x20] sm:$0x1e] }
  0x6c   : > { %1051 = vmatprep.mubr.bf16.mxu0 %v2664_v20  ;;  %v1285_v24 = vrot.slane %v1283_v59, 5  ;;  %v1290_v25 = vrot.slane %v1288_v15, 4  ;;  %v1258_v19 = vsel %vm3710_vm14, %v1253_v57, %v1257_v12  ;;  %v2749_v29 = vcombine.low %v1353_v13, %v1353_v13  ;;  %v3413_v12 = vld [vmem:[%s4236_s3 + $0x218] sm:$0xff]   ;;  %v3418_v20 = vld [vmem:[%s4236_s3 + $0x1d0] sm:$0xff]  }
  0x6d   : > { %1052 = vmatmul.mubr.bf16.gmra.mrb[12].mxu0 %v3389_v55  ;;  %3229 = vmatmul.mubr.bf16.vlgmr.msra.gmra.mrb[0].mxu1 %v3899_v8  ;;  %v1293_v27 = vrot.slane %v1291_v11, 5  ;;  %v1299_v33 = vrot.slane %v1297_v18, 5  ;;  %v1272_v32 = vsel %vm3710_vm14, %v1267_v16, %v1271_v54  ;;  %v1280_v7 = vor.u32 %v1279_v23, %v1276_v17  ;;  %v3412_v55 = vld [vmem:[%s4236_s3 + $0x188] sm:$0xff]   ;;  %v3419_v59 = vld [vmem:[#allocation2 + $0x18] ss:$8 sps:$4 sm:$0xff]   ;;  %v3420_v15 = vld [vmem:[%s4236_s3 + $0x190] sm:$0xff]  }
  0x6e   : > { %1686 = vmatprep.mubr.bf16.mxu0 %v2737_v49  ;;  %3237 = vmatpush3.bf16.msra.mxu1 %v3917_v9  ;;  %v2750_v34 = vcombine.high %v1353_v13, %v1353_v13  ;;  %v2751_v8 = vcombine.low %v1354_v14, %v1354_v14  ;;  %v2752_v35 = vcombine.high %v1354_v14, %v1354_v14  ;;  %v2761_v36 = vrot.slane %v2749_v29, 9  ;;  %v3421_v16 = vld [vmem:[%s4236_s3 + $0x220] sm:$0xff]   ;;  %v2028_v23 = vld [vmem:[#allocation2 + $0x28] sm:$0x1e] }
  0x6f   : > { %3238 = vmatprep.subr.bf16.mxu1 %v3402_v1  ;;  %v1294_v4 = vor.u32 %v1293_v27, %v1290_v25  ;;  %v299_v37 = vmax.f32 %v3719_v5, 0.0  ;;  %v1281_v9 = vrot.slane %v1280_v7, 4  ;;  %v2753_v41 = vcombine.low %v3974_v22, %v3974_v22  ;;  %v3411_v5 = vld [vmem:[%s4236_s3 + $0x1c8] sm:$0xff]   ;;  %v3422_v7 = vld [vmem:[%s4236_s3 + $0x1d8] sm:$0xff]  }
  0x70   : > { %v1415_v39 = vrot.slane %v2750_v34, 5  ;;  %v2762_v40 = vrot.slane %v2751_v8, 9  ;;  %v2738_v3 = vcombine.low %v1258_v19, %v1272_v32  ;;  %v1419_v43 = vrot.slane %v2752_v35, 5  ;;  %v1845_v32 = vld [vmem:[#allocation2 + $0x10] sm:$0x1f] }
  0x71   : > { %v1295_v42 = vrot.slane %v1294_v4, 4  ;;  %v307_v45 = vpack.c.bf16 %v299_v37, %v299_v37  ;;  %v3998_v46 = vsel %vm3710_vm14, %v1281_v9, %v1285_v24  ;;  %v2754_v48 = vcombine.high %v3974_v22, %v3974_v22  ;;  %v1846_v8 = vld [vmem:[#allocation2 + $0x18] sm:$0x1f] }
  0x72   : > { %3239 = vmatpush3.bf16.msra.mxu1 %v3402_v1  ;;  %v1416_v47 = vsel %vm3700_vm13, %v2761_v36, %v1415_v39  ;;  %v2733_v49 = vcombine.low %v3986_v21, %v3986_v21  ;;  %v1420_v52 = vsel %vm3700_vm13, %v2762_v40, %v1419_v43  ;;  %v4016_v62 = vrot.slane %v2753_v41, 9  ;;  %v3423_v39 = vld [vmem:[%s4236_s3 + $0x198] sm:$0xff]   ;;  %v3429_v40 = vld [vmem:[%s4236_s3 + $0x1e0] sm:$0xff]  }
  0x73   : > { %3240 = vmatprep.subr.bf16.mxu1 %v3410_v26  ;;  %v1300_v51 = vsel %vm3710_vm14, %v1295_v42, %v1299_v33  ;;  %v358_v54 = vshrl.u32 %v307_v45, 16  ;;  %v361_v10 = vshll.u32 %v307_v45, 16  ;;  %v2767_v63 = vcombine.low %v1416_v47, %v1420_v52  ;;  %v2029_v45 = vld [vmem:[#allocation2 + $0x30] sm:$0x1e] }
  0x74   : > { %v1302_v60 = vshrl.u32 %v2733_v49, 16  ;;  %v1305_v2 = vshll.u32 %v2733_v49, 16  ;;  %v2865_v6 = vcombine.low %v2025_v50, %v2025_v50  ;;  %v2739_v13 = vcombine.low %v3998_v46, %v1300_v51  ;;  %v3440_v46 = vld [vmem:[%s4236_s3 + $0x230] sm:$0xff]   ;;  %v3435_v51 = vld [vmem:[%s4236_s3 + $0x1a0] sm:$0xff]  }
  0x75   : > { %1687 = vmatmul.mubr.bf16.vlgmr.msra.gmra.mrb[16].mxu0 %v3408_v31  ;;  %v360_v1 = vrot.slane %v358_v54, 7  ;;  %v2866_v14 = vcombine.high %v2025_v50, %v2025_v50  ;;  %v2867_v57 = vcombine.low %v2026_v53, %v2026_v53  ;;  %3232 = vmatprep.mubr.bf16.mxu1 %v2767_v63  ;;  %v4028_v11 = vrot.slane %v2754_v48, 5 }
  0x76   : > { %3137 = vmatpush3.bf16.msra.mxu0 %v3409_v38  ;;  %1694 = vmatprep.mubr.bf16.mxu0 %v2738_v3  ;;  %v2734_v18 = vcombine.high %v3986_v21, %v3986_v21  ;;  %v2868_v22 = vcombine.high %v2026_v53, %v2026_v53  ;;  %v4032_v24 = vrot.slane %v1302_v60, 4  ;;  %v4034_v25 = vrot.slane %v1305_v2, 5 }
  0x77   : > { %3241 = vmatpush3.bf16.msra.mxu1 %v3410_v26  ;;  %3138 = vmatprep.subr.bf16.mxu0 %v3411_v5  ;;  %v363_v17 = vor.u32 %v361_v10, %v360_v1  ;;  %v4036_v26 = vrot.slane %v2865_v6, 9  ;;  %v4038_v19 = vrot.slane %v2866_v14, 5  ;;  %v4042_v33 = vrot.slane %v2867_v57, 9  ;;  %v3430_v5 = vld [vmem:[#allocation2 + $0x28] ss:$8 sps:$4 sm:$0xff]  }
  0x78   : > { %3242 = vmatprep.subr.bf16.mxu1 %v3413_v12  ;;  %v4044_v29 = vrot.slane %v2868_v22, 5  ;;  %v2869_v31 = vcombine.low %v2027_v28, %v2027_v28  ;;  %v2870_v34 = vcombine.high %v2027_v28, %v2027_v28  ;;  %v1424_v4 = vsel %vm3700_vm13, %v4016_v62, %v4028_v11  ;;  %v466_v1 = vld [vmem:[#allocation2 + $0x48] sm:$0x10]  ;;  %v3443_v22 = vld [vmem:[%s4236_s3 + $0x238] sm:$0xff]  }
  0x79   : > { %v398_v27 = vsel %vm3667_vm8, %v363_v17, %v397_v56  ;;  %v4056_v35 = vshll.u32 %v2734_v18, 16  ;;  %v2871_v36 = vcombine.low %v2028_v23, %v2028_v23  ;;  %v1308_v37 = vor.u32 %v4034_v25, %v4032_v24  ;;  %v1847_v18 = vld [vmem:[#allocation2 + $0x20] sm:$0x1f] }
  0x7a   : > { %3139 = vmatpush3.bf16.msra.mxu0 %v3412_v55  ;;  %399 = vst [vmem:[#allocation2 + $0x40] sm:$0x1f] %v398_v27  ;;  %v2076_v21 = vsel %vm3700_vm13, %v4036_v26, %v4038_v19  ;;  %v2872_v38 = vcombine.high %v2028_v23, %v2028_v23  ;;  %v2845_v9 = vcombine.low %v1845_v32, %v1845_v32  ;;  %v4074_v3 = vrot.slane %v2869_v31, 9 }
  0x7b   : > { %3243 = vmatpush3.bf16.msra.mxu1 %v3413_v12  ;;  %3140 = vmatprep.subr.bf16.mxu0 %v3418_v20  ;;  %v2080_v41 = vsel %vm3700_vm13, %v4042_v33, %v4044_v29  ;;  %v2846_v42 = vcombine.high %v1845_v32, %v1845_v32  ;;  %v2847_v43 = vcombine.low %v1846_v8, %v1846_v8  ;;  %v4079_v47 = vrot.slane %v2870_v34, 5  ;;  %v2030_v12 = vld [vmem:[#allocation2 + $0x38] sm:$0x1e] }
  0x7c   : > { %3244 = vmatprep.subr.bf16.mxu1 %v3421_v16  ;;  %v2848_v48 = vcombine.high %v1846_v8, %v1846_v8  ;;  %v1894_v49 = vshrl.u32 %v2845_v9, 16  ;;  %v1897_v50 = vshll.u32 %v2845_v9, 16  ;;  %v4084_v52 = vrot.slane %v2871_v36, 9 }
  0x7d   : > { %1695 = vmatmul.mubr.bf16.gmra.mrb[20].mxu0 %v3419_v59  ;;  %v1903_v54 = vshll.u32 %v2846_v42, 16  ;;  %v1908_v10 = vshrl.u32 %v2847_v43, 16  ;;  %v1911_v53 = vshll.u32 %v2847_v43, 16  ;;  %v4086_v55 = vrot.slane %v2872_v38, 5  ;;  %v3441_v59 = vld [vmem:[%s4236_s3 + $0x1e8] sm:$0xff]  }
  0x7e   : > { %3141 = vmatpush3.bf16.msra.mxu0 %v3420_v15  ;;  %1702 = vmatprep.mubr.bf16.mxu0 %v2739_v13  ;;  %v1896_v63 = vrot.slane %v1894_v49, 4  ;;  %v1899_v56 = vrot.slane %v1897_v50, 5  ;;  %v1917_v20 = vshll.u32 %v2848_v48, 16  ;;  %v2873_v14 = vcombine.low %v2029_v45, %v2029_v45  ;;  %v3442_v38 = vld [vmem:[%s4236_s3 + $0x1a8] sm:$0xff]  }
  0x7f   : > { %3245 = vmatpush3.bf16.msra.mxu1 %v3421_v16  ;;  %3142 = vmatprep.subr.bf16.mxu0 %v3422_v7  ;;  %v1905_v6 = vrot.slane %v1903_v54, 5  ;;  %v1910_v13 = vrot.slane %v1908_v10, 4  ;;  %v2874_v57 = vcombine.high %v2029_v45, %v2029_v45  ;;  %v1913_v17 = vrot.slane %v1911_v53, 5  ;;  %v4098_v7 = vld [vmem:[#allocation2 + $0x28] sm:$0x1f] }
  0x80   : > { %3246 = vmatprep.subr.bf16.mxu1 %v3424_v61  ;;  %v1900_v16 = vor.u32 %v1899_v56, %v1896_v63  ;;  %v1919_v23 = vrot.slane %v1917_v20, 5  ;;  %v2875_v27 = vcombine.low %v2030_v12, %v2030_v12  ;;  %v2876_v31 = vcombine.high %v2030_v12, %v2030_v12  ;;  %v4165_v20 = vld [vmem:[#allocation2 + $0x30] sm:$0x1f] }
  0x81   : > { %v463_v60 = vld [vmem:[#allocation2 + $0x40] sm:$0x10]  ;;  %v430_v2 = vld [vmem:[#allocation2 + $0x40] sm:$0x1]  ;;  %v2885_v32 = vrot.slane %v2873_v14, 9  ;;  %v1914_v8 = vor.u32 %v1913_v17, %v1910_v13  ;;  %v467_v36 = vsel %vm3630_vm2, 0, %v466_v1  ;;  %v2850_v42 = vcombine.high %v1847_v18, %v1847_v18 }
  0x82   : > { %3143 = vmatpush3.bf16.msra.mxu0 %v3423_v39  ;;  %v464_v28 = vsel %vm3630_vm2, 0, %v463_v60  ;;  %v431_v15 = vsel %vm3653_vm5, 0, %v430_v2  ;;  %v1901_v34 = vrot.slane %v1900_v16, 4  ;;  %v2886_v9 = vrot.slane %v2875_v27, 9  ;;  %468 = vst [vmem:[#allocation2 + $0x48] sm:$0x10] %v467_v36 }
  0x83   : > { %3247 = vmatpush3.bf16.msra.mxu1 %v3424_v61  ;;  %3144 = vmatprep.subr.bf16.mxu0 %v3429_v40  ;;  %465 = vst [vmem:[#allocation2 + $0x40] sm:$0x10] %v464_v28  ;;  %432 = vst [vmem:[#allocation2 + $0x40] sm:$0x1] %v431_v15  ;;  %v2091_v61 = vrot.slane %v2874_v57, 5  ;;  %v2095_v39 = vrot.slane %v2876_v31, 5  ;;  %v2849_v40 = vcombine.low %v1847_v18, %v1847_v18 }
  0x84   : > { %3248 = vmatprep.subr.bf16.mxu1 %v3440_v46  ;;  %v1309_v43 = vrot.slane %v1308_v37, 4  ;;  %v1313_v45 = vrot.slane %v4056_v35, 5  ;;  %v4114_v48 = vcombine.low %v4098_v7, %v4098_v7  ;;  %v4126_v24 = vcombine.low %v2076_v21, %v2080_v41  ;;  %v3450_v21 = vld [vmem:[%s4236_s3 + $0x1b0] sm:$0xff]   ;;  %v3459_v41 = vld [vmem:[%s4236_s3 + $0x1f8] sm:$0xff]  }
  0x85   : > { %1703 = vmatmul.mubr.bf16.gmra.mrb[24].mxu0 %v3430_v5  ;;  %v1915_v5 = vrot.slane %v1914_v8, 4  ;;  %v2084_v25 = vsel %vm3700_vm13, %v4074_v3, %v4079_v47  ;;  %v2088_v35 = vsel %vm3700_vm13, %v4084_v52, %v4086_v55  ;;  %v1922_v37 = vshrl.u32 %v2849_v40, 16  ;;  %v3460_v15 = vld [vmem:[%s4236_s3 + $0x1b8] sm:$0xff]  }
  0x86   : > { %3145 = vmatpush3.bf16.msra.mxu0 %v3435_v51  ;;  %v4138_v33 = vsel %vm3710_vm14, %v1901_v34, %v1905_v6  ;;  %v2092_v26 = vsel %vm3700_vm13, %v2885_v32, %v2091_v61  ;;  %v2096_v19 = vsel %vm3700_vm13, %v2886_v9, %v2095_v39  ;;  %v1925_v29 = vshll.u32 %v2849_v40, 16 }
  0x87   : > { %3249 = vmatpush3.bf16.msra.mxu1 %v3440_v46  ;;  %3146 = vmatprep.subr.bf16.mxu0 %v3441_v59  ;;  %v4152_v3 = vsel %vm3710_vm14, %v1915_v5, %v1919_v23  ;;  %v1924_v46 = vrot.slane %v1922_v37, 4  ;;  %v4154_v47 = vshll.u32 %v2850_v42, 16  ;;  %v1936_v49 = vshrl.u32 %v4114_v48, 16 }
  0x88   : > { %3250 = vmatprep.subr.bf16.mxu1 %v3443_v22  ;;  %v4159_v51 = vsel %vm3710_vm14, %v1309_v43, %v1313_v45  ;;  %v4161_v52 = vcombine.low %v2084_v25, %v2088_v35  ;;  %v2852_v54 = vcombine.high %v4098_v7, %v4098_v7  ;;  %v2861_v1 = vcombine.low %v4138_v33, %v4152_v3 }
  0x89   : > { %v4169_v60 = vcombine.low %v2092_v26, %v2096_v19  ;;  %v2032_v2 = vld [vmem:[#allocation2 + $0x48] sm:$0x1e]  ;;  %v1927_v6 = vrot.slane %v1925_v29, 5  ;;  %v1939_v13 = vshll.u32 %v4114_v48, 16  ;;  %v2853_v23 = vcombine.low %v4165_v20, %v4165_v20  ;;  %v433_v26 = vld [vmem:[#allocation2 + $0x48] sm:$0x1] }
  0x8a   : > { %3147 = vmatpush3.bf16.msra.mxu0 %v3442_v38  ;;  %v1356_v50 = vld [vmem:[#allocation2 + $0x40] sm:$0x1e]  ;;  %v2879_v7 = vcombine.low %v2032_v2, %v2032_v2  ;;  %v2880_v8 = vcombine.high %v2032_v2, %v2032_v2  ;;  %v2854_v36 = vcombine.high %v4165_v20, %v4165_v20  ;;  %v1938_v39 = vrot.slane %v1936_v49, 4 }
  0x8b   : > { %3251 = vmatpush3.bf16.msra.mxu1 %v3443_v22  ;;  %v1176_v12 = vld [vmem:[#allocation2 + $0x40] sm:$0x1f]  ;;  %3148 = vmatprep.subr.bf16.mxu0 %v3448_v30  ;;  %v2755_v10 = vcombine.low %v1356_v50, %v1356_v50  ;;  %v2756_v53 = vcombine.high %v1356_v50, %v1356_v50  ;;  %v1850_v22 = vld [vmem:[#allocation2 + $0x38] sm:$0x1f]  ;;  %v1928_v61 = vor.u32 %v1927_v6, %v1924_v46  ;;  %v1933_v43 = vrot.slane %v4154_v47, 5 }
  0x8c   : > { %v2735_v55 = vcombine.low %v1176_v12, %v1176_v12  ;;  %v2736_v63 = vcombine.high %v1176_v12, %v1176_v12  ;;  %v2031_v56 = vld [vmem:[#allocation2 + $0x40] sm:$0x1e]  ;;  %v2855_v40 = vcombine.low %v1850_v22, %v1850_v22  ;;  %v1941_v45 = vrot.slane %v1939_v13, 5 }
  0x8d   : > { %v2764_v14 = vrot.slane %v2755_v10, 9  ;;  %v1427_v57 = vrot.slane %v2756_v53, 5  ;;  %v2877_v17 = vcombine.low %v2031_v56, %v2031_v56  ;;  %v2878_v18 = vcombine.high %v2031_v56, %v2031_v56  ;;  %v3449_v29 = vld [vmem:[#allocation2 + $0x38] ss:$8 sps:$4 sm:$0xff]  }
  0x8e   : > { %v1316_v28 = vshrl.u32 %v2735_v55, 16  ;;  %v1319_v59 = vshll.u32 %v2735_v55, 16  ;;  %3149 = vmatpush3.bf16.msra.mxu0 %v3450_v21  ;;  %v1325_v16 = vshll.u32 %v2736_v63, 16  ;;  %v1945_v30 = vshll.u32 %v2852_v54, 16  ;;  %v1851_v47 = vld [vmem:[#allocation2 + $0x40] sm:$0x1f] }
  0x8f   : > { %3150 = vmatprep.subr.bf16.mxu0 %v3459_v41  ;;  %v1428_v27 = vsel %vm3700_vm13, %v2764_v14, %v1427_v57  ;;  %v2887_v42 = vrot.slane %v2877_v17, 9  ;;  %v2099_v62 = vrot.slane %v2878_v18, 5  ;;  %v2888_v11 = vrot.slane %v2879_v7, 9 }
  0x90   : > { %v1318_v31 = vrot.slane %v1316_v28, 4  ;;  %v1321_v32 = vrot.slane %v1319_v59, 5  ;;  %v2768_v34 = vcombine.low %v1424_v4, %v1428_v27  ;;  %v1327_v9 = vrot.slane %v1325_v16, 5  ;;  %v3465_v28 = vld [vmem:[#allocation2 + $0x10] ss:$8 sps:$4 sm:$0xff]  }
  0x91   : > { %v1950_v4 = vshrl.u32 %v2853_v23, 16  ;;  %v2103_v48 = vrot.slane %v2880_v8, 5  ;;  %v1929_v25 = vrot.slane %v1928_v61, 4  ;;  %v1942_v35 = vor.u32 %v1941_v45, %v1938_v39 }
  0x92   : > { %v1322_v38 = vor.u32 %v1321_v32, %v1318_v31  ;;  %3151 = vmatpush3.bf16.msra.mxu0 %v3460_v15  ;;  %3233 = vmatmul.mubr.bf16.gmra.mrb[4].mxu1 %v2768_v34  ;;  %v1953_v37 = vshll.u32 %v2853_v23, 16  ;;  %v2856_v21 = vcombine.high %v1850_v22, %v1850_v22  ;;  %v1964_v41 = vshrl.u32 %v2855_v40, 16 }
  0x93   : > { %3252 = vmatprep.mubr.bf16.mxu1 %v4126_v24  ;;  %v1967_v46 = vshll.u32 %v2855_v40, 16  ;;  %v1947_v50 = vrot.slane %v1945_v30, 5  ;;  %v1952_v24 = vrot.slane %v1950_v4, 4  ;;  %v1943_v54 = vrot.slane %v1942_v35, 4 }
  0x94   : > { %v1323_v5 = vrot.slane %v1322_v38, 4  ;;  %v1955_v12 = vrot.slane %v1953_v37, 5  ;;  %v1966_v10 = vrot.slane %v1964_v41, 4  ;;  %v434_v55 = vsel %vm3653_vm5, 0, %v433_v26 }
  0x95   : > { %v1969_v53 = vrot.slane %v1967_v46, 5  ;;  %435 = vst [vmem:[#allocation2 + $0x48] sm:$0x1] %v434_v55  ;;  %v2857_v63 = vcombine.low %v1851_v47, %v1851_v47  ;;  %v2100_v56 = vsel %vm3700_vm13, %v2887_v42, %v2099_v62  ;;  %v1959_v20 = vshll.u32 %v2854_v36, 16 }
  0x96   : > { %v1328_v19 = vsel %vm3710_vm14, %v1323_v5, %v1327_v9  ;;  %v1956_v2 = vor.u32 %v1955_v12, %v1952_v24  ;;  %v1973_v6 = vshll.u32 %v2856_v21, 16  ;;  %v1934_v13 = vsel %vm3710_vm14, %v1929_v25, %v1933_v43  ;;  %v3478_v9 = vld [vmem:[#allocation2 + $0x20] ss:$8 sps:$4 sm:$0xff]  }
  0x97   : > { %v2740_v49 = vcombine.low %v4159_v51, %v1328_v19  ;;  %v2104_v51 = vsel %vm3700_vm13, %v2888_v11, %v2103_v48  ;;  %v1970_v44 = vor.u32 %v1969_v53, %v1966_v10  ;;  %v1948_v14 = vsel %vm3710_vm14, %v1943_v54, %v1947_v50  ;;  %v3483_v11 = vld [vmem:[#allocation2 + $0x30] ss:$8 sps:$4 sm:$0xff]  }
  0x98   : > { %v1978_v57 = vshrl.u32 %v2857_v63, 16  ;;  %v2892_v59 = vcombine.low %v2100_v56, %v2104_v51  ;;  %v1961_v33 = vrot.slane %v1959_v20, 5  ;;  %v2858_v3 = vcombine.high %v1851_v47, %v1851_v47 }
  0x99   : > { %1710 = vmatprep.mubr.bf16.mxu0 %v2740_v49  ;;  %v1957_v58 = vrot.slane %v1956_v2, 4  ;;  %v1971_v15 = vrot.slane %v1970_v44, 4  ;;  %v1975_v16 = vrot.slane %v1973_v6, 5 }
  0x9a   : > { %1711 = vmatmul.mubr.bf16.gmra.mrb[28].mxu0 %v3449_v29  ;;  %3253 = vmatmul.mubr.bf16.vlgmr.msra.gmra.mrb[0].mxu1 %v4161_v52  ;;  %v1981_v52 = vshll.u32 %v2857_v63, 16  ;;  %v1980_v18 = vrot.slane %v1978_v57, 4  ;;  %v1987_v27 = vshll.u32 %v2858_v3, 16 }
  0x9b   : > { %2362 = vmatprep.mubr.bf16.mxu0 %v2861_v1  ;;  %3256 = vmatprep.mubr.bf16.mxu1 %v4169_v60  ;;  %v2862_v1 = vcombine.low %v1934_v13, %v1948_v14  ;;  %v1962_v7 = vsel %vm3710_vm14, %v1957_v58, %v1961_v33  ;;  %v1976_v34 = vsel %vm3710_vm14, %v1971_v15, %v1975_v16 }
  0x9c   : > { %v1852_v17 = vld [vmem:[#allocation2 + $0x48] sm:$0x1f]  ;;  %v1983_v22 = vrot.slane %v1981_v52, 5  ;;  %v2863_v39 = vcombine.low %v1962_v7, %v1976_v34  ;;  %v1989_v43 = vrot.slane %v1987_v27, 5 }
  0x9d   : > { %v2859_v60 = vcombine.low %v1852_v17, %v1852_v17  ;;  %v2860_v23 = vcombine.high %v1852_v17, %v1852_v17  ;;  %v3488_v48 = vld [vmem:[#allocation2 + $0x40] ss:$8 sps:$4 sm:$0xff]  }
  0x9e   : > { %v1984_v8 = vor.u32 %v1983_v22, %v1980_v18 }
  0x9f   : > { %v1992_v31 = vshrl.u32 %v2859_v60, 16  ;;  %v1995_v32 = vshll.u32 %v2859_v60, 16  ;;  %v2001_v61 = vshll.u32 %v2860_v23, 16 }
  0xa0   : > { %v1985_v42 = vrot.slane %v1984_v8, 4 }
  0xa1   : > { %v1994_v36 = vrot.slane %v1992_v31, 4  ;;  %v1997_v38 = vrot.slane %v1995_v32, 5  ;;  %v2003_v45 = vrot.slane %v2001_v61, 5 }
  0xa2   : > { %2363 = vmatmul.mubr.bf16.vlgmr.msra.gmra.mrb[32].mxu0 %v3465_v28  ;;  %3257 = vmatmul.mubr.bf16.gmra.mrb[4].mxu1 %v2892_v59  ;;  %v1990_v5 = vsel %vm3710_vm14, %v1985_v42, %v1989_v43 }
  0xa3   : > { %2370 = vmatprep.mubr.bf16.mxu0 %v2862_v1  ;;  %v1998_v40 = vor.u32 %v1997_v38, %v1994_v36 }
  0xa5   : > { %v1999_v30 = vrot.slane %v1998_v40, 4 }
  0xa7   : > { %v2004_v62 = vsel %vm3710_vm14, %v1999_v30, %v2003_v45 }
  0xa8   : > { %v2864_v4 = vcombine.low %v1990_v5, %v2004_v62 }
  0xaa   : > { %2371 = vmatmul.mubr.bf16.gmra.mrb[36].mxu0 %v3478_v9 }
  0xab   : > { %2378 = vmatprep.mubr.bf16.mxu0 %v2863_v39 }
  0xb2   : > { %2379 = vmatmul.mubr.bf16.gmra.mrb[40].mxu0 %v3483_v11 }
  0xb3   : > { %2386 = vmatprep.mubr.bf16.mxu0 %v2864_v4 }
  0xba   : > { %2387 = vmatmul.mubr.bf16.gmra.mrb[44].mxu0 %v3488_v48 }
 0x115   : > { %v3048_v25 = vpop.f32.mrb[0].mxu0 }
 0x116   : > { %v3049_v35 = vpop.f32.mrb[1].mxu0 }
 0x117   : > { %v3050_v37 = vadd.f32 %v3049_v35, %v3048_v25  ;;  %v3051_v26 = vpop.f32.mrb[2].mxu0 }
 0x118   : > { %v3052_v19 = vpop.f32.mrb[3].mxu0 }
 0x119   : > { %v3053_v29 = vadd.f32 %v3052_v19, %v3051_v26 }
 0x11d   : > { %v3054_v21 = vpop.f32.mrb[4].mxu0 }
 0x11e   : > { %v3055_v41 = vpop.f32.mrb[5].mxu0 }
 0x11f   : > { %v3056_v46 = vadd.f32 %v3055_v41, %v3054_v21  ;;  %v3057_v47 = vpop.f32.mrb[6].mxu0 }
 0x120   : > { %v3058_v49 = vpop.f32.mrb[7].mxu0 }
 0x121   : > { %v3059_v50 = vadd.f32 %v3058_v49, %v3057_v47 }
 0x135   : > { %v3060_v0 = vpop.f32.mrb[8].mxu0 }
 0x136   : > { %v3061_v24 = vpop.f32.mrb[9].mxu0 }
 0x137   : > { %v3062_v12 = vadd.f32 %v3061_v24, %v3060_v0  ;;  %v3063_v54 = vpop.f32.mrb[10].mxu0 }
 0x138   : > { %v3064_v10 = vpop.f32.mrb[11].mxu0 }
 0x139   : > { %v3065_v53 = vadd.f32 %v3064_v10, %v3063_v54 }
 0x140   : > { %v3066_v55 = vpop.f32.mrb[12].mxu0 }
 0x141   : > { %v3067_v63 = vpop.f32.mrb[13].mxu0 }
 0x142   : > { %v3068_v56 = vadd.f32 %v3067_v63, %v3066_v55  ;;  %v3069_v20 = vpop.f32.mrb[14].mxu0 }
 0x143   : > { %v3070_v51 = vpop.f32.mrb[15].mxu0 }
 0x144   : > { %v3071_v2 = vadd.f32 %v3070_v51, %v3069_v20 }
 0x148   : > { %v3100_v44 = vpop.f32.mrb[16].mxu0 }
 0x149   : > { %v3101_v6 = vpop.f32.mrb[17].mxu0 }
 0x14a   : > { %v3102_v13 = vadd.f32 %v3101_v6, %v3100_v44  ;;  %v3103_v14 = vpop.f32.mrb[18].mxu0 }
 0x14b   : > { %v3104_v57 = vpop.f32.mrb[19].mxu0 }
 0x14c   : > { %v3263_v52 = vadd.f32 %v3102_v13, %v3050_v37  ;;  %v3105_v28 = vadd.f32 %v3104_v57, %v3103_v14 }
 0x14e   : > { %v3269_v59 = vadd.f32 %v3105_v28, %v3053_v29 }
 0x150   : > { %v3106_v33 = vpop.f32.mrb[20].mxu0 }
 0x151   : > { %v3107_v3 = vpop.f32.mrb[21].mxu0 }
 0x152   : > { %v3108_v1 = vadd.f32 %v3107_v3, %v3106_v33  ;;  %v3109_v58 = vpop.f32.mrb[22].mxu0 }
 0x153   : > { %v3110_v15 = vpop.f32.mrb[23].mxu0 }
 0x154   : > { %v3260_v16 = vadd.f32 %v3108_v1, %v3056_v46  ;;  %v3111_v17 = vadd.f32 %v3110_v15, %v3109_v58 }
 0x156   : > { %v3266_v18 = vadd.f32 %v3111_v17, %v3059_v50 }
 0x158   : > { %v3112_v22 = vpop.f32.mrb[24].mxu0 }
 0x159   : > { %v3113_v60 = vpop.f32.mrb[25].mxu0 }
 0x15a   : > { %v3114_v23 = vadd.f32 %v3113_v60, %v3112_v22  ;;  %v3115_v27 = vpop.f32.mrb[26].mxu0 }
 0x15b   : > { %v3116_v31 = vpop.f32.mrb[27].mxu0 }
 0x15c   : > { %v3275_v32 = vadd.f32 %v3114_v23, %v3062_v12  ;;  %v3117_v7 = vadd.f32 %v3116_v31, %v3115_v27 }
 0x15e   : > { %v3281_v34 = vadd.f32 %v3117_v7, %v3065_v53 }
 0x16d   : > { %v3118_v8 = vpop.f32.mrb[28].mxu0  ;;  %v3254_v36 = vpop.f32.mrb[0].mxu1 }
 0x16e   : > { %v3119_v61 = vpop.f32.mrb[29].mxu0  ;;  %v2429_v39 = vpop.f32.mrb[1].mxu1 }
 0x16f   : > { %v3120_v38 = vadd.f32 %v3119_v61, %v3118_v8  ;;  %v3121_v9 = vpop.f32.mrb[30].mxu0  ;;  %v3255_v42 = vpop.f32.mrb[2].mxu1 }
 0x170   : > { %v3122_v40 = vpop.f32.mrb[31].mxu0  ;;  %v2432_v30 = vpop.f32.mrb[3].mxu1 }
 0x171   : > { %v3272_v43 = vadd.f32 %v3120_v38, %v3068_v56  ;;  %v3123_v45 = vadd.f32 %v3122_v40, %v3121_v9 }
 0x173   : > { %v3278_v5 = vadd.f32 %v3123_v45, %v3071_v2 }
 0x175   : > { %v3152_v62 = vpop.f32.mrb[32].mxu0  ;;  %v3258_v4 = vpop.f32.mrb[4].mxu1 }
 0x176   : > { %v3153_v11 = vpop.f32.mrb[33].mxu0  ;;  %v2445_v35 = vpop.f32.mrb[5].mxu1 }
 0x177   : > { %v3154_v48 = vadd.f32 %v3153_v11, %v3152_v62  ;;  %v3155_v25 = vpop.f32.mrb[34].mxu0  ;;  %v3259_v26 = vpop.f32.mrb[6].mxu1  ;;  %v3028_v62 = vld [vmem:[%s239_s10 + $0x18] sm:$0xff]  }
 0x178   : > { %v3156_v37 = vpop.f32.mrb[35].mxu0  ;;  %v2448_v21 = vpop.f32.mrb[7].mxu1 }
 0x179   : > { %v3264_v19 = vadd.f32 %v3263_v52, %v3154_v48  ;;  %v3157_v29 = vadd.f32 %v3156_v37, %v3155_v25 }
 0x17b   : > { %v4214_v41 = vadd.f32 %v3264_v19, %v2429_v39  ;;  %v3270_v46 = vadd.f32 %v3269_v59, %v3157_v29  ;;  %v3001_v19 = vunpack.c.l.bf16 %v3028_v62  ;;  %v3002_v29 = vunpack.c.h.bf16 %v3028_v62 }
 0x17d   : > { %v4216_v47 = vadd.f32 %v3270_v46, %v2432_v30  ;;  %v3158_v49 = vpop.f32.mrb[36].mxu0  ;;  %v3026_v30 = vld [vmem:[%s239_s10 + $0x8] sm:$0xff]  }
 0x17e   : > { %v3159_v50 = vpop.f32.mrb[37].mxu0  ;;  %v2993_v48 = vunpack.c.l.bf16 %v3026_v30  ;;  %v2994_v25 = vunpack.c.h.bf16 %v3026_v30 }
 0x17f   : > { %v2492_v0 = vadd.f32 %v4216_v47, %v4214_v41  ;;  %v3160_v24 = vadd.f32 %v3159_v50, %v3158_v49  ;;  %v3161_v12 = vpop.f32.mrb[38].mxu0 }
 0x180   : > { %v3162_v54 = vpop.f32.mrb[39].mxu0 }
 0x181   : > { %v3261_v10 = vadd.f32 %v3260_v16, %v3160_v24  ;;  %v3163_v53 = vadd.f32 %v3162_v54, %v3161_v12 }
 0x183   : > { %v3262_v55 = vadd.f32 %v3261_v10, %v3254_v36  ;;  %v3267_v63 = vadd.f32 %v3266_v18, %v3163_v53 }
 0x185   : > { %v2493_v56 = vadd.f32 %v3262_v55, %v2492_v0  ;;  %v3268_v20 = vadd.f32 %v3267_v63, %v3255_v42  ;;  %v3164_v51 = vpop.f32.mrb[40].mxu0 }
 0x186   : > { %v3165_v2 = vpop.f32.mrb[41].mxu0 }
 0x187   : > { %v2494_v44 = vadd.f32 %v3268_v20, %v2493_v56  ;;  %v3166_v6 = vadd.f32 %v3165_v2, %v3164_v51  ;;  %v3167_v13 = vpop.f32.mrb[42].mxu0 }
 0x188   : > { %v3168_v14 = vpop.f32.mrb[43].mxu0 }
 0x189   : > { %v3276_v57 = vadd.f32 %v3275_v32, %v3166_v6  ;;  %v3169_v52 = vadd.f32 %v3168_v14, %v3167_v13 }
 0x18b   : > { %v3277_v28 = vadd.f32 %v3276_v57, %v2445_v35  ;;  %v3282_v59 = vadd.f32 %v3281_v34, %v3169_v52 }
 0x18d   : > { %v2495_v33 = vadd.f32 %v3277_v28, %v2494_v44  ;;  %v3283_v3 = vadd.f32 %v3282_v59, %v2448_v21  ;;  %v3170_v1 = vpop.f32.mrb[44].mxu0 }
 0x18e   : > { %v3171_v58 = vpop.f32.mrb[45].mxu0 }
 0x18f   : > { %v2496_v15 = vadd.f32 %v3283_v3, %v2495_v33  ;;  %v3172_v16 = vadd.f32 %v3171_v58, %v3170_v1  ;;  %v3173_v17 = vpop.f32.mrb[46].mxu0 }
 0x190   : > { %v3174_v18 = vpop.f32.mrb[47].mxu0 }
 0x191   : > { %v3273_v22 = vadd.f32 %v3272_v43, %v3172_v16  ;;  %v3175_v60 = vadd.f32 %v3174_v18, %v3173_v17  ;;  %v2988_v43 = vld [vmem:[%s239_s10] sm:$0xff]  }
 0x192   : > { %v2989_v11 = vunpack.c.l.bf16 %v2988_v43 }
 0x193   : > { %v3274_v23 = vadd.f32 %v3273_v22, %v3258_v4  ;;  %v3279_v27 = vadd.f32 %v3278_v5, %v3175_v60  ;;  %v3027_v5 = vld [vmem:[%s239_s10 + $0x10] sm:$0xff]   ;;  %v2990_v4 = vunpack.c.h.bf16 %v2988_v43 }
 0x194   : > { %v2997_v37 = vunpack.c.l.bf16 %v3027_v5 }
 0x195   : > { %v2497_v31 = vadd.f32 %v3274_v23, %v2496_v15  ;;  %v3280_v7 = vadd.f32 %v3279_v27, %v3259_v26  ;;  %v2998_v26 = vunpack.c.h.bf16 %v3027_v5 }
 0x197   : > { %v2498_v8 = vadd.f32 %v3280_v7, %v2497_v31 }
 0x199   : > { %v2499_v32 = vrot.slane %v2498_v8, 4 }
 0x19b   : > { %v2500_v61 = vadd.f32 %v2499_v32, %v2498_v8 }
 0x19d   : > { %v2501_v36 = vrot.slane %v2500_v61, 2 }
 0x19f   : > { %v2502_v34 = vadd.f32 %v2501_v36, %v2500_v61 }
 0x1a1   : > { %v2503_v38 = vrot.slane %v2502_v34, 1 }
 0x1a3   : > { %v2504_v9 = vadd.f32 %v2503_v38, %v2502_v34 }
 0x1a5   : > { %v2965_v39 = vmul.f32 -0.015625, %v2504_v9 }
 0x1a7   : > { %v2508_v40 = vmul.f32 1.442695, %v2965_v39 }
 0x1a9   : > { %3489 = vpow2.f32 %v2508_v40 }
 0x1b3   : > { %v3490_v42 = vpop.eup %3489 }
 0x1b4   : > { %v2510_v45 = vadd.f32 1.0, %v3490_v42 }
 0x1b6   : > { %3491 = vrcp.f32 %v2510_v45 }
 0x1c0   : > { %v3492_v35 = vpop.eup %3491 }
 0x1c1   : > { %v2529_v21 = vmul.f32 %v3492_v35, %v4214_v41  ;;  %v2530_v46 = vmul.f32 %v3492_v35, %v4216_v47  ;;  %v2531_v49 = vmul.f32 %v3492_v35, %v3262_v55  ;;  %v2532_v50 = vmul.f32 %v3492_v35, %v3268_v20 }
 0x1c2   : > { %v2533_v0 = vmul.f32 %v3492_v35, %v3277_v28  ;;  %v2534_v24 = vmul.f32 %v3492_v35, %v3283_v3  ;;  %v2535_v12 = vmul.f32 %v3492_v35, %v3274_v23  ;;  %v2536_v54 = vmul.f32 %v3492_v35, %v3280_v7 }
 0x1c3   : > { %v2537_v10 = vadd.f32 %v2989_v11, %v2529_v21  ;;  %v2538_v53 = vadd.f32 %v2990_v4, %v2530_v46  ;;  %v2539_v63 = vadd.f32 %v2993_v48, %v2531_v49  ;;  %v2540_v56 = vadd.f32 %v2994_v25, %v2532_v50 }
 0x1c4   : > { %v2541_v51 = vadd.f32 %v2997_v37, %v2533_v0  ;;  %v2542_v2 = vadd.f32 %v2998_v26, %v2534_v24  ;;  %v2543_v44 = vadd.f32 %v3001_v19, %v2535_v12  ;;  %v2544_v41 = vadd.f32 %v3002_v29, %v2536_v54 }
 0x1c5   : > { %v3006_v6 = vpack.c.bf16 %v2538_v53, %v2537_v10  ;;  %v3011_v47 = vpack.c.bf16 %v2540_v56, %v2539_v63 }
 0x1c6   : > { %v3016_v55 = vpack.c.bf16 %v2542_v2, %v2541_v51  ;;  %v3021_v20 = vpack.c.bf16 %v2544_v41, %v2543_v44 }
 0x1c7   : > { %3007 = vst [vmem:[%s244_s13] sm:$0xff] %v3006_v6   ;;  %3029 = vst [vmem:[%s244_s13 + $0x8] sm:$0xff] %v3011_v47  }
 0x1c8   : > { %3030 = vst [vmem:[%s244_s13 + $0x10] sm:$0xff] %v3016_v55   ;;  %3031 = vst [vmem:[%s244_s13 + $0x18] sm:$0xff] %v3021_v20  }
 0x1c9 PF: > { %s15_s18 = sadd.s32 1, %s3499_s18  }
 0x1ca   : > { %p12_p4 = scmp.ge.s32.totalorder %s15_s18, 4  }
 0x1cc   :  { %14 = sbr.rel (!%p12_p4) target bundleno = 1 (0x1), region = 78 }

// kernel: _lambda_.6
= control target key start
LH: loop header
LB: loop body
LE: loop exit
PB: predicated region body
PF: predicated region fallthrough
CT: control target
= control target key end

     0   :  { %s3255_s15 = smov 0   ;;  %s3257_s16 = smov 0   ;;  %s3905_s0 = inlined_call_operand.vmem [shape: bf16[2,8,8,128], index: 0, kind: input, shape index: {}]   ;;  %s3906_s1 = inlined_call_operand.vmem [shape: f32[1,128], index: 1, kind: input, shape index: {}]   ;;  %s3907_s2 = inlined_call_operand.vmem [shape: f32[1,128], index: 2, kind: input, shape index: {}]   ;;  %s3908_s3 = inlined_call_operand.vmem [shape: bf16[1152,128], index: 3, kind: input, shape index: {}]   ;;  %s3909_s4 = inlined_call_operand.vmem [shape: bf16[2,8,8,128], index: 4, kind: output, shape index: {}]  }
   0x1   :  { %s3259_s17 = smov 0  }
   0x2 LB: > { %s26_s18 = sadd.s32 1, %s3223_s16  ;;  %p2505_p0 = scmp.ge.s32.totalorder %s3227_s17, 1  ;;  %s3227_s17 = sphi %s3259_s17, %s14_s17   ;;  %s3223_s16 = sphi %s3257_s16, %s3921_s16   ;;  %s3219_s15 = sphi %s3255_s15, %s3920_s15  }
   0x3   : > { %p28_p1 = scmp.ge.s32.totalorder %s26_s18, 2  ;;  %p176_p2 = scmp.lt.s32.totalorder %s3227_s17, 3 }
   0x5   : > { %s3923_s18 = smov (%p28_p1, %s26_s18), 0  ;;  %p177_p3 = pnand %p2505_p0, %p176_p2 }
   0x6   : > { %v3025_v0 = vld [vmem:[%s3908_s3 + $0xc0] sm:$0xff] (!%p177_p3)   ;;  %v3027_v2 = vld [vmem:[%s3908_s3 + $0xc8] sm:$0xff] (!%p177_p3)   ;;  %v3031_v6 = vld [vmem:[%s3908_s3 + $0xd0] sm:$0xff] (!%p177_p3)   ;;  %v3229_v8 = vmov (!%p177_p3), 0   ;;  %p206_p4 = scmp.lt.s32.totalorder (!%p177_p3), %s3219_s15, 1  ;;  %vm471_vm0 = vcmask (!%p177_p3), 1044484  }
   0x7   : > { %180 = sbr.rel (%p177_p3) target bundleno = 390 (0x186), region = 36  ;;  %v3026_v1 = vld [vmem:[%s3908_s3 + $0x80] sm:$0xff] (!%p177_p3)   ;;  %2828 = vmatprep.subr.bf16.mxu1 (!%p177_p3), %v3025_v0  ;;  %v3028_v3 = vld [vmem:[%s3908_s3 + $0x88] sm:$0xff] (!%p177_p3)   ;;  %v3032_v7 = vld [vmem:[%s3908_s3 + $0x90] sm:$0xff] (!%p177_p3)   ;;  %383 = vst [vmem:[#allocation2] sm:$0xff] (!%p177_p3), %v3229_v8  ;;  %vm438_vm2 = vcmask (!%p177_p3), 1040384  }
   0x8   : > { %2829 = vmatpush3.bf16.msra.mxu1 (!%p177_p3), %v3026_v1  ;;  %v3029_v4 = vld [vmem:[%s3908_s3 + $0x40] sm:$0xff] (!%p177_p3)   ;;  %412 = vst [vmem:[#allocation2 + $0x48] sm:$0xff] (!%p177_p3), %v3229_v8  ;;  %v3033_v9 = vld [vmem:[%s3908_s3 + $0x48] sm:$0xff] (!%p177_p3)   ;;  %v3035_v11 = vld [vmem:[%s3908_s3 + $0xd8] sm:$0xff] (!%p177_p3)   ;;  %vm472_vm1 = vsmask.f32 (!%p177_p3), 7954 }
   0x9   : > { %2830 = vmatprep.subr.bf16.mxu1 (!%p177_p3), %v3027_v2  ;;  %v3030_v5 = vld [vmem:[%s3908_s3] sm:$0xff] (!%p177_p3)   ;;  %2788 = vmatprep.subr.bf16.mxu0 (!%p177_p3), %v3029_v4  ;;  %v3034_v10 = vld [vmem:[%s3908_s3 + $0x8] sm:$0xff] (!%p177_p3)   ;;  %v3036_v12 = vld [vmem:[%s3908_s3 + $0x98] sm:$0xff] (!%p177_p3)   ;;  %vm439_vm3 = vsmask.f32 (!%p177_p3), 256  ;;  %vm352_vm7 = vcmask (!%p177_p3), 1044480  }
   0xa   : > { %2789 = vmatpush3.bf16.msra.mxu0 (!%p177_p3), %v3030_v5  ;;  %v3037_v13 = vld [vmem:[%s3908_s3 + $0x50] sm:$0xff] (!%p177_p3)   ;;  %v3039_v15 = vld [vmem:[%s3908_s3 + $0xe0] sm:$0xff] (!%p177_p3)   ;;  %v3041_v17 = vld [vmem:[%s3908_s3 + $0x58] sm:$0xff] (!%p177_p3)   ;;  %vm353_vm6 = vsmask.f32 (!%p177_p3), 4354  ;;  %vm771_vm9 = vcmask (!%p177_p3), 1042432  }
   0xb   : > { %2790 = vmatprep.subr.bf16.mxu0 (!%p177_p3), %v3033_v9  ;;  %v3038_v14 = vld [vmem:[%s3908_s3 + $0x10] sm:$0xff] (!%p177_p3)   ;;  %v3040_v16 = vld [vmem:[%s3908_s3 + $0xa0] sm:$0xff] (!%p177_p3)   ;;  %v3042_v18 = vld [vmem:[%s3908_s3 + $0x18] sm:$0xff] (!%p177_p3)   ;;  %vm772_vm10 = vcmask (!%p177_p3), 1046532   ;;  %vm588_vm11 = vsmask.f32 (!%p177_p3), 3328 }
   0xc   : > { %2831 = vmatpush3.bf16.msra.mxu1 (!%p177_p3), %v3028_v3  ;;  %v3043_v19 = vld [vmem:[%s3908_s3 + $0xe8] sm:$0xff] (!%p177_p3)   ;;  %v3045_v21 = vld [vmem:[%s3908_s3 + $0x60] sm:$0xff] (!%p177_p3)   ;;  %v3047_v23 = vld [vmem:[%s3908_s3 + $0xf0] sm:$0xff] (!%p177_p3)   ;;  %vm589_vm12 = vsmask.f32 (!%p177_p3), 7440 }
   0xd   : > { %2832 = vmatprep.subr.bf16.mxu1 (!%p177_p3), %v3031_v6  ;;  %v3044_v20 = vld [vmem:[%s3908_s3 + $0xa8] sm:$0xff] (!%p177_p3)   ;;  %v3046_v22 = vld [vmem:[%s3908_s3 + $0x20] sm:$0xff] (!%p177_p3)   ;;  %v3048_v24 = vld [vmem:[%s3908_s3 + $0xb0] sm:$0xff] (!%p177_p3)  }
   0xe   : > { %2791 = vmatpush3.bf16.msra.mxu0 %v3034_v10  ;;  %s3925_s15 = smov (!%p206_p4, %s3219_s15), 1  ;;  %v3049_v25 = vld [vmem:[%s3908_s3 + $0x68] sm:$0xff]   ;;  %v3051_v27 = vld [vmem:[%s3908_s3 + $0xf8] sm:$0xff]   ;;  %v3053_v29 = vld [vmem:[%s3908_s3 + $0x70] sm:$0xff]  }
   0xf   : > { %2792 = vmatprep.subr.bf16.mxu0 %v3037_v13  ;;  %s2744_s25 = sshll.u32 %s3925_s15, 5  ;;  %v3050_v26 = vld [vmem:[%s3908_s3 + $0x28] sm:$0xff]   ;;  %v3052_v28 = vld [vmem:[%s3908_s3 + $0xb8] sm:$0xff]   ;;  %v3054_v30 = vld [vmem:[%s3908_s3 + $0x30] sm:$0xff]  }
  0x10   : > { %2833 = vmatpush3.bf16.msra.mxu1 %v3032_v7  ;;  %s3369_s8 = scalar_lea.vmem %s3905_s0, %s2744_s25  ;;  %v3380_v31 = vld [vmem:[%s3906_s1] ss:$0 sm:$0xff]  ;;  %v474_v36 = vld [vmem:[#allocation2] sm:$0x10]  ;;  %vm3390_vm4 = vmand %vm471_vm0, %vm472_vm1  ;;  %s219_s23 = scalar_lea.vmem %s3909_s4, %s2744_s25 }
  0x11   : > { %2834 = vmatprep.subr.bf16.mxu1 %v3035_v11  ;;  %v2747_v32 = vld [vmem:[%s3369_s8] sm:$0xff]   ;;  %v475_v43 = vsel %vm3390_vm4, 0, %v474_v36  ;;  %v3062_v44 = vld [vmem:[%s3908_s3 + $0x78] sm:$0xff]   ;;  %vm3404_vm5 = vmand %vm438_vm2, %vm439_vm3 }
  0x12   : > { %2793 = vmatpush3.bf16.msra.mxu0 %v3038_v14  ;;  %v2748_v33 = vunpack.c.l.bf16 %v2747_v32  ;;  %v2749_v34 = vunpack.c.h.bf16 %v2747_v32  ;;  %v3386_v35 = vld [vmem:[%s3907_s2] ss:$0 sm:$0xff]  ;;  %476 = vst [vmem:[#allocation2] sm:$0x10] %v475_v43  ;;  %v3063_v48 = vld [vmem:[%s3908_s3 + $0x38] sm:$0xff]   ;;  %v2782_v58 = vld [vmem:[%s3369_s8 + $0x8] sm:$0xff]  }
  0x13   : > { %2794 = vmatprep.subr.bf16.mxu0 %v3041_v17  ;;  %v3060_v40 = vld [vmem:[%s3908_s3 + $0x1c0] sm:$0xff]   ;;  %v355_v59 = vld [vmem:[#allocation2 + $0x8] sm:$0x1f]  ;;  %v2752_v60 = vunpack.c.l.bf16 %v2782_v58  ;;  %v2753_v61 = vunpack.c.h.bf16 %v2782_v58  ;;  %v358_v0 = vld [vmem:[#allocation2 + $0x10] sm:$0x1f] }
  0x14   : > { %2835 = vmatpush3.bf16.msra.mxu1 %v3036_v12  ;;  %v249_v37 = vmul.f32 %v2748_v33, %v3380_v31  ;;  %v250_v38 = vmul.f32 %v2749_v34, %v3380_v31  ;;  %v441_v51 = vld [vmem:[#allocation2] sm:$0x1]  ;;  %vm3419_vm8 = vmand %vm352_vm7, %vm353_vm6  ;;  %v3819_v39 = vld [vmem:[%s3908_s3 + $0x238] sm:$0xff]  }
  0x15   : > { %2836 = vmatprep.subr.bf16.mxu1 %v3039_v15  ;;  %v442_v52 = vsel %vm3404_vm5, 0, %v441_v51  ;;  %v3070_v57 = vld [vmem:[%s3908_s3 + $0x140] sm:$0xff]   ;;  %v251_v2 = vmul.f32 %v2752_v60, %v3380_v31  ;;  %v252_v3 = vmul.f32 %v2753_v61, %v3380_v31  ;;  %vm3452_vm13 = vmor %vm771_vm9, %vm772_vm10 }
  0x16   : > { %2795 = vmatpush3.bf16.msra.mxu0 %v3042_v18  ;;  %v263_v41 = vadd.f32 %v3386_v35, %v249_v37  ;;  %v264_v42 = vadd.f32 %v3386_v35, %v250_v38  ;;  %443 = vst [vmem:[#allocation2] sm:$0x1] %v442_v52  ;;  %vm3476_vm14 = vmor %vm588_vm11, %vm589_vm12 }
  0x17   : > { %2796 = vmatprep.subr.bf16.mxu0 %v3045_v21  ;;  %v265_v6 = vadd.f32 %v3386_v35, %v251_v2  ;;  %v266_v7 = vadd.f32 %v3386_v35, %v252_v3 }
  0x18   : > { %2837 = vmatpush3.bf16.msra.mxu1 %v3040_v16  ;;  %v271_v45 = vmax.f32 %v263_v41, 0.0  ;;  %v272_v46 = vmax.f32 %v264_v42, 0.0 }
  0x19   : > { %2838 = vmatprep.subr.bf16.mxu1 %v3043_v19  ;;  %v273_v11 = vmax.f32 %v265_v6, 0.0  ;;  %v274_v12 = vmax.f32 %v266_v7, 0.0  ;;  %v723_v16 = vld [vmem:[#allocation2] sm:$0x1e] }
  0x1a   : > { %2797 = vmatpush3.bf16.msra.mxu0 %v3046_v22  ;;  %v279_v49 = vpack.c.bf16 %v271_v45, %v271_v45  ;;  %v280_v50 = vpack.c.bf16 %v272_v46, %v272_v46  ;;  %v2538_v38 = vcombine.low %v723_v16, %v723_v16 }
  0x1b   : > { %2798 = vmatprep.subr.bf16.mxu0 %v3049_v25  ;;  %v281_v14 = vpack.c.bf16 %v273_v11, %v273_v11  ;;  %v282_v15 = vpack.c.bf16 %v274_v12, %v274_v12 }
  0x1c   : > { %2839 = vmatpush3.bf16.msra.mxu1 %v3044_v20  ;;  %v288_v53 = vshrl.u32 %v279_v49, 16  ;;  %v291_v54 = vshll.u32 %v279_v49, 16  ;;  %v295_v55 = vshrl.u32 %v280_v50, 16  ;;  %v298_v56 = vshll.u32 %v280_v50, 16 }
  0x1d   : > { %2840 = vmatprep.subr.bf16.mxu1 %v3047_v23  ;;  %v540_v10 = vld [vmem:[#allocation2] sm:$0x1f]  ;;  %v302_v19 = vshrl.u32 %v281_v14, 16  ;;  %v305_v20 = vshll.u32 %v281_v14, 16  ;;  %v309_v21 = vshrl.u32 %v282_v15, 16  ;;  %v312_v25 = vshll.u32 %v282_v15, 16 }
  0x1e   : > { %2799 = vmatpush3.bf16.msra.mxu0 %v3050_v26  ;;  %v290_v62 = vrot.slane %v288_v53, 7  ;;  %v297_v63 = vrot.slane %v295_v55, 7  ;;  %v2518_v13 = vcombine.low %v540_v10, %v540_v10  ;;  %v2519_v22 = vcombine.high %v540_v10, %v540_v10  ;;  %v2783_v26 = vld [vmem:[%s3369_s8 + $0x10] sm:$0xff]  }
  0x1f   : > { %2800 = vmatprep.subr.bf16.mxu0 %v3053_v29  ;;  %v361_v29 = vld [vmem:[#allocation2 + $0x18] sm:$0x1f]  ;;  %v2756_v32 = vunpack.c.l.bf16 %v2783_v26  ;;  %v2757_v33 = vunpack.c.h.bf16 %v2783_v26 }
  0x20   : > { %2841 = vmatpush3.bf16.msra.mxu1 %v3048_v24  ;;  %v293_v4 = vor.u32 %v291_v54, %v290_v62  ;;  %v300_v5 = vor.u32 %v298_v56, %v297_v63  ;;  %v592_v17 = vshrl.u32 %v2518_v13, 16  ;;  %v595_v18 = vshll.u32 %v2518_v13, 16 }
  0x21   : > { %2842 = vmatprep.subr.bf16.mxu1 %v3051_v27  ;;  %v304_v27 = vrot.slane %v302_v19, 7  ;;  %v253_v50 = vmul.f32 %v2756_v32, %v3380_v31  ;;  %v254_v53 = vmul.f32 %v2757_v33, %v3380_v31 }
  0x22   : > { %2801 = vmatpush3.bf16.msra.mxu0 %v3054_v30  ;;  %v356_v8 = vsel %vm3419_vm8, %v293_v4, %v355_v59  ;;  %v359_v9 = vsel %vm3419_vm8, %v300_v5, %v358_v0  ;;  %v594_v23 = vrot.slane %v592_v17, 4  ;;  %v597_v24 = vrot.slane %v595_v18, 5  ;;  %v364_v30 = vld [vmem:[#allocation2 + $0x20] sm:$0x1f] }
  0x23   : > { %2802 = vmatprep.subr.bf16.mxu0 %v3062_v44  ;;  %357 = vst [vmem:[#allocation2 + $0x8] sm:$0x1f] %v356_v8  ;;  %360 = vst [vmem:[#allocation2 + $0x10] sm:$0x1f] %v359_v9  ;;  %v307_v45 = vor.u32 %v305_v20, %v304_v27  ;;  %v267_v55 = vadd.f32 %v3386_v35, %v253_v50  ;;  %v268_v56 = vadd.f32 %v3386_v35, %v254_v53  ;;  %v3061_v27 = vld [vmem:[%s3908_s3 + $0x180] sm:$0xff]  }
  0x24   : > { %2843 = vmatpush3.bf16.msra.mxu1 %v3052_v28  ;;  %v311_v28 = vrot.slane %v309_v21, 7  ;;  %v598_v51 = vor.u32 %v597_v24, %v594_v23 }
  0x25   : > { %2908 = vmatprep.subr.bf16.mxu1 %v3060_v40  ;;  %v2539_v40 = vcombine.high %v723_v16, %v723_v16  ;;  %v362_v52 = vsel %vm3419_vm8, %v307_v45, %v361_v29  ;;  %v275_v62 = vmax.f32 %v267_v55, 0.0  ;;  %v276_v63 = vmax.f32 %v268_v56, 0.0  ;;  %v3065_v45 = vld [vmem:[%s3908_s3 + $0x188] sm:$0xff]   ;;  %v3073_v56 = vld [vmem:[%s3908_s3 + $0x100] sm:$0xff]  }
  0x26   : > { %2803 = vmatpush3.bf16.msra.mxu0 %v3063_v48  ;;  %v3440_v48 = vshll.u32 %v2519_v22, 16  ;;  %v314_v49 = vor.u32 %v312_v25, %v311_v28  ;;  %363 = vst [vmem:[#allocation2 + $0x18] sm:$0x1f] %v362_v52  ;;  %v599_v60 = vrot.slane %v598_v51, 4  ;;  %v3078_v52 = vld [vmem:[%s3908_s3 + $0x1d0] sm:$0xff]  }
  0x27   : > { %2868 = vmatprep.subr.bf16.mxu0 %v3070_v57  ;;  %v2554_v57 = vrot.slane %v2538_v38, 9  ;;  %v776_v58 = vrot.slane %v2539_v40, 5  ;;  %v3463_v15 = vpack.c.bf16 %v275_v62, %v275_v62  ;;  %v3465_v16 = vpack.c.bf16 %v276_v63, %v276_v63 }
  0x28   : > { %v365_v54 = vsel %vm3419_vm8, %v314_v49, %v364_v30  ;;  %v603_v61 = vrot.slane %v3440_v48, 5 }
  0x29   : > { %366 = vst [vmem:[#allocation2 + $0x20] sm:$0x1f] %v365_v54  ;;  %v777_v3 = vsel %vm3452_vm13, %v2554_v57, %v776_v58  ;;  %v316_v48 = vshrl.u32 %v3463_v15, 16  ;;  %v319_v49 = vshll.u32 %v3463_v15, 16  ;;  %v323_v50 = vshrl.u32 %v3465_v16, 16 }
  0x2a   : > { %v444_v34 = vld [vmem:[#allocation2 + $0x8] sm:$0x1]  ;;  %v447_v36 = vld [vmem:[#allocation2 + $0x10] sm:$0x1]  ;;  %v477_v37 = vld [vmem:[#allocation2 + $0x8] sm:$0x10] }
  0x2b   : > { %v445_v41 = vsel %vm3404_vm5, 0, %v444_v34  ;;  %v448_v42 = vsel %vm3404_vm5, 0, %v447_v36  ;;  %v478_v43 = vsel %vm3390_vm4, 0, %v477_v37  ;;  %v480_v44 = vld [vmem:[#allocation2 + $0x10] sm:$0x10]  ;;  %v3064_v34 = vld [vmem:[%s3908_s3 + $0x1c8] sm:$0xff]  }
  0x2c   : > { %446 = vst [vmem:[#allocation2 + $0x8] sm:$0x1] %v445_v41  ;;  %449 = vst [vmem:[#allocation2 + $0x10] sm:$0x1] %v448_v42  ;;  %v481_v46 = vsel %vm3390_vm4, 0, %v480_v44  ;;  %v3486_v44 = vld [vmem:[%s3369_s8 + $0x18] sm:$0xff]  }
  0x2d   : > { %479 = vst [vmem:[#allocation2 + $0x8] sm:$0x10] %v478_v43  ;;  %482 = vst [vmem:[#allocation2 + $0x10] sm:$0x10] %v481_v46  ;;  %v450_v9 = vld [vmem:[#allocation2 + $0x18] sm:$0x1]  ;;  %v604_v46 = vsel %vm3476_vm14, %v599_v60, %v603_v61  ;;  %v2760_v61 = vunpack.c.l.bf16 %v3486_v44  ;;  %v2761_v62 = vunpack.c.h.bf16 %v3486_v44 }
  0x2e   : > { %v483_v10 = vld [vmem:[#allocation2 + $0x18] sm:$0x10]  ;;  %v451_v11 = vsel %vm3404_vm5, 0, %v450_v9  ;;  %v3091_v44 = vld [vmem:[%s3908_s3 + $0x110] sm:$0xff]  }
  0x2f   : > { %v484_v13 = vsel %vm3390_vm4, 0, %v483_v10  ;;  %452 = vst [vmem:[#allocation2 + $0x18] sm:$0x1] %v451_v11  ;;  %v3082_v9 = vld [vmem:[%s3908_s3 + $0x1d8] sm:$0xff]  }
  0x30   : > { %v453_v12 = vld [vmem:[#allocation2 + $0x20] sm:$0x1]  ;;  %485 = vst [vmem:[#allocation2 + $0x18] sm:$0x10] %v484_v13  ;;  %v486_v13 = vld [vmem:[#allocation2 + $0x20] sm:$0x10] }
  0x31   : > { %v454_v23 = vsel %vm3404_vm5, 0, %v453_v12 }
  0x32   : > { %455 = vst [vmem:[#allocation2 + $0x20] sm:$0x1] %v454_v23  ;;  %v318_v23 = vrot.slane %v316_v48, 7 }
  0x33   : > { %v3055_v0 = vld [vmem:[#allocation2 + $0x8] ss:$8 sps:$4 sm:$0xff]  }
  0x34   : > { %v724_v2 = vld [vmem:[#allocation2 + $0x8] sm:$0x1e]  ;;  %2168 = vmatprep.mubr.bf16.mxu1 %v3055_v0  ;;  %v725_v14 = vld [vmem:[#allocation2 + $0x10] sm:$0x1e] }
  0x35   : > { %v541_v4 = vld [vmem:[#allocation2 + $0x8] sm:$0x1f]  ;;  %v2540_v5 = vcombine.low %v724_v2, %v724_v2  ;;  %v2541_v6 = vcombine.high %v724_v2, %v724_v2  ;;  %v542_v21 = vld [vmem:[#allocation2 + $0x10] sm:$0x1f]  ;;  %v2542_v24 = vcombine.low %v725_v14, %v725_v14  ;;  %v2543_v25 = vcombine.high %v725_v14, %v725_v14 }
  0x36   : > { %v2520_v7 = vcombine.low %v541_v4, %v541_v4  ;;  %v2521_v8 = vcombine.high %v541_v4, %v541_v4  ;;  %v2522_v32 = vcombine.low %v542_v21, %v542_v21  ;;  %v2523_v41 = vcombine.high %v542_v21, %v542_v21  ;;  %v3071_v0 = vld [vmem:[#allocation2] ss:$8 sps:$4 sm:$0xff]   ;;  %v3079_v4 = vld [vmem:[%s3908_s3 + $0x190] sm:$0xff]  }
  0x37   : > { %v2555_v17 = vrot.slane %v2540_v5, 9  ;;  %v780_v18 = vrot.slane %v2541_v6, 5  ;;  %v3483_v37 = vrot.slane %v2542_v24, 9  ;;  %v784_v38 = vrot.slane %v2543_v25, 5  ;;  %v726_v57 = vld [vmem:[#allocation2 + $0x18] sm:$0x1e] }
  0x38   : > { %v606_v19 = vshrl.u32 %v2520_v7, 16  ;;  %v609_v20 = vshll.u32 %v2520_v7, 16  ;;  %v615_v22 = vshll.u32 %v2521_v8, 16  ;;  %v620_v42 = vshrl.u32 %v2522_v32, 16  ;;  %v543_v60 = vld [vmem:[#allocation2 + $0x18] sm:$0x1f] }
  0x39   : > { %v781_v26 = vsel %vm3452_vm13, %v2555_v17, %v780_v18  ;;  %v623_v43 = vshll.u32 %v2522_v32, 16  ;;  %v3499_v55 = vshll.u32 %v2523_v41, 16  ;;  %v785_v58 = vsel %vm3452_vm13, %v3483_v37, %v784_v38  ;;  %v3080_v5 = vld [vmem:[%s3908_s3 + $0x148] sm:$0xff]   ;;  %v3072_v8 = vld [vmem:[#allocation2 + $0x18] ss:$8 sps:$4 sm:$0xff]  }
  0x3a   : > { %v608_v29 = vrot.slane %v606_v19, 4  ;;  %v611_v30 = vrot.slane %v609_v20, 5  ;;  %v2562_v33 = vcombine.low %v777_v3, %v781_v26  ;;  %v617_v36 = vrot.slane %v615_v22, 5  ;;  %v367_v19 = vld [vmem:[#allocation2 + $0x28] sm:$0x1f] }
  0x3b   : > { %v622_v53 = vrot.slane %v620_v42, 4  ;;  %v625_v54 = vrot.slane %v623_v43, 5  ;;  %v2544_v2 = vcombine.low %v726_v57, %v726_v57  ;;  %v2545_v3 = vcombine.high %v726_v57, %v726_v57  ;;  %v3081_v20 = vld [vmem:[%s3908_s3 + $0x108] sm:$0xff]   ;;  %v370_v25 = vld [vmem:[#allocation2 + $0x30] sm:$0x1f]  ;;  %v3096_v42 = vld [vmem:[%s3908_s3 + $0x1e0] sm:$0xff]  }
  0x3c   : > { %v612_v40 = vor.u32 %v611_v30, %v608_v29  ;;  %2169 = vmatmul.mubr.bf16.vlgmr.msra.gmra.mrb[0].mxu1 %v2562_v33  ;;  %v2524_v6 = vcombine.low %v543_v60, %v543_v60  ;;  %v2525_v10 = vcombine.high %v543_v60, %v543_v60  ;;  %v631_v12 = vrot.slane %v3499_v55, 5 }
  0x3d   : > { %2909 = vmatpush3.bf16.msra.mxu1 %v3061_v27  ;;  %v626_v11 = vor.u32 %v625_v54, %v622_v53  ;;  %v2557_v14 = vrot.slane %v2544_v2, 9  ;;  %v788_v15 = vrot.slane %v2545_v3, 5  ;;  %2176 = vmatprep.mubr.bf16.mxu1 %v3072_v8  ;;  %v325_v24 = vrot.slane %v323_v50, 7  ;;  %v3083_v27 = vld [vmem:[%s3908_s3 + $0x198] sm:$0xff]   ;;  %v3097_v50 = vld [vmem:[%s3908_s3 + $0x1a0] sm:$0xff]  }
  0x3e   : > { %v613_v51 = vrot.slane %v612_v40, 4  ;;  %2910 = vmatprep.subr.bf16.mxu1 %v3064_v34  ;;  %v634_v17 = vshrl.u32 %v2524_v6, 16  ;;  %v637_v18 = vshll.u32 %v2524_v6, 16  ;;  %v643_v22 = vshll.u32 %v2525_v10, 16  ;;  %v3098_v54 = vld [vmem:[%s3908_s3 + $0x158] sm:$0xff]   ;;  %v3106_v2 = vld [vmem:[%s3908_s3 + $0x160] sm:$0xff]  }
  0x3f   : > { %v627_v21 = vrot.slane %v626_v11, 4  ;;  %v789_v26 = vsel %vm3452_vm13, %v2557_v14, %v788_v15  ;;  %v326_v32 = vshll.u32 %v3465_v16, 16  ;;  %v321_v37 = vor.u32 %v319_v49, %v318_v23 }
  0x40   : > { %v618_v63 = vsel %vm3476_vm14, %v613_v51, %v617_v36  ;;  %v636_v29 = vrot.slane %v634_v17, 4  ;;  %v639_v30 = vrot.slane %v637_v18, 5  ;;  %v2563_v33 = vcombine.low %v785_v58, %v789_v26  ;;  %v3088_v36 = vld [vmem:[%s3908_s3 + $0x150] sm:$0xff]   ;;  %v3100_v58 = vld [vmem:[%s3908_s3 + $0x1e8] sm:$0xff]  }
  0x41   : > { %v2534_v7 = vcombine.low %v604_v46, %v618_v63  ;;  %2911 = vmatpush3.bf16.msra.mxu1 %v3065_v45  ;;  %v645_v34 = vrot.slane %v643_v22, 5  ;;  %v328_v40 = vor.u32 %v326_v32, %v325_v24  ;;  %v487_v41 = vsel %vm3390_vm4, 0, %v486_v13 }
  0x42   : > { %2912 = vmatprep.subr.bf16.mxu1 %v3078_v52  ;;  %v640_v38 = vor.u32 %v639_v30, %v636_v29  ;;  %v255_v16 = vmul.f32 %v2760_v61, %v3380_v31  ;;  %v368_v43 = vsel %vm3419_vm8, %v321_v37, %v367_v19  ;;  %488 = vst [vmem:[#allocation2 + $0x20] sm:$0x10] %v487_v41  ;;  %v3089_v52 = vld [vmem:[#allocation2 + $0x10] ss:$8 sps:$4 sm:$0xff]   ;;  %v3116_v29 = vld [vmem:[%s3908_s3 + $0x168] sm:$0xff]  }
  0x43   : > { %2103 = vmatprep.mubr.bf16.mxu0 %v2534_v7  ;;  %v256_v45 = vmul.f32 %v2761_v62, %v3380_v31  ;;  %v632_v46 = vsel %vm3476_vm14, %v627_v21, %v631_v12  ;;  %369 = vst [vmem:[#allocation2 + $0x28] sm:$0x1f] %v368_v43  ;;  %v371_v49 = vsel %vm3419_vm8, %v328_v40, %v370_v25  ;;  %v3562_v61 = vld [vmem:[#allocation2 + $0x18] sm:$0x1f]  ;;  %v3114_v21 = vld [vmem:[%s3908_s3 + $0x1f0] sm:$0xff]  }
  0x44   : > { %2104 = vmatmul.mubr.bf16.vlgmr.msra.gmra.mrb[0].mxu0 %v3071_v0  ;;  %2177 = vmatmul.mubr.bf16.gmra.mrb[4].mxu1 %v2563_v33  ;;  %v641_v48 = vrot.slane %v640_v38, 4  ;;  %v269_v51 = vadd.f32 %v3386_v35, %v255_v16  ;;  %372 = vst [vmem:[#allocation2 + $0x30] sm:$0x1f] %v371_v49  ;;  %v3099_v62 = vld [vmem:[%s3908_s3 + $0x118] sm:$0xff]   ;;  %v3101_v0 = vld [vmem:[%s3908_s3 + $0x1a8] sm:$0xff]   ;;  %v3578_v10 = vcombine.low %v3562_v61, %v3562_v61 }
  0x45   : > { %2869 = vmatpush3.bf16.msra.mxu0 %v3073_v56  ;;  %2913 = vmatpush3.bf16.msra.mxu1 %v3079_v4  ;;  %v270_v53 = vadd.f32 %v3386_v35, %v256_v45  ;;  %v1179_v56 = vld [vmem:[#allocation2 + $0x10] sm:$0x1f]  ;;  %v2625_v11 = vcombine.high %v3562_v61, %v3562_v61  ;;  %v373_v19 = vld [vmem:[#allocation2 + $0x38] sm:$0x1f] }
  0x46   : > { %2870 = vmatprep.subr.bf16.mxu0 %v3080_v5  ;;  %2914 = vmatprep.subr.bf16.mxu1 %v3082_v9  ;;  %v646_v31 = vsel %vm3476_vm14, %v641_v48, %v645_v34  ;;  %v277_v55 = vmax.f32 %v269_v51, 0.0  ;;  %v3564_v35 = vcombine.low %v1179_v56, %v1179_v56  ;;  %v2623_v4 = vcombine.high %v1179_v56, %v1179_v56  ;;  %v3118_v16 = vld [vmem:[%s3908_s3 + $0x1f8] sm:$0xff]   ;;  %v3117_v48 = vld [vmem:[%s3908_s3 + $0x128] sm:$0xff]  }
  0x47   : > { %v2535_v57 = vcombine.low %v632_v46, %v646_v31  ;;  %v278_v60 = vmax.f32 %v270_v53, 0.0  ;;  %v3124_v53 = vld [vmem:[%s3908_s3 + $0x170] sm:$0xff]  }
  0x48   : > { %v285_v63 = vpack.c.bf16 %v277_v55, %v277_v55  ;;  %v1228_v5 = vshrl.u32 %v3564_v35, 16  ;;  %v1231_v34 = vshll.u32 %v3564_v35, 16 }
  0x49   : > { %2871 = vmatpush3.bf16.msra.mxu0 %v3081_v20  ;;  %2915 = vmatpush3.bf16.msra.mxu1 %v3083_v27  ;;  %v286_v3 = vpack.c.bf16 %v278_v60, %v278_v60  ;;  %v727_v6 = vld [vmem:[#allocation2 + $0x20] sm:$0x1e]  ;;  %v3115_v27 = vld [vmem:[%s3908_s3 + $0x1b0] sm:$0xff]  }
  0x4a   : > { %2872 = vmatprep.subr.bf16.mxu0 %v3088_v36  ;;  %2916 = vmatprep.subr.bf16.mxu1 %v3096_v42  ;;  %v544_v7 = vld [vmem:[#allocation2 + $0x20] sm:$0x1f]  ;;  %v330_v8 = vshrl.u32 %v285_v63, 16  ;;  %v333_v9 = vshll.u32 %v285_v63, 16  ;;  %v456_v12 = vld [vmem:[#allocation2 + $0x28] sm:$0x1]  ;;  %v2546_v14 = vcombine.low %v727_v6, %v727_v6  ;;  %v2547_v15 = vcombine.high %v727_v6, %v727_v6 }
  0x4b   : > { %2111 = vmatprep.mubr.bf16.mxu0 %v2535_v57  ;;  %v489_v13 = vld [vmem:[#allocation2 + $0x28] sm:$0x10]  ;;  %v2526_v17 = vcombine.low %v544_v7, %v544_v7  ;;  %v337_v18 = vshrl.u32 %v286_v3, 16  ;;  %v3109_v20 = vld [vmem:[%s3908_s3 + $0x120] sm:$0xff]   ;;  %v457_v22 = vsel %vm3404_vm5, 0, %v456_v12  ;;  %v2527_v25 = vcombine.high %v544_v7, %v544_v7 }
  0x4c   : > { %2112 = vmatmul.mubr.bf16.gmra.mrb[4].mxu0 %v3089_v52  ;;  %v459_v23 = vld [vmem:[#allocation2 + $0x30] sm:$0x1]  ;;  %v490_v24 = vsel %vm3390_vm4, 0, %v489_v13  ;;  %v332_v26 = vrot.slane %v330_v8, 7  ;;  %458 = vst [vmem:[#allocation2 + $0x28] sm:$0x1] %v457_v22 }
  0x4d   : > { %2873 = vmatpush3.bf16.msra.mxu0 %v3091_v44  ;;  %2917 = vmatpush3.bf16.msra.mxu1 %v3097_v50  ;;  %v460_v30 = vsel %vm3404_vm5, 0, %v459_v23  ;;  %491 = vst [vmem:[#allocation2 + $0x28] sm:$0x10] %v490_v24  ;;  %v648_v32 = vshrl.u32 %v2526_v17, 16  ;;  %v492_v33 = vld [vmem:[#allocation2 + $0x30] sm:$0x10] }
  0x4e   : > { %2874 = vmatprep.subr.bf16.mxu0 %v3098_v54  ;;  %2918 = vmatprep.subr.bf16.mxu1 %v3100_v58  ;;  %v3601_v36 = vshll.u32 %v2623_v4, 16  ;;  %461 = vst [vmem:[#allocation2 + $0x30] sm:$0x1] %v460_v30  ;;  %v651_v37 = vshll.u32 %v2526_v17, 16  ;;  %v3603_v38 = vshll.u32 %v2527_v25, 16  ;;  %v335_v40 = vor.u32 %v333_v9, %v332_v26  ;;  %v3119_v52 = vld [vmem:[%s3908_s3 + $0x1b8] sm:$0xff]  }
  0x4f   : > { %v339_v41 = vrot.slane %v337_v18, 7  ;;  %v376_v42 = vld [vmem:[#allocation2 + $0x40] sm:$0x1f]  ;;  %v3608_v43 = vrot.slane %v2546_v14, 9  ;;  %v650_v44 = vrot.slane %v648_v32, 4  ;;  %v340_v45 = vshll.u32 %v286_v3, 16 }
  0x50   : > { %v493_v46 = vsel %vm3390_vm4, 0, %v492_v33  ;;  %v3615_v49 = vrot.slane %v2547_v15, 5  ;;  %v653_v50 = vrot.slane %v651_v37, 5  ;;  %v374_v51 = vsel %vm3419_vm8, %v335_v40, %v373_v19  ;;  %v3630_v58 = vld [vmem:[%s3908_s3 + $0x200] sm:$0xff]   ;;  %v3648_v6 = vld [vmem:[#allocation2 + $0x10] sm:$0x1e] }
  0x51   : > { %2875 = vmatpush3.bf16.msra.mxu0 %v3099_v62  ;;  %2919 = vmatpush3.bf16.msra.mxu1 %v3101_v0  ;;  %494 = vst [vmem:[#allocation2 + $0x30] sm:$0x10] %v493_v46  ;;  %v1230_v31 = vrot.slane %v1228_v5, 4  ;;  %v659_v54 = vrot.slane %v3603_v38, 5  ;;  %v342_v55 = vor.u32 %v340_v45, %v339_v41  ;;  %375 = vst [vmem:[#allocation2 + $0x38] sm:$0x1f] %v374_v51 }
  0x52   : > { %2876 = vmatprep.subr.bf16.mxu0 %v3106_v2  ;;  %2920 = vmatprep.subr.bf16.mxu1 %v3114_v21  ;;  %v1233_v56 = vrot.slane %v1231_v34, 5  ;;  %v1242_v57 = vshrl.u32 %v3578_v10, 16  ;;  %v654_v60 = vor.u32 %v653_v50, %v650_v44  ;;  %v1239_v35 = vrot.slane %v3601_v36, 5  ;;  %v3126_v0 = vld [vmem:[%s3908_s3 + $0x130] sm:$0xff]   ;;  %v3646_v5 = vld [vmem:[#allocation2 + $0x8] sm:$0x1e] }
  0x53   : > { %v1245_v62 = vshll.u32 %v3578_v10, 16  ;;  %v377_v63 = vsel %vm3419_vm8, %v342_v55, %v376_v42  ;;  %v3644_v4 = vshll.u32 %v2625_v11, 16  ;;  %v793_v1 = vsel %vm3452_vm13, %v3608_v43, %v3615_v49  ;;  %v3133_v19 = vld [vmem:[%s3908_s3 + $0x178] sm:$0xff]  }
  0x54   : > { %v1234_v2 = vor.u32 %v1233_v56, %v1230_v31  ;;  %v3639_v3 = vrot.slane %v1242_v57, 4  ;;  %v728_v7 = vld [vmem:[#allocation2 + $0x28] sm:$0x1e]  ;;  %378 = vst [vmem:[#allocation2 + $0x40] sm:$0x1f] %v377_v63  ;;  %v2590_v9 = vcombine.low %v3646_v5, %v3646_v5  ;;  %v2591_v61 = vcombine.high %v3646_v5, %v3646_v5 }
  0x55   : > { %2877 = vmatpush3.bf16.msra.mxu0 %v3109_v20  ;;  %2921 = vmatpush3.bf16.msra.mxu1 %v3115_v27  ;;  %v545_v8 = vld [vmem:[#allocation2 + $0x28] sm:$0x1f]  ;;  %v2548_v12 = vcombine.low %v728_v7, %v728_v7  ;;  %v2549_v13 = vcombine.high %v728_v7, %v728_v7  ;;  %v655_v17 = vrot.slane %v654_v60, 4  ;;  %v2592_v20 = vcombine.low %v3648_v6, %v3648_v6  ;;  %v3692_v57 = vld [vmem:[#allocation2 + $0x10] sm:$0x1f] }
  0x56   : > { %2878 = vmatprep.subr.bf16.mxu0 %v3116_v29  ;;  %2922 = vmatprep.subr.bf16.mxu1 %v3118_v16  ;;  %v3090_v11 = vld [vmem:[#allocation2 + $0x28] ss:$8 sps:$4 sm:$0xff]   ;;  %v2528_v14 = vcombine.low %v545_v8, %v545_v8  ;;  %v2529_v15 = vcombine.high %v545_v8, %v545_v8  ;;  %v1235_v18 = vrot.slane %v1234_v2, 4  ;;  %v2593_v21 = vcombine.high %v3648_v6, %v3648_v6  ;;  %v3134_v16 = vld [vmem:[%s3908_s3 + $0x138] sm:$0xff]  }
  0x57   : > { %2184 = vmatprep.mubr.bf16.mxu1 %v3090_v11  ;;  %v2559_v22 = vrot.slane %v2548_v12, 9  ;;  %v796_v23 = vrot.slane %v2549_v13, 5  ;;  %v660_v27 = vsel %vm3476_vm14, %v655_v17, %v659_v54  ;;  %v1247_v54 = vrot.slane %v1245_v62, 5  ;;  %v862_v56 = vld [vmem:[#allocation2 + $0x8] sm:$0x1f] }
  0x58   : > { %v662_v24 = vshrl.u32 %v2528_v14, 16  ;;  %v665_v25 = vshll.u32 %v2528_v14, 16  ;;  %v729_v26 = vld [vmem:[#allocation2 + $0x30] sm:$0x1e]  ;;  %v671_v29 = vshll.u32 %v2529_v15, 16  ;;  %v3687_v31 = vsel %vm3476_vm14, %v1235_v18, %v1239_v35 }
  0x59   : > { %2879 = vmatpush3.bf16.msra.mxu0 %v3117_v48  ;;  %2923 = vmatpush3.bf16.msra.mxu1 %v3119_v52  ;;  %v462_v30 = vld [vmem:[#allocation2 + $0x38] sm:$0x1]  ;;  %v495_v32 = vld [vmem:[#allocation2 + $0x38] sm:$0x10]  ;;  %v2550_v33 = vcombine.low %v729_v26, %v729_v26  ;;  %v2551_v34 = vcombine.high %v729_v26, %v729_v26  ;;  %v797_v37 = vsel %vm3452_vm13, %v2559_v22, %v796_v23  ;;  %v546_v42 = vld [vmem:[#allocation2 + $0x30] sm:$0x1f] }
  0x5a   : > { %2880 = vmatprep.subr.bf16.mxu0 %v3124_v53  ;;  %2984 = vmatprep.subr.bf16.mxu1 %v3630_v58  ;;  %v664_v38 = vrot.slane %v662_v24, 4  ;;  %v667_v40 = vrot.slane %v665_v25, 5  ;;  %v463_v41 = vsel %vm3404_vm5, 0, %v462_v30  ;;  %v2564_v43 = vcombine.low %v793_v1, %v797_v37  ;;  %v3107_v63 = vld [vmem:[#allocation2 + $0x20] ss:$8 sps:$4 sm:$0xff]  }
  0x5b   : > { %v673_v44 = vrot.slane %v671_v29, 5  ;;  %464 = vst [vmem:[#allocation2 + $0x38] sm:$0x1] %v463_v41  ;;  %v496_v45 = vsel %vm3390_vm4, 0, %v495_v32  ;;  %v3677_v46 = vrot.slane %v2550_v33, 9  ;;  %v3679_v50 = vrot.slane %v2551_v34, 5 }
  0x5c   : > { %v668_v48 = vor.u32 %v667_v40, %v664_v38  ;;  %v465_v49 = vld [vmem:[#allocation2 + $0x40] sm:$0x1]  ;;  %497 = vst [vmem:[#allocation2 + $0x38] sm:$0x10] %v496_v45  ;;  %v2530_v51 = vcombine.low %v546_v42, %v546_v42  ;;  %v2531_v52 = vcombine.high %v546_v42, %v546_v42  ;;  %2185 = vmatmul.mubr.bf16.gmra.mrb[8].mxu1 %v2564_v43  ;;  %v1253_v55 = vrot.slane %v3644_v4, 5 }
  0x5d   : > { %2881 = vmatpush3.bf16.msra.mxu0 %v3126_v0  ;;  %v466_v53 = vsel %vm3404_vm5, 0, %v465_v49  ;;  %v801_v36 = vsel %vm3452_vm13, %v3677_v46, %v3679_v50  ;;  %v3698_v35 = vld [vmem:[#allocation2 + $0x20] sm:$0x1f]  ;;  %v1248_v62 = vor.u32 %v1247_v54, %v3639_v3  ;;  %v2606_v4 = vrot.slane %v2590_v9, 9  ;;  %v1182_v49 = vld [vmem:[#allocation2 + $0x28] sm:$0x1f] }
  0x5e   : > { %2882 = vmatprep.subr.bf16.mxu0 %v3133_v19  ;;  %v669_v60 = vrot.slane %v668_v48, 4  ;;  %467 = vst [vmem:[#allocation2 + $0x40] sm:$0x1] %v466_v53  ;;  %v676_v0 = vshrl.u32 %v2530_v51, 16  ;;  %v679_v2 = vshll.u32 %v2530_v51, 16  ;;  %v685_v10 = vshll.u32 %v2531_v52, 16 }
  0x5f   : > { %v1092_v7 = vrot.slane %v2591_v61, 5  ;;  %v2607_v12 = vrot.slane %v2592_v20, 9  ;;  %v1249_v15 = vrot.slane %v1248_v62, 4  ;;  %v2570_v9 = vcombine.low %v862_v56, %v862_v56 }
  0x60   : > { %v674_v1 = vsel %vm3476_vm14, %v669_v60, %v673_v44  ;;  %v678_v8 = vrot.slane %v676_v0, 4  ;;  %v681_v11 = vrot.slane %v679_v2, 5  ;;  %v687_v14 = vrot.slane %v685_v10, 5 }
  0x61   : > { %2883 = vmatpush3.bf16.msra.mxu0 %v3134_v16  ;;  %v2536_v13 = vcombine.low %v660_v27, %v674_v1  ;;  %v1093_v3 = vsel %vm3452_vm13, %v2606_v4, %v1092_v7  ;;  %v2571_v18 = vcombine.high %v862_v56, %v862_v56  ;;  %v2572_v5 = vcombine.low %v3692_v57, %v3692_v57  ;;  %v1044_v7 = vld [vmem:[#allocation2 + $0x18] sm:$0x1e] }
  0x62   : > { %2960 = vmatprep.subr.bf16.mxu0 %v3630_v58  ;;  %v682_v17 = vor.u32 %v681_v11, %v678_v8  ;;  %v1254_v22 = vsel %vm3476_vm14, %v1249_v15, %v1253_v55  ;;  %v1096_v20 = vrot.slane %v2593_v21, 5  ;;  %v2573_v23 = vcombine.high %v3692_v57, %v3692_v57  ;;  %v3125_v10 = vld [vmem:[#allocation2 + $0x30] ss:$8 sps:$4 sm:$0xff]  }
  0x63   : > { %2119 = vmatprep.mubr.bf16.mxu0 %v2536_v13  ;;  %v730_v61 = vld [vmem:[#allocation2 + $0x38] sm:$0x1e]  ;;  %v2626_v24 = vcombine.low %v3698_v35, %v3698_v35  ;;  %v2638_v33 = vcombine.low %v3687_v31, %v1254_v22  ;;  %v911_v6 = vshrl.u32 %v2570_v9, 16  ;;  %v914_v48 = vshll.u32 %v2570_v9, 16 }
  0x64   : > { %v547_v19 = vld [vmem:[#allocation2 + $0x38] sm:$0x1f]  ;;  %2120 = vmatmul.mubr.bf16.gmra.mrb[8].mxu0 %v3107_v63  ;;  %v2552_v25 = vcombine.low %v730_v61, %v730_v61  ;;  %v2553_v26 = vcombine.high %v730_v61, %v730_v61  ;;  %v683_v32 = vrot.slane %v682_v17, 4  ;;  %v1097_v34 = vsel %vm3452_vm13, %v2607_v12, %v1096_v20 }
  0x65   : > { %v2532_v27 = vcombine.low %v547_v19, %v547_v19  ;;  %v2533_v29 = vcombine.high %v547_v19, %v547_v19  ;;  %v3108_v30 = vld [vmem:[#allocation2 + $0x38] ss:$8 sps:$4 sm:$0xff]   ;;  %v2614_v16 = vcombine.low %v1093_v3, %v1097_v34  ;;  %v913_v43 = vrot.slane %v911_v6, 4 }
  0x66   : > { %v2561_v21 = vrot.slane %v2552_v25, 9  ;;  %v804_v37 = vrot.slane %v2553_v26, 5  ;;  %2192 = vmatprep.mubr.bf16.mxu1 %v3108_v30  ;;  %v688_v41 = vsel %vm3476_vm14, %v683_v32, %v687_v14  ;;  %v920_v52 = vshll.u32 %v2571_v18, 16  ;;  %v3131_v1 = vld [vmem:[#allocation2 + $0x10] ss:$8 sps:$4 sm:$0xff]  }
  0x67   : > { %v690_v38 = vshrl.u32 %v2532_v27, 16  ;;  %v693_v40 = vshll.u32 %v2532_v27, 16  ;;  %v699_v42 = vshll.u32 %v2533_v29, 16  ;;  %v925_v53 = vshrl.u32 %v2572_v5, 16  ;;  %v1045_v14 = vld [vmem:[#allocation2 + $0x20] sm:$0x1e] }
  0x68   : > { %v805_v44 = vsel %vm3452_vm13, %v2561_v21, %v804_v37  ;;  %v916_v54 = vrot.slane %v914_v48, 5  ;;  %v928_v55 = vshll.u32 %v2572_v5, 16  ;;  %v934_v56 = vshll.u32 %v2573_v23, 16  ;;  %v864_v6 = vld [vmem:[#allocation2 + $0x18] sm:$0x1f] }
  0x69   : > { %v692_v45 = vrot.slane %v690_v38, 4  ;;  %v695_v46 = vrot.slane %v693_v40, 5  ;;  %v2565_v50 = vcombine.low %v801_v36, %v805_v44  ;;  %v701_v51 = vrot.slane %v699_v42, 5  ;;  %v865_v21 = vld [vmem:[#allocation2 + $0x20] sm:$0x1f] }
  0x6a   : > { %v922_v57 = vrot.slane %v920_v52, 5  ;;  %v927_v60 = vrot.slane %v925_v53, 4  ;;  %v2627_v63 = vcombine.high %v3698_v35, %v3698_v35  ;;  %v2628_v0 = vcombine.low %v1182_v49, %v1182_v49  ;;  %v3148_v53 = vld [vmem:[#allocation2 + $0x20] ss:$8 sps:$4 sm:$0xff]  }
  0x6b   : > { %v696_v31 = vor.u32 %v695_v46, %v692_v45  ;;  %2193 = vmatmul.mubr.bf16.gmra.mrb[12].mxu1 %v2565_v50  ;;  %v917_v62 = vor.u32 %v916_v54, %v913_v43  ;;  %v930_v4 = vrot.slane %v928_v55, 5  ;;  %v936_v36 = vrot.slane %v934_v56, 5  ;;  %v3747_v43 = vld [vmem:[%s3908_s3 + $0x210] sm:$0xff]  }
  0x6c   : > { %2298 = vmatprep.mubr.bf16.mxu1 %v2638_v33  ;;  %v2629_v8 = vcombine.high %v1182_v49, %v1182_v49  ;;  %v1256_v11 = vshrl.u32 %v2626_v24, 16  ;;  %v1259_v12 = vshll.u32 %v2626_v24, 16  ;;  %v1265_v13 = vshll.u32 %v2627_v63, 16  ;;  %v3739_v24 = vld [vmem:[%s3908_s3 + $0x208] sm:$0xff]  }
  0x6d   : > { %v697_v2 = vrot.slane %v696_v31, 4  ;;  %v918_v3 = vrot.slane %v917_v62, 4  ;;  %v931_v17 = vor.u32 %v930_v4, %v927_v60  ;;  %v1270_v35 = vshrl.u32 %v2628_v0, 16 }
  0x6e   : > { %v1258_v18 = vrot.slane %v1256_v11, 4  ;;  %v1261_v5 = vrot.slane %v1259_v12, 5  ;;  %v1267_v61 = vrot.slane %v1265_v13, 5  ;;  %v1273_v23 = vshll.u32 %v2628_v0, 16  ;;  %v1184_v0 = vld [vmem:[#allocation2 + $0x38] sm:$0x1f] }
  0x6f   : > { %v702_v15 = vsel %vm3476_vm14, %v697_v2, %v701_v51  ;;  %v923_v19 = vsel %vm3476_vm14, %v918_v3, %v922_v57  ;;  %v932_v22 = vrot.slane %v931_v17, 4  ;;  %v1272_v20 = vrot.slane %v1270_v35, 4  ;;  %v1183_v51 = vld [vmem:[#allocation2 + $0x30] sm:$0x1f]  ;;  %v3763_v12 = vld [vmem:[%s3908_s3 + $0x218] sm:$0xff]  }
  0x70   : > { %v2537_v9 = vcombine.low %v688_v41, %v702_v15  ;;  %v1262_v25 = vor.u32 %v1261_v5, %v1258_v18  ;;  %v1279_v26 = vshll.u32 %v2629_v8, 16  ;;  %v2594_v27 = vcombine.low %v1044_v7, %v1044_v7 }
  0x71   : > { %v2595_v29 = vcombine.high %v1044_v7, %v1044_v7  ;;  %v937_v30 = vsel %vm3476_vm14, %v932_v22, %v936_v36  ;;  %v1275_v32 = vrot.slane %v1273_v23, 5  ;;  %v2596_v33 = vcombine.low %v1045_v14, %v1045_v14  ;;  %v468_v36 = vld [vmem:[#allocation2 + $0x48] sm:$0x1] }
  0x72   : > { %2127 = vmatprep.mubr.bf16.mxu0 %v2537_v9  ;;  %v2597_v34 = vcombine.high %v1045_v14, %v1045_v14  ;;  %v2586_v37 = vcombine.low %v923_v19, %v937_v30  ;;  %v1263_v38 = vrot.slane %v1262_v25, 4  ;;  %v1281_v40 = vrot.slane %v1279_v26, 5  ;;  %v1046_v26 = vld [vmem:[#allocation2 + $0x28] sm:$0x1e] }
  0x73   : > { %2128 = vmatmul.mubr.bf16.gmra.mrb[12].mxu0 %v3125_v10  ;;  %2299 = vmatmul.mubr.bf16.vlgmr.msra.gmra.mrb[16].mxu1 %v3131_v1  ;;  %v2608_v41 = vrot.slane %v2594_v27, 9  ;;  %v1276_v42 = vor.u32 %v1275_v32, %v1272_v20  ;;  %v1100_v44 = vrot.slane %v2595_v29, 5  ;;  %v2609_v45 = vrot.slane %v2596_v33, 9  ;;  %v3772_v20 = vld [vmem:[%s3908_s3 + $0x220] sm:$0xff]   ;;  %v1047_v33 = vld [vmem:[#allocation2 + $0x30] sm:$0x1e] }
  0x74   : > { %2233 = vmatprep.mubr.bf16.mxu0 %v2614_v16  ;;  %2992 = vmatpush3.bf16.msra.mxu1 %v3630_v58  ;;  %v1104_v46 = vrot.slane %v2597_v34, 5  ;;  %v1268_v16 = vsel %vm3476_vm14, %v1263_v38, %v1267_v61  ;;  %v2574_v48 = vcombine.low %v864_v6, %v864_v6  ;;  %v2575_v49 = vcombine.high %v864_v6, %v864_v6  ;;  %v866_v38 = vld [vmem:[#allocation2 + $0x28] sm:$0x1f] }
  0x75   : > { %2985 = vmatprep.subr.bf16.mxu1 %v3739_v24  ;;  %v2576_v50 = vcombine.low %v865_v21, %v865_v21  ;;  %v1277_v52 = vrot.slane %v1276_v42, 4  ;;  %v1101_v31 = vsel %vm3452_vm13, %v2608_v41, %v1100_v44  ;;  %v2577_v55 = vcombine.high %v865_v21, %v865_v21 }
  0x76   : > { %v1105_v54 = vsel %vm3452_vm13, %v2609_v45, %v1104_v46  ;;  %v939_v57 = vshrl.u32 %v2574_v48, 16  ;;  %v942_v60 = vshll.u32 %v2574_v48, 16  ;;  %v948_v63 = vshll.u32 %v2575_v49, 16  ;;  %v867_v48 = vld [vmem:[#allocation2 + $0x30] sm:$0x1f] }
  0x77   : > { %v2615_v56 = vcombine.low %v1101_v31, %v1105_v54  ;;  %v1282_v2 = vsel %vm3476_vm14, %v1277_v52, %v1281_v40  ;;  %v953_v10 = vshrl.u32 %v2576_v50, 16  ;;  %v956_v62 = vshll.u32 %v2576_v50, 16  ;;  %v3787_v50 = vld [vmem:[%s3908_s3 + $0x228] sm:$0xff]  }
  0x78   : > { %2993 = vmatpush3.bf16.msra.mxu1 %v3739_v24  ;;  %v962_v4 = vshll.u32 %v2577_v55, 16  ;;  %v2639_v7 = vcombine.low %v1268_v16, %v1282_v2  ;;  %v941_v1 = vrot.slane %v939_v57, 4  ;;  %v944_v8 = vrot.slane %v942_v60, 5 }
  0x79   : > { %2986 = vmatprep.subr.bf16.mxu1 %v3747_v43  ;;  %v950_v11 = vrot.slane %v948_v63, 5  ;;  %v955_v13 = vrot.slane %v953_v10, 4  ;;  %v958_v14 = vrot.slane %v956_v62, 5  ;;  %v2630_v3 = vcombine.low %v1183_v51, %v1183_v51  ;;  %v3163_v10 = vld [vmem:[#allocation2 + $0x30] ss:$8 sps:$4 sm:$0xff]  }
  0x7a   : > { %v964_v15 = vrot.slane %v962_v4, 5  ;;  %2306 = vmatprep.mubr.bf16.mxu1 %v2639_v7  ;;  %v945_v17 = vor.u32 %v944_v8, %v941_v1  ;;  %v2631_v35 = vcombine.high %v1183_v51, %v1183_v51  ;;  %v2632_v9 = vcombine.low %v1184_v0, %v1184_v0  ;;  %v498_v7 = vld [vmem:[#allocation2 + $0x40] sm:$0x10] }
  0x7b   : > { %2234 = vmatmul.mubr.bf16.vlgmr.msra.gmra.mrb[16].mxu0 %v2586_v37  ;;  %v469_v18 = vsel %vm3404_vm5, 0, %v468_v36  ;;  %2307 = vmatmul.mubr.bf16.gmra.mrb[20].mxu1 %v3148_v53  ;;  %v959_v5 = vor.u32 %v958_v14, %v955_v13  ;;  %v2633_v61 = vcombine.high %v1184_v0, %v1184_v0  ;;  %v1284_v19 = vshrl.u32 %v2630_v3, 16  ;;  %v501_v13 = vld [vmem:[#allocation2 + $0x48] sm:$0x10]  ;;  %v1048_v14 = vld [vmem:[#allocation2 + $0x38] sm:$0x1e] }
  0x7c   : > { %2961 = vmatpush3.bf16.msra.mxu0 %v3630_v58  ;;  %v1287_v22 = vshll.u32 %v2630_v3, 16  ;;  %470 = vst [vmem:[#allocation2 + $0x48] sm:$0x1] %v469_v18  ;;  %2994 = vmatpush3.bf16.msra.mxu1 %v3747_v43  ;;  %v946_v58 = vrot.slane %v945_v17, 4  ;;  %v1293_v23 = vshll.u32 %v2631_v35, 16  ;;  %v1298_v47 = vshrl.u32 %v2632_v9, 16 }
  0x7d   : > { %2962 = vmatprep.subr.bf16.mxu0 %v3739_v24  ;;  %2241 = vmatprep.mubr.bf16.mxu0 %v2615_v56  ;;  %v1301_v25 = vshll.u32 %v2632_v9, 16  ;;  %v960_v27 = vrot.slane %v959_v5, 4  ;;  %v1286_v29 = vrot.slane %v1284_v19, 4  ;;  %v1307_v32 = vshll.u32 %v2633_v61, 16  ;;  %v3804_v9 = vld [vmem:[%s3908_s3 + $0x230] sm:$0xff]  }
  0x7e   : > { %2987 = vmatprep.subr.bf16.mxu1 %v3763_v12  ;;  %v1289_v30 = vrot.slane %v1287_v22, 5  ;;  %v951_v34 = vsel %vm3476_vm14, %v946_v58, %v950_v11  ;;  %v1295_v6 = vrot.slane %v1293_v23, 5  ;;  %v1300_v21 = vrot.slane %v1298_v47, 4  ;;  %v868_v18 = vld [vmem:[#allocation2 + $0x38] sm:$0x1f] }
  0x7f   : > { %v1303_v37 = vrot.slane %v1301_v25, 5  ;;  %v965_v40 = vsel %vm3476_vm14, %v960_v27, %v964_v15  ;;  %v1309_v42 = vrot.slane %v1307_v32, 5  ;;  %v2598_v44 = vcombine.low %v1046_v26, %v1046_v26  ;;  %v1363_v58 = vld [vmem:[#allocation2 + $0x30] sm:$0x1e]  ;;  %v3813_v32 = vld [vmem:[#allocation2 + $0x38] sm:$0x1e] }
  0x80   : > { %2963 = vmatpush3.bf16.msra.mxu0 %v3739_v24  ;;  %v1290_v41 = vor.u32 %v1289_v30, %v1286_v29  ;;  %2995 = vmatpush3.bf16.msra.mxu1 %v3763_v12  ;;  %v2587_v45 = vcombine.low %v951_v34, %v965_v40  ;;  %v2599_v24 = vcombine.high %v1046_v26, %v1046_v26  ;;  %v499_v22 = vsel %vm3390_vm4, 0, %v498_v7 }
  0x81   : > { %2964 = vmatprep.subr.bf16.mxu0 %v3747_v43  ;;  %v1304_v46 = vor.u32 %v1303_v37, %v1300_v21  ;;  %v2600_v16 = vcombine.low %v1047_v33, %v1047_v33  ;;  %2988 = vmatprep.subr.bf16.mxu1 %v3772_v20  ;;  %v2601_v51 = vcombine.high %v1047_v33, %v1047_v33  ;;  %v2610_v52 = vrot.slane %v2598_v44, 9 }
  0x82   : > { %v1291_v49 = vrot.slane %v1290_v41, 4  ;;  %v2578_v53 = vcombine.low %v866_v38, %v866_v38  ;;  %v1108_v54 = vrot.slane %v2599_v24, 5  ;;  %v2579_v56 = vcombine.high %v866_v38, %v866_v38  ;;  %500 = vst [vmem:[#allocation2 + $0x40] sm:$0x10] %v499_v22  ;;  %v3829_v24 = vld [vmem:[#allocation2 + $0x10] sm:$0x1e] }
  0x83   : > { %2242 = vmatmul.mubr.bf16.gmra.mrb[20].mxu0 %v2587_v45  ;;  %v1305_v31 = vrot.slane %v1304_v46, 4  ;;  %v2611_v55 = vrot.slane %v2600_v16, 9  ;;  %v1112_v60 = vrot.slane %v2601_v51, 5  ;;  %v2580_v63 = vcombine.low %v867_v48, %v867_v48 }
  0x84   : > { %v1296_v57 = vsel %vm3476_vm14, %v1291_v49, %v1295_v6  ;;  %2965 = vmatpush3.bf16.msra.mxu0 %v3747_v43  ;;  %v2581_v0 = vcombine.high %v867_v48, %v867_v48  ;;  %2996 = vmatpush3.bf16.msra.mxu1 %v3772_v20  ;;  %v1109_v62 = vsel %vm3452_vm13, %v2610_v52, %v1108_v54  ;;  %v967_v4 = vshrl.u32 %v2578_v53, 16 }
  0x85   : > { %v1310_v2 = vsel %vm3476_vm14, %v1305_v31, %v1309_v42  ;;  %2966 = vmatprep.subr.bf16.mxu0 %v3763_v12  ;;  %v970_v36 = vshll.u32 %v2578_v53, 16  ;;  %2989 = vmatprep.subr.bf16.mxu1 %v3787_v50  ;;  %v1113_v43 = vsel %vm3452_vm13, %v2611_v55, %v1112_v60  ;;  %v976_v8 = vshll.u32 %v2579_v56, 16 }
  0x86   : > { %v2640_v1 = vcombine.low %v1296_v57, %v1310_v2  ;;  %v981_v11 = vshrl.u32 %v2580_v63, 16  ;;  %v2616_v15 = vcombine.low %v1109_v62, %v1113_v43  ;;  %v969_v3 = vrot.slane %v967_v4, 4 }
  0x87   : > { %v972_v17 = vrot.slane %v970_v36, 5  ;;  %v984_v35 = vshll.u32 %v2580_v63, 16  ;;  %v978_v5 = vrot.slane %v976_v8, 5  ;;  %v990_v19 = vshll.u32 %v2581_v0, 16 }
  0x88   : > { %2314 = vmatprep.mubr.bf16.mxu1 %v2640_v1  ;;  %2967 = vmatpush3.bf16.msra.mxu0 %v3763_v12  ;;  %v983_v61 = vrot.slane %v981_v11, 4  ;;  %v502_v25 = vsel %vm3390_vm4, 0, %v501_v13  ;;  %v2602_v26 = vcombine.low %v1048_v14, %v1048_v14  ;;  %v2603_v27 = vcombine.high %v1048_v14, %v1048_v14 }
  0x89   : > { %2315 = vmatmul.mubr.bf16.gmra.mrb[24].mxu1 %v3163_v10  ;;  %2249 = vmatprep.mubr.bf16.mxu0 %v2616_v15  ;;  %v973_v23 = vor.u32 %v972_v17, %v969_v3  ;;  %v986_v47 = vrot.slane %v984_v35, 5  ;;  %v992_v12 = vrot.slane %v990_v19, 5  ;;  %503 = vst [vmem:[#allocation2 + $0x48] sm:$0x10] %v502_v25  ;;  %v2582_v29 = vcombine.low %v868_v18, %v868_v18  ;;  %v1185_v55 = vld [vmem:[#allocation2 + $0x40] sm:$0x1f] }
  0x8a   : > { %2997 = vmatpush3.bf16.msra.mxu1 %v3787_v50  ;;  %2968 = vmatprep.subr.bf16.mxu0 %v3772_v20  ;;  %v2583_v30 = vcombine.high %v868_v18, %v868_v18  ;;  %v3821_v6 = vrot.slane %v2602_v26, 9  ;;  %v2650_v21 = vcombine.low %v1363_v58, %v1363_v58  ;;  %v1116_v37 = vrot.slane %v2603_v27, 5  ;;  %v1049_v56 = vld [vmem:[#allocation2 + $0x40] sm:$0x1e] }
  0x8b   : > { %v974_v33 = vrot.slane %v973_v23, 4  ;;  %v987_v34 = vor.u32 %v986_v47, %v983_v61  ;;  %2990 = vmatprep.subr.bf16.mxu1 %v3804_v9  ;;  %v995_v38 = vshrl.u32 %v2582_v29, 16  ;;  %v998_v40 = vshll.u32 %v2582_v29, 16  ;;  %v869_v57 = vld [vmem:[#allocation2 + $0x40] sm:$0x1f] }
  0x8c   : > { %2969 = vmatpush3.bf16.msra.mxu0 %v3772_v20  ;;  %v1004_v41 = vshll.u32 %v2583_v30, 16  ;;  %v2651_v45 = vcombine.high %v1363_v58, %v1363_v58  ;;  %v2652_v46 = vcombine.low %v3813_v32, %v3813_v32  ;;  %v1117_v20 = vsel %vm3452_vm13, %v3821_v6, %v1116_v37  ;;  %v1365_v29 = vld [vmem:[#allocation2 + $0x40] sm:$0x1e] }
  0x8d   : > { %v979_v42 = vsel %vm3476_vm14, %v974_v33, %v978_v5  ;;  %v988_v44 = vrot.slane %v987_v34, 4  ;;  %2970 = vmatprep.subr.bf16.mxu0 %v3787_v50  ;;  %v997_v16 = vrot.slane %v995_v38, 4  ;;  %v1000_v48 = vrot.slane %v998_v40, 5 }
  0x8e   : > { %2998 = vmatpush3.bf16.msra.mxu1 %v3804_v9  ;;  %v1006_v49 = vrot.slane %v1004_v41, 5  ;;  %v2653_v52 = vcombine.high %v3813_v32, %v3813_v32  ;;  %v3840_v53 = vrot.slane %v2650_v21, 9  ;;  %v3842_v31 = vrot.slane %v2651_v45, 5 }
  0x8f   : > { %v993_v51 = vsel %vm3476_vm14, %v988_v44, %v992_v12  ;;  %2991 = vmatprep.subr.bf16.mxu1 %v3819_v39  ;;  %v1001_v60 = vor.u32 %v1000_v48, %v997_v16  ;;  %v2642_v63 = vcombine.low %v3829_v24, %v3829_v24  ;;  %v2643_v0 = vcombine.high %v3829_v24, %v3829_v24 }
  0x90   : > { %v2588_v54 = vcombine.low %v979_v42, %v993_v51  ;;  %2971 = vmatpush3.bf16.msra.mxu0 %v3787_v50  ;;  %v1186_v2 = vld [vmem:[#allocation2 + $0x48] sm:$0x1f]  ;;  %v2634_v10 = vcombine.low %v1185_v55, %v1185_v55  ;;  %v2635_v62 = vcombine.high %v1185_v55, %v1185_v55  ;;  %v2604_v4 = vcombine.low %v1049_v56, %v1049_v56 }
  0x91   : > { %v2605_v36 = vcombine.high %v1049_v56, %v1049_v56  ;;  %2972 = vmatprep.subr.bf16.mxu0 %v3804_v9  ;;  %v2636_v7 = vcombine.low %v1186_v2, %v1186_v2  ;;  %v2637_v1 = vcombine.high %v1186_v2, %v1186_v2  ;;  %v2584_v50 = vcombine.low %v869_v57, %v869_v57  ;;  %v1366_v6 = vld [vmem:[#allocation2 + $0x48] sm:$0x1e] }
  0x92   : > { %2250 = vmatmul.mubr.bf16.gmra.mrb[24].mxu0 %v2588_v54  ;;  %2999 = vmatpush3.bf16.msra.mxu1 %v3819_v39  ;;  %v1002_v43 = vrot.slane %v1001_v60, 4  ;;  %v1312_v8 = vshrl.u32 %v2634_v10, 16  ;;  %v1315_v11 = vshll.u32 %v2634_v10, 16  ;;  %v1321_v13 = vshll.u32 %v2635_v62, 16 }
  0x93   : > { %v2613_v14 = vrot.slane %v2604_v4, 9  ;;  %v1326_v15 = vshrl.u32 %v2636_v7, 16  ;;  %v1329_v3 = vshll.u32 %v2636_v7, 16  ;;  %v1335_v17 = vshll.u32 %v2637_v1, 16  ;;  %v1362_v7 = vld [vmem:[#allocation2 + $0x28] sm:$0x1e] }
  0x94   : > { %v1120_v35 = vrot.slane %v2605_v36, 5  ;;  %2973 = vmatpush3.bf16.msra.mxu0 %v3804_v9  ;;  %v1314_v18 = vrot.slane %v1312_v8, 4  ;;  %v1317_v5 = vrot.slane %v1315_v11, 5  ;;  %v1323_v61 = vrot.slane %v1321_v13, 5 }
  0x95   : > { %v2585_v19 = vcombine.high %v869_v57, %v869_v57  ;;  %2974 = vmatprep.subr.bf16.mxu0 %v3819_v39  ;;  %v1328_v22 = vrot.slane %v1326_v15, 4  ;;  %v1331_v58 = vrot.slane %v1329_v3, 5  ;;  %v1337_v23 = vrot.slane %v1335_v17, 5 }
  0x96   : > { %v1121_v47 = vsel %vm3452_vm13, %v2613_v14, %v1120_v35  ;;  %v1318_v25 = vor.u32 %v1317_v5, %v1314_v18  ;;  %v1007_v12 = vsel %vm3476_vm14, %v1002_v43, %v1006_v49  ;;  %v1009_v27 = vshrl.u32 %v2584_v50, 16  ;;  %v1360_v49 = vld [vmem:[#allocation2 + $0x18] sm:$0x1e] }
  0x97   : > { %v2617_v26 = vcombine.low %v1117_v20, %v1121_v47  ;;  %v1332_v9 = vor.u32 %v1331_v58, %v1328_v22  ;;  %v1012_v30 = vshll.u32 %v2584_v50, 16  ;;  %v1018_v33 = vshll.u32 %v2585_v19, 16 }
  0x98   : > { %v1426_v34 = vsel %vm3452_vm13, %v3840_v53, %v3842_v31  ;;  %2975 = vmatpush3.bf16.msra.mxu0 %v3819_v39  ;;  %v1319_v21 = vrot.slane %v1318_v25, 4  ;;  %v1011_v37 = vrot.slane %v1009_v27, 4  ;;  %v2663_v38 = vrot.slane %v2652_v46, 9  ;;  %v3178_v53 = vld [vmem:[#allocation2 + $0x40] ss:$8 sps:$4 sm:$0xff]  }
  0x99   : > { %2257 = vmatprep.mubr.bf16.mxu0 %v2617_v26  ;;  %v1429_v40 = vrot.slane %v2653_v52, 5  ;;  %v1333_v41 = vrot.slane %v1332_v9, 4  ;;  %v1014_v42 = vrot.slane %v1012_v30, 5  ;;  %v1020_v44 = vrot.slane %v1018_v33, 5  ;;  %v1361_v31 = vld [vmem:[#allocation2 + $0x20] sm:$0x1e] }
  0x9a   : > { %v2654_v45 = vcombine.low %v1365_v29, %v1365_v29  ;;  %v1324_v20 = vsel %vm3476_vm14, %v1319_v21, %v1323_v61  ;;  %v2655_v48 = vcombine.high %v1365_v29, %v1365_v29  ;;  %v2656_v39 = vcombine.low %v1366_v6, %v1366_v6 }
  0x9b   : > { %v1430_v16 = vsel %vm3452_vm13, %v2663_v38, %v1429_v40  ;;  %v1338_v51 = vsel %vm3476_vm14, %v1333_v41, %v1337_v23  ;;  %v1015_v32 = vor.u32 %v1014_v42, %v1011_v37  ;;  %v2657_v52 = vcombine.high %v1366_v6, %v1366_v6 }
  0x9c   : > { %v2668_v46 = vcombine.low %v1426_v34, %v1430_v16  ;;  %v2641_v54 = vcombine.low %v1324_v20, %v1338_v51  ;;  %v2664_v55 = vrot.slane %v2654_v45, 9  ;;  %v1433_v56 = vrot.slane %v2655_v48, 5 }
  0x9d   : > { %v2665_v57 = vrot.slane %v2656_v39, 9  ;;  %v1016_v60 = vrot.slane %v1015_v32, 4  ;;  %v1437_v2 = vrot.slane %v2657_v52, 5  ;;  %v2644_v10 = vcombine.low %v1360_v49, %v1360_v49 }
  0x9e   : > { %v2645_v62 = vcombine.high %v1360_v49, %v1360_v49  ;;  %2322 = vmatprep.mubr.bf16.mxu1 %v2641_v54  ;;  %v2658_v4 = vrot.slane %v2642_v63, 9  ;;  %v1409_v36 = vrot.slane %v2643_v0, 5  ;;  %v2646_v1 = vcombine.low %v1361_v31, %v1361_v31 }
  0x9f   : > { %2323 = vmatmul.mubr.bf16.gmra.mrb[28].mxu1 %v3178_v53  ;;  %v1021_v50 = vsel %vm3476_vm14, %v1016_v60, %v1020_v44  ;;  %v1434_v43 = vsel %vm3452_vm13, %v2664_v55, %v1433_v56  ;;  %v2659_v8 = vrot.slane %v2644_v10, 9  ;;  %v1438_v63 = vsel %vm3452_vm13, %v2665_v57, %v1437_v2 }
  0xa0   : > { %v1413_v11 = vrot.slane %v2645_v62, 5  ;;  %v2589_v13 = vcombine.low %v1007_v12, %v1021_v50  ;;  %2980 = vmatprep.mubr.bf16.mxu1 %v2668_v46  ;;  %v1410_v24 = vsel %vm3452_vm13, %v2658_v4, %v1409_v36  ;;  %v2647_v0 = vcombine.high %v1361_v31, %v1361_v31 }
  0xa1   : > { %v2648_v15 = vcombine.low %v1362_v7, %v1362_v7  ;;  %v2649_v28 = vcombine.high %v1362_v7, %v1362_v7  ;;  %v2660_v3 = vrot.slane %v2646_v1, 9  ;;  %v2669_v18 = vcombine.low %v1434_v43, %v1438_v63 }
  0xa2   : > { %v1414_v14 = vsel %vm3452_vm13, %v2659_v8, %v1413_v11  ;;  %2258 = vmatmul.mubr.bf16.gmra.mrb[28].mxu0 %v2589_v13  ;;  %v1417_v35 = vrot.slane %v2647_v0, 5 }
  0xa3   : > { %v2666_v17 = vcombine.low %v1410_v24, %v1414_v14  ;;  %v2661_v5 = vrot.slane %v2648_v15, 9  ;;  %v1421_v61 = vrot.slane %v2649_v28, 5 }
  0xa4   : > { %v1418_v19 = vsel %vm3452_vm13, %v2660_v3, %v1417_v35 }
  0xa5   : > { %2976 = vmatprep.mubr.bf16.mxu0 %v2666_v17  ;;  %v1422_v22 = vsel %vm3452_vm13, %v2661_v5, %v1421_v61 }
  0xa6   : > { %v2667_v58 = vcombine.low %v1418_v19, %v1422_v22 }
  0xa7   : > { %2981 = vmatmul.mubr.bf16.vlgmr.msra.gmra.mrb[32].mxu1 %v2669_v18 }
  0xaa   : > { %2977 = vmatmul.mubr.bf16.vlgmr.msra.gmra.mrb[32].mxu0 %v2667_v58 }
 0x10f   : > { %v2844_v23 = vpop.f32.mrb[0].mxu1 }
 0x110   : > { %v2845_v47 = vpop.f32.mrb[1].mxu1 }
 0x111   : > { %v2846_v25 = vadd.f32 %v2845_v47, %v2844_v23  ;;  %v2847_v26 = vpop.f32.mrb[2].mxu1 }
 0x112   : > { %v2848_v12 = vpop.f32.mrb[3].mxu1 }
 0x113   : > { %v2849_v27 = vadd.f32 %v2848_v12, %v2847_v26 }
 0x117   : > { %v2804_v29 = vpop.f32.mrb[0].mxu0  ;;  %v2850_v6 = vpop.f32.mrb[4].mxu1 }
 0x118   : > { %v2805_v9 = vpop.f32.mrb[1].mxu0  ;;  %v2851_v38 = vpop.f32.mrb[5].mxu1 }
 0x119   : > { %v2806_v30 = vadd.f32 %v2805_v9, %v2804_v29  ;;  %v2807_v33 = vpop.f32.mrb[2].mxu0  ;;  %v2852_v59 = vadd.f32 %v2851_v38, %v2850_v6  ;;  %v2853_v40 = vpop.f32.mrb[6].mxu1 }
 0x11a   : > { %v2808_v34 = vpop.f32.mrb[3].mxu0  ;;  %v2854_v42 = vpop.f32.mrb[7].mxu1 }
 0x11b   : > { %v2171_v21 = vadd.f32 %v2846_v25, %v2806_v30  ;;  %v2809_v37 = vadd.f32 %v2808_v34, %v2807_v33  ;;  %v2855_v44 = vadd.f32 %v2854_v42, %v2853_v40 }
 0x11d   : > { %v2174_v41 = vadd.f32 %v2849_v27, %v2809_v37 }
 0x11f   : > { %v2810_v45 = vpop.f32.mrb[4].mxu0 }
 0x120   : > { %v2811_v20 = vpop.f32.mrb[5].mxu0 }
 0x121   : > { %v2812_v16 = vadd.f32 %v2811_v20, %v2810_v45  ;;  %v2813_v48 = vpop.f32.mrb[6].mxu0 }
 0x122   : > { %v2814_v39 = vpop.f32.mrb[7].mxu0 }
 0x123   : > { %v2179_v49 = vadd.f32 %v2852_v59, %v2812_v16  ;;  %v2815_v51 = vadd.f32 %v2814_v39, %v2813_v48 }
 0x125   : > { %v2182_v53 = vadd.f32 %v2855_v44, %v2815_v51 }
 0x12f   : > { %v2856_v32 = vpop.f32.mrb[8].mxu1 }
 0x130   : > { %v2857_v46 = vpop.f32.mrb[9].mxu1 }
 0x131   : > { %v2858_v52 = vadd.f32 %v2857_v46, %v2856_v32  ;;  %v2859_v31 = vpop.f32.mrb[10].mxu1 }
 0x132   : > { %v2860_v54 = vpop.f32.mrb[11].mxu1 }
 0x133   : > { %v2861_v55 = vadd.f32 %v2860_v54, %v2859_v31 }
 0x137   : > { %v2816_v56 = vpop.f32.mrb[8].mxu0 }
 0x138   : > { %v2817_v57 = vpop.f32.mrb[9].mxu0 }
 0x139   : > { %v2818_v60 = vadd.f32 %v2817_v57, %v2816_v56  ;;  %v2819_v2 = vpop.f32.mrb[10].mxu0 }
 0x13a   : > { %v2820_v10 = vpop.f32.mrb[11].mxu0 }
 0x13b   : > { %v2187_v62 = vadd.f32 %v2858_v52, %v2818_v60  ;;  %v2821_v4 = vadd.f32 %v2820_v10, %v2819_v2 }
 0x13d   : > { %v2190_v36 = vadd.f32 %v2861_v55, %v2821_v4 }
 0x13e   : > { %v2862_v7 = vpop.f32.mrb[12].mxu1 }
 0x13f   : > { %v2863_v1 = vpop.f32.mrb[13].mxu1 }
 0x140   : > { %v2864_v50 = vadd.f32 %v2863_v1, %v2862_v7  ;;  %v2865_v43 = vpop.f32.mrb[14].mxu1 }
 0x141   : > { %v2866_v8 = vpop.f32.mrb[15].mxu1 }
 0x142   : > { %v2867_v11 = vadd.f32 %v2866_v8, %v2865_v43 }
 0x146   : > { %v2822_v13 = vpop.f32.mrb[12].mxu0  ;;  %v2924_v24 = vpop.f32.mrb[16].mxu1 }
 0x147   : > { %v2823_v63 = vpop.f32.mrb[13].mxu0  ;;  %v2925_v15 = vpop.f32.mrb[17].mxu1 }
 0x148   : > { %v2824_v0 = vadd.f32 %v2823_v63, %v2822_v13  ;;  %v2825_v14 = vpop.f32.mrb[14].mxu0  ;;  %v2926_v3 = vadd.f32 %v2925_v15, %v2924_v24  ;;  %v2927_v17 = vpop.f32.mrb[18].mxu1 }
 0x149   : > { %v2826_v28 = vpop.f32.mrb[15].mxu0  ;;  %v2928_v5 = vpop.f32.mrb[19].mxu1 }
 0x14a   : > { %v2195_v35 = vadd.f32 %v2864_v50, %v2824_v0  ;;  %v2827_v18 = vadd.f32 %v2826_v28, %v2825_v14  ;;  %v2929_v61 = vadd.f32 %v2928_v5, %v2927_v17 }
 0x14c   : > { %v2198_v19 = vadd.f32 %v2867_v11, %v2827_v18 }
 0x14e   : > { %v2884_v22 = vpop.f32.mrb[16].mxu0  ;;  %v2930_v25 = vpop.f32.mrb[20].mxu1 }
 0x14f   : > { %v2885_v58 = vpop.f32.mrb[17].mxu0  ;;  %v2931_v12 = vpop.f32.mrb[21].mxu1 }
 0x150   : > { %v2886_v23 = vadd.f32 %v2885_v58, %v2884_v22  ;;  %v2887_v47 = vpop.f32.mrb[18].mxu0  ;;  %v2932_v9 = vadd.f32 %v2931_v12, %v2930_v25  ;;  %v2933_v30 = vpop.f32.mrb[22].mxu1 }
 0x151   : > { %v2888_v26 = vpop.f32.mrb[19].mxu0  ;;  %v2934_v33 = vpop.f32.mrb[23].mxu1 }
 0x152   : > { %v2236_v27 = vadd.f32 %v2886_v23, %v2171_v21  ;;  %v2889_v29 = vadd.f32 %v2888_v26, %v2887_v47  ;;  %v2935_v6 = vadd.f32 %v2934_v33, %v2933_v30 }
 0x154   : > { %v2239_v34 = vadd.f32 %v2889_v29, %v2174_v41  ;;  %v2301_v37 = vadd.f32 %v2926_v3, %v2236_v27 }
 0x156   : > { %v2304_v38 = vadd.f32 %v2929_v61, %v2239_v34  ;;  %v2890_v59 = vpop.f32.mrb[20].mxu0 }
 0x157   : > { %v2891_v40 = vpop.f32.mrb[21].mxu0 }
 0x158   : > { %v2892_v42 = vadd.f32 %v2891_v40, %v2890_v59  ;;  %v2893_v44 = vpop.f32.mrb[22].mxu0 }
 0x159   : > { %v2894_v45 = vpop.f32.mrb[23].mxu0 }
 0x15a   : > { %v2244_v20 = vadd.f32 %v2892_v42, %v2179_v49  ;;  %v2895_v16 = vadd.f32 %v2894_v45, %v2893_v44 }
 0x15c   : > { %v2247_v48 = vadd.f32 %v2895_v16, %v2182_v53  ;;  %v2936_v39 = vpop.f32.mrb[24].mxu1  ;;  %v2309_v51 = vadd.f32 %v2932_v9, %v2244_v20 }
 0x15d   : > { %v2937_v32 = vpop.f32.mrb[25].mxu1 }
 0x15e   : > { %v2938_v21 = vadd.f32 %v2937_v32, %v2936_v39  ;;  %v2939_v46 = vpop.f32.mrb[26].mxu1  ;;  %v2312_v52 = vadd.f32 %v2935_v6, %v2247_v48 }
 0x15f   : > { %v2940_v31 = vpop.f32.mrb[27].mxu1 }
 0x160   : > { %v2941_v54 = vadd.f32 %v2940_v31, %v2939_v46 }
 0x165   : > { %v2896_v41 = vpop.f32.mrb[24].mxu0 }
 0x166   : > { %v2897_v55 = vpop.f32.mrb[25].mxu0 }
 0x167   : > { %v2898_v56 = vadd.f32 %v2897_v55, %v2896_v41  ;;  %v2899_v57 = vpop.f32.mrb[26].mxu0 }
 0x168   : > { %v2900_v60 = vpop.f32.mrb[27].mxu0 }
 0x169   : > { %v2252_v2 = vadd.f32 %v2898_v56, %v2187_v62  ;;  %v2901_v10 = vadd.f32 %v2900_v60, %v2899_v57 }
 0x16b   : > { %v2255_v4 = vadd.f32 %v2901_v10, %v2190_v36  ;;  %v2317_v7 = vadd.f32 %v2938_v21, %v2252_v2 }
 0x16d   : > { %v2320_v49 = vadd.f32 %v2941_v54, %v2255_v4 }
 0x172   : > { %v2942_v1 = vpop.f32.mrb[28].mxu1 }
 0x173   : > { %v2943_v53 = vpop.f32.mrb[29].mxu1 }
 0x174   : > { %v2944_v50 = vadd.f32 %v2943_v53, %v2942_v1  ;;  %v2945_v43 = vpop.f32.mrb[30].mxu1 }
 0x175   : > { %v2902_v8 = vpop.f32.mrb[28].mxu0  ;;  %v2946_v11 = vpop.f32.mrb[31].mxu1 }
 0x176   : > { %v2947_v13 = vadd.f32 %v2946_v11, %v2945_v43  ;;  %v2903_v63 = vpop.f32.mrb[29].mxu0 }
 0x177   : > { %v2904_v24 = vadd.f32 %v2903_v63, %v2902_v8  ;;  %v2905_v0 = vpop.f32.mrb[30].mxu0 }
 0x178   : > { %v2906_v14 = vpop.f32.mrb[31].mxu0 }
 0x179   : > { %v2260_v15 = vadd.f32 %v2904_v24, %v2195_v35  ;;  %v2907_v28 = vadd.f32 %v2906_v14, %v2905_v0 }
 0x17a   : > { %v2982_v3 = vpop.f32.mrb[32].mxu1 }
 0x17b   : > { %v2325_v62 = vadd.f32 %v2944_v50, %v2260_v15  ;;  %v2381_v17 = vpop.f32.mrb[33].mxu1  ;;  %v2263_v36 = vadd.f32 %v2907_v28, %v2198_v19 }
 0x17c   : > { %v2382_v18 = vadd.f32 %v2381_v17, %v2317_v7  ;;  %v2983_v5 = vpop.f32.mrb[34].mxu1 }
 0x17d   : > { %v2390_v61 = vadd.f32 %v2982_v3, %v2325_v62  ;;  %v2328_v22 = vadd.f32 %v2947_v13, %v2263_v36  ;;  %v2384_v58 = vpop.f32.mrb[35].mxu1  ;;  %v2978_v23 = vpop.f32.mrb[32].mxu0 }
 0x17e   : > { %v2385_v47 = vadd.f32 %v2384_v58, %v2320_v49  ;;  %v2374_v25 = vadd.f32 %v2978_v23, %v2309_v51  ;;  %v2365_v26 = vpop.f32.mrb[33].mxu0 }
 0x17f   : > { %v2393_v35 = vadd.f32 %v2983_v5, %v2328_v22  ;;  %v2366_v12 = vadd.f32 %v2365_v26, %v2301_v37  ;;  %v2979_v27 = vpop.f32.mrb[34].mxu0 }
 0x180   : > { %v2775_v29 = vpack.c.bf16 %v2385_v47, %v2382_v18  ;;  %v2377_v9 = vadd.f32 %v2979_v27, %v2312_v52  ;;  %v2368_v19 = vpop.f32.mrb[35].mxu0 }
 0x181   : > { %v2780_v30 = vpack.c.bf16 %v2393_v35, %v2390_v61  ;;  %v2369_v33 = vadd.f32 %v2368_v19, %v2304_v38 }
 0x182   : > { %2786 = vst [vmem:[%s219_s23 + $0x10] sm:$0xff] %v2775_v29   ;;  %v2770_v34 = vpack.c.bf16 %v2377_v9, %v2374_v25 }
 0x183   : > { %2787 = vst [vmem:[%s219_s23 + $0x18] sm:$0xff] %v2780_v30   ;;  %v2765_v6 = vpack.c.bf16 %v2369_v33, %v2366_v12 }
 0x184   : > { %2785 = vst [vmem:[%s219_s23 + $0x8] sm:$0xff] %v2770_v34  }
 0x185   : > { %2766 = vst [vmem:[%s219_s23] sm:$0xff] %v2765_v6  }
 0x186 PF: > { %s14_s17 = sadd.s32 1, %s3227_s17   ;;  %s3920_s15 = smov %s3223_s16 }
 0x187   : > { %p11_p5 = scmp.ge.s32.totalorder %s14_s17, 4   ;;  %s3921_s16 = smov %s3923_s18 }
 0x189   :  { %13 = sbr.rel (!%p11_p5) target bundleno = 2 (0x2), region = 89 }

// kernel: _lambda_.4
= control target key start
LH: loop header
LB: loop body
LE: loop exit
PB: predicated region body
PF: predicated region fallthrough
CT: control target
= control target key end

     0   :  { %s5425_s21 = smov 0   ;;  %s5427_s22 = smov 0   ;;  %s6322_s0 = inlined_call_operand.vmem [shape: bf16[2,8,8,512], index: 0, kind: input, shape index: {}]   ;;  %s6323_s1 = inlined_call_operand.vmem [shape: f32[1,512], index: 1, kind: input, shape index: {}]   ;;  %s6324_s2 = inlined_call_operand.vmem [shape: f32[1,512], index: 2, kind: input, shape index: {}]   ;;  %s6325_s3 = inlined_call_operand.vmem [shape: bf16[2048,128], index: 3, kind: input, shape index: {}]   ;;  %s6326_s4 = inlined_call_operand.vmem [shape: bf16[128,128], index: 4, kind: input, shape index: {}]   ;;  %s6327_s5 = inlined_call_operand.vmem [shape: bf16[2,8,8,128], index: 5, kind: output, shape index: {0}]   ;;  %s6328_s6 = inlined_call_operand.vmem [shape: bf16[2,8,8,128], index: 6, kind: output, shape index: {1}]  }
   0x1   :  { %s5429_s23 = smov 0  }
   0x2 LB: > { %s29_s24 = sadd.s32 1, %s5383_s22  ;;  %p4376_p0 = scmp.ge.s32.totalorder %s5387_s23, 1  ;;  %s5387_s23 = sphi %s5429_s23, %s17_s23   ;;  %s5383_s22 = sphi %s5427_s22, %s6336_s22   ;;  %s5379_s21 = sphi %s5425_s21, %s6335_s21  }
   0x3   : > { %p31_p1 = scmp.ge.s32.totalorder %s29_s24, 2  ;;  %p231_p2 = scmp.lt.s32.totalorder %s5387_s23, 3 }
   0x5   : > { %s6338_s24 = smov (%p31_p1, %s29_s24), 0  ;;  %p232_p3 = pnand %p4376_p0, %p231_p2 }
   0x6   : > { %v5117_v0 = vld [vmem:[%s6325_s3 + $0x40] sm:$0xff] (!%p232_p3)   ;;  %v5121_v4 = vld [vmem:[%s6325_s3 + $0x48] sm:$0xff] (!%p232_p3)   ;;  %v5389_v8 = vmov (!%p232_p3), 0   ;;  %v5125_v9 = vld [vmem:[%s6325_s3 + $0x50] sm:$0xff] (!%p232_p3)   ;;  %p274_p4 = scmp.lt.s32.totalorder (!%p232_p3), %s5379_s21, 1  ;;  %v355_v23 = vlaneseq (!%p232_p3)  ;;  %vm962_vm0 = vcmask (!%p232_p3), 1040384  }
   0x7   : > { %235 = sbr.rel (%p232_p3) target bundleno = 496 (0x1f0), region = 40  ;;  %v5118_v1 = vld [vmem:[%s6325_s3 + $0xc0] sm:$0xff] (!%p232_p3)   ;;  %4720 = vmatprep.subr.bf16.mxu0 (!%p232_p3), %v5117_v0  ;;  %v5122_v5 = vld [vmem:[%s6325_s3 + $0xc8] sm:$0xff] (!%p232_p3)   ;;  %885 = vst [vmem:[#allocation2 + $0x8] sm:$0xff] (!%p232_p3), %v5389_v8  ;;  %884 = vst [vmem:[#allocation2] sm:$0xff] (!%p232_p3), %v5389_v8  ;;  %vm781_vm3 = vcmask (!%p232_p3), 1044480  }
   0x8   : > { %v5119_v2 = vld [vmem:[%s6325_s3] sm:$0xff] (!%p232_p3)   ;;  %4760 = vmatprep.subr.bf16.mxu1 (!%p232_p3), %v5118_v1  ;;  %v5123_v6 = vld [vmem:[%s6325_s3 + $0x8] sm:$0xff] (!%p232_p3)   ;;  %886 = vst [vmem:[#allocation2 + $0x10] sm:$0xff] (!%p232_p3), %v5389_v8  ;;  %887 = vst [vmem:[#allocation2 + $0x18] sm:$0xff] (!%p232_p3), %v5389_v8  ;;  %v356_v28 = vshrl.u32 (!%p232_p3), %v355_v23, 7 }
   0x9   : > { %v5120_v3 = vld [vmem:[%s6325_s3 + $0x80] sm:$0xff] (!%p232_p3)   ;;  %4721 = vmatpush3.bf16.msra.mxu0 (!%p232_p3), %v5119_v2  ;;  %v5124_v7 = vld [vmem:[%s6325_s3 + $0x88] sm:$0xff] (!%p232_p3)   ;;  %v5126_v10 = vld [vmem:[%s6325_s3 + $0xd0] sm:$0xff] (!%p232_p3)   ;;  %vm963_vm1 = vsmask.f32 (!%p232_p3), 256 }
   0xa   : > { %4761 = vmatpush3.bf16.msra.mxu1 (!%p232_p3), %v5120_v3  ;;  %4722 = vmatprep.subr.bf16.mxu0 (!%p232_p3), %v5121_v4  ;;  %v5127_v11 = vld [vmem:[%s6325_s3 + $0x10] sm:$0xff] (!%p232_p3)   ;;  %v5129_v13 = vld [vmem:[%s6325_s3 + $0x58] sm:$0xff] (!%p232_p3)   ;;  %v5133_v17 = vld [vmem:[%s6325_s3 + $0x60] sm:$0xff] (!%p232_p3)   ;;  %v361_v33 = vsub.s32 (!%p232_p3), 1, %v356_v28  ;;  %v369_v35 = vsub.s32 (!%p232_p3), 3, %v356_v28  ;;  %v357_v37 = vsub.s32 (!%p232_p3), 0, %v356_v28 }
   0xb   : > { %4762 = vmatprep.subr.bf16.mxu1 (!%p232_p3), %v5122_v5  ;;  %v5128_v12 = vld [vmem:[%s6325_s3 + $0x90] sm:$0xff] (!%p232_p3)   ;;  %v5130_v14 = vld [vmem:[%s6325_s3 + $0xd8] sm:$0xff] (!%p232_p3)   ;;  %v5134_v18 = vld [vmem:[%s6325_s3 + $0xe0] sm:$0xff] (!%p232_p3)   ;;  %v365_v41 = vsub.s32 (!%p232_p3), 2, %v356_v28  ;;  %vm782_vm4 = vsmask.f32 (!%p232_p3), 4354 }
   0xc   : > { %v5131_v15 = vld [vmem:[%s6325_s3 + $0x18] sm:$0xff] (!%p232_p3)   ;;  %v5135_v19 = vld [vmem:[%s6325_s3 + $0x20] sm:$0xff] (!%p232_p3)   ;;  %v5137_v21 = vld [vmem:[%s6325_s3 + $0x68] sm:$0xff] (!%p232_p3)   ;;  %vm1377_vm6 = vsmask.f32 (!%p232_p3), 3328 }
   0xd   : > { %4723 = vmatpush3.bf16.msra.mxu0 (!%p232_p3), %v5123_v6  ;;  %v5132_v16 = vld [vmem:[%s6325_s3 + $0x98] sm:$0xff] (!%p232_p3)   ;;  %v5136_v20 = vld [vmem:[%s6325_s3 + $0xa0] sm:$0xff] (!%p232_p3)   ;;  %v5138_v22 = vld [vmem:[%s6325_s3 + $0xe8] sm:$0xff] (!%p232_p3)   ;;  %vm1378_vm7 = vsmask.f32 (!%p232_p3), 7440 }
   0xe   : > { %4763 = vmatpush3.bf16.msra.mxu1 %v5124_v7  ;;  %4724 = vmatprep.subr.bf16.mxu0 %v5125_v9  ;;  %v5139_v24 = vld [vmem:[%s6325_s3 + $0x28] sm:$0xff]   ;;  %s6340_s21 = smov (!%p274_p4, %s5379_s21), 1  ;;  %v5141_v26 = vld [vmem:[%s6325_s3 + $0x70] sm:$0xff]   ;;  %v5145_v31 = vld [vmem:[%s6325_s3 + $0x78] sm:$0xff]  }
   0xf   : > { %4764 = vmatprep.subr.bf16.mxu1 %v5126_v10  ;;  %v5140_v25 = vld [vmem:[%s6325_s3 + $0xa8] sm:$0xff]   ;;  %v5142_v27 = vld [vmem:[%s6325_s3 + $0xf0] sm:$0xff]   ;;  %s4671_s15 = sshll.u32 %s6340_s21, 7  ;;  %v5146_v32 = vld [vmem:[%s6325_s3 + $0xf8] sm:$0xff]   ;;  %s4672_s10 = sshll.u32 %s6340_s21, 5 }
  0x10   : > { %v5143_v29 = vld [vmem:[%s6325_s3 + $0x30] sm:$0xff]   ;;  %s5543_s28 = scalar_lea.vmem %s6322_s0, %s4671_s15  ;;  %v5147_v34 = vld [vmem:[%s6325_s3 + $0x38] sm:$0xff]   ;;  %v301_v38 = vld [vmem:[%s6323_s1] sm:$0xf]  ;;  %s6298_s13 = scalar_lea.vmem %s6327_s5, %s4672_s10 }
  0x11   : > { %4725 = vmatpush3.bf16.msra.mxu0 %v5127_v11  ;;  %v5144_v30 = vld [vmem:[%s6325_s3 + $0xb0] sm:$0xff]   ;;  %v5148_v36 = vld [vmem:[%s6325_s3 + $0xb8] sm:$0xff]   ;;  %v302_v39 = vld [vmem:[%s6324_s2] sm:$0xf]  ;;  %v5558_v43 = vrot.slane %v301_v38, %v361_v33  ;;  %v5564_v51 = vrot.slane %v301_v38, %v369_v35  ;;  %v5568_v54 = vrot.slane %v301_v38, %v357_v37  ;;  %v5579_v58 = vrot.slane %v301_v38, %v365_v41  ;;  %s297_s16 = scalar_lea.vmem %s6328_s6, %s4672_s10 }
  0x12   : > { %4765 = vmatpush3.bf16.msra.mxu1 %v5128_v12  ;;  %4726 = vmatprep.subr.bf16.mxu0 %v5129_v13  ;;  %v306_v40 = vld [vmem:[%s5543_s28] sm:$0xff]  ;;  %v5560_v44 = vrot.slane %v302_v39, %v361_v33  ;;  %v307_v45 = vld [vmem:[%s5543_s28 + $0x8] sm:$0xff]  ;;  %v5566_v52 = vrot.slane %v302_v39, %v369_v35  ;;  %v974_v53 = vld [vmem:[#allocation2 + $0x18] sm:$0x1]  ;;  %v5577_v57 = vrot.slane %v302_v39, %v357_v37 }
  0x13   : > { %4766 = vmatprep.subr.bf16.mxu1 %v5130_v14  ;;  %v323_v42 = vunpack.c.h.bf16 %v306_v40  ;;  %v322_v46 = vunpack.c.l.bf16 %v306_v40  ;;  %v968_v47 = vld [vmem:[#allocation2 + $0x8] sm:$0x1]  ;;  %v324_v48 = vunpack.c.l.bf16 %v307_v45  ;;  %v325_v49 = vunpack.c.h.bf16 %v307_v45  ;;  %vm5570_vm2 = vmand %vm962_vm0, %vm963_vm1  ;;  %v5149_v56 = vld [vmem:[%s6325_s3 + $0x140] sm:$0xff]  }
  0x14   : > { %v5581_v59 = vrot.slane %v302_v39, %v365_v41  ;;  %v969_v61 = vsel %vm5570_vm2, 0, %v968_v47  ;;  %v975_v63 = vsel %vm5570_vm2, 0, %v974_v53  ;;  %v5150_v0 = vld [vmem:[%s6325_s3 + $0x1c0] sm:$0xff]   ;;  %v971_v7 = vld [vmem:[#allocation2 + $0x10] sm:$0x1]  ;;  %vm5601_vm5 = vmand %vm781_vm3, %vm782_vm4 }
  0x15   : > { %4727 = vmatpush3.bf16.msra.mxu0 %v5131_v15  ;;  %v376_v50 = vmul.f32 %v5558_v43, %v323_v42  ;;  %v378_v62 = vmul.f32 %v5564_v51, %v325_v49  ;;  %970 = vst [vmem:[#allocation2 + $0x8] sm:$0x1] %v969_v61  ;;  %976 = vst [vmem:[#allocation2 + $0x18] sm:$0x1] %v975_v63  ;;  %v375_v1 = vmul.f32 %v5568_v54, %v322_v46  ;;  %v965_v2 = vld [vmem:[#allocation2] sm:$0x1] }
  0x16   : > { %4767 = vmatpush3.bf16.msra.mxu1 %v5132_v16  ;;  %4728 = vmatprep.subr.bf16.mxu0 %v5133_v17  ;;  %v377_v3 = vmul.f32 %v5579_v58, %v324_v48  ;;  %v966_v6 = vsel %vm5570_vm2, 0, %v965_v2  ;;  %v972_v10 = vsel %vm5570_vm2, 0, %v971_v7  ;;  %v784_v33 = vld [vmem:[#allocation2 + $0x20] sm:$0x1f]  ;;  %v790_v37 = vld [vmem:[#allocation2 + $0x30] sm:$0x1f]  ;;  %vm5906_vm8 = vmor %vm1377_vm6, %vm1378_vm7 }
  0x17   : > { %4768 = vmatprep.subr.bf16.mxu1 %v5134_v18  ;;  %v429_v60 = vadd.f32 %v5560_v44, %v376_v50  ;;  %v431_v5 = vadd.f32 %v5566_v52, %v378_v62  ;;  %v428_v8 = vadd.f32 %v5577_v57, %v375_v1  ;;  %967 = vst [vmem:[#allocation2] sm:$0x1] %v966_v6  ;;  %973 = vst [vmem:[#allocation2 + $0x10] sm:$0x1] %v972_v10  ;;  %v308_v38 = vld [vmem:[%s5543_s28 + $0x10] sm:$0xff]  ;;  %v310_v39 = vld [vmem:[%s5543_s28 + $0x20] sm:$0xff] }
  0x18   : > { %v430_v9 = vadd.f32 %v5581_v59, %v377_v3  ;;  %v327_v42 = vunpack.c.h.bf16 %v308_v38  ;;  %v331_v45 = vunpack.c.h.bf16 %v310_v39  ;;  %v309_v46 = vld [vmem:[%s5543_s28 + $0x18] sm:$0xff]  ;;  %v311_v47 = vld [vmem:[%s5543_s28 + $0x28] sm:$0xff]  ;;  %v326_v53 = vunpack.c.l.bf16 %v308_v38 }
  0x19   : > { %4729 = vmatpush3.bf16.msra.mxu0 %v5135_v19  ;;  %v461_v4 = vmax.f32 %v429_v60, 0.0  ;;  %v463_v12 = vmax.f32 %v431_v5, 0.0  ;;  %v460_v13 = vmax.f32 %v428_v8, 0.0  ;;  %v329_v49 = vunpack.c.h.bf16 %v309_v46 }
  0x1a   : > { %4769 = vmatpush3.bf16.msra.mxu1 %v5136_v20  ;;  %4730 = vmatprep.subr.bf16.mxu0 %v5137_v21  ;;  %v462_v14 = vmax.f32 %v430_v9, 0.0  ;;  %v333_v50 = vunpack.c.h.bf16 %v311_v47  ;;  %v380_v61 = vmul.f32 %v5558_v43, %v327_v42  ;;  %v384_v62 = vmul.f32 %v5558_v43, %v331_v45  ;;  %v811_v45 = vld [vmem:[#allocation2 + $0x68] sm:$0x1f] }
  0x1b   : > { %4770 = vmatprep.subr.bf16.mxu1 %v5138_v22  ;;  %v493_v11 = vpack.c.bf16 %v461_v4, %v461_v4  ;;  %v495_v17 = vpack.c.bf16 %v463_v12, %v463_v12  ;;  %v492_v18 = vpack.c.bf16 %v460_v13, %v460_v13  ;;  %v382_v63 = vmul.f32 %v5564_v51, %v329_v49 }
  0x1c   : > { %v494_v19 = vpack.c.bf16 %v462_v14, %v462_v14  ;;  %v330_v1 = vunpack.c.l.bf16 %v310_v39  ;;  %v379_v2 = vmul.f32 %v5568_v54, %v326_v53  ;;  %v433_v3 = vadd.f32 %v5560_v44, %v380_v61  ;;  %v799_v39 = vld [vmem:[#allocation2 + $0x48] sm:$0x1f]  ;;  %v805_v53 = vld [vmem:[#allocation2 + $0x58] sm:$0x1f] }
  0x1d   : > { %4731 = vmatpush3.bf16.msra.mxu0 %v5139_v24  ;;  %v532_v15 = vshrl.u32 %v493_v11, 16  ;;  %v535_v16 = vshll.u32 %v493_v11, 16  ;;  %v546_v21 = vshrl.u32 %v495_v17, 16  ;;  %v549_v22 = vshll.u32 %v495_v17, 16  ;;  %v787_v24 = vld [vmem:[#allocation2 + $0x28] sm:$0x1f] }
  0x1e   : > { %4771 = vmatpush3.bf16.msra.mxu1 %v5140_v25  ;;  %4732 = vmatprep.subr.bf16.mxu0 %v5141_v26  ;;  %v525_v25 = vshrl.u32 %v492_v18, 16  ;;  %v528_v26 = vshll.u32 %v492_v18, 16  ;;  %v542_v28 = vshll.u32 %v494_v19, 16  ;;  %v437_v4 = vadd.f32 %v5560_v44, %v384_v62 }
  0x1f   : > { %4772 = vmatprep.subr.bf16.mxu1 %v5142_v27  ;;  %v534_v20 = vrot.slane %v532_v15, 7  ;;  %v539_v27 = vshrl.u32 %v494_v19, 16  ;;  %v328_v5 = vunpack.c.l.bf16 %v309_v46  ;;  %v332_v6 = vunpack.c.l.bf16 %v311_v47 }
  0x20   : > { %v435_v7 = vadd.f32 %v5566_v52, %v382_v63  ;;  %v383_v9 = vmul.f32 %v5568_v54, %v330_v1  ;;  %v432_v10 = vadd.f32 %v5577_v57, %v379_v2  ;;  %v465_v11 = vmax.f32 %v433_v3, 0.0  ;;  %v817_v63 = vld [vmem:[#allocation2 + $0x78] sm:$0x1f]  ;;  %v1073_v2 = vld [vmem:[#allocation2] sm:$0xf] }
  0x21   : > { %4733 = vmatpush3.bf16.msra.mxu0 %v5143_v29  ;;  %v537_v29 = vor.u32 %v535_v16, %v534_v20  ;;  %v469_v12 = vmax.f32 %v437_v4, 0.0  ;;  %v381_v13 = vmul.f32 %v5579_v58, %v328_v5  ;;  %v385_v14 = vmul.f32 %v5579_v58, %v332_v6  ;;  %v1075_v3 = vld [vmem:[#allocation2 + $0x10] sm:$0xf] }
  0x22   : > { %4773 = vmatpush3.bf16.msra.mxu1 %v5144_v30  ;;  %4734 = vmatprep.subr.bf16.mxu0 %v5145_v31  ;;  %v548_v30 = vrot.slane %v546_v21, 7  ;;  %v793_v31 = vld [vmem:[#allocation2 + $0x38] sm:$0x1f]  ;;  %v467_v16 = vmax.f32 %v435_v7, 0.0  ;;  %v436_v18 = vadd.f32 %v5577_v57, %v383_v9  ;;  %v464_v19 = vmax.f32 %v432_v10, 0.0 }
  0x23   : > { %4774 = vmatprep.subr.bf16.mxu1 %v5146_v32  ;;  %v527_v32 = vrot.slane %v525_v25, 7  ;;  %v788_v35 = vsel %vm5601_vm5, %v537_v29, %v787_v24  ;;  %v497_v21 = vpack.c.bf16 %v465_v11, %v465_v11 }
  0x24   : > { %789 = vst [vmem:[#allocation2 + $0x28] sm:$0x1f] %v788_v35  ;;  %v499_v25 = vpack.c.bf16 %v467_v16, %v467_v16  ;;  %v5152_v16 = vld [vmem:[%s6325_s3 + $0x180] sm:$0xff]  }
  0x25   : > { %4735 = vmatpush3.bf16.msra.mxu0 %v5147_v34  ;;  %v541_v34 = vrot.slane %v539_v27, 7  ;;  %v530_v40 = vor.u32 %v528_v26, %v527_v32  ;;  %v468_v27 = vmax.f32 %v436_v18, 0.0  ;;  %v560_v32 = vshrl.u32 %v497_v21, 16 }
  0x26   : > { %4775 = vmatpush3.bf16.msra.mxu1 %v5148_v36  ;;  %4800 = vmatprep.subr.bf16.mxu0 %v5149_v56  ;;  %v551_v36 = vor.u32 %v549_v22, %v548_v30  ;;  %v501_v22 = vpack.c.bf16 %v469_v12, %v469_v12  ;;  %v574_v46 = vshrl.u32 %v499_v25, 16  ;;  %v577_v47 = vshll.u32 %v499_v25, 16  ;;  %v5154_v25 = vld [vmem:[%s6325_s3 + $0x1c8] sm:$0xff]  }
  0x27   : > { %4840 = vmatprep.subr.bf16.mxu1 %v5150_v0  ;;  %v544_v41 = vor.u32 %v542_v28, %v541_v34  ;;  %v785_v56 = vsel %vm5601_vm5, %v530_v40, %v784_v33  ;;  %v386_v0 = vmul.f32 %v5564_v51, %v333_v50  ;;  %v434_v28 = vadd.f32 %v5581_v59, %v381_v13  ;;  %v1074_v40 = vld [vmem:[#allocation2 + $0x8] sm:$0xf]  ;;  %v5646_v13 = vld [vmem:[%s5543_s28 + $0x30] sm:$0xff] }
  0x28   : > { %v794_v48 = vsel %vm5601_vm5, %v551_v36, %v793_v31  ;;  %786 = vst [vmem:[#allocation2 + $0x20] sm:$0x1f] %v785_v56  ;;  %v496_v33 = vpack.c.bf16 %v464_v19, %v464_v19  ;;  %v5637_v34 = vadd.f32 %v5581_v59, %v385_v14  ;;  %v588_v38 = vshrl.u32 %v501_v22, 16 }
  0x29   : > { %795 = vst [vmem:[#allocation2 + $0x38] sm:$0x1f] %v794_v48  ;;  %v791_v60 = vsel %vm5601_vm5, %v544_v41, %v790_v37  ;;  %v439_v8 = vadd.f32 %v5566_v52, %v386_v0  ;;  %v563_v37 = vshll.u32 %v497_v21, 16  ;;  %v562_v41 = vrot.slane %v560_v32, 7  ;;  %v808_v21 = vld [vmem:[#allocation2 + $0x60] sm:$0x1f] }
  0x2a   : > { %792 = vst [vmem:[#allocation2 + $0x30] sm:$0x1f] %v791_v60  ;;  %v591_v42 = vshll.u32 %v501_v22, 16  ;;  %v590_v48 = vrot.slane %v588_v38, 7  ;;  %v500_v56 = vpack.c.bf16 %v468_v27, %v468_v27  ;;  %v1076_v60 = vld [vmem:[#allocation2 + $0x18] sm:$0xf]  ;;  %v335_v38 = vunpack.c.h.bf16 %v5646_v13 }
  0x2b   : > { %v980_v15 = vld [vmem:[#allocation2 + $0x28] sm:$0x1]  ;;  %v471_v17 = vmax.f32 %v439_v8, 0.0  ;;  %v565_v61 = vor.u32 %v563_v37, %v562_v41  ;;  %v576_v62 = vrot.slane %v574_v46, 7  ;;  %v553_v0 = vshrl.u32 %v496_v33, 16 }
  0x2c   : > { %v981_v20 = vsel %vm5570_vm2, 0, %v980_v15  ;;  %v556_v1 = vshll.u32 %v496_v33, 16  ;;  %v593_v4 = vor.u32 %v591_v42, %v590_v48  ;;  %v581_v6 = vshrl.u32 %v500_v56, 16  ;;  %v5151_v15 = vld [vmem:[%s6325_s3 + $0x100] sm:$0xff]  }
  0x2d   : > { %982 = vst [vmem:[#allocation2 + $0x28] sm:$0x1] %v981_v20  ;;  %v503_v26 = vpack.c.bf16 %v471_v17, %v471_v17  ;;  %v584_v7 = vshll.u32 %v500_v56, 16  ;;  %v800_v9 = vsel %vm5601_vm5, %v565_v61, %v799_v39  ;;  %v579_v10 = vor.u32 %v577_v47, %v576_v62  ;;  %v796_v20 = vld [vmem:[#allocation2 + $0x40] sm:$0x1f]  ;;  %v5675_v39 = vld [vmem:[%s5543_s28 + $0x48] sm:$0xff] }
  0x2e   : > { %v555_v11 = vrot.slane %v553_v0, 7  ;;  %v466_v12 = vmax.f32 %v434_v28, 0.0  ;;  %801 = vst [vmem:[#allocation2 + $0x48] sm:$0x1f] %v800_v9  ;;  %v812_v17 = vsel %vm5601_vm5, %v593_v4, %v811_v45  ;;  %v583_v19 = vrot.slane %v581_v6, 7  ;;  %v5157_v62 = vld [vmem:[%s6325_s3 + $0x150] sm:$0xff]  }
  0x2f   : > { %v977_v30 = vld [vmem:[#allocation2 + $0x20] sm:$0x1]  ;;  %v602_v49 = vshrl.u32 %v503_v26, 16  ;;  %v605_v50 = vshll.u32 %v503_v26, 16  ;;  %813 = vst [vmem:[#allocation2 + $0x68] sm:$0x1f] %v812_v17  ;;  %v806_v26 = vsel %vm5601_vm5, %v579_v10, %v805_v53  ;;  %v334_v4 = vunpack.c.l.bf16 %v5646_v13 }
  0x30   : > { %v986_v24 = vld [vmem:[#allocation2 + $0x38] sm:$0x1]  ;;  %v978_v35 = vsel %vm5570_vm2, 0, %v977_v30  ;;  %v558_v27 = vor.u32 %v556_v1, %v555_v11  ;;  %v470_v28 = vmax.f32 %v5637_v34, 0.0  ;;  %v5666_v30 = vld [vmem:[%s5543_s28 + $0x40] sm:$0xff]  ;;  %v586_v37 = vor.u32 %v584_v7, %v583_v19  ;;  %v5158_v6 = vld [vmem:[%s6325_s3 + $0x1d0] sm:$0xff]  }
  0x31   : > { %v987_v29 = vsel %vm5570_vm2, 0, %v986_v24  ;;  %v983_v31 = vld [vmem:[#allocation2 + $0x30] sm:$0x1]  ;;  %979 = vst [vmem:[#allocation2 + $0x20] sm:$0x1] %v978_v35  ;;  %v604_v5 = vrot.slane %v602_v49, 7  ;;  %v339_v48 = vunpack.c.h.bf16 %v5666_v30  ;;  %v338_v10 = vunpack.c.l.bf16 %v5666_v30 }
  0x32   : > { %988 = vst [vmem:[#allocation2 + $0x38] sm:$0x1] %v987_v29  ;;  %v984_v36 = vsel %vm5570_vm2, 0, %v983_v31  ;;  %v5153_v24 = vld [vmem:[%s6325_s3 + $0x148] sm:$0xff]   ;;  %v498_v29 = vpack.c.bf16 %v466_v12, %v466_v12  ;;  %v5669_v31 = vld [vmem:[%s5543_s28 + $0x38] sm:$0xff]  ;;  %v797_v41 = vsel %vm5601_vm5, %v558_v27, %v796_v20  ;;  %v502_v42 = vpack.c.bf16 %v470_v28, %v470_v28  ;;  %v5159_v13 = vld [vmem:[%s6325_s3 + $0x110] sm:$0xff]  }
  0x33   : > { %985 = vst [vmem:[#allocation2 + $0x30] sm:$0x1] %v984_v36  ;;  %v607_v18 = vor.u32 %v605_v50, %v604_v5  ;;  %807 = vst [vmem:[#allocation2 + $0x58] sm:$0x1f] %v806_v26  ;;  %v809_v45 = vsel %vm5601_vm5, %v586_v37, %v808_v21  ;;  %v5155_v49 = vld [vmem:[%s6325_s3 + $0x108] sm:$0xff]   ;;  %v337_v61 = vunpack.c.h.bf16 %v5669_v31  ;;  %v5161_v21 = vld [vmem:[%s6325_s3 + $0x158] sm:$0xff]  }
  0x34   : > { %v1078_v8 = vld [vmem:[#allocation2 + $0x28] sm:$0xf]  ;;  %798 = vst [vmem:[#allocation2 + $0x40] sm:$0x1f] %v797_v41  ;;  %v567_v46 = vshrl.u32 %v498_v29, 16  ;;  %v570_v47 = vshll.u32 %v498_v29, 16 }
  0x35   : > { %v4386_v14 = vcombine.low %v1074_v40, %v1078_v8  ;;  %v818_v36 = vsel %vm5601_vm5, %v607_v18, %v817_v63  ;;  %v5156_v50 = vld [vmem:[%s6325_s3 + $0x188] sm:$0xff]   ;;  %810 = vst [vmem:[#allocation2 + $0x60] sm:$0x1f] %v809_v45  ;;  %v595_v53 = vshrl.u32 %v502_v42, 16  ;;  %v598_v56 = vshll.u32 %v502_v42, 16  ;;  %v5164_v41 = vld [vmem:[%s6325_s3 + $0x198] sm:$0xff]  }
  0x36   : > { %819 = vst [vmem:[#allocation2 + $0x78] sm:$0x1f] %v818_v36  ;;  %v569_v63 = vrot.slane %v567_v46, 7  ;;  %v802_v0 = vld [vmem:[#allocation2 + $0x50] sm:$0x1f]  ;;  %v390_v9 = vmul.f32 %v5564_v51, %v337_v61  ;;  %v387_v46 = vmul.f32 %v5568_v54, %v334_v4  ;;  %v5166_v4 = vld [vmem:[%s6325_s3 + $0x1e0] sm:$0xff]  }
  0x37   : > { %3412 = vmatprep.mubr.bf16.mxu0 %v4386_v14  ;;  %v814_v1 = vld [vmem:[#allocation2 + $0x70] sm:$0x1f]  ;;  %v992_v5 = vld [vmem:[#allocation2 + $0x48] sm:$0x1]  ;;  %v597_v7 = vrot.slane %v595_v53, 7  ;;  %v5165_v53 = vld [vmem:[%s6325_s3 + $0x160] sm:$0xff]  }
  0x38   : > { %v1077_v33 = vld [vmem:[#allocation2 + $0x20] sm:$0xf]  ;;  %v993_v11 = vsel %vm5570_vm2, 0, %v992_v5  ;;  %v1004_v12 = vld [vmem:[#allocation2 + $0x68] sm:$0x1]  ;;  %v572_v14 = vor.u32 %v570_v47, %v569_v63  ;;  %v391_v63 = vmul.f32 %v5568_v54, %v338_v10  ;;  %v440_v5 = vadd.f32 %v5577_v57, %v387_v46 }
  0x39   : > { %v1080_v22 = vld [vmem:[#allocation2 + $0x38] sm:$0xf]  ;;  %v4385_v40 = vcombine.low %v1073_v2, %v1077_v33  ;;  %v392_v2 = vmul.f32 %v5558_v43, %v339_v48  ;;  %994 = vst [vmem:[#allocation2 + $0x48] sm:$0x1] %v993_v11  ;;  %v1005_v18 = vsel %vm5570_vm2, 0, %v1004_v12  ;;  %v600_v20 = vor.u32 %v598_v56, %v597_v7  ;;  %v5167_v10 = vld [vmem:[%s6325_s3 + $0x120] sm:$0xff]  }
  0x3a   : > { %v4388_v32 = vcombine.low %v1076_v60, %v1080_v22  ;;  %v1079_v35 = vld [vmem:[#allocation2 + $0x30] sm:$0xf]  ;;  %v388_v60 = vmul.f32 %v5558_v43, %v335_v38  ;;  %v998_v19 = vld [vmem:[#allocation2 + $0x58] sm:$0x1]  ;;  %1006 = vst [vmem:[#allocation2 + $0x68] sm:$0x1] %v1005_v18  ;;  %v803_v28 = vsel %vm5601_vm5, %v572_v14, %v802_v0  ;;  %v444_v12 = vadd.f32 %v5577_v57, %v391_v63 }
  0x3b   : > { %v4387_v34 = vcombine.low %v1075_v3, %v1079_v35  ;;  %3413 = vmatmul.mubr.bf16.vlgmr.msra.gmra.mrb[0].mxu0 %v4385_v40  ;;  %v341_v3 = vunpack.c.h.bf16 %v5675_v39  ;;  %v5162_v22 = vld [vmem:[%s6325_s3 + $0x1d8] sm:$0xff]   ;;  %v999_v26 = vsel %vm5570_vm2, 0, %v998_v19  ;;  %v989_v33 = vld [vmem:[#allocation2 + $0x40] sm:$0x1]  ;;  %804 = vst [vmem:[#allocation2 + $0x50] sm:$0x1f] %v803_v28  ;;  %v815_v35 = vsel %vm5601_vm5, %v600_v20, %v814_v1 }
  0x3c   : > { %3477 = vmatprep.mubr.bf16.mxu1 %v4388_v32  ;;  %4801 = vmatpush3.bf16.msra.mxu0 %v5151_v15  ;;  %v441_v8 = vadd.f32 %v5560_v44, %v388_v60  ;;  %v5160_v15 = vld [vmem:[%s6325_s3 + $0x190] sm:$0xff]   ;;  %1000 = vst [vmem:[#allocation2 + $0x58] sm:$0x1] %v999_v26  ;;  %v990_v38 = vsel %vm5570_vm2, 0, %v989_v33  ;;  %v1001_v40 = vld [vmem:[#allocation2 + $0x60] sm:$0x1]  ;;  %v336_v18 = vunpack.c.l.bf16 %v5669_v31 }
  0x3d   : > { %3478 = vmatmul.mubr.bf16.vlgmr.msra.gmra.mrb[0].mxu1 %v4387_v34  ;;  %4802 = vmatprep.subr.bf16.mxu0 %v5153_v24  ;;  %v394_v17 = vmul.f32 %v5564_v51, %v341_v3  ;;  %v1010_v27 = vld [vmem:[#allocation2 + $0x78] sm:$0x1]  ;;  %816 = vst [vmem:[#allocation2 + $0x70] sm:$0x1f] %v815_v35  ;;  %991 = vst [vmem:[#allocation2 + $0x40] sm:$0x1] %v990_v38 }
  0x3e   : > { %4841 = vmatpush3.bf16.msra.mxu1 %v5152_v16  ;;  %v445_v16 = vadd.f32 %v5560_v44, %v392_v2  ;;  %v473_v24 = vmax.f32 %v441_v8, 0.0  ;;  %v1011_v32 = vsel %vm5570_vm2, 0, %v1010_v27  ;;  %v5163_v34 = vld [vmem:[%s6325_s3 + $0x118] sm:$0xff]   ;;  %v1002_v47 = vsel %vm5570_vm2, 0, %v1001_v40  ;;  %v823_v61 = vld [vmem:[#allocation2 + $0x88] sm:$0x1f] }
  0x3f   : > { %4842 = vmatprep.subr.bf16.mxu1 %v5154_v25  ;;  %v443_v25 = vadd.f32 %v5566_v52, %v390_v9  ;;  %v447_v30 = vadd.f32 %v5566_v52, %v394_v17  ;;  %1012 = vst [vmem:[#allocation2 + $0x78] sm:$0x1] %v1011_v32  ;;  %1003 = vst [vmem:[#allocation2 + $0x60] sm:$0x1] %v1002_v47  ;;  %v835_v1 = vld [vmem:[#allocation2 + $0xa8] sm:$0x1f] }
  0x40   : > { %4803 = vmatpush3.bf16.msra.mxu0 %v5155_v49  ;;  %v477_v29 = vmax.f32 %v445_v16, 0.0  ;;  %v505_v36 = vpack.c.bf16 %v473_v24, %v473_v24  ;;  %v829_v11 = vld [vmem:[#allocation2 + $0x98] sm:$0x1f]  ;;  %v472_v17 = vmax.f32 %v440_v5, 0.0  ;;  %v5168_v19 = vld [vmem:[%s6325_s3 + $0x1a0] sm:$0xff]   ;;  %v5169_v20 = vld [vmem:[%s6325_s3 + $0x168] sm:$0xff]  }
  0x41   : > { %4804 = vmatprep.subr.bf16.mxu0 %v5157_v62  ;;  %v475_v37 = vmax.f32 %v443_v25, 0.0  ;;  %v479_v45 = vmax.f32 %v447_v30, 0.0  ;;  %v1086_v14 = vld [vmem:[#allocation2 + $0x68] sm:$0xf]  ;;  %v841_v16 = vld [vmem:[#allocation2 + $0xb8] sm:$0x1f] }
  0x42   : > { %4843 = vmatpush3.bf16.msra.mxu1 %v5156_v50  ;;  %v509_v42 = vpack.c.bf16 %v477_v29, %v477_v29  ;;  %v616_v48 = vshrl.u32 %v505_v36, 16  ;;  %v619_v49 = vshll.u32 %v505_v36, 16  ;;  %v995_v24 = vld [vmem:[#allocation2 + $0x50] sm:$0x1]  ;;  %v476_v27 = vmax.f32 %v444_v12, 0.0  ;;  %v5170_v35 = vld [vmem:[%s6325_s3 + $0x1e8] sm:$0xff]  }
  0x43   : > { %4844 = vmatprep.subr.bf16.mxu1 %v5158_v6  ;;  %v507_v50 = vpack.c.bf16 %v475_v37, %v475_v37  ;;  %v511_v62 = vpack.c.bf16 %v479_v45, %v479_v45  ;;  %v1082_v6 = vld [vmem:[#allocation2 + $0x48] sm:$0xf]  ;;  %v996_v31 = vsel %vm5570_vm2, 0, %v995_v24  ;;  %v504_v33 = vpack.c.bf16 %v472_v17, %v472_v17  ;;  %v5173_v5 = vld [vmem:[%s6325_s3 + $0x170] sm:$0xff]  }
  0x44   : > { %4805 = vmatpush3.bf16.msra.mxu0 %v5159_v13  ;;  %v644_v56 = vshrl.u32 %v509_v42, 16  ;;  %v647_v60 = vshll.u32 %v509_v42, 16  ;;  %v618_v0 = vrot.slane %v616_v48, 7  ;;  %v1007_v29 = vld [vmem:[#allocation2 + $0x70] sm:$0x1]  ;;  %v508_v46 = vpack.c.bf16 %v476_v27, %v476_v27  ;;  %v5171_v63 = vld [vmem:[%s6325_s3 + $0x128] sm:$0xff]  }
  0x45   : > { %4806 = vmatprep.subr.bf16.mxu0 %v5161_v21  ;;  %v630_v2 = vshrl.u32 %v507_v50, 16  ;;  %v633_v3 = vshll.u32 %v507_v50, 16  ;;  %v658_v8 = vshrl.u32 %v511_v62, 16  ;;  %v661_v9 = vshll.u32 %v511_v62, 16  ;;  %v1081_v37 = vld [vmem:[#allocation2 + $0x40] sm:$0xf] }
  0x46   : > { %4845 = vmatpush3.bf16.msra.mxu1 %v5160_v15  ;;  %v646_v7 = vrot.slane %v644_v56, 7  ;;  %v621_v13 = vor.u32 %v619_v49, %v618_v0  ;;  %v4390_v21 = vcombine.low %v1082_v6, %v1086_v14  ;;  %v1088_v28 = vld [vmem:[#allocation2 + $0x78] sm:$0xf]  ;;  %997 = vst [vmem:[#allocation2 + $0x50] sm:$0x1] %v996_v31  ;;  %v1008_v38 = vsel %vm5570_vm2, 0, %v1007_v29 }
  0x47   : > { %4846 = vmatprep.subr.bf16.mxu1 %v5162_v22  ;;  %v632_v15 = vrot.slane %v630_v2, 7  ;;  %v1084_v22 = vld [vmem:[#allocation2 + $0x58] sm:$0xf]  ;;  %v660_v26 = vrot.slane %v658_v8, 7  ;;  %v1085_v42 = vld [vmem:[#allocation2 + $0x60] sm:$0xf]  ;;  %v389_v62 = vmul.f32 %v5579_v58, %v336_v18 }
  0x48   : > { %4807 = vmatpush3.bf16.msra.mxu0 %v5163_v34  ;;  %v649_v25 = vor.u32 %v647_v60, %v646_v7  ;;  %v824_v30 = vsel %vm5601_vm5, %v621_v13, %v823_v61  ;;  %3420 = vmatprep.mubr.bf16.mxu0 %v4390_v21  ;;  %v4392_v36 = vcombine.low %v1084_v22, %v1088_v28  ;;  %v609_v47 = vshrl.u32 %v504_v33, 16  ;;  %v5777_v49 = vld [vmem:[%s5543_s28 + $0x60] sm:$0xff]  ;;  %v5780_v50 = vld [vmem:[%s5543_s28 + $0x58] sm:$0xff]  ;;  %v5790_v0 = vld [vmem:[%s5543_s28 + $0x68] sm:$0xff] }
  0x49   : > { %v635_v32 = vor.u32 %v633_v3, %v632_v15  ;;  %4808 = vmatprep.subr.bf16.mxu0 %v5165_v53  ;;  %825 = vst [vmem:[#allocation2 + $0x88] sm:$0x1f] %v824_v30  ;;  %v663_v34 = vor.u32 %v661_v9, %v660_v26  ;;  %1009 = vst [vmem:[#allocation2 + $0x70] sm:$0x1] %v1008_v38  ;;  %v612_v48 = vshll.u32 %v504_v33, 16  ;;  %v340_v61 = vunpack.c.l.bf16 %v5675_v39  ;;  %v5174_v13 = vld [vmem:[%s6325_s3 + $0x1f0] sm:$0xff]  }
  0x4a   : > { %4847 = vmatpush3.bf16.msra.mxu1 %v5164_v41  ;;  %v836_v40 = vsel %vm5601_vm5, %v649_v25, %v835_v1  ;;  %v5772_v41 = vld [vmem:[%s5543_s28 + $0x50] sm:$0xff]  ;;  %3485 = vmatprep.mubr.bf16.mxu1 %v4392_v36  ;;  %v4389_v53 = vcombine.low %v1081_v37, %v1085_v42  ;;  %v820_v60 = vld [vmem:[#allocation2 + $0x80] sm:$0x1f]  ;;  %v611_v1 = vrot.slane %v609_v47, 7  ;;  %v637_v2 = vshrl.u32 %v508_v46, 16 }
  0x4b   : > { %4848 = vmatprep.subr.bf16.mxu1 %v5166_v4  ;;  %837 = vst [vmem:[#allocation2 + $0xa8] sm:$0x1f] %v836_v40  ;;  %v830_v45 = vsel %vm5601_vm5, %v635_v32, %v829_v11  ;;  %v842_v56 = vsel %vm5601_vm5, %v663_v34, %v841_v16  ;;  %v640_v3 = vshll.u32 %v508_v46, 16  ;;  %v5172_v4 = vld [vmem:[%s6325_s3 + $0x1a8] sm:$0xff]   ;;  %v343_v39 = vunpack.c.h.bf16 %v5772_v41  ;;  %v832_v15 = vld [vmem:[#allocation2 + $0xa0] sm:$0x1f] }
  0x4c   : > { %831 = vst [vmem:[#allocation2 + $0x98] sm:$0x1f] %v830_v45  ;;  %4809 = vmatpush3.bf16.msra.mxu0 %v5167_v10  ;;  %843 = vst [vmem:[#allocation2 + $0xb8] sm:$0x1f] %v842_v56  ;;  %v393_v6 = vmul.f32 %v5579_v58, %v340_v61  ;;  %v442_v7 = vadd.f32 %v5581_v59, %v389_v62  ;;  %v347_v8 = vunpack.c.h.bf16 %v5777_v49  ;;  %v345_v9 = vunpack.c.h.bf16 %v5780_v50  ;;  %v826_v56 = vld [vmem:[#allocation2 + $0x90] sm:$0x1f] }
  0x4d   : > { %4810 = vmatprep.subr.bf16.mxu0 %v5169_v20  ;;  %3421 = vmatmul.mubr.bf16.gmra.mrb[4].mxu0 %v4389_v53  ;;  %v614_v11 = vor.u32 %v612_v48, %v611_v1  ;;  %v639_v12 = vrot.slane %v637_v2, 7  ;;  %v396_v10 = vmul.f32 %v5558_v43, %v343_v39  ;;  %v349_v14 = vunpack.c.h.bf16 %v5790_v0  ;;  %v5175_v20 = vld [vmem:[%s6325_s3 + $0x130] sm:$0xff]  }
  0x4e   : > { %4849 = vmatpush3.bf16.msra.mxu1 %v5168_v19  ;;  %v446_v16 = vadd.f32 %v5581_v59, %v393_v6  ;;  %v474_v17 = vmax.f32 %v442_v7, 0.0  ;;  %v400_v18 = vmul.f32 %v5558_v43, %v347_v8  ;;  %v398_v19 = vmul.f32 %v5564_v51, %v345_v9  ;;  %v1083_v21 = vld [vmem:[#allocation2 + $0x50] sm:$0xf]  ;;  %v5178_v9 = vld [vmem:[%s6325_s3 + $0x1f8] sm:$0xff]  }
  0x4f   : > { %4850 = vmatprep.subr.bf16.mxu1 %v5170_v35  ;;  %v642_v24 = vor.u32 %v640_v3, %v639_v12  ;;  %v821_v25 = vsel %vm5601_vm5, %v614_v11, %v820_v60  ;;  %v449_v26 = vadd.f32 %v5560_v44, %v396_v10  ;;  %v402_v27 = vmul.f32 %v5564_v51, %v349_v14  ;;  %v5176_v48 = vld [vmem:[%s6325_s3 + $0x1b0] sm:$0xff]   ;;  %v847_v10 = vld [vmem:[#allocation2 + $0xc8] sm:$0x1f] }
  0x50   : > { %4811 = vmatpush3.bf16.msra.mxu0 %v5171_v63  ;;  %v1016_v22 = vld [vmem:[#allocation2 + $0x88] sm:$0x1]  ;;  %v1087_v28 = vld [vmem:[#allocation2 + $0x70] sm:$0xf]  ;;  %822 = vst [vmem:[#allocation2 + $0x80] sm:$0x1f] %v821_v25  ;;  %v506_v32 = vpack.c.bf16 %v474_v17, %v474_v17  ;;  %v453_v33 = vadd.f32 %v5560_v44, %v400_v18  ;;  %v451_v62 = vadd.f32 %v5566_v52, %v398_v19 }
  0x51   : > { %v1017_v31 = vsel %vm5570_vm2, 0, %v1016_v22  ;;  %v478_v30 = vmax.f32 %v446_v16, 0.0  ;;  %4812 = vmatprep.subr.bf16.mxu0 %v5173_v5  ;;  %v4391_v35 = vcombine.low %v1083_v21, %v1087_v28  ;;  %v833_v38 = vsel %vm5601_vm5, %v642_v24, %v832_v15  ;;  %v838_v39 = vld [vmem:[#allocation2 + $0xb0] sm:$0x1f] }
  0x52   : > { %4851 = vmatpush3.bf16.msra.mxu1 %v5172_v4  ;;  %v1028_v29 = vld [vmem:[#allocation2 + $0xa8] sm:$0x1]  ;;  %1018 = vst [vmem:[#allocation2 + $0x88] sm:$0x1] %v1017_v31  ;;  %v481_v40 = vmax.f32 %v449_v26, 0.0  ;;  %v623_v46 = vshrl.u32 %v506_v32, 16  ;;  %v455_v3 = vadd.f32 %v5566_v52, %v402_v27 }
  0x53   : > { %4852 = vmatprep.subr.bf16.mxu1 %v5174_v13  ;;  %v1029_v36 = vsel %vm5570_vm2, 0, %v1028_v29  ;;  %v1022_v37 = vld [vmem:[#allocation2 + $0x98] sm:$0x1]  ;;  %834 = vst [vmem:[#allocation2 + $0xa0] sm:$0x1f] %v833_v38  ;;  %v510_v45 = vpack.c.bf16 %v478_v30, %v478_v30  ;;  %v626_v47 = vshll.u32 %v506_v32, 16  ;;  %3486 = vmatmul.mubr.bf16.gmra.mrb[4].mxu1 %v4391_v35  ;;  %v342_v13 = vunpack.c.l.bf16 %v5772_v41 }
  0x54   : > { %1030 = vst [vmem:[#allocation2 + $0xa8] sm:$0x1] %v1029_v36  ;;  %v1023_v34 = vsel %vm5570_vm2, 0, %v1022_v37  ;;  %v1034_v42 = vld [vmem:[#allocation2 + $0xb8] sm:$0x1]  ;;  %4813 = vmatpush3.bf16.msra.mxu0 %v5175_v20  ;;  %v485_v60 = vmax.f32 %v453_v33, 0.0  ;;  %v513_v61 = vpack.c.bf16 %v481_v40, %v481_v40  ;;  %v346_v33 = vunpack.c.l.bf16 %v5777_v49 }
  0x55   : > { %1024 = vst [vmem:[#allocation2 + $0x98] sm:$0x1] %v1023_v34  ;;  %v1035_v53 = vsel %vm5570_vm2, 0, %v1034_v42  ;;  %v625_v63 = vrot.slane %v623_v46, 7  ;;  %v651_v1 = vshrl.u32 %v510_v45, 16  ;;  %v654_v2 = vshll.u32 %v510_v45, 16 }
  0x56   : > { %1036 = vst [vmem:[#allocation2 + $0xb8] sm:$0x1] %v1035_v53  ;;  %4853 = vmatpush3.bf16.msra.mxu1 %v5176_v48  ;;  %v5177_v4 = vld [vmem:[%s6325_s3 + $0x178] sm:$0xff]   ;;  %v517_v5 = vpack.c.bf16 %v485_v60, %v485_v60  ;;  %v672_v6 = vshrl.u32 %v513_v61, 16  ;;  %v675_v7 = vshll.u32 %v513_v61, 16  ;;  %v483_v8 = vmax.f32 %v451_v62, 0.0 }
  0x57   : > { %v628_v11 = vor.u32 %v626_v47, %v625_v63  ;;  %v653_v12 = vrot.slane %v651_v1, 7  ;;  %v487_v14 = vmax.f32 %v455_v3, 0.0  ;;  %4814 = vmatprep.subr.bf16.mxu0 %v5177_v4  ;;  %v1013_v15 = vld [vmem:[#allocation2 + $0x80] sm:$0x1]  ;;  %4854 = vmatprep.subr.bf16.mxu1 %v5178_v9  ;;  %v5179_v20 = vld [vmem:[%s6325_s3 + $0x138] sm:$0xff]   ;;  %v395_v60 = vmul.f32 %v5568_v54, %v342_v13 }
  0x58   : > { %v674_v16 = vrot.slane %v672_v6, 7  ;;  %v700_v17 = vshrl.u32 %v517_v5, 16  ;;  %v703_v18 = vshll.u32 %v517_v5, 16  ;;  %v515_v19 = vpack.c.bf16 %v483_v8, %v483_v8  ;;  %v859_v41 = vld [vmem:[#allocation2 + $0xe8] sm:$0x1f]  ;;  %v5180_v27 = vld [vmem:[%s6325_s3 + $0x1b8] sm:$0xff]   ;;  %4815 = vmatpush3.bf16.msra.mxu0 %v5179_v20 }
  0x59   : > { %v1090_v21 = vld [vmem:[#allocation2 + $0x88] sm:$0xf]  ;;  %v1014_v22 = vsel %vm5570_vm2, 0, %v1013_v15  ;;  %v656_v24 = vor.u32 %v654_v2, %v653_v12  ;;  %v827_v25 = vsel %vm5601_vm5, %v628_v11, %v826_v56  ;;  %v519_v26 = vpack.c.bf16 %v487_v14, %v487_v14  ;;  %v853_v34 = vld [vmem:[#allocation2 + $0xd8] sm:$0x1f]  ;;  %v5193_v62 = vld [vmem:[%s6325_s3 + $0x240] sm:$0xff]  }
  0x5a   : > { %1015 = vst [vmem:[#allocation2 + $0x80] sm:$0x1] %v1014_v22  ;;  %v1025_v31 = vld [vmem:[#allocation2 + $0xa0] sm:$0x1]  ;;  %828 = vst [vmem:[#allocation2 + $0x90] sm:$0x1f] %v827_v25  ;;  %v677_v29 = vor.u32 %v675_v7, %v674_v16  ;;  %4855 = vmatpush3.bf16.msra.mxu1 %v5180_v27  ;;  %v399_v61 = vmul.f32 %v5568_v54, %v346_v33  ;;  %v344_v3 = vunpack.c.l.bf16 %v5780_v50  ;;  %v348_v6 = vunpack.c.l.bf16 %v5790_v0 }
  0x5b   : > { %v1094_v28 = vld [vmem:[#allocation2 + $0xa8] sm:$0xf]  ;;  %v702_v30 = vrot.slane %v700_v17, 7  ;;  %v686_v32 = vshrl.u32 %v515_v19, 16  ;;  %v1026_v37 = vsel %vm5570_vm2, 0, %v1025_v31  ;;  %v839_v38 = vsel %vm5601_vm5, %v656_v24, %v838_v39  ;;  %v5194_v4 = vld [vmem:[%s6325_s3 + $0x2c0] sm:$0xff]   ;;  %4880 = vmatprep.subr.bf16.mxu0 %v5193_v62 }
  0x5c   : > { %v4394_v35 = vcombine.low %v1090_v21, %v1094_v28  ;;  %v1092_v36 = vld [vmem:[#allocation2 + $0x98] sm:$0xf]  ;;  %v689_v40 = vshll.u32 %v515_v19, 16  ;;  %1027 = vst [vmem:[#allocation2 + $0xa0] sm:$0x1] %v1026_v37  ;;  %v848_v46 = vsel %vm5601_vm5, %v677_v29, %v847_v10  ;;  %v714_v47 = vshrl.u32 %v519_v26, 16  ;;  %4920 = vmatprep.subr.bf16.mxu1 %v5194_v4 }
  0x5d   : > { %v1096_v42 = vld [vmem:[#allocation2 + $0xb8] sm:$0xf]  ;;  %840 = vst [vmem:[#allocation2 + $0xb0] sm:$0x1f] %v839_v38  ;;  %v705_v45 = vor.u32 %v703_v18, %v702_v30  ;;  %v688_v49 = vrot.slane %v686_v32, 7  ;;  %v717_v53 = vshll.u32 %v519_v26, 16  ;;  %v448_v39 = vadd.f32 %v5577_v57, %v395_v60 }
  0x5e   : > { %3428 = vmatprep.mubr.bf16.mxu0 %v4394_v35  ;;  %v4396_v48 = vcombine.low %v1092_v36, %v1096_v42  ;;  %849 = vst [vmem:[#allocation2 + $0xc8] sm:$0x1f] %v848_v46  ;;  %v865_v56 = vld [vmem:[#allocation2 + $0xf8] sm:$0x1f]  ;;  %v716_v2 = vrot.slane %v714_v47, 7  ;;  %v452_v5 = vadd.f32 %v5577_v57, %v399_v61  ;;  %v397_v50 = vmul.f32 %v5579_v58, %v344_v3 }
  0x5f   : > { %v860_v63 = vsel %vm5601_vm5, %v705_v45, %v859_v41  ;;  %v691_v1 = vor.u32 %v689_v40, %v688_v49  ;;  %v5181_v7 = vld [vmem:[#allocation2] ss:$8 sps:$4 sm:$0xff]   ;;  %v480_v10 = vmax.f32 %v448_v39, 0.0  ;;  %v401_v13 = vmul.f32 %v5579_v58, %v348_v6  ;;  %v5183_v46 = vld [vmem:[#allocation2 + $0x4] ss:$8 sps:$4 sm:$0x11]  }
  0x60   : > { %3493 = vmatprep.mubr.bf16.mxu1 %v4396_v48  ;;  %861 = vst [vmem:[#allocation2 + $0xe8] sm:$0x1f] %v860_v63  ;;  %v719_v8 = vor.u32 %v717_v53, %v716_v2  ;;  %v484_v14 = vmax.f32 %v452_v5, 0.0  ;;  %v450_v16 = vadd.f32 %v5581_v59, %v397_v50  ;;  %v1381_v22 = vshrl.u32 %v5181_v7, 16  ;;  %v844_v35 = vld [vmem:[#allocation2 + $0xc0] sm:$0x1f] }
  0x61   : > { %v854_v9 = vsel %vm5601_vm5, %v691_v1, %v853_v34  ;;  %v1089_v11 = vld [vmem:[#allocation2 + $0x80] sm:$0xf]  ;;  %v1019_v12 = vld [vmem:[#allocation2 + $0x90] sm:$0x1]  ;;  %v512_v19 = vpack.c.bf16 %v480_v10, %v480_v10  ;;  %v454_v21 = vadd.f32 %v5581_v59, %v401_v13  ;;  %v1384_v27 = vshll.u32 %v5181_v7, 16 }
  0x62   : > { %855 = vst [vmem:[#allocation2 + $0xd8] sm:$0x1f] %v854_v9  ;;  %v1020_v15 = vsel %vm5570_vm2, 0, %v1019_v12  ;;  %v866_v0 = vsel %vm5601_vm5, %v719_v8, %v865_v56  ;;  %v516_v20 = vpack.c.bf16 %v484_v14, %v484_v14  ;;  %v482_v26 = vmax.f32 %v450_v16, 0.0  ;;  %v856_v36 = vld [vmem:[#allocation2 + $0xe0] sm:$0x1f] }
  0x63   : > { %v1093_v17 = vld [vmem:[#allocation2 + $0xa0] sm:$0xf]  ;;  %1021 = vst [vmem:[#allocation2 + $0x90] sm:$0x1] %v1020_v15  ;;  %867 = vst [vmem:[#allocation2 + $0xf8] sm:$0x1f] %v866_v0 }
  0x64   : > { %v1031_v18 = vld [vmem:[#allocation2 + $0xb0] sm:$0x1]  ;;  %v4393_v24 = vcombine.low %v1089_v11, %v1093_v17  ;;  %v665_v31 = vshrl.u32 %v512_v19, 16  ;;  %v668_v29 = vshll.u32 %v512_v19, 16  ;;  %v693_v30 = vshrl.u32 %v516_v20, 16 }
  0x65   : > { %v1032_v25 = vsel %vm5570_vm2, 0, %v1031_v18  ;;  %v1040_v41 = vld [vmem:[#allocation2 + $0xc8] sm:$0x1]  ;;  %v696_v33 = vshll.u32 %v516_v20, 16  ;;  %v486_v37 = vmax.f32 %v454_v21, 0.0  ;;  %v514_v38 = vpack.c.bf16 %v482_v26, %v482_v26 }
  0x66   : > { %1033 = vst [vmem:[#allocation2 + $0xb0] sm:$0x1] %v1032_v25  ;;  %v1041_v28 = vsel %vm5570_vm2, 0, %v1040_v41  ;;  %3429 = vmatmul.mubr.bf16.gmra.mrb[8].mxu0 %v4393_v24  ;;  %v5184_v40 = vld [vmem:[#allocation2 + $0x20] ss:$8 sps:$4 sm:$0xff]   ;;  %v667_v42 = vrot.slane %v665_v31, 7 }
  0x67   : > { %1042 = vst [vmem:[#allocation2 + $0xc8] sm:$0x1] %v1041_v28  ;;  %v1052_v32 = vld [vmem:[#allocation2 + $0xe8] sm:$0x1]  ;;  %v695_v45 = vrot.slane %v693_v30, 7  ;;  %v1383_v49 = vrot.slane %v1381_v22, 4  ;;  %v518_v48 = vpack.c.bf16 %v486_v37, %v486_v37 }
  0x68   : > { %v1053_v34 = vsel %vm5570_vm2, 0, %v1052_v32  ;;  %v679_v53 = vshrl.u32 %v514_v38, 16  ;;  %v682_v56 = vshll.u32 %v514_v38, 16  ;;  %v5186_v60 = vld [vmem:[#allocation2 + $0x24] ss:$8 sps:$4 sm:$0x11]   ;;  %v670_v62 = vor.u32 %v668_v29, %v667_v42 }
  0x69   : > { %1054 = vst [vmem:[#allocation2 + $0xe8] sm:$0x1] %v1053_v34  ;;  %v1046_v47 = vld [vmem:[#allocation2 + $0xd8] sm:$0x1]  ;;  %v698_v63 = vor.u32 %v696_v33, %v695_v45  ;;  %v1386_v1 = vrot.slane %v1384_v27, 5  ;;  %v707_v39 = vshrl.u32 %v518_v48, 16 }
  0x6a   : > { %v1047_v61 = vsel %vm5570_vm2, 0, %v1046_v47  ;;  %v1091_v2 = vld [vmem:[#allocation2 + $0x90] sm:$0xf]  ;;  %v1058_v3 = vld [vmem:[#allocation2 + $0xf8] sm:$0x1]  ;;  %v681_v4 = vrot.slane %v679_v53, 7  ;;  %v845_v6 = vsel %vm5601_vm5, %v670_v62, %v844_v35 }
  0x6b   : > { %1048 = vst [vmem:[#allocation2 + $0xd8] sm:$0x1] %v1047_v61  ;;  %v1059_v5 = vsel %vm5570_vm2, 0, %v1058_v3  ;;  %v857_v7 = vsel %vm5601_vm5, %v698_v63, %v856_v36  ;;  %v710_v8 = vshll.u32 %v518_v48, 16  ;;  %v850_v9 = vld [vmem:[#allocation2 + $0xd0] sm:$0x1f]  ;;  %v1387_v17 = vor.u32 %v1386_v1, %v1383_v49 }
  0x6c   : > { %v5187_v50 = vld [vmem:[#allocation2 + $0x10] ss:$8 sps:$4 sm:$0xff]   ;;  %1060 = vst [vmem:[#allocation2 + $0xf8] sm:$0x1] %v1059_v5  ;;  %846 = vst [vmem:[#allocation2 + $0xc0] sm:$0x1f] %v845_v6  ;;  %v684_v12 = vor.u32 %v682_v56, %v681_v4 }
  0x6d   : > { %v1095_v11 = vld [vmem:[#allocation2 + $0xb0] sm:$0xf]  ;;  %858 = vst [vmem:[#allocation2 + $0xe0] sm:$0x1f] %v857_v7  ;;  %v709_v10 = vrot.slane %v707_v39, 7  ;;  %v1409_v13 = vshrl.u32 %v5184_v40, 16 }
  0x6e   : > { %v862_v14 = vld [vmem:[#allocation2 + $0xf0] sm:$0x1f]  ;;  %v4395_v0 = vcombine.low %v1091_v2, %v1095_v11  ;;  %v1098_v16 = vld [vmem:[#allocation2 + $0xc8] sm:$0xf]  ;;  %v1390_v18 = vshll.u32 %v5183_v46, 16  ;;  %v1412_v19 = vshll.u32 %v5184_v40, 16  ;;  %v851_v22 = vsel %vm5601_vm5, %v684_v12, %v850_v9 }
  0x6f   : > { %v5189_v15 = vld [vmem:[#allocation2 + $0x14] ss:$8 sps:$4 sm:$0x11]   ;;  %v5190_v20 = vld [vmem:[#allocation2 + $0x30] ss:$8 sps:$4 sm:$0xff]   ;;  %v712_v21 = vor.u32 %v710_v8, %v709_v10  ;;  %v1411_v24 = vrot.slane %v1409_v13, 4 }
  0x70   : > { %v1418_v25 = vshll.u32 %v5186_v60, 16  ;;  %3494 = vmatmul.mubr.bf16.gmra.mrb[8].mxu1 %v4395_v0  ;;  %v1102_v41 = vld [vmem:[#allocation2 + $0xe8] sm:$0xf]  ;;  %852 = vst [vmem:[#allocation2 + $0xd0] sm:$0x1f] %v851_v22  ;;  %v1414_v26 = vrot.slane %v1412_v19, 5 }
  0x71   : > { %v5192_v27 = vld [vmem:[#allocation2 + $0x34] ss:$8 sps:$4 sm:$0x11]   ;;  %v1395_v28 = vshrl.u32 %v5187_v50, 16  ;;  %v1398_v31 = vshll.u32 %v5187_v50, 16  ;;  %v4398_v29 = vcombine.low %v1098_v16, %v1102_v41  ;;  %v863_v30 = vsel %vm5601_vm5, %v712_v21, %v862_v14 }
  0x72   : > { %v1423_v32 = vshrl.u32 %v5190_v20, 16  ;;  %v1100_v33 = vld [vmem:[#allocation2 + $0xd8] sm:$0xf]  ;;  %864 = vst [vmem:[#allocation2 + $0xf0] sm:$0x1f] %v863_v30  ;;  %v1415_v35 = vor.u32 %v1414_v26, %v1411_v24  ;;  %v1426_v38 = vshll.u32 %v5190_v20, 16 }
  0x73   : > { %v1397_v36 = vrot.slane %v1395_v28, 4  ;;  %v1400_v37 = vrot.slane %v1398_v31, 5  ;;  %3436 = vmatprep.mubr.bf16.mxu0 %v4398_v29  ;;  %v1388_v40 = vrot.slane %v1387_v17, 4  ;;  %v1392_v34 = vrot.slane %v1390_v18, 5  ;;  %v1104_v46 = vld [vmem:[#allocation2 + $0xf8] sm:$0xf] }
  0x74   : > { %v1420_v42 = vrot.slane %v1418_v25, 5  ;;  %v1404_v45 = vshll.u32 %v5189_v15, 16  ;;  %v1037_v49 = vld [vmem:[#allocation2 + $0xc0] sm:$0x1]  ;;  %v4400_v48 = vcombine.low %v1100_v33, %v1104_v46  ;;  %v1425_v60 = vrot.slane %v1423_v32, 4 }
  0x75   : > { %v1049_v47 = vld [vmem:[#allocation2 + $0xe0] sm:$0x1]  ;;  %v1038_v53 = vsel %vm5570_vm2, 0, %v1037_v49  ;;  %v1416_v62 = vrot.slane %v1415_v35, 4  ;;  %v1401_v63 = vor.u32 %v1400_v37, %v1397_v36  ;;  %v1428_v1 = vrot.slane %v1426_v38, 5 }
  0x76   : > { %v1050_v56 = vsel %vm5570_vm2, 0, %v1049_v47  ;;  %1039 = vst [vmem:[#allocation2 + $0xc0] sm:$0x1] %v1038_v53  ;;  %v1432_v2 = vshll.u32 %v5192_v27, 16  ;;  %3501 = vmatprep.mubr.bf16.mxu1 %v4400_v48  ;;  %v1406_v39 = vrot.slane %v1404_v45, 5  ;;  %v1393_v8 = vsel %vm5906_vm8, %v1388_v40, %v1392_v34  ;;  %v5195_v33 = vld [vmem:[%s6325_s3 + $0x200] sm:$0xff]  }
  0x77   : > { %1051 = vst [vmem:[#allocation2 + $0xe0] sm:$0x1] %v1050_v56  ;;  %v1043_v3 = vld [vmem:[#allocation2 + $0xd0] sm:$0x1]  ;;  %v1429_v6 = vor.u32 %v1428_v1, %v1425_v60  ;;  %v1421_v9 = vsel %vm5906_vm8, %v1416_v62, %v1420_v42  ;;  %v1402_v50 = vrot.slane %v1401_v63, 4  ;;  %v5197_v40 = vld [vmem:[%s6325_s3 + $0x248] sm:$0xff]  }
  0x78   : > { %v1044_v4 = vsel %vm5570_vm2, 0, %v1043_v3  ;;  %v1434_v12 = vrot.slane %v1432_v2, 5  ;;  %v4434_v13 = vcombine.high %v1393_v8, %v1421_v9  ;;  %v5201_v0 = vld [vmem:[#allocation2 + $0x40] ss:$8 sps:$4 sm:$0xff]   ;;  %v4433_v38 = vcombine.low %v1393_v8, %v1421_v9  ;;  %v5207_v42 = vld [vmem:[#allocation2 + $0x50] ss:$8 sps:$4 sm:$0xff]  }
  0x79   : > { %1045 = vst [vmem:[#allocation2 + $0xd0] sm:$0x1] %v1044_v4  ;;  %v1055_v5 = vld [vmem:[#allocation2 + $0xf0] sm:$0x1]  ;;  %v1430_v11 = vrot.slane %v1429_v6, 4  ;;  %v5920_v17 = vsel %vm5906_vm8, %v1402_v50, %v1406_v39  ;;  %v1437_v22 = vshrl.u32 %v5201_v0, 16 }
  0x7a   : > { %v1056_v7 = vsel %vm5570_vm2, 0, %v1055_v5  ;;  %v5203_v16 = vld [vmem:[#allocation2 + $0x44] ss:$8 sps:$4 sm:$0x11]   ;;  %v5204_v19 = vld [vmem:[#allocation2 + $0x60] ss:$8 sps:$4 sm:$0xff]  }
  0x7b   : > { %1057 = vst [vmem:[#allocation2 + $0xf0] sm:$0x1] %v1056_v7  ;;  %v5924_v18 = vsel %vm5906_vm8, %v1430_v11, %v1434_v12  ;;  %v5206_v20 = vld [vmem:[#allocation2 + $0x64] ss:$8 sps:$4 sm:$0x11]   ;;  %v1440_v24 = vshll.u32 %v5201_v0, 16 }
  0x7c   : > { %v1446_v25 = vshll.u32 %v5203_v16, 16  ;;  %v1465_v41 = vshrl.u32 %v5204_v19, 16  ;;  %v1468_v26 = vshll.u32 %v5204_v19, 16  ;;  %v1474_v27 = vshll.u32 %v5206_v20, 16  ;;  %v5210_v47 = vld [vmem:[#allocation2 + $0x70] ss:$8 sps:$4 sm:$0xff]  }
  0x7d   : > { %v1097_v10 = vld [vmem:[#allocation2 + $0xc0] sm:$0xf]  ;;  %v4436_v31 = vcombine.high %v5920_v17, %v5924_v18  ;;  %v1439_v29 = vrot.slane %v1437_v22, 4  ;;  %v1442_v30 = vrot.slane %v1440_v24, 5  ;;  %v1451_v56 = vshrl.u32 %v5207_v42, 16  ;;  %v5198_v8 = vld [vmem:[%s6325_s3 + $0x2c8] sm:$0xff]  }
  0x7e   : > { %v1101_v14 = vld [vmem:[#allocation2 + $0xe0] sm:$0xf]  ;;  %v1448_v35 = vrot.slane %v1446_v25, 5  ;;  %v1467_v36 = vrot.slane %v1465_v41, 4  ;;  %v1470_v37 = vrot.slane %v1468_v26, 5  ;;  %v1476_v46 = vrot.slane %v1474_v27, 5 }
  0x7f   : > { %v4397_v15 = vcombine.low %v1097_v10, %v1101_v14  ;;  %v1443_v34 = vor.u32 %v1442_v30, %v1439_v29  ;;  %v5209_v49 = vld [vmem:[#allocation2 + $0x54] ss:$8 sps:$4 sm:$0x11]   ;;  %v1454_v60 = vshll.u32 %v5207_v42, 16  ;;  %v1479_v1 = vshrl.u32 %v5210_v47, 16  ;;  %v5196_v3 = vld [vmem:[%s6325_s3 + $0x280] sm:$0xff]  }
  0x80   : > { %v1099_v21 = vld [vmem:[#allocation2 + $0xd0] sm:$0xf]  ;;  %v1471_v45 = vor.u32 %v1470_v37, %v1467_v36  ;;  %v5212_v53 = vld [vmem:[#allocation2 + $0x74] ss:$8 sps:$4 sm:$0x11]   ;;  %v1460_v63 = vshll.u32 %v5209_v49, 16  ;;  %v4435_v7 = vcombine.low %v5920_v17, %v5924_v18 }
  0x81   : > { %3437 = vmatmul.mubr.bf16.gmra.mrb[12].mxu0 %v4397_v15  ;;  %v1444_v48 = vrot.slane %v1443_v34, 4  ;;  %v1482_v2 = vshll.u32 %v5210_v47, 16  ;;  %v1453_v39 = vrot.slane %v1451_v56, 4  ;;  %v1456_v5 = vrot.slane %v1454_v60, 5  ;;  %v5199_v9 = vld [vmem:[%s6325_s3 + $0x208] sm:$0xff]   ;;  %v5213_v10 = vld [vmem:[%s6325_s3 + $0x250] sm:$0xff]  }
  0x82   : > { %3542 = vmatprep.mubr.bf16.mxu0 %v4434_v13  ;;  %v1103_v28 = vld [vmem:[#allocation2 + $0xf0] sm:$0xf]  ;;  %v1472_v62 = vrot.slane %v1471_v45, 4  ;;  %v1488_v6 = vshll.u32 %v5212_v53, 16  ;;  %v1481_v11 = vrot.slane %v1479_v1, 4  ;;  %v1462_v15 = vrot.slane %v1460_v63, 5 }
  0x83   : > { %v4399_v32 = vcombine.low %v1099_v21, %v1103_v28  ;;  %v1449_v4 = vsel %vm5906_vm8, %v1444_v48, %v1448_v35  ;;  %v1484_v12 = vrot.slane %v1482_v2, 5  ;;  %v1457_v13 = vor.u32 %v1456_v5, %v1453_v39  ;;  %v5200_v17 = vld [vmem:[%s6325_s3 + $0x288] sm:$0xff]   ;;  %v5215_v20 = vld [vmem:[%s6325_s3 + $0x210] sm:$0xff]   ;;  %v5217_v24 = vld [vmem:[%s6325_s3 + $0x258] sm:$0xff]  }
  0x84   : > { %v1477_v50 = vsel %vm5906_vm8, %v1472_v62, %v1476_v46  ;;  %v1490_v0 = vrot.slane %v1488_v6, 5  ;;  %v5214_v22 = vld [vmem:[%s6325_s3 + $0x2d0] sm:$0xff]   ;;  %v5221_v28 = vld [vmem:[#allocation2 + $0x80] ss:$8 sps:$4 sm:$0xff]   ;;  %v5219_v29 = vld [vmem:[%s6325_s3 + $0x218] sm:$0xff]  }
  0x85   : > { %3502 = vmatmul.mubr.bf16.gmra.mrb[12].mxu1 %v4399_v32  ;;  %v4438_v14 = vcombine.high %v1449_v4, %v1477_v50  ;;  %v1485_v16 = vor.u32 %v1484_v12, %v1481_v11  ;;  %v1458_v18 = vrot.slane %v1457_v13, 4  ;;  %v4437_v19 = vcombine.low %v1449_v4, %v1477_v50  ;;  %v5216_v27 = vld [vmem:[%s6325_s3 + $0x290] sm:$0xff]   ;;  %v5223_v30 = vld [vmem:[#allocation2 + $0x84] ss:$8 sps:$4 sm:$0x11]   ;;  %v5220_v45 = vld [vmem:[%s6325_s3 + $0x298] sm:$0xff]  }
  0x86   : > { %3607 = vmatprep.mubr.bf16.mxu1 %v4436_v31  ;;  %v5224_v32 = vld [vmem:[#allocation2 + $0xa0] ss:$8 sps:$4 sm:$0xff]   ;;  %v1493_v35 = vshrl.u32 %v5221_v28, 16  ;;  %v1496_v36 = vshll.u32 %v5221_v28, 16  ;;  %v5227_v1 = vld [vmem:[#allocation2 + $0x90] ss:$8 sps:$4 sm:$0xff]  }
  0x87   : > { %v1486_v21 = vrot.slane %v1485_v16, 4  ;;  %v1463_v25 = vsel %vm5906_vm8, %v1458_v18, %v1462_v15  ;;  %v5233_v37 = vld [vmem:[%s6325_s3 + $0x260] sm:$0xff]   ;;  %v1521_v34 = vshrl.u32 %v5224_v32, 16  ;;  %v1524_v42 = vshll.u32 %v5224_v32, 16  ;;  %v5237_v2 = vld [vmem:[%s6325_s3 + $0x268] sm:$0xff]  }
  0x88   : > { %v1495_v46 = vrot.slane %v1493_v35, 4  ;;  %v1498_v49 = vrot.slane %v1496_v36, 5  ;;  %v5234_v56 = vld [vmem:[%s6325_s3 + $0x2e0] sm:$0xff]   ;;  %v5229_v39 = vld [vmem:[#allocation2 + $0x94] ss:$8 sps:$4 sm:$0x11]  }
  0x89   : > { %3543 = vmatmul.mubr.bf16.vlgmr.msra.gmra.mrb[16].mxu0 %v4433_v38  ;;  %v1491_v41 = vsel %vm5906_vm8, %v1486_v21, %v1490_v0  ;;  %v5218_v38 = vld [vmem:[%s6325_s3 + $0x2d8] sm:$0xff]   ;;  %v1523_v48 = vrot.slane %v1521_v34, 4  ;;  %v1526_v53 = vrot.slane %v1524_v42, 5  ;;  %v5235_v60 = vld [vmem:[%s6325_s3 + $0x220] sm:$0xff]   ;;  %v5239_v6 = vld [vmem:[%s6325_s3 + $0x228] sm:$0xff]   ;;  %v1510_v50 = vshll.u32 %v5227_v1, 16 }
  0x8a   : > { %4881 = vmatpush3.bf16.msra.mxu0 %v5195_v33  ;;  %3550 = vmatprep.mubr.bf16.mxu0 %v4438_v14  ;;  %v4440_v26 = vcombine.high %v1463_v25, %v1491_v41  ;;  %v4439_v31 = vcombine.low %v1463_v25, %v1491_v41  ;;  %v5226_v33 = vld [vmem:[#allocation2 + $0xa4] ss:$8 sps:$4 sm:$0x11]   ;;  %v1499_v62 = vor.u32 %v1498_v49, %v1495_v46  ;;  %v5230_v5 = vld [vmem:[#allocation2 + $0xb0] ss:$8 sps:$4 sm:$0xff]  }
  0x8b   : > { %4882 = vmatprep.subr.bf16.mxu0 %v5197_v40  ;;  %v1502_v40 = vshll.u32 %v5223_v30, 16  ;;  %v1530_v47 = vshll.u32 %v5226_v33, 16  ;;  %v5236_v11 = vld [vmem:[%s6325_s3 + $0x2a0] sm:$0xff]   ;;  %v1535_v14 = vshrl.u32 %v5230_v5, 16  ;;  %v1538_v13 = vshll.u32 %v5230_v5, 16  ;;  %v5238_v18 = vld [vmem:[%s6325_s3 + $0x2e8] sm:$0xff]  }
  0x8c   : > { %v1512_v16 = vrot.slane %v1510_v50, 5  ;;  %v5240_v28 = vld [vmem:[%s6325_s3 + $0x2a8] sm:$0xff]   ;;  %v5254_v30 = vld [vmem:[%s6325_s3 + $0x2f0] sm:$0xff]   ;;  %v5257_v33 = vld [vmem:[%s6325_s3 + $0x278] sm:$0xff]  }
  0x8d   : > { %3608 = vmatmul.mubr.bf16.vlgmr.msra.gmra.mrb[16].mxu1 %v4435_v7  ;;  %v1504_v63 = vrot.slane %v1502_v40, 5  ;;  %v1532_v4 = vrot.slane %v1530_v47, 5  ;;  %v1500_v7 = vrot.slane %v1499_v62, 4  ;;  %v1537_v21 = vrot.slane %v1535_v14, 4  ;;  %v5259_v36 = vld [vmem:[%s6325_s3 + $0x238] sm:$0xff]   ;;  %v5261_v40 = vld [vmem:[%s6325_s3 + $0x340] sm:$0xff]  }
  0x8e   : > { %4883 = vmatpush3.bf16.msra.mxu0 %v5199_v9  ;;  %4921 = vmatpush3.bf16.msra.mxu1 %v5196_v3  ;;  %v1527_v3 = vor.u32 %v1526_v53, %v1523_v48  ;;  %v1507_v9 = vshrl.u32 %v5227_v1, 16  ;;  %v5241_v46 = vld [vmem:[#allocation2 + $0xc0] ss:$8 sps:$4 sm:$0xff]   ;;  %v5243_v49 = vld [vmem:[#allocation2 + $0xc4] ss:$8 sps:$4 sm:$0x11]  }
  0x8f   : > { %4884 = vmatprep.subr.bf16.mxu0 %v5213_v10  ;;  %4922 = vmatprep.subr.bf16.mxu1 %v5198_v8  ;;  %v5232_v8 = vld [vmem:[#allocation2 + $0xb4] ss:$8 sps:$4 sm:$0x11]   ;;  %v1516_v10 = vshll.u32 %v5229_v39, 16  ;;  %v1505_v15 = vsel %vm5906_vm8, %v1500_v7, %v1504_v63  ;;  %v5244_v47 = vld [vmem:[#allocation2 + $0xe0] ss:$8 sps:$4 sm:$0xff]  }
  0x90   : > { %3615 = vmatprep.mubr.bf16.mxu1 %v4440_v26  ;;  %v1528_v12 = vrot.slane %v1527_v3, 4  ;;  %v1509_v0 = vrot.slane %v1507_v9, 4  ;;  %v5258_v48 = vld [vmem:[%s6325_s3 + $0x2f8] sm:$0xff]   ;;  %v5246_v53 = vld [vmem:[#allocation2 + $0xe4] ss:$8 sps:$4 sm:$0x11]  }
  0x91   : > { %3551 = vmatmul.mubr.bf16.gmra.mrb[20].mxu0 %v4437_v19  ;;  %v1558_v62 = vshll.u32 %v5243_v49, 16  ;;  %v1577_v63 = vshrl.u32 %v5244_v47, 16  ;;  %v1580_v1 = vshll.u32 %v5244_v47, 16  ;;  %v5260_v39 = vld [vmem:[%s6325_s3 + $0x2b8] sm:$0xff]   ;;  %v5262_v7 = vld [vmem:[%s6325_s3 + $0x3c0] sm:$0xff]  }
  0x92   : > { %4885 = vmatpush3.bf16.msra.mxu0 %v5215_v20  ;;  %4923 = vmatpush3.bf16.msra.mxu1 %v5200_v17  ;;  %v1544_v17 = vshll.u32 %v5232_v8, 16  ;;  %v1533_v19 = vsel %vm5906_vm8, %v1528_v12, %v1532_v4  ;;  %v1518_v20 = vrot.slane %v1516_v10, 5  ;;  %v1513_v41 = vor.u32 %v1512_v16, %v1509_v0  ;;  %v5247_v50 = vld [vmem:[#allocation2 + $0xd0] ss:$8 sps:$4 sm:$0xff]  }
  0x93   : > { %4924 = vmatprep.subr.bf16.mxu1 %v5214_v22  ;;  %4886 = vmatprep.subr.bf16.mxu0 %v5217_v24  ;;  %v1540_v22 = vrot.slane %v1538_v13, 5  ;;  %v5253_v24 = vld [vmem:[%s6325_s3 + $0x270] sm:$0xff]   ;;  %v4442_v25 = vcombine.high %v1505_v15, %v1533_v19  ;;  %v1586_v4 = vshll.u32 %v5246_v53, 16  ;;  %v1579_v5 = vrot.slane %v1577_v63, 4  ;;  %v1687_v49 = vld [vmem:[#allocation2 + $0x38] sm:$0xf] }
  0x94   : > { %v1546_v26 = vrot.slane %v1544_v17, 5  ;;  %v1514_v32 = vrot.slane %v1513_v41, 4  ;;  %v1560_v9 = vrot.slane %v1558_v62, 5  ;;  %v5249_v10 = vld [vmem:[#allocation2 + $0xd4] ss:$8 sps:$4 sm:$0x11]  }
  0x95   : > { %3616 = vmatmul.mubr.bf16.gmra.mrb[20].mxu1 %v4439_v31  ;;  %v5255_v31 = vld [vmem:[%s6325_s3 + $0x230] sm:$0xff]   ;;  %3558 = vmatprep.mubr.bf16.mxu0 %v4442_v25  ;;  %v1588_v12 = vrot.slane %v1586_v4, 5  ;;  %v1563_v0 = vshrl.u32 %v5247_v50, 16  ;;  %v1566_v16 = vshll.u32 %v5247_v50, 16  ;;  %v1691_v47 = vld [vmem:[#allocation2 + $0x58] sm:$0xf] }
  0x96   : > { %4887 = vmatpush3.bf16.msra.mxu0 %v5219_v29  ;;  %4925 = vmatpush3.bf16.msra.mxu1 %v5216_v27  ;;  %v4441_v27 = vcombine.low %v1505_v15, %v1533_v19  ;;  %v1541_v29 = vor.u32 %v1540_v22, %v1537_v21  ;;  %v5250_v14 = vld [vmem:[#allocation2 + $0xf0] ss:$8 sps:$4 sm:$0xff]   ;;  %v5252_v15 = vld [vmem:[#allocation2 + $0xf4] ss:$8 sps:$4 sm:$0x11]   ;;  %v4452_v53 = vcombine.low %v1687_v49, %v1691_v47  ;;  %v5282_v47 = vld [vmem:[%s6325_s3 + $0x3e8] sm:$0xff]  }
  0x97   : > { %4888 = vmatprep.subr.bf16.mxu0 %v5233_v37  ;;  %4926 = vmatprep.subr.bf16.mxu1 %v5218_v38  ;;  %v1519_v37 = vsel %vm5906_vm8, %v1514_v32, %v1518_v20  ;;  %v5256_v38 = vld [vmem:[%s6325_s3 + $0x2b0] sm:$0xff]   ;;  %v1591_v19 = vshrl.u32 %v5250_v14, 16  ;;  %v1594_v20 = vshll.u32 %v5250_v14, 16  ;;  %v1565_v22 = vrot.slane %v1563_v0, 4  ;;  %v1688_v62 = vld [vmem:[#allocation2 + $0x40] sm:$0xf] }
  0x98   : > { %v1542_v35 = vrot.slane %v1541_v29, 4  ;;  %v1600_v25 = vshll.u32 %v5252_v15, 16  ;;  %v1686_v63 = vld [vmem:[#allocation2 + $0x30] sm:$0xf]  ;;  %v1695_v50 = vld [vmem:[#allocation2 + $0x78] sm:$0xf] }
  0x99   : > { %3559 = vmatmul.mubr.bf16.gmra.mrb[24].mxu0 %v4441_v27  ;;  %v1593_v27 = vrot.slane %v1591_v19, 4  ;;  %v5269_v4 = vld [vmem:[%s6325_s3 + $0x350] sm:$0xff]   ;;  %v5273_v14 = vld [vmem:[%s6325_s3 + $0x358] sm:$0xff]   ;;  %v1692_v15 = vld [vmem:[#allocation2 + $0x60] sm:$0xf] }
  0x9a   : > { %4889 = vmatpush3.bf16.msra.mxu0 %v5235_v60  ;;  %4927 = vmatpush3.bf16.msra.mxu1 %v5220_v45  ;;  %v1547_v34 = vsel %vm5906_vm8, %v1542_v35, %v1546_v26  ;;  %v1552_v60 = vshll.u32 %v5241_v46, 16  ;;  %v1696_v0 = vld [vmem:[#allocation2 + $0x80] sm:$0xf]  ;;  %v1698_v19 = vld [vmem:[#allocation2 + $0x90] sm:$0xf] }
  0x9b   : > { %4890 = vmatprep.subr.bf16.mxu0 %v5237_v2  ;;  %4928 = vmatprep.subr.bf16.mxu1 %v5234_v56  ;;  %v4444_v42 = vcombine.high %v1519_v37, %v1547_v34  ;;  %v4443_v45 = vcombine.low %v1519_v37, %v1547_v34  ;;  %v1549_v56 = vshrl.u32 %v5241_v46, 16  ;;  %v1689_v34 = vld [vmem:[#allocation2 + $0x48] sm:$0xf]  ;;  %v320_v49 = vld [vmem:[%s5543_s28 + $0x70] sm:$0xff] }
  0x9c   : > { %v1554_v3 = vrot.slane %v1552_v60, 5  ;;  %v1684_v60 = vld [vmem:[#allocation2 + $0x20] sm:$0xf]  ;;  %v5302_v23 = vld [vmem:[#allocation2 + $0x50] ss:$8 sps:$4 sm:$0xff]  }
  0x9d   : > { %3623 = vmatprep.mubr.bf16.mxu1 %v4444_v42  ;;  %v1551_v2 = vrot.slane %v1549_v56, 4  ;;  %v5265_v56 = vld [vmem:[%s6325_s3 + $0x348] sm:$0xff]  }
  0x9e   : > { %4891 = vmatpush3.bf16.msra.mxu0 %v5239_v6  ;;  %4929 = vmatpush3.bf16.msra.mxu1 %v5236_v11  ;;  %v1582_v6 = vrot.slane %v1580_v1, 5  ;;  %v4449_v1 = vcombine.low %v1684_v60, %v1688_v62 }
  0x9f   : > { %4930 = vmatprep.subr.bf16.mxu1 %v5238_v18  ;;  %4892 = vmatprep.subr.bf16.mxu0 %v5253_v24  ;;  %v1555_v8 = vor.u32 %v1554_v3, %v1551_v2  ;;  %v1572_v18 = vshll.u32 %v5249_v10, 16  ;;  %v1568_v24 = vrot.slane %v1566_v16, 5  ;;  %v1690_v2 = vld [vmem:[#allocation2 + $0x50] sm:$0xf]  ;;  %v5267_v3 = vld [vmem:[%s6325_s3 + $0x308] sm:$0xff]  }
  0xa0   : > { %3624 = vmatmul.mubr.bf16.gmra.mrb[24].mxu1 %v4443_v45  ;;  %v1583_v11 = vor.u32 %v1582_v6, %v1579_v5  ;;  %v4451_v5 = vcombine.low %v1686_v63, %v1690_v2  ;;  %v5266_v6 = vld [vmem:[%s6325_s3 + $0x3c8] sm:$0xff]   ;;  %v1694_v16 = vld [vmem:[#allocation2 + $0x70] sm:$0xf] }
  0xa1   : > { %v1556_v13 = vrot.slane %v1555_v8, 4  ;;  %v1574_v26 = vrot.slane %v1572_v18, 5  ;;  %v1569_v29 = vor.u32 %v1568_v24, %v1565_v22  ;;  %v1697_v8 = vld [vmem:[#allocation2 + $0x88] sm:$0xf]  ;;  %v4453_v18 = vcombine.low %v1692_v15, %v1696_v0  ;;  %v5272_v22 = vld [vmem:[%s6325_s3 + $0x390] sm:$0xff]  }
  0xa2   : > { %4893 = vmatpush3.bf16.msra.mxu0 %v5255_v31  ;;  %4931 = vmatpush3.bf16.msra.mxu1 %v5240_v28  ;;  %v1584_v17 = vrot.slane %v1583_v11, 4  ;;  %v1596_v28 = vrot.slane %v1594_v20, 5  ;;  %v1699_v11 = vld [vmem:[#allocation2 + $0x98] sm:$0xf]  ;;  %v4455_v24 = vcombine.low %v1694_v16, %v1698_v19 }
  0xa3   : > { %4894 = vmatprep.subr.bf16.mxu0 %v5257_v33  ;;  %4932 = vmatprep.subr.bf16.mxu1 %v5254_v30  ;;  %v1561_v21 = vsel %vm5906_vm8, %v1556_v13, %v1560_v9  ;;  %v1602_v30 = vrot.slane %v1600_v25, 5  ;;  %v1570_v35 = vrot.slane %v1569_v29, 4  ;;  %v4456_v10 = vcombine.low %v1695_v50, %v1699_v11  ;;  %v5268_v13 = vld [vmem:[%s6325_s3 + $0x388] sm:$0xff]   ;;  %v5275_v20 = vld [vmem:[%s6325_s3 + $0x318] sm:$0xff]   ;;  %v5279_v29 = vld [vmem:[%s6325_s3 + $0x320] sm:$0xff]  }
  0xa4   : > { %v1589_v41 = vsel %vm5906_vm8, %v1584_v17, %v1588_v12  ;;  %v1597_v33 = vor.u32 %v1596_v28, %v1593_v27  ;;  %v5271_v12 = vld [vmem:[%s6325_s3 + $0x310] sm:$0xff]   ;;  %v5274_v25 = vld [vmem:[%s6325_s3 + $0x3d8] sm:$0xff]  }
  0xa5   : > { %v4446_v31 = vcombine.high %v1561_v21, %v1589_v41  ;;  %v4445_v32 = vcombine.low %v1561_v21, %v1589_v41  ;;  %v1575_v37 = vsel %vm5906_vm8, %v1570_v35, %v1574_v26  ;;  %v5270_v17 = vld [vmem:[%s6325_s3 + $0x3d0] sm:$0xff]   ;;  %v5277_v21 = vld [vmem:[%s6325_s3 + $0x360] sm:$0xff]   ;;  %v1701_v41 = vld [vmem:[#allocation2 + $0xa8] sm:$0xf] }
  0xa6   : > { %4895 = vmatpush3.bf16.msra.mxu0 %v5259_v36  ;;  %4933 = vmatpush3.bf16.msra.mxu1 %v5256_v38  ;;  %v1598_v36 = vrot.slane %v1597_v33, 4  ;;  %v1705_v26 = vld [vmem:[#allocation2 + $0xc8] sm:$0xf]  ;;  %v1703_v28 = vld [vmem:[#allocation2 + $0xb8] sm:$0xf]  ;;  %v5288_v50 = vld [vmem:[%s6325_s3 + $0x3b0] sm:$0xff]  }
  0xa7   : > { %4960 = vmatprep.subr.bf16.mxu0 %v5261_v40  ;;  %4934 = vmatprep.subr.bf16.mxu1 %v5258_v48  ;;  %v1685_v40 = vld [vmem:[#allocation2 + $0x28] sm:$0xf]  ;;  %v5263_v48 = vld [vmem:[%s6325_s3 + $0x300] sm:$0xff]   ;;  %v4458_v27 = vcombine.low %v1701_v41, %v1705_v26  ;;  %v5291_v16 = vld [vmem:[%s6325_s3 + $0x338] sm:$0xff]  }
  0xa8   : > { %3566 = vmatprep.mubr.bf16.mxu0 %v4446_v31  ;;  %v1603_v38 = vsel %vm5906_vm8, %v1598_v36, %v1602_v30  ;;  %v4450_v46 = vcombine.low %v1685_v40, %v1689_v34  ;;  %v1707_v31 = vld [vmem:[#allocation2 + $0xd8] sm:$0xf]  ;;  %v1700_v33 = vld [vmem:[#allocation2 + $0xa0] sm:$0xf]  ;;  %v1702_v36 = vld [vmem:[#allocation2 + $0xb0] sm:$0xf] }
  0xa9   : > { %3567 = vmatmul.mubr.bf16.gmra.mrb[28].mxu0 %v4445_v32  ;;  %v4448_v42 = vcombine.high %v1575_v37, %v1603_v38  ;;  %v4447_v45 = vcombine.low %v1575_v37, %v1603_v38  ;;  %v4460_v30 = vcombine.low %v1703_v28, %v1707_v31  ;;  %v5276_v32 = vld [vmem:[%s6325_s3 + $0x398] sm:$0xff]   ;;  %v1704_v35 = vld [vmem:[#allocation2 + $0xc0] sm:$0xf]  ;;  %v1706_v40 = vld [vmem:[#allocation2 + $0xd0] sm:$0xf] }
  0xaa   : > { %4935 = vmatpush3.bf16.msra.mxu1 %v5260_v39  ;;  %3672 = vmatprep.mubr.bf16.mxu0 %v4450_v46  ;;  %v5264_v39 = vld [vmem:[%s6325_s3 + $0x380] sm:$0xff]   ;;  %v4457_v38 = vcombine.low %v1700_v33, %v1704_v35  ;;  %v5281_v34 = vld [vmem:[%s6325_s3 + $0x368] sm:$0xff]   ;;  %v877_v41 = vld [vmem:[#allocation2 + $0x118] sm:$0x1f] }
  0xab   : > { %5000 = vmatprep.subr.bf16.mxu1 %v5262_v7  ;;  %3631 = vmatprep.mubr.bf16.mxu1 %v4448_v42  ;;  %v1693_v7 = vld [vmem:[#allocation2 + $0x68] sm:$0xf]  ;;  %v5278_v37 = vld [vmem:[%s6325_s3 + $0x3e0] sm:$0xff]   ;;  %v4459_v42 = vcombine.low %v1702_v36, %v1706_v40 }
  0xac   : > { %3632 = vmatmul.mubr.bf16.gmra.mrb[28].mxu1 %v4447_v45  ;;  %v4454_v9 = vcombine.low %v1693_v7, %v1697_v8  ;;  %v5283_v45 = vld [vmem:[%s6325_s3 + $0x328] sm:$0xff]   ;;  %v5280_v46 = vld [vmem:[%s6325_s3 + $0x3a0] sm:$0xff]  }
  0xad   : > { %3737 = vmatprep.mubr.bf16.mxu1 %v4452_v53  ;;  %v321_v53 = vld [vmem:[%s5543_s28 + $0x78] sm:$0xff]  ;;  %v5296_v33 = vld [vmem:[#allocation2 + $0x40] ss:$8 sps:$4 sm:$0xff]  }
  0xae   : > { %v353_v60 = vunpack.c.h.bf16 %v321_v53  ;;  %v352_v62 = vunpack.c.l.bf16 %v321_v53 }
  0xb1   : > { %3673 = vmatmul.mubr.bf16.vlgmr.msra.gmra.mrb[32].mxu0 %v4449_v1  ;;  %v5285_v1 = vld [vmem:[%s6325_s3 + $0x370] sm:$0xff]  }
  0xb2   : > { %4961 = vmatpush3.bf16.msra.mxu0 %v5263_v48  ;;  %3680 = vmatprep.mubr.bf16.mxu0 %v4454_v9  ;;  %v351_v48 = vunpack.c.h.bf16 %v320_v49 }
  0xb3   : > { %4962 = vmatprep.subr.bf16.mxu0 %v5265_v56  ;;  %v350_v56 = vunpack.c.l.bf16 %v320_v49 }
  0xb4   : > { %3738 = vmatmul.mubr.bf16.vlgmr.msra.gmra.mrb[32].mxu1 %v4451_v5  ;;  %v404_v63 = vmul.f32 %v5558_v43, %v351_v48  ;;  %v5286_v43 = vld [vmem:[%s6325_s3 + $0x3f0] sm:$0xff]   ;;  %v2017_v48 = vshrl.u32 %v5296_v33, 16 }
  0xb5   : > { %5001 = vmatpush3.bf16.msra.mxu1 %v5264_v39  ;;  %3745 = vmatprep.mubr.bf16.mxu1 %v4456_v10  ;;  %v403_v2 = vmul.f32 %v5568_v54, %v350_v56  ;;  %v405_v39 = vmul.f32 %v5579_v58, %v352_v62  ;;  %v5290_v10 = vld [vmem:[%s6325_s3 + $0x3f8] sm:$0xff]  }
  0xb6   : > { %4963 = vmatpush3.bf16.msra.mxu0 %v5267_v3  ;;  %5002 = vmatprep.subr.bf16.mxu1 %v5266_v6  ;;  %v5284_v3 = vld [vmem:[%s6325_s3 + $0x3a8] sm:$0xff]   ;;  %v457_v5 = vadd.f32 %v5560_v44, %v404_v63  ;;  %v5299_v63 = vld [vmem:[#allocation2 + $0x30] ss:$8 sps:$4 sm:$0xff]  }
  0xb7   : > { %4964 = vmatprep.subr.bf16.mxu0 %v5269_v4  ;;  %v406_v4 = vmul.f32 %v5564_v51, %v353_v60  ;;  %v456_v6 = vadd.f32 %v5577_v57, %v403_v2  ;;  %v458_v7 = vadd.f32 %v5581_v59, %v405_v39  ;;  %v5287_v51 = vld [vmem:[%s6325_s3 + $0x330] sm:$0xff]   ;;  %v2020_v60 = vshll.u32 %v5296_v33, 16  ;;  %v5310_v33 = vld [vmem:[#allocation2 + $0x80] ss:$8 sps:$4 sm:$0xff]  }
  0xb8   : > { %v489_v8 = vmax.f32 %v457_v5, 0.0  ;;  %v5301_v2 = vld [vmem:[#allocation2 + $0x34] ss:$8 sps:$4 sm:$0x11]   ;;  %v2003_v5 = vshrl.u32 %v5299_v63, 16 }
  0xb9   : > { %3681 = vmatmul.mubr.bf16.gmra.mrb[36].mxu0 %v4453_v18  ;;  %5003 = vmatpush3.bf16.msra.mxu1 %v5268_v13  ;;  %v459_v54 = vadd.f32 %v5566_v52, %v406_v4  ;;  %v488_v58 = vmax.f32 %v456_v6, 0.0  ;;  %v490_v44 = vmax.f32 %v458_v7, 0.0  ;;  %v5289_v52 = vld [vmem:[%s6325_s3 + $0x378] sm:$0xff]   ;;  %v871_v18 = vld [vmem:[#allocation2 + $0x108] sm:$0x1f]  ;;  %v2022_v39 = vrot.slane %v2020_v60, 5 }
  0xba   : > { %4965 = vmatpush3.bf16.msra.mxu0 %v5271_v12  ;;  %5004 = vmatprep.subr.bf16.mxu1 %v5270_v17  ;;  %v521_v57 = vpack.c.bf16 %v489_v8, %v489_v8  ;;  %v5292_v17 = vld [vmem:[%s6325_s3 + $0x3b8] sm:$0xff]   ;;  %v2012_v7 = vshll.u32 %v5301_v2, 16 }
  0xbb   : > { %4966 = vmatprep.subr.bf16.mxu0 %v5273_v14  ;;  %3688 = vmatprep.mubr.bf16.mxu0 %v4458_v27  ;;  %v491_v9 = vmax.f32 %v459_v54, 0.0  ;;  %v520_v59 = vpack.c.bf16 %v488_v58, %v488_v58  ;;  %v522_v12 = vpack.c.bf16 %v490_v44, %v490_v44  ;;  %v874_v27 = vld [vmem:[#allocation2 + $0x110] sm:$0x1f]  ;;  %v2006_v54 = vshll.u32 %v5299_v63, 16 }
  0xbc   : > { %3746 = vmatmul.mubr.bf16.gmra.mrb[36].mxu1 %v4455_v24  ;;  %v728_v14 = vshrl.u32 %v521_v57, 16  ;;  %v731_v13 = vshll.u32 %v521_v57, 16  ;;  %v5304_v6 = vld [vmem:[#allocation2 + $0x54] ss:$8 sps:$4 sm:$0x11]   ;;  %v2005_v58 = vrot.slane %v2003_v5, 4 }
  0xbd   : > { %5005 = vmatpush3.bf16.msra.mxu1 %v5272_v22  ;;  %3753 = vmatprep.mubr.bf16.mxu1 %v4460_v30  ;;  %v523_v11 = vpack.c.bf16 %v491_v9, %v491_v9  ;;  %v721_v15 = vshrl.u32 %v520_v59, 16  ;;  %v724_v0 = vshll.u32 %v520_v59, 16  ;;  %v735_v22 = vshrl.u32 %v522_v12, 16 }
  0xbe   : > { %4967 = vmatpush3.bf16.msra.mxu0 %v5275_v20  ;;  %5006 = vmatprep.subr.bf16.mxu1 %v5274_v25  ;;  %v738_v24 = vshll.u32 %v522_v12, 16  ;;  %v730_v25 = vrot.slane %v728_v14, 7  ;;  %v2031_v9 = vshrl.u32 %v5302_v23, 16  ;;  %v2040_v57 = vshll.u32 %v5304_v6, 16 }
  0xbf   : > { %4968 = vmatprep.subr.bf16.mxu0 %v5277_v21  ;;  %v742_v19 = vshrl.u32 %v523_v11, 16  ;;  %v745_v20 = vshll.u32 %v523_v11, 16  ;;  %v868_v21 = vld [vmem:[#allocation2 + $0x100] sm:$0x1f]  ;;  %v723_v26 = vrot.slane %v721_v15, 7  ;;  %v737_v31 = vrot.slane %v735_v22, 7 }
  0xc0   : > { %v2014_v12 = vrot.slane %v2012_v7, 5  ;;  %v2042_v22 = vrot.slane %v2040_v57, 5  ;;  %v5315_v7 = vld [vmem:[#allocation2 + $0x74] ss:$8 sps:$4 sm:$0x11]  }
  0xc1   : > { %3689 = vmatmul.mubr.bf16.gmra.mrb[40].mxu0 %v4457_v38  ;;  %5007 = vmatpush3.bf16.msra.mxu1 %v5276_v32  ;;  %v744_v28 = vrot.slane %v742_v19, 7  ;;  %v726_v30 = vor.u32 %v724_v0, %v723_v26  ;;  %v5293_v32 = vld [vmem:[#allocation2 + $0x20] ss:$8 sps:$4 sm:$0xff]   ;;  %v740_v36 = vor.u32 %v738_v24, %v737_v31  ;;  %v5298_v38 = vld [vmem:[#allocation2 + $0x44] ss:$8 sps:$4 sm:$0x11]  }
  0xc2   : > { %4969 = vmatpush3.bf16.msra.mxu0 %v5279_v29  ;;  %5008 = vmatprep.subr.bf16.mxu1 %v5278_v37  ;;  %v733_v29 = vor.u32 %v731_v13, %v730_v25  ;;  %v5295_v37 = vld [vmem:[#allocation2 + $0x24] ss:$8 sps:$4 sm:$0x11]   ;;  %v2026_v62 = vshll.u32 %v5298_v38, 16  ;;  %v1709_v25 = vld [vmem:[#allocation2 + $0xe8] sm:$0xf] }
  0xc3   : > { %4970 = vmatprep.subr.bf16.mxu0 %v5281_v34  ;;  %v747_v35 = vor.u32 %v745_v20, %v744_v28  ;;  %v869_v34 = vsel %vm5601_vm5, %v726_v30, %v868_v21  ;;  %v875_v49 = vsel %vm5601_vm5, %v740_v36, %v874_v27  ;;  %v5307_v26 = vld [vmem:[#allocation2 + $0x60] ss:$8 sps:$4 sm:$0xff]   ;;  %v5309_v27 = vld [vmem:[#allocation2 + $0x64] ss:$8 sps:$4 sm:$0x11]  }
  0xc4   : > { %3754 = vmatmul.mubr.bf16.gmra.mrb[40].mxu1 %v4459_v42  ;;  %v872_v40 = vsel %vm5601_vm5, %v733_v29, %v871_v18  ;;  %v1989_v42 = vshrl.u32 %v5293_v32, 16  ;;  %870 = vst [vmem:[#allocation2 + $0x100] sm:$0x1f] %v869_v34  ;;  %876 = vst [vmem:[#allocation2 + $0x110] sm:$0x1f] %v875_v49  ;;  %v2028_v8 = vrot.slane %v2026_v62, 5 }
  0xc5   : > { %5009 = vmatpush3.bf16.msra.mxu1 %v5280_v46  ;;  %873 = vst [vmem:[#allocation2 + $0x108] sm:$0x1f] %v872_v40  ;;  %v878_v46 = vsel %vm5601_vm5, %v747_v35, %v877_v41  ;;  %v1708_v41 = vld [vmem:[#allocation2 + $0xe0] sm:$0xf]  ;;  %v1711_v28 = vld [vmem:[#allocation2 + $0xf8] sm:$0xf] }
  0xc6   : > { %4971 = vmatpush3.bf16.msra.mxu0 %v5283_v45  ;;  %5010 = vmatprep.subr.bf16.mxu1 %v5282_v47  ;;  %v1992_v45 = vshll.u32 %v5293_v32, 16  ;;  %v1998_v47 = vshll.u32 %v5295_v37, 16  ;;  %879 = vst [vmem:[#allocation2 + $0x118] sm:$0x1f] %v878_v46  ;;  %v1991_v53 = vrot.slane %v1989_v42, 4  ;;  %v2045_v36 = vshrl.u32 %v5307_v26, 16 }
  0xc7   : > { %4972 = vmatprep.subr.bf16.mxu0 %v5285_v1  ;;  %v2019_v1 = vrot.slane %v2017_v48, 4  ;;  %v1710_v31 = vld [vmem:[#allocation2 + $0xf0] sm:$0xf]  ;;  %v5312_v35 = vld [vmem:[#allocation2 + $0x84] ss:$8 sps:$4 sm:$0x11]  }
  0xc8   : > { %v1994_v56 = vrot.slane %v1992_v45, 5  ;;  %v2048_v37 = vshll.u32 %v5307_v26, 16  ;;  %v2054_v38 = vshll.u32 %v5309_v27, 16  ;;  %v2073_v34 = vshrl.u32 %v5310_v33, 16 }
  0xc9   : > { %5011 = vmatpush3.bf16.msra.mxu1 %v5284_v3  ;;  %v6161_v3 = vld [vmem:[%s6326_s4] sm:$0xff]   ;;  %v2076_v42 = vshll.u32 %v5310_v33, 16  ;;  %v2082_v45 = vshll.u32 %v5312_v35, 16 }
  0xca   : > { %4973 = vmatpush3.bf16.msra.mxu0 %v5287_v51  ;;  %5012 = vmatprep.subr.bf16.mxu1 %v5286_v43  ;;  %v1995_v4 = vor.u32 %v1994_v56, %v1991_v53  ;;  %v2000_v43 = vrot.slane %v1998_v47, 5  ;;  %v2023_v51 = vor.u32 %v2022_v39, %v2019_v1  ;;  %v2047_v53 = vrot.slane %v2045_v36, 4 }
  0xcb   : > { %4974 = vmatprep.subr.bf16.mxu0 %v5289_v52  ;;  %v2034_v52 = vshll.u32 %v5302_v23, 16  ;;  %v1061_v11 = vld [vmem:[#allocation2 + $0x100] sm:$0x1]  ;;  %v1067_v0 = vld [vmem:[#allocation2 + $0x110] sm:$0x1]  ;;  %v2050_v56 = vrot.slane %v2048_v37, 5 }
  0xcc   : > { %v1996_v44 = vrot.slane %v1995_v4, 4  ;;  %v1064_v59 = vld [vmem:[#allocation2 + $0x108] sm:$0x1]  ;;  %v1062_v15 = vsel %vm5570_vm2, 0, %v1061_v11  ;;  %v1068_v18 = vsel %vm5570_vm2, 0, %v1067_v0  ;;  %v2024_v19 = vrot.slane %v2023_v51, 4 }
  0xcd   : > { %5013 = vmatpush3.bf16.msra.mxu1 %v5288_v50  ;;  %v2008_v50 = vrot.slane %v2006_v54, 5  ;;  %v1065_v14 = vsel %vm5570_vm2, 0, %v1064_v59  ;;  %v1070_v13 = vld [vmem:[#allocation2 + $0x118] sm:$0x1]  ;;  %1063 = vst [vmem:[#allocation2 + $0x100] sm:$0x1] %v1062_v15  ;;  %v2051_v5 = vor.u32 %v2050_v56, %v2047_v53 }
  0xce   : > { %5014 = vmatprep.subr.bf16.mxu1 %v5290_v10  ;;  %4975 = vmatpush3.bf16.msra.mxu0 %v5291_v16  ;;  %v2033_v10 = vrot.slane %v2031_v9, 4  ;;  %1066 = vst [vmem:[#allocation2 + $0x108] sm:$0x1] %v1065_v14  ;;  %v2036_v20 = vrot.slane %v2034_v52, 5  ;;  %1069 = vst [vmem:[#allocation2 + $0x110] sm:$0x1] %v1068_v18  ;;  %v6175_v29 = vsel %vm5906_vm8, %v1996_v44, %v2000_v43 }
  0xcf   : > { %5052 = vmatprep.subr.bf16.mxu0 %v6161_v3  ;;  %v2009_v16 = vor.u32 %v2008_v50, %v2005_v58  ;;  %v6179_v55 = vsel %vm5906_vm8, %v2024_v19, %v2028_v8  ;;  %v2056_v2 = vrot.slane %v2054_v38, 5  ;;  %v2075_v4 = vrot.slane %v2073_v34, 4  ;;  %v5313_v54 = vld [vmem:[#allocation2 + $0x70] ss:$8 sps:$4 sm:$0xff]   ;;  %v5306_v15 = vld [vmem:[%s6326_s4 + $0x8] sm:$0xff]  }
  0xd0   : > { %v2037_v24 = vor.u32 %v2036_v20, %v2033_v10  ;;  %v4498_v47 = vcombine.high %v6175_v29, %v6179_v55  ;;  %v2078_v43 = vrot.slane %v2076_v42, 5  ;;  %v2084_v6 = vrot.slane %v2082_v45, 5  ;;  %v5316_v58 = vld [vmem:[#allocation2 + $0x90] ss:$8 sps:$4 sm:$0xff]  }
  0xd1   : > { %5015 = vmatpush3.bf16.msra.mxu1 %v5292_v17  ;;  %v1071_v17 = vsel %vm5570_vm2, 0, %v1070_v13  ;;  %v2010_v21 = vrot.slane %v2009_v16, 4  ;;  %v2052_v51 = vrot.slane %v2051_v5, 4  ;;  %v5318_v9 = vld [vmem:[#allocation2 + $0x94] ss:$8 sps:$4 sm:$0x11]  }
  0xd2   : > { %5076 = vmatprep.subr.bf16.mxu1 %v6161_v3  ;;  %1072 = vst [vmem:[#allocation2 + $0x118] sm:$0x1] %v1071_v17  ;;  %v2038_v32 = vrot.slane %v2037_v24, 4  ;;  %v2079_v8 = vor.u32 %v2078_v43, %v2075_v4  ;;  %v2059_v44 = vshrl.u32 %v5313_v54, 16  ;;  %v2062_v50 = vshll.u32 %v5313_v54, 16  ;;  %v5319_v38 = vld [vmem:[%s6326_s4 + $0x10] sm:$0xff]  }
  0xd3   : > { %v6183_v30 = vsel %vm5906_vm8, %v2010_v21, %v2014_v12  ;;  %v2068_v52 = vshll.u32 %v5315_v7, 16  ;;  %v2087_v59 = vshrl.u32 %v5316_v58, 16  ;;  %v2090_v11 = vshll.u32 %v5316_v58, 16  ;;  %v5320_v4 = vld [vmem:[%s6326_s4 + $0x18] sm:$0xff]  }
  0xd4   : > { %v6187_v40 = vsel %vm5906_vm8, %v2038_v32, %v2042_v22  ;;  %v1712_v49 = vld [vmem:[#allocation2 + $0x100] sm:$0xf]  ;;  %v2080_v57 = vrot.slane %v2079_v8, 4  ;;  %v4497_v12 = vcombine.low %v6175_v29, %v6179_v55  ;;  %v2061_v10 = vrot.slane %v2059_v44, 4 }
  0xd5   : > { %v1713_v46 = vld [vmem:[#allocation2 + $0x108] sm:$0xf]  ;;  %v4500_v48 = vcombine.high %v6183_v30, %v6187_v40  ;;  %v4461_v63 = vcombine.low %v1708_v41, %v1712_v49  ;;  %v1714_v1 = vld [vmem:[#allocation2 + $0x110] sm:$0xf]  ;;  %v2064_v14 = vrot.slane %v2062_v50, 5  ;;  %v2096_v13 = vshll.u32 %v5318_v9, 16 }
  0xd6   : > { %v4462_v60 = vcombine.low %v1709_v25, %v1713_v46  ;;  %v4463_v23 = vcombine.low %v1710_v31, %v1714_v1  ;;  %v2057_v0 = vsel %vm5906_vm8, %v2052_v51, %v2056_v2  ;;  %v2085_v16 = vsel %vm5906_vm8, %v2080_v57, %v2084_v6  ;;  %v5321_v25 = vld [vmem:[#allocation2 + $0xa0] ss:$8 sps:$4 sm:$0xff]   ;;  %v5326_v29 = vld [vmem:[#allocation2 + $0xc4] ss:$8 sps:$4 sm:$0x11]  }
  0xd7   : > { %v2089_v17 = vrot.slane %v2087_v59, 4  ;;  %v2092_v18 = vrot.slane %v2090_v11, 5  ;;  %v4499_v19 = vcombine.low %v6183_v30, %v6187_v40  ;;  %v2065_v20 = vor.u32 %v2064_v14, %v2061_v10  ;;  %v5324_v41 = vld [vmem:[#allocation2 + $0xc0] ss:$8 sps:$4 sm:$0xff]  }
  0xd8   : > { %3696 = vmatprep.mubr.bf16.mxu0 %v4462_v60  ;;  %v2070_v21 = vrot.slane %v2068_v52, 5  ;;  %v2098_v22 = vrot.slane %v2096_v13, 5  ;;  %v4502_v26 = vcombine.high %v2057_v0, %v2085_v16  ;;  %v2101_v55 = vshrl.u32 %v5321_v25, 16  ;;  %v5329_v60 = vld [vmem:[#allocation2 + $0xb4] ss:$8 sps:$4 sm:$0x11]  }
  0xd9   : > { %v1715_v62 = vld [vmem:[#allocation2 + $0x118] sm:$0xf]  ;;  %3697 = vmatmul.mubr.bf16.gmra.mrb[44].mxu0 %v4461_v63  ;;  %v2093_v24 = vor.u32 %v2092_v18, %v2089_v17  ;;  %v2066_v27 = vrot.slane %v2065_v20, 4  ;;  %v2104_v32 = vshll.u32 %v5321_v25, 16  ;;  %v2129_v35 = vshrl.u32 %v5324_v41, 16  ;;  %v5333_v44 = vld [vmem:[%s6326_s4 + $0x20] sm:$0xff]  }
  0xda   : > { %v4464_v39 = vcombine.low %v1711_v28, %v1715_v62  ;;  %3802 = vmatprep.mubr.bf16.mxu0 %v4498_v47  ;;  %v5323_v28 = vld [vmem:[#allocation2 + $0xa4] ss:$8 sps:$4 sm:$0x11]   ;;  %v2132_v36 = vshll.u32 %v5324_v41, 16  ;;  %v2103_v40 = vrot.slane %v2101_v55, 4  ;;  %v2138_v42 = vshll.u32 %v5326_v29, 16 }
  0xdb   : > { %v2094_v31 = vrot.slane %v2093_v24, 4  ;;  %v2071_v30 = vsel %vm5906_vm8, %v2066_v27, %v2070_v21  ;;  %v2110_v33 = vshll.u32 %v5323_v28, 16  ;;  %v2106_v34 = vrot.slane %v2104_v32, 5  ;;  %v5327_v47 = vld [vmem:[#allocation2 + $0xb0] ss:$8 sps:$4 sm:$0xff]   ;;  %v5334_v27 = vld [vmem:[%s6326_s4 + $0x28] sm:$0xff]  }
  0xdc   : > { %3761 = vmatprep.mubr.bf16.mxu1 %v4464_v39  ;;  %v4501_v46 = vcombine.low %v2057_v0, %v2085_v16  ;;  %v2131_v49 = vrot.slane %v2129_v35, 4  ;;  %v2140_v56 = vrot.slane %v2138_v42, 5  ;;  %v5330_v63 = vld [vmem:[#allocation2 + $0xd0] ss:$8 sps:$4 sm:$0xff]   ;;  %v2115_v2 = vshrl.u32 %v5327_v47, 16 }
  0xdd   : > { %3762 = vmatmul.mubr.bf16.gmra.mrb[44].mxu1 %v4463_v23  ;;  %v2099_v37 = vsel %vm5906_vm8, %v2094_v31, %v2098_v22  ;;  %v2112_v53 = vrot.slane %v2110_v33, 5  ;;  %v5332_v1 = vld [vmem:[#allocation2 + $0xd4] ss:$8 sps:$4 sm:$0x11]   ;;  %v2118_v5 = vshll.u32 %v5327_v47, 16  ;;  %v2124_v43 = vshll.u32 %v5329_v60, 16 }
  0xde   : > { %3867 = vmatprep.mubr.bf16.mxu1 %v4500_v48  ;;  %v4504_v45 = vcombine.high %v2071_v30, %v2099_v37  ;;  %v2107_v48 = vor.u32 %v2106_v34, %v2103_v40  ;;  %v4503_v62 = vcombine.low %v2071_v30, %v2099_v37  ;;  %v2117_v6 = vrot.slane %v2115_v2, 4  ;;  %v5335_v13 = vld [vmem:[#allocation2 + $0xe0] ss:$8 sps:$4 sm:$0xff]   ;;  %v5337_v17 = vld [vmem:[#allocation2 + $0xe4] ss:$8 sps:$4 sm:$0x11]  }
  0xdf   : > { %v2143_v54 = vshrl.u32 %v5330_v63, 16  ;;  %v2146_v7 = vshll.u32 %v5330_v63, 16  ;;  %v2152_v51 = vshll.u32 %v5332_v1, 16  ;;  %v2120_v9 = vrot.slane %v2118_v5, 5  ;;  %v5341_v33 = vld [vmem:[#allocation2 + $0xf0] ss:$8 sps:$4 sm:$0xff]  }
  0xe0   : > { %v2108_v39 = vrot.slane %v2107_v48, 4  ;;  %v2126_v50 = vrot.slane %v2124_v43, 5  ;;  %v2157_v20 = vshrl.u32 %v5335_v13, 16  ;;  %v2160_v21 = vshll.u32 %v5335_v13, 16  ;;  %v5347_v35 = vld [vmem:[%s6326_s4 + $0x30] sm:$0xff]  }
  0xe1   : > { %3803 = vmatmul.mubr.bf16.vlgmr.msra.gmra.mrb[48].mxu0 %v4497_v12  ;;  %v2145_v52 = vrot.slane %v2143_v54, 4  ;;  %v2148_v57 = vrot.slane %v2146_v7, 5  ;;  %v2154_v59 = vrot.slane %v2152_v51, 5  ;;  %v2121_v12 = vor.u32 %v2120_v9, %v2117_v6  ;;  %v5343_v34 = vld [vmem:[#allocation2 + $0xf4] ss:$8 sps:$4 sm:$0x11]  }
  0xe2   : > { %5053 = vmatpush3.bf16.msra.mxu0 %v6161_v3  ;;  %3810 = vmatprep.mubr.bf16.mxu0 %v4502_v26  ;;  %v2113_v8 = vsel %vm5906_vm8, %v2108_v39, %v2112_v53  ;;  %v2166_v24 = vshll.u32 %v5337_v17, 16  ;;  %v2159_v28 = vrot.slane %v2157_v20, 4  ;;  %v2162_v31 = vrot.slane %v2160_v21, 5  ;;  %v5344_v42 = vld [vmem:[#allocation2 + $0x110] ss:$8 sps:$4 sm:$0xff]  }
  0xe3   : > { %5054 = vmatprep.subr.bf16.mxu0 %v5306_v15  ;;  %v2149_v14 = vor.u32 %v2148_v57, %v2145_v52  ;;  %v2122_v0 = vrot.slane %v2121_v12, 4  ;;  %v2174_v48 = vshll.u32 %v5341_v33, 16  ;;  %v2180_v53 = vshll.u32 %v5343_v34, 16  ;;  %v5348_v39 = vld [vmem:[%s6326_s4 + $0x38] sm:$0xff]   ;;  %v3920_v9 = vld [vmem:[#allocation2 + $0xa0] sm:$0x1f] }
  0xe4   : > { %v2168_v37 = vrot.slane %v2166_v24, 5  ;;  %v2202_v60 = vshll.u32 %v5344_v42, 16 }
  0xe5   : > { %3868 = vmatmul.mubr.bf16.vlgmr.msra.gmra.mrb[48].mxu1 %v4499_v19  ;;  %v2150_v18 = vrot.slane %v2149_v14, 4  ;;  %v5340_v19 = vld [vmem:[#allocation2 + $0x104] ss:$8 sps:$4 sm:$0x11]   ;;  %v2127_v22 = vsel %vm5906_vm8, %v2122_v0, %v2126_v50  ;;  %v2176_v2 = vrot.slane %v2174_v48, 5 }
  0xe6   : > { %5084 = vmatpush3.bf16.msra.mxu1 %v6161_v3  ;;  %v2134_v3 = vrot.slane %v2132_v36, 5  ;;  %5055 = vmatpush3.bf16.msra.mxu0 %v5306_v15  ;;  %v2194_v29 = vshll.u32 %v5340_v19, 16  ;;  %v2163_v36 = vor.u32 %v2162_v31, %v2159_v28  ;;  %v2204_v43 = vrot.slane %v2202_v60, 5  ;;  %v3921_v31 = vld [vmem:[#allocation2 + $0xc0] sm:$0x1f] }
  0xe7   : > { %5077 = vmatprep.subr.bf16.mxu1 %v5306_v15  ;;  %3875 = vmatprep.mubr.bf16.mxu1 %v4504_v45  ;;  %v2155_v26 = vsel %vm5906_vm8, %v2150_v18, %v2154_v59  ;;  %v5346_v45 = vld [vmem:[#allocation2 + $0x114] ss:$8 sps:$4 sm:$0x11]   ;;  %v4651_v34 = vcombine.low %v3921_v31, %v3921_v31 }
  0xe8   : > { %5056 = vmatprep.subr.bf16.mxu0 %v5319_v38  ;;  %v2135_v23 = vor.u32 %v2134_v3, %v2131_v49  ;;  %v4508_v55 = vcombine.high %v2127_v22, %v2155_v26  ;;  %v4507_v32 = vcombine.low %v2127_v22, %v2155_v26  ;;  %v2196_v40 = vrot.slane %v2194_v29, 5 }
  0xe9   : > { %3811 = vmatmul.mubr.bf16.gmra.mrb[52].mxu0 %v4501_v46  ;;  %v2171_v46 = vshrl.u32 %v5341_v33, 16  ;;  %v2164_v49 = vrot.slane %v2163_v36, 4  ;;  %v4035_v60 = vshrl.u32 %v4651_v34, 16 }
  0xea   : > { %5085 = vmatpush3.bf16.msra.mxu1 %v5306_v15  ;;  %v2136_v58 = vrot.slane %v2135_v23, 4  ;;  %5057 = vmatpush3.bf16.msra.mxu0 %v5319_v38  ;;  %v5338_v15 = vld [vmem:[#allocation2 + $0x100] ss:$8 sps:$4 sm:$0xff]  }
  0xeb   : > { %5078 = vmatprep.subr.bf16.mxu1 %v5319_v38  ;;  %5058 = vmatprep.subr.bf16.mxu0 %v5320_v4  ;;  %v2185_v25 = vshrl.u32 %v5338_v15, 16  ;;  %v2188_v41 = vshll.u32 %v5338_v15, 16  ;;  %v2173_v3 = vrot.slane %v2171_v46, 4  ;;  %v2169_v63 = vsel %vm5906_vm8, %v2164_v49, %v2168_v37 }
  0xec   : > { %v2141_v11 = vsel %vm5906_vm8, %v2136_v58, %v2140_v56  ;;  %v2199_v56 = vshrl.u32 %v5344_v42, 16  ;;  %v3917_v58 = vld [vmem:[#allocation2 + $0x40] sm:$0x1f]  ;;  %v4652_v42 = vcombine.high %v3921_v31, %v3921_v31 }
  0xed   : > { %3876 = vmatmul.mubr.bf16.gmra.mrb[52].mxu1 %v4503_v62  ;;  %v4506_v10 = vcombine.high %v2113_v8, %v2141_v11  ;;  %v4505_v16 = vcombine.low %v2113_v8, %v2141_v11  ;;  %v2187_v30 = vrot.slane %v2185_v25, 4  ;;  %v2208_v62 = vshll.u32 %v5346_v45, 16  ;;  %v3916_v8 = vld [vmem:[#allocation2 + $0x20] sm:$0x1f] }
  0xee   : > { %5086 = vmatpush3.bf16.msra.mxu1 %v5319_v38  ;;  %5059 = vmatpush3.bf16.msra.mxu0 %v5320_v4  ;;  %v2190_v38 = vrot.slane %v2188_v41, 5  ;;  %v2201_v5 = vrot.slane %v2199_v56, 4  ;;  %v2177_v51 = vor.u32 %v2176_v2, %v2173_v3  ;;  %v4641_v57 = vcombine.low %v3916_v8, %v3916_v8 }
  0xef   : > { %5079 = vmatprep.subr.bf16.mxu1 %v5320_v4  ;;  %3818 = vmatprep.mubr.bf16.mxu0 %v4506_v10  ;;  %v2210_v6 = vrot.slane %v2208_v62, 5  ;;  %v4642_v11 = vcombine.high %v3916_v8, %v3916_v8  ;;  %v4643_v12 = vcombine.low %v3917_v58, %v3917_v58  ;;  %v4644_v10 = vcombine.high %v3917_v58, %v3917_v58 }
  0xf0   : > { %5060 = vmatprep.subr.bf16.mxu0 %v5333_v44  ;;  %3883 = vmatprep.mubr.bf16.mxu1 %v4508_v55  ;;  %v2191_v47 = vor.u32 %v2190_v38, %v2187_v30  ;;  %v2205_v50 = vor.u32 %v2204_v43, %v2201_v5  ;;  %v2178_v59 = vrot.slane %v2177_v51, 4  ;;  %v3965_v15 = vshrl.u32 %v4641_v57, 16 }
  0xf1   : > { %3819 = vmatmul.mubr.bf16.gmra.mrb[56].mxu0 %v4505_v16  ;;  %v3968_v0 = vshll.u32 %v4641_v57, 16  ;;  %v4649_v16 = vcombine.low %v3920_v9, %v3920_v9  ;;  %v3974_v20 = vshll.u32 %v4642_v11, 16  ;;  %v3979_v21 = vshrl.u32 %v4643_v12, 16 }
  0xf2   : > { %5087 = vmatpush3.bf16.msra.mxu1 %v5320_v4  ;;  %5061 = vmatpush3.bf16.msra.mxu0 %v5333_v44  ;;  %v2192_v1 = vrot.slane %v2191_v47, 4  ;;  %v2182_v4 = vrot.slane %v2180_v53, 5  ;;  %v2206_v13 = vrot.slane %v2205_v50, 4  ;;  %v3982_v22 = vshll.u32 %v4643_v12, 16 }
  0xf3   : > { %5080 = vmatprep.subr.bf16.mxu1 %v5333_v44  ;;  %5062 = vmatprep.subr.bf16.mxu0 %v5334_v27  ;;  %v3967_v26 = vrot.slane %v3965_v15, 4  ;;  %v3988_v28 = vshll.u32 %v4644_v10, 16  ;;  %v3976_v30 = vrot.slane %v3974_v20, 5  ;;  %v3981_v33 = vrot.slane %v3979_v21, 4  ;;  %v3923_v20 = vld [vmem:[#allocation2 + $0x100] sm:$0x1f] }
  0xf4   : > { %v2197_v7 = vsel %vm5906_vm8, %v2192_v1, %v2196_v40  ;;  %v2183_v19 = vsel %vm5906_vm8, %v2178_v59, %v2182_v4  ;;  %v2211_v41 = vsel %vm5906_vm8, %v2206_v13, %v2210_v6  ;;  %v3984_v37 = vrot.slane %v3982_v22, 5  ;;  %v3922_v13 = vld [vmem:[#allocation2 + $0xe0] sm:$0x1f] }
  0xf5   : > { %3884 = vmatmul.mubr.bf16.gmra.mrb[56].mxu1 %v4507_v32  ;;  %v4509_v52 = vcombine.low %v2169_v63, %v2197_v7  ;;  %v4512_v55 = vcombine.high %v2183_v19, %v2211_v41  ;;  %v4511_v32 = vcombine.low %v2183_v19, %v2211_v41  ;;  %v3990_v38 = vrot.slane %v3988_v28, 5 }
  0xf6   : > { %5088 = vmatpush3.bf16.msra.mxu1 %v5333_v44  ;;  %5063 = vmatpush3.bf16.msra.mxu0 %v5334_v27  ;;  %v4510_v44 = vcombine.high %v2169_v63, %v2197_v7  ;;  %v4650_v40 = vcombine.high %v3920_v9, %v3920_v9  ;;  %v4021_v45 = vshrl.u32 %v4649_v16, 16  ;;  %v4024_v46 = vshll.u32 %v4649_v16, 16  ;;  %v3919_v63 = vld [vmem:[#allocation2 + $0x80] sm:$0x1f] }
  0xf7   : > { %5081 = vmatprep.subr.bf16.mxu1 %v5334_v27  ;;  %5064 = vmatprep.subr.bf16.mxu0 %v5347_v35  ;;  %v3985_v47 = vor.u32 %v3984_v37, %v3981_v33  ;;  %v4038_v62 = vshll.u32 %v4651_v34, 16  ;;  %v4037_v43 = vrot.slane %v4035_v60, 4  ;;  %v4647_v58 = vcombine.low %v3919_v63, %v3919_v63 }
  0xf8   : > { %3826 = vmatprep.mubr.bf16.mxu0 %v4510_v44  ;;  %3891 = vmatprep.mubr.bf16.mxu1 %v4512_v55  ;;  %v4030_v48 = vshll.u32 %v4650_v40, 16  ;;  %v4023_v3 = vrot.slane %v4021_v45, 4  ;;  %v4026_v56 = vrot.slane %v4024_v46, 5  ;;  %v4648_v9 = vcombine.high %v3919_v63, %v3919_v63 }
  0xf9   : > { %3827 = vmatmul.mubr.bf16.gmra.mrb[60].mxu0 %v4509_v52  ;;  %v3986_v2 = vrot.slane %v3985_v47, 4  ;;  %v4040_v6 = vrot.slane %v4038_v62, 5  ;;  %v4007_v12 = vshrl.u32 %v4647_v58, 16  ;;  %v4010_v10 = vshll.u32 %v4647_v58, 16 }
  0xfa   : > { %5089 = vmatpush3.bf16.msra.mxu1 %v5334_v27  ;;  %5065 = vmatpush3.bf16.msra.mxu0 %v5347_v35  ;;  %v3970_v27 = vrot.slane %v3968_v0, 5  ;;  %v4032_v4 = vrot.slane %v4030_v48, 5  ;;  %v4027_v5 = vor.u32 %v4026_v56, %v4023_v3  ;;  %v4016_v19 = vshll.u32 %v4648_v9, 16 }
  0xfb   : > { %5082 = vmatprep.subr.bf16.mxu1 %v5347_v35  ;;  %5066 = vmatprep.subr.bf16.mxu0 %v5348_v39  ;;  %v3991_v51 = vsel %vm5906_vm8, %v3986_v2, %v3990_v38  ;;  %v4041_v52 = vor.u32 %v4040_v6, %v4037_v43  ;;  %v4655_v38 = vcombine.low %v3923_v20, %v3923_v20 }
  0xfc   : > { %v3971_v36 = vor.u32 %v3970_v27, %v3967_v26  ;;  %v4028_v50 = vrot.slane %v4027_v5, 4  ;;  %v4009_v26 = vrot.slane %v4007_v12, 4  ;;  %v4012_v27 = vrot.slane %v4010_v10, 5 }
  0xfd   : > { %3892 = vmatmul.mubr.bf16.gmra.mrb[60].mxu1 %v4511_v32  ;;  %v4042_v0 = vrot.slane %v4041_v52, 4  ;;  %v4018_v55 = vrot.slane %v4016_v19, 5  ;;  %v4653_v32 = vcombine.low %v3922_v13, %v3922_v13  ;;  %v4656_v34 = vcombine.high %v3923_v20, %v3923_v20 }
  0xfe   : > { %5090 = vmatpush3.bf16.msra.mxu1 %v5347_v35  ;;  %5067 = vmatpush3.bf16.msra.mxu0 %v5348_v39  ;;  %v3918_v35 = vld [vmem:[#allocation2 + $0x60] sm:$0x1f]  ;;  %v3972_v49 = vrot.slane %v3971_v36, 4  ;;  %v4033_v15 = vsel %vm5906_vm8, %v4028_v50, %v4032_v4  ;;  %v4013_v37 = vor.u32 %v4012_v27, %v4009_v26  ;;  %v4063_v48 = vshrl.u32 %v4655_v38, 16 }
  0xff   : > { %5083 = vmatprep.subr.bf16.mxu1 %v5348_v39  ;;  %v4645_v53 = vcombine.low %v3918_v35, %v3918_v35  ;;  %v4646_v7 = vcombine.high %v3918_v35, %v3918_v35  ;;  %v4052_v45 = vshll.u32 %v4653_v32, 16  ;;  %v4072_v62 = vshll.u32 %v4656_v34, 16 }
 0x100   : > { %v3977_v1 = vsel %vm5906_vm8, %v3972_v49, %v3976_v30  ;;  %v4654_v30 = vcombine.high %v3922_v13, %v3922_v13  ;;  %v4014_v47 = vrot.slane %v4013_v37, 4  ;;  %v4065_v2 = vrot.slane %v4063_v48, 4 }
 0x101   : > { %v4657_v44 = vcombine.low %v3977_v1, %v3991_v51  ;;  %v3993_v57 = vshrl.u32 %v4645_v53, 16  ;;  %v3996_v59 = vshll.u32 %v4645_v53, 16  ;;  %v4002_v11 = vshll.u32 %v4646_v7, 16 }
 0x102   : > { %5091 = vmatpush3.bf16.msra.mxu1 %v5348_v39  ;;  %v4044_v39 = vshll.u32 %v4652_v42, 16  ;;  %v4049_v42 = vshrl.u32 %v4653_v32, 16  ;;  %v4058_v46 = vshll.u32 %v4654_v30, 16  ;;  %v4066_v53 = vshll.u32 %v4655_v38, 16 }
 0x103   : > { %5068 = vmatprep.mubr.bf16.mxu0 %v4657_v44  ;;  %v3995_v16 = vrot.slane %v3993_v57, 4  ;;  %v3998_v22 = vrot.slane %v3996_v59, 5  ;;  %v4004_v41 = vrot.slane %v4002_v11, 5  ;;  %v4054_v56 = vrot.slane %v4052_v45, 5 }
 0x104   : > { %v4046_v8 = vrot.slane %v4044_v39, 5  ;;  %v4051_v3 = vrot.slane %v4049_v42, 4  ;;  %v4060_v60 = vrot.slane %v4058_v46, 5  ;;  %v4019_v1 = vsel %vm5906_vm8, %v4014_v47, %v4018_v55 }
 0x105   : > { %v3999_v36 = vor.u32 %v3998_v22, %v3995_v16  ;;  %v4068_v4 = vrot.slane %v4066_v53, 5  ;;  %v4074_v6 = vrot.slane %v4072_v62, 5 }
 0x106   : > { %v4047_v31 = vsel %vm5906_vm8, %v4042_v0, %v4046_v8  ;;  %v4055_v43 = vor.u32 %v4054_v56, %v4051_v3 }
 0x107   : > { %v4659_v35 = vcombine.low %v4033_v15, %v4047_v31  ;;  %v4000_v49 = vrot.slane %v3999_v36, 4  ;;  %v4069_v8 = vor.u32 %v4068_v4, %v4065_v2 }
 0x108   : > { %v4056_v52 = vrot.slane %v4055_v43, 4 }
 0x109   : > { %5072 = vmatprep.mubr.bf16.mxu1 %v4659_v35  ;;  %v4005_v63 = vsel %vm5906_vm8, %v4000_v49, %v4004_v41  ;;  %v4070_v10 = vrot.slane %v4069_v8, 4 }
 0x10a   : > { %v4658_v5 = vcombine.low %v4005_v63, %v4019_v1 }
 0x10c   : > { %5069 = vmatmul.mubr.bf16.vlgmr.msra.gmra.mrb[64].mxu0 %v4658_v5 }
 0x10e   : > { %v6238_v23 = vpop.f32.mrb[0].mxu0 }
 0x10f   : > { %v6244_v14 = vpop.f32.mrb[1].mxu0 }
 0x110   : > { %v6240_v54 = vpop.f32.mrb[0].mxu1  ;;  %v6248_v18 = vpop.f32.mrb[2].mxu0  ;;  %v4738_v7 = vadd.f32 %v6244_v14, %v6238_v23 }
 0x111   : > { %v6246_v17 = vpop.f32.mrb[1].mxu1  ;;  %v6254_v25 = vpop.f32.mrb[3].mxu0 }
 0x112   : > { %v6252_v24 = vpop.f32.mrb[2].mxu1  ;;  %v4778_v58 = vadd.f32 %v6246_v17, %v6240_v54  ;;  %v4741_v9 = vadd.f32 %v6254_v25, %v6248_v18  ;;  %v4061_v54 = vsel %vm5906_vm8, %v4056_v52, %v4060_v60  ;;  %v4075_v18 = vsel %vm5906_vm8, %v4070_v10, %v4074_v6 }
 0x113   : > { %v6258_v29 = vpop.f32.mrb[3].mxu1 }
 0x114   : > { %v4781_v44 = vadd.f32 %v6258_v29, %v6252_v24  ;;  %v3480_v23 = vadd.f32 %v4778_v58, %v4738_v7  ;;  %v4660_v24 = vcombine.low %v4061_v54, %v4075_v18 }
 0x116   : > { %v3483_v14 = vadd.f32 %v4781_v44, %v4741_v9  ;;  %5073 = vmatmul.mubr.bf16.vlgmr.msra.gmra.mrb[64].mxu1 %v4660_v24 }
 0x120   : > { %v4742_v21 = vpop.f32.mrb[4].mxu0 }
 0x121   : > { %v4743_v28 = vpop.f32.mrb[5].mxu0 }
 0x122   : > { %v4745_v33 = vpop.f32.mrb[6].mxu0  ;;  %v4744_v57 = vadd.f32 %v4743_v28, %v4742_v21 }
 0x123   : > { %v4746_v40 = vpop.f32.mrb[7].mxu0 }
 0x124   : > { %v4747_v11 = vadd.f32 %v4746_v40, %v4745_v33 }
 0x126   : > { %v4782_v39 = vpop.f32.mrb[4].mxu1 }
 0x127   : > { %v4783_v51 = vpop.f32.mrb[5].mxu1 }
 0x128   : > { %v4785_v50 = vpop.f32.mrb[6].mxu1  ;;  %v4784_v59 = vadd.f32 %v4783_v51, %v4782_v39 }
 0x129   : > { %v4786_v12 = vpop.f32.mrb[7].mxu1 }
 0x12a   : > { %v4787_v13 = vadd.f32 %v4786_v12, %v4785_v50  ;;  %v3488_v17 = vadd.f32 %v4784_v59, %v4744_v57 }
 0x12c   : > { %v3491_v25 = vadd.f32 %v4787_v13, %v4747_v11 }
 0x139   : > { %v4748_v29 = vpop.f32.mrb[8].mxu0 }
 0x13a   : > { %v4749_v15 = vpop.f32.mrb[9].mxu0 }
 0x13b   : > { %v4750_v0 = vadd.f32 %v4749_v15, %v4748_v29  ;;  %v4751_v16 = vpop.f32.mrb[10].mxu0 }
 0x13c   : > { %v4752_v19 = vpop.f32.mrb[11].mxu0 }
 0x13d   : > { %v4753_v20 = vadd.f32 %v4752_v19, %v4751_v16 }
 0x143   : > { %v4788_v21 = vpop.f32.mrb[8].mxu1 }
 0x144   : > { %v4789_v22 = vpop.f32.mrb[9].mxu1 }
 0x145   : > { %v4790_v41 = vadd.f32 %v4789_v22, %v4788_v21  ;;  %v4791_v26 = vpop.f32.mrb[10].mxu1 }
 0x146   : > { %v4792_v27 = vpop.f32.mrb[11].mxu1 }
 0x147   : > { %v3496_v28 = vadd.f32 %v4790_v41, %v4750_v0  ;;  %v4793_v31 = vadd.f32 %v4792_v27, %v4791_v26 }
 0x149   : > { %v3499_v55 = vadd.f32 %v4793_v31, %v4753_v20 }
 0x154   : > { %v4754_v32 = vpop.f32.mrb[12].mxu0 }
 0x155   : > { %v4755_v61 = vpop.f32.mrb[13].mxu0 }
 0x156   : > { %v4756_v30 = vadd.f32 %v4755_v61, %v4754_v32  ;;  %v4757_v33 = vpop.f32.mrb[14].mxu0 }
 0x157   : > { %v4758_v35 = vpop.f32.mrb[15].mxu0 }
 0x158   : > { %v4759_v36 = vadd.f32 %v4758_v35, %v4757_v33  ;;  %v4794_v37 = vpop.f32.mrb[12].mxu1 }
 0x159   : > { %v4795_v38 = vpop.f32.mrb[13].mxu1 }
 0x15a   : > { %v4796_v40 = vadd.f32 %v4795_v38, %v4794_v37  ;;  %v4797_v34 = vpop.f32.mrb[14].mxu1 }
 0x15b   : > { %v4798_v42 = vpop.f32.mrb[15].mxu1 }
 0x15c   : > { %v4816_v45 = vpop.f32.mrb[16].mxu0  ;;  %v3504_v46 = vadd.f32 %v4796_v40, %v4756_v30  ;;  %v4799_v49 = vadd.f32 %v4798_v42, %v4797_v34 }
 0x15d   : > { %v4817_v47 = vpop.f32.mrb[17].mxu0 }
 0x15e   : > { %v4818_v48 = vadd.f32 %v4817_v47, %v4816_v45  ;;  %v4819_v53 = vpop.f32.mrb[18].mxu0  ;;  %v3507_v3 = vadd.f32 %v4799_v49, %v4759_v36 }
 0x15f   : > { %v4820_v56 = vpop.f32.mrb[19].mxu0 }
 0x160   : > { %v3545_v60 = vadd.f32 %v4818_v48, %v3480_v23  ;;  %v4821_v62 = vadd.f32 %v4820_v56, %v4819_v53  ;;  %v4856_v63 = vpop.f32.mrb[16].mxu1 }
 0x161   : > { %v4857_v1 = vpop.f32.mrb[17].mxu1 }
 0x162   : > { %v3548_v2 = vadd.f32 %v4821_v62, %v3483_v14  ;;  %v4858_v4 = vadd.f32 %v4857_v1, %v4856_v63  ;;  %v4859_v39 = vpop.f32.mrb[18].mxu1 }
 0x163   : > { %v4860_v5 = vpop.f32.mrb[19].mxu1 }
 0x164   : > { %v4822_v43 = vpop.f32.mrb[20].mxu0  ;;  %v3610_v6 = vadd.f32 %v4858_v4, %v3545_v60  ;;  %v4861_v7 = vadd.f32 %v4860_v5, %v4859_v39 }
 0x165   : > { %v4823_v51 = vpop.f32.mrb[21].mxu0 }
 0x166   : > { %v4824_v8 = vadd.f32 %v4823_v51, %v4822_v43  ;;  %v4825_v58 = vpop.f32.mrb[22].mxu0  ;;  %v3613_v9 = vadd.f32 %v4861_v7, %v3548_v2 }
 0x167   : > { %v4826_v44 = vpop.f32.mrb[23].mxu0 }
 0x168   : > { %v3553_v50 = vadd.f32 %v4824_v8, %v3488_v17  ;;  %v4827_v52 = vadd.f32 %v4826_v44, %v4825_v58  ;;  %v4862_v57 = vpop.f32.mrb[20].mxu1 }
 0x169   : > { %v4863_v59 = vpop.f32.mrb[21].mxu1 }
 0x16a   : > { %v3556_v11 = vadd.f32 %v4827_v52, %v3491_v25  ;;  %v4864_v12 = vadd.f32 %v4863_v59, %v4862_v57  ;;  %v4865_v10 = vpop.f32.mrb[22].mxu1 }
 0x16b   : > { %v4866_v23 = vpop.f32.mrb[23].mxu1 }
 0x16c   : > { %v3618_v14 = vadd.f32 %v4864_v12, %v3553_v50  ;;  %v4867_v13 = vadd.f32 %v4866_v23, %v4865_v10  ;;  %v4828_v18 = vpop.f32.mrb[24].mxu0 }
 0x16d   : > { %v4829_v24 = vpop.f32.mrb[25].mxu0 }
 0x16e   : > { %v3621_v54 = vadd.f32 %v4867_v13, %v3556_v11  ;;  %v4830_v29 = vadd.f32 %v4829_v24, %v4828_v18  ;;  %v4831_v15 = vpop.f32.mrb[26].mxu0 }
 0x16f   : > { %v4832_v0 = vpop.f32.mrb[27].mxu0 }
 0x170   : > { %v3561_v16 = vadd.f32 %v4830_v29, %v3496_v28  ;;  %v4833_v19 = vadd.f32 %v4832_v0, %v4831_v15 }
 0x172   : > { %v3564_v21 = vadd.f32 %v4833_v19, %v3499_v55 }
 0x173   : > { %v4868_v20 = vpop.f32.mrb[24].mxu1 }
 0x174   : > { %v4869_v17 = vpop.f32.mrb[25].mxu1 }
 0x175   : > { %v4870_v22 = vadd.f32 %v4869_v17, %v4868_v20  ;;  %v4871_v41 = vpop.f32.mrb[26].mxu1 }
 0x176   : > { %v4872_v26 = vpop.f32.mrb[27].mxu1 }
 0x177   : > { %v3626_v25 = vadd.f32 %v4870_v22, %v3561_v16  ;;  %v4873_v27 = vadd.f32 %v4872_v26, %v4871_v41 }
 0x179   : > { %v3629_v31 = vadd.f32 %v4873_v27, %v3564_v21 }
 0x17c   : > { %v4834_v32 = vpop.f32.mrb[28].mxu0 }
 0x17d   : > { %v4835_v61 = vpop.f32.mrb[29].mxu0 }
 0x17e   : > { %v4836_v30 = vadd.f32 %v4835_v61, %v4834_v32  ;;  %v4837_v33 = vpop.f32.mrb[30].mxu0 }
 0x17f   : > { %v4838_v35 = vpop.f32.mrb[31].mxu0  ;;  %v4874_v38 = vpop.f32.mrb[28].mxu1 }
 0x180   : > { %v3569_v36 = vadd.f32 %v4836_v30, %v3504_v46  ;;  %v4839_v37 = vadd.f32 %v4838_v35, %v4837_v33  ;;  %v4875_v28 = vpop.f32.mrb[29].mxu1 }
 0x181   : > { %v4876_v34 = vadd.f32 %v4875_v28, %v4874_v38  ;;  %v4877_v42 = vpop.f32.mrb[30].mxu1 }
 0x182   : > { %v3572_v40 = vadd.f32 %v4839_v37, %v3507_v3  ;;  %v4878_v45 = vpop.f32.mrb[31].mxu1 }
 0x183   : > { %v3634_v47 = vadd.f32 %v4876_v34, %v3569_v36  ;;  %v4879_v48 = vadd.f32 %v4878_v45, %v4877_v42 }
 0x184   : > { %v4896_v55 = vpop.f32.mrb[32].mxu0 }
 0x185   : > { %v4897_v49 = vpop.f32.mrb[33].mxu0  ;;  %v3637_v62 = vadd.f32 %v4879_v48, %v3572_v40 }
 0x186   : > { %v4898_v53 = vadd.f32 %v4897_v49, %v4896_v55  ;;  %v4899_v56 = vpop.f32.mrb[34].mxu0 }
 0x187   : > { %v4900_v60 = vpop.f32.mrb[35].mxu0  ;;  %v4936_v2 = vpop.f32.mrb[32].mxu1 }
 0x188   : > { %v3675_v63 = vadd.f32 %v4898_v53, %v3610_v6  ;;  %v4901_v1 = vadd.f32 %v4900_v60, %v4899_v56  ;;  %v4937_v46 = vpop.f32.mrb[33].mxu1 }
 0x189   : > { %v4938_v39 = vadd.f32 %v4937_v46, %v4936_v2  ;;  %v4939_v5 = vpop.f32.mrb[34].mxu1 }
 0x18a   : > { %v3678_v4 = vadd.f32 %v4901_v1, %v3613_v9  ;;  %v4940_v43 = vpop.f32.mrb[35].mxu1 }
 0x18b   : > { %v3740_v51 = vadd.f32 %v4938_v39, %v3675_v63  ;;  %v4941_v8 = vadd.f32 %v4940_v43, %v4939_v5 }
 0x18c   : > { %v4902_v3 = vpop.f32.mrb[36].mxu0 }
 0x18d   : > { %v4903_v7 = vpop.f32.mrb[37].mxu0  ;;  %v3743_v52 = vadd.f32 %v4941_v8, %v3678_v4 }
 0x18e   : > { %v4904_v58 = vadd.f32 %v4903_v7, %v4902_v3  ;;  %v4905_v44 = vpop.f32.mrb[38].mxu0 }
 0x18f   : > { %v4906_v50 = vpop.f32.mrb[39].mxu0  ;;  %v4942_v11 = vpop.f32.mrb[36].mxu1 }
 0x190   : > { %v3683_v57 = vadd.f32 %v4904_v58, %v3618_v14  ;;  %v4907_v59 = vadd.f32 %v4906_v50, %v4905_v44  ;;  %v4943_v6 = vpop.f32.mrb[37].mxu1 }
 0x191   : > { %v4944_v10 = vadd.f32 %v4943_v6, %v4942_v11  ;;  %v4945_v23 = vpop.f32.mrb[38].mxu1 }
 0x192   : > { %v3686_v12 = vadd.f32 %v4907_v59, %v3621_v54  ;;  %v4946_v13 = vpop.f32.mrb[39].mxu1 }
 0x193   : > { %v3748_v24 = vadd.f32 %v4944_v10, %v3683_v57  ;;  %v4947_v29 = vadd.f32 %v4946_v13, %v4945_v23 }
 0x194   : > { %v4908_v9 = vpop.f32.mrb[40].mxu0 }
 0x195   : > { %v4909_v18 = vpop.f32.mrb[41].mxu0  ;;  %v3751_v19 = vadd.f32 %v4947_v29, %v3686_v12 }
 0x196   : > { %v4910_v15 = vadd.f32 %v4909_v18, %v4908_v9  ;;  %v4911_v0 = vpop.f32.mrb[42].mxu0 }
 0x197   : > { %v4912_v16 = vpop.f32.mrb[43].mxu0  ;;  %v4948_v17 = vpop.f32.mrb[40].mxu1 }
 0x198   : > { %v3691_v20 = vadd.f32 %v4910_v15, %v3626_v25  ;;  %v4913_v21 = vadd.f32 %v4912_v16, %v4911_v0  ;;  %v4949_v14 = vpop.f32.mrb[41].mxu1 }
 0x199   : > { %v4950_v41 = vadd.f32 %v4949_v14, %v4948_v17  ;;  %v4951_v26 = vpop.f32.mrb[42].mxu1 }
 0x19a   : > { %v3694_v22 = vadd.f32 %v4913_v21, %v3629_v31  ;;  %v4952_v54 = vpop.f32.mrb[43].mxu1 }
 0x19b   : > { %v6284_v27 = vadd.f32 %v4950_v41, %v3691_v20  ;;  %v4953_v32 = vadd.f32 %v4952_v54, %v4951_v26 }
 0x19d   : > { %v6286_v61 = vadd.f32 %v4953_v32, %v3694_v22 }
 0x1ac   : > { %v4914_v30 = vpop.f32.mrb[44].mxu0 }
 0x1ad   : > { %v4915_v35 = vpop.f32.mrb[45].mxu0 }
 0x1ae   : > { %v4916_v36 = vadd.f32 %v4915_v35, %v4914_v30  ;;  %v4917_v38 = vpop.f32.mrb[46].mxu0 }
 0x1af   : > { %v4918_v28 = vpop.f32.mrb[47].mxu0 }
 0x1b0   : > { %v4954_v33 = vpop.f32.mrb[44].mxu1  ;;  %v3699_v34 = vadd.f32 %v4916_v36, %v3634_v47  ;;  %v4919_v31 = vadd.f32 %v4918_v28, %v4917_v38 }
 0x1b1   : > { %v4955_v37 = vpop.f32.mrb[45].mxu1 }
 0x1b2   : > { %v4956_v40 = vadd.f32 %v4955_v37, %v4954_v33  ;;  %v4957_v25 = vpop.f32.mrb[46].mxu1  ;;  %v3702_v49 = vadd.f32 %v4919_v31, %v3637_v62 }
 0x1b3   : > { %v4958_v42 = vpop.f32.mrb[47].mxu1 }
 0x1b4   : > { %v4959_v55 = vadd.f32 %v4958_v42, %v4957_v25  ;;  %v6288_v45 = vadd.f32 %v4956_v40, %v3699_v34  ;;  %v4976_v53 = vpop.f32.mrb[48].mxu0 }
 0x1b5   : > { %v4977_v60 = vpop.f32.mrb[49].mxu0 }
 0x1b6   : > { %v6290_v48 = vadd.f32 %v4959_v55, %v3702_v49  ;;  %v4978_v63 = vadd.f32 %v4977_v60, %v4976_v53  ;;  %v4979_v2 = vpop.f32.mrb[50].mxu0 }
 0x1b7   : > { %v4980_v39 = vpop.f32.mrb[51].mxu0 }
 0x1b8   : > { %v5016_v56 = vpop.f32.mrb[48].mxu1  ;;  %v3805_v47 = vadd.f32 %v4978_v63, %v3740_v51  ;;  %v4981_v5 = vadd.f32 %v4980_v39, %v4979_v2 }
 0x1b9   : > { %v5017_v1 = vpop.f32.mrb[49].mxu1 }
 0x1ba   : > { %v5018_v4 = vadd.f32 %v5017_v1, %v5016_v56  ;;  %v5019_v46 = vpop.f32.mrb[50].mxu1  ;;  %v3808_v8 = vadd.f32 %v4981_v5, %v3743_v52 }
 0x1bb   : > { %v5020_v3 = vpop.f32.mrb[51].mxu1 }
 0x1bc   : > { %v5021_v43 = vadd.f32 %v5020_v3, %v5019_v46  ;;  %v3870_v7 = vadd.f32 %v5018_v4, %v3805_v47  ;;  %v4982_v58 = vpop.f32.mrb[52].mxu0 }
 0x1bd   : > { %v4983_v50 = vpop.f32.mrb[53].mxu0 }
 0x1be   : > { %v3873_v62 = vadd.f32 %v5021_v43, %v3808_v8  ;;  %v4984_v59 = vadd.f32 %v4983_v50, %v4982_v58  ;;  %v4985_v11 = vpop.f32.mrb[54].mxu0 }
 0x1bf   : > { %v4986_v10 = vpop.f32.mrb[55].mxu0 }
 0x1c0   : > { %v5022_v44 = vpop.f32.mrb[52].mxu1  ;;  %v4677_v57 = vpack.c.bf16 %v3873_v62, %v3870_v7  ;;  %v3813_v52 = vadd.f32 %v4984_v59, %v3748_v24  ;;  %v4987_v23 = vadd.f32 %v4986_v10, %v4985_v11 }
 0x1c1   : > { %v5023_v51 = vpop.f32.mrb[53].mxu1 }
 0x1c2   : > { %v5024_v12 = vadd.f32 %v5023_v51, %v5022_v44  ;;  %v5025_v6 = vpop.f32.mrb[54].mxu1  ;;  %4678 = vst [vmem:[%s6298_s13] sm:$0xff] %v4677_v57   ;;  %v3816_v29 = vadd.f32 %v4987_v23, %v3751_v19 }
 0x1c3   : > { %v5026_v9 = vpop.f32.mrb[55].mxu1 }
 0x1c4   : > { %v5027_v13 = vadd.f32 %v5026_v9, %v5025_v6  ;;  %v3878_v18 = vadd.f32 %v5024_v12, %v3813_v52  ;;  %v4988_v0 = vpop.f32.mrb[56].mxu0 }
 0x1c5   : > { %v4989_v16 = vpop.f32.mrb[57].mxu0 }
 0x1c6   : > { %v3881_v15 = vadd.f32 %v5027_v13, %v3816_v29  ;;  %v4990_v21 = vadd.f32 %v4989_v16, %v4988_v0  ;;  %v4991_v17 = vpop.f32.mrb[58].mxu0 }
 0x1c7   : > { %v4992_v14 = vpop.f32.mrb[59].mxu0 }
 0x1c8   : > { %v4682_v20 = vpack.c.bf16 %v3881_v15, %v3878_v18  ;;  %v5028_v22 = vpop.f32.mrb[56].mxu1  ;;  %v3821_v41 = vadd.f32 %v4990_v21, %v6284_v27  ;;  %v4993_v54 = vadd.f32 %v4992_v14, %v4991_v17 }
 0x1c9   : > { %v5029_v26 = vpop.f32.mrb[57].mxu1 }
 0x1ca   : > { %4714 = vst [vmem:[%s6298_s13 + $0x8] sm:$0xff] %v4682_v20   ;;  %v5030_v24 = vadd.f32 %v5029_v26, %v5028_v22  ;;  %v5031_v32 = vpop.f32.mrb[58].mxu1  ;;  %v3824_v30 = vadd.f32 %v4993_v54, %v6286_v61 }
 0x1cb   : > { %v5032_v33 = vpop.f32.mrb[59].mxu1 }
 0x1cc   : > { %v3886_v19 = vadd.f32 %v5030_v24, %v3821_v41  ;;  %v5033_v35 = vadd.f32 %v5032_v33, %v5031_v32  ;;  %v4994_v38 = vpop.f32.mrb[60].mxu0 }
 0x1cd   : > { %v4995_v40 = vpop.f32.mrb[61].mxu0 }
 0x1ce   : > { %v3889_v36 = vadd.f32 %v5033_v35, %v3824_v30  ;;  %v4996_v25 = vadd.f32 %v4995_v40, %v4994_v38  ;;  %v4997_v28 = vpop.f32.mrb[62].mxu0 }
 0x1cf   : > { %v4998_v34 = vpop.f32.mrb[63].mxu0 }
 0x1d0   : > { %v4687_v37 = vpack.c.bf16 %v3889_v36, %v3886_v19  ;;  %v3829_v27 = vadd.f32 %v4996_v25, %v6288_v45  ;;  %v4999_v31 = vadd.f32 %v4998_v34, %v4997_v28  ;;  %v5034_v42 = vpop.f32.mrb[60].mxu1 }
 0x1d1   : > { %v5035_v55 = vpop.f32.mrb[61].mxu1 }
 0x1d2   : > { %4715 = vst [vmem:[%s6298_s13 + $0x10] sm:$0xff] %v4687_v37   ;;  %v3832_v61 = vadd.f32 %v4999_v31, %v6290_v48  ;;  %v5036_v49 = vadd.f32 %v5035_v55, %v5034_v42  ;;  %v5037_v53 = vpop.f32.mrb[62].mxu1 }
 0x1d3   : > { %v5038_v56 = vpop.f32.mrb[63].mxu1 }
 0x1d4   : > { %v3894_v60 = vadd.f32 %v5036_v49, %v3829_v27  ;;  %v5039_v63 = vadd.f32 %v5038_v56, %v5037_v53 }
 0x1d6   : > { %v3897_v1 = vadd.f32 %v5039_v63, %v3832_v61 }
 0x1d8   : > { %v4692_v2 = vpack.c.bf16 %v3897_v1, %v3894_v60 }
 0x1da   : > { %4716 = vst [vmem:[%s6298_s13 + $0x18] sm:$0xff] %v4692_v2  }
 0x1df   : > { %v5070_v4 = vpop.f32.mrb[64].mxu0 }
 0x1e0   : > { %v4190_v46 = vpop.f32.mrb[65].mxu0 }
 0x1e1   : > { %v5071_v45 = vpop.f32.mrb[66].mxu0 }
 0x1e2   : > { %v4702_v39 = vpack.c.bf16 %v5071_v45, %v5070_v4  ;;  %v4193_v47 = vpop.f32.mrb[67].mxu0 }
 0x1e3   : > { %v4697_v5 = vpack.c.bf16 %v4193_v47, %v4190_v46 }
 0x1e4   : > { %4717 = vst [vmem:[%s297_s16 + $0x8] sm:$0xff] %v4702_v39  }
 0x1e5   : > { %4698 = vst [vmem:[%s297_s16] sm:$0xff] %v4697_v5  }
 0x1e9   : > { %v5074_v48 = vpop.f32.mrb[64].mxu1 }
 0x1ea   : > { %v4206_v3 = vpop.f32.mrb[65].mxu1 }
 0x1eb   : > { %v5075_v43 = vpop.f32.mrb[66].mxu1 }
 0x1ec   : > { %v4712_v7 = vpack.c.bf16 %v5075_v43, %v5074_v48  ;;  %v4209_v8 = vpop.f32.mrb[67].mxu1 }
 0x1ed   : > { %v4707_v62 = vpack.c.bf16 %v4209_v8, %v4206_v3 }
 0x1ee   : > { %4719 = vst [vmem:[%s297_s16 + $0x18] sm:$0xff] %v4712_v7  }
 0x1ef   : > { %4718 = vst [vmem:[%s297_s16 + $0x10] sm:$0xff] %v4707_v62  }
 0x1f0 PF: > { %s17_s23 = sadd.s32 1, %s5387_s23   ;;  %s6335_s21 = smov %s5383_s22 }
 0x1f1   : > { %p14_p5 = scmp.ge.s32.totalorder %s17_s23, 4   ;;  %s6336_s22 = smov %s6338_s24 }
 0x1f3   :  { %16 = sbr.rel (!%p14_p5) target bundleno = 2 (0x2), region = 93 }

</bundles_post_ra>
